<compile_context>
chip_gen: v7x
topology: tpu7x:2x2x1
jax: 0.10.0
libtpu: 0.0.40
codegen_flags: <defaults>
</compile_context>

<pallas_src>
import numpy as np
import jax
import jax.numpy as jnp
from jax.experimental import pallas as pl
from jax.experimental.pallas import tpu as pltpu


LANE = 128  # pad channel dims to a multiple of this for lane-dense layouts


# ---------------------------------------------------------------------------
# Fused per-stage kernel: proj conv -> bilinear up -> add skip -> node conv
# ---------------------------------------------------------------------------
def _fused_ida_stage_kernel(x_ref, skip_ref, pw_ref, ps_ref, pb_ref,
                            uw_ref, uh_ref, nw_ref, ns_ref, nb_ref,
                            o_ref,
                            xpad_ref, sbuf_ref, zpad_ref):
    _, Hin, Win, Ci = x_ref.shape
    _, Hout, Wout, Co = o_ref.shape
    bf16 = jnp.bfloat16
    f32 = jnp.float32
    taps = [(dy, dx) for dy in range(3) for dx in range(3)]

    # ---- refresh the 1-pixel zero halo (border only; interiors are fully
    #      overwritten below, so no full-buffer memset per grid step) --------
    def zero_border(ref):
        hp, wp, cc = ref.shape
        ref[0:1, :, :] = jnp.zeros((1, wp, cc), ref.dtype)
        ref[hp - 1:hp, :, :] = jnp.zeros((1, wp, cc), ref.dtype)
        ref[:, 0:1, :] = jnp.zeros((hp, 1, cc), ref.dtype)
        ref[:, wp - 1:wp, :] = jnp.zeros((hp, 1, cc), ref.dtype)

    zero_border(xpad_ref)
    zero_border(zpad_ref)

    # ---- proj 3x3 conv (+folded BN+ReLU): 9 shifted-tap MXU matmuls -------
    xpad_ref[1:Hin + 1, 1:Win + 1, :] = x_ref[0]
    acc = None
    for k, (dy, dx) in enumerate(taps):
        patch = xpad_ref[dy:dy + Hin, dx:dx + Win, :].reshape(Hin * Win, Ci)
        part = jnp.dot(patch, pw_ref[k], preferred_element_type=f32)
        acc = part if acc is None else acc + part
    y = jnp.maximum(acc * ps_ref[...] + pb_ref[...], 0.0)        # f32 epilogue

    # ---- separable bilinear upsample on the MXU ----------------------------
    # W pass: batched matmul over input rows (flash-attention einsum pattern).
    y3 = y.astype(bf16).reshape(Hin, Win, Co)
    uwb = jnp.broadcast_to(uw_ref[...][None], (Hin, Wout, Win))
    s = jax.lax.dot_general(uwb, y3, (((2,), (1,)), ((0,), (0,))),
                            preferred_element_type=f32)          # (Hin, Wout, Co)
    # H pass: single 2D matmul on a lane-dense (Hin, Wout*Co) view; columns
    # are scattered with 128-aligned lane offsets (no lane-crossing reshape).
    for p in range(Wout):
        sbuf_ref[:, p * Co:(p + 1) * Co] = (
            s[:, p:p + 1, :].reshape(Hin, Co).astype(bf16))
    up2 = jnp.dot(uh_ref[...], sbuf_ref[...],
                  preferred_element_type=f32)                    # (Hout, Wout*Co)

    # ---- residual add (f32) + node-conv halo fill, column by column --------
    skip3 = skip_ref[0]                                          # (Hout, Wout, Co) bf16
    for p in range(Wout):
        col = (up2[:, p * Co:(p + 1) * Co]
               + skip3[:, p:p + 1, :].reshape(Hout, Co).astype(f32))
        zpad_ref[1:Hout + 1, p + 1:p + 2, :] = col.astype(bf16).reshape(Hout, 1, Co)

    # ---- node 3x3 conv (+folded BN+ReLU): 9 shifted-tap MXU matmuls -------
    acc2 = None
    for k, (dy, dx) in enumerate(taps):
        patch = zpad_ref[dy:dy + Hout, dx:dx + Wout, :].reshape(Hout * Wout, Co)
        part = jnp.dot(patch, nw_ref[k], preferred_element_type=f32)
        acc2 = part if acc2 is None else acc2 + part
    out = jnp.maximum(acc2 * ns_ref[...] + nb_ref[...], 0.0)     # f32 epilogue
    o_ref[0] = out.reshape(Hout, Wout, Co).astype(o_ref.dtype)


def fused_ida_stage(x, skip, p):
    """One IDAUp stage: node(up(proj(x)) + skip), fused in a single kernel.

    x:    (N, Hin, Win, ci_p)  bf16, channel-padded to a multiple of 128
    skip: (N, Hout, Wout, co_p) bf16, channel-padded
    out:  (N, Hout, Wout, co_p) bf16
    """
    N, Hin, Win, Ci = x.shape
    Hout, Wout, Co = p["hout"], p["wout"], p["co_p"]
    assert Ci == p["ci_p"]
    assert skip.shape == (N, Hout, Wout, Co), (skip.shape, (N, Hout, Wout, Co))

    return pl.pallas_call(
        _fused_ida_stage_kernel,
        out_shape=jax.ShapeDtypeStruct((N, Hout, Wout, Co), jnp.bfloat16),
        grid=(N,),
        in_specs=[
            pl.BlockSpec((1, Hin, Win, Ci), lambda n: (n, 0, 0, 0)),      # x
            pl.BlockSpec((1, Hout, Wout, Co), lambda n: (n, 0, 0, 0)),    # skip
            pl.BlockSpec((9, Ci, Co), lambda n: (0, 0, 0)),               # proj w (bf16)
            pl.BlockSpec((1, Co), lambda n: (0, 0)),                      # proj scale
            pl.BlockSpec((1, Co), lambda n: (0, 0)),                      # proj bias
            pl.BlockSpec((Wout, Win), lambda n: (0, 0)),                  # Uw (bf16)
            pl.BlockSpec((Hout, Hin), lambda n: (0, 0)),                  # Uh (bf16)
            pl.BlockSpec((9, Co, Co), lambda n: (0, 0, 0)),               # node w (bf16)
            pl.BlockSpec((1, Co), lambda n: (0, 0)),                      # node scale
            pl.BlockSpec((1, Co), lambda n: (0, 0)),                      # node bias
        ],
        out_specs=pl.BlockSpec((1, Hout, Wout, Co), lambda n: (n, 0, 0, 0)),
        scratch_shapes=[
            pltpu.VMEM((Hin + 2, Win + 2, Ci), jnp.bfloat16),     # proj halo buffer
            pltpu.VMEM((Hin, Wout * Co), jnp.bfloat16),           # lane-dense H-pass input
            pltpu.VMEM((Hout + 2, Wout + 2, Co), jnp.bfloat16),   # node halo buffer
        ],
        compiler_params=pltpu.CompilerParams(
            dimension_semantics=("parallel",),
            vmem_limit_bytes=48 * 1024 * 1024,   # <=48 MiB: safe on v7x, raised vs default
        ),
    )(x, skip, p["proj_wk"], p["proj_sk"], p["proj_bk"],
      p["uw"], p["uh"], p["node_wk"], p["node_sk"], p["node_bk"])


# ---------------------------------------------------------------------------
# Wrapper mirroring IDAUp.forward(layers, startp, endp)
# ---------------------------------------------------------------------------
def _pad_nhwc_bf16(x, cp):
    c = x.shape[-1]
    if c < cp:
        x = jnp.pad(x, ((0, 0), (0, 0), (0, 0), (0, cp - c)))
    return x.astype(jnp.bfloat16)


def ida_up_forward(layers, startp, endp, params):
    layers = list(layers)
    co_p = params[1]["co_p"]
    skip = _pad_nhwc_bf16(layers[startp].astype(jnp.float32), co_p)
    for i in range(startp + 1, endp):
        p = params[i - startp]
        x = _pad_nhwc_bf16(layers[i].astype(jnp.float32), p["ci_p"])
        skip = fused_ida_stage(x, skip, p)          # bf16, padded channels
        layers[i] = skip[..., :p["cout"]]           # expose original channels
    return layers


# ---------------------------------------------------------------------------
# Plain-JAX references (dt=bf16 mirrors the kernel's quantization)
# ---------------------------------------------------------------------------
def _conv3x3_bn_relu_ref(x, w, scale, bias, dt):
    y = jax.lax.conv_general_dilated(
        x.astype(dt), w.astype(dt), (1, 1), "SAME",
        dimension_numbers=("NHWC", "HWIO", "NHWC"),
        preferred_element_type=jnp.float32)
    return jnp.maximum(y * scale + bias, 0.0)


def _stage_ref(x, skip, p, dt):
    y = _conv3x3_bn_relu_ref(x, p["proj_w"], p["proj_scale"], p["proj_bias"], dt)
    u = p["u_mat"].astype(dt)
    s = jnp.einsum("pw,nhwc->nhpc", u, y.astype(dt),
                   preferred_element_type=jnp.float32)            # W pass
    up = jnp.einsum("oh,nhpc->nopc", u, s.astype(dt),
                    preferred_element_type=jnp.float32)           # H pass
    z = up + skip.astype(dt).astype(jnp.float32)
    return _conv3x3_bn_relu_ref(z, p["node_w"], p["node_scale"], p["node_bias"], dt)


def ida_up_forward_ref(layers, startp, endp, params, dt):
    layers = list(layers)
    for i in range(startp + 1, endp):
        layers[i] = _stage_ref(layers[i], layers[i - 1], params[i - startp], dt)
    return layers


# ---------------------------------------------------------------------------
# Deterministic parameter construction (mirrors IDAUp.__init__ shapes)
# ---------------------------------------------------------------------------
def _bilinear_1d(f):
    k = 2 * f
    c = (2 * f - 1 - f % 2) / (2.0 * f)
    return np.array([1.0 - abs(i / f - c) for i in range(k)], dtype=np.float32)


def _upsample_matrix(hin, f):
    # ConvTranspose2d(kernel 2f, stride f, pad f//2): out[o] += x[i] * w1[o + pad - i*f]
    k = 2 * f
    pad = f // 2
    hout = (hin - 1) * f - 2 * pad + k
    w1 = _bilinear_1d(f)
    U = np.zeros((hout, hin), np.float32)
    for oy in range(hout):
        for iy in range(hin):
            t = oy + pad - iy * f
            if 0 <= t < k:
                U[oy, iy] = w1[t]
    return U


def _fold_bn(conv_bias, gamma, beta, mean, var, eps=1e-5):
    s = gamma / jnp.sqrt(var + eps)
    return s.reshape(1, -1), ((conv_bias - mean) * s + beta).reshape(1, -1)


def _round_up(v, m):
    return ((v + m - 1) // m) * m


def _pad_weight(w, ci_p, co_p):
    kh, kw, ci, co = w.shape
    wp = jnp.zeros((kh, kw, ci_p, co_p), jnp.float32).at[:, :, :ci, :co].set(w)
    return wp.reshape(kh * kw, ci_p, co_p).astype(jnp.bfloat16)


def _pad_row(v, cp):
    return jnp.pad(v, ((0, 0), (0, cp - v.shape[-1])))


def make_params(o, channels, up_f, spatial, key):
    params = {}
    co_p = _round_up(o, LANE)
    keys = jax.random.split(key, 2 * (len(channels) - 1))
    ki = 0
    for j in range(1, len(channels)):
        c = channels[j]
        f = int(up_f[j])
        hin = spatial[j]
        ci_p = _round_up(c, LANE)
        idx = jnp.arange(o, dtype=jnp.float32)

        proj_w = 0.1 * jax.random.normal(keys[ki], (3, 3, c, o), jnp.float32)
        ki += 1
        proj_scale, proj_bias = _fold_bn(
            0.01 * idx - 0.05, 1.0 + 0.05 * idx, 0.02 * idx, 0.01 * idx, 1.0 + 0.1 * idx)

        node_w = 0.1 * jax.random.normal(keys[ki], (3, 3, o, o), jnp.float32)
        ki += 1
        node_scale, node_bias = _fold_bn(
            0.02 * idx - 0.03, 1.0 - 0.03 * idx, -0.01 * idx, 0.005 * idx, 1.0 + 0.05 * idx)

        U = _upsample_matrix(hin, f)        # square spatial -> same matrix for H and W
        hout = U.shape[0]
        u_mat = jnp.asarray(U)              # (hout, hin) f32 (bilinear weights exact in bf16)

        params[j] = dict(
            # unpadded f32 for the references
            proj_w=proj_w, proj_scale=proj_scale, proj_bias=proj_bias,
            node_w=node_w, node_scale=node_scale, node_bias=node_bias,
            u_mat=u_mat,
            # kernel-side (channel-padded, lane-dense, bf16 matmul operands)
            proj_wk=_pad_weight(proj_w, ci_p, co_p),
            proj_sk=_pad_row(proj_scale, co_p), proj_bk=_pad_row(proj_bias, co_p),
            node_wk=_pad_weight(node_w, co_p, co_p),
            node_sk=_pad_row(node_scale, co_p), node_bk=_pad_row(node_bias, co_p),
            uh=u_mat.astype(jnp.bfloat16),                  # (Hout, Hin)
            uw=u_mat.astype(jnp.bfloat16),                  # (Wout, Win)
            hout=hout, wout=hout, cin=c, cout=o, ci_p=ci_p, co_p=co_p,
        )
    return params


# ---------------------------------------------------------------------------
if __name__ == "__main__":
    key = jax.random.PRNGKey(0)
    N = 2
    o = 8                         # IDAUp(o, channels, up_f)
    channels = [8, 16, 32]
    up_f = [1, 2, 4]
    spatial = [16, 8, 4]
    startp, endp = 0, 3
    assert channels[startp] == o  # residual add requires matching channel count

    kdata, kparam = jax.random.split(key)
    dkeys = jax.random.split(kdata, len(channels))
    layers = [
        jax.random.normal(dkeys[i], (N, spatial[i], spatial[i], channels[i]), jnp.float32)
        for i in range(len(channels))
    ]
    params = make_params(o, channels, up_f, spatial, kparam)

    out_layers = ida_up_forward(layers, startp, endp, params)
    out_layers = [jax.block_until_ready(x) for x in out_layers]

    # (1) per-stage check vs a plain-JAX reference mirroring the kernel's
    #     quantization (bf16 matmul operands / bf16 chained activations,
    #     f32 accumulation and epilogues)
    for i in range(startp + 1, endp):
        skip_i = layers[i - 1] if i - 1 == startp else out_layers[i - 1]
        ref_i = _stage_ref(layers[i], skip_i.astype(jnp.float32),
                           params[i - startp], jnp.bfloat16)
        np.testing.assert_allclose(
            np.asarray(out_layers[i].astype(jnp.float32)),
            np.asarray(ref_i), rtol=2e-2, atol=2e-2)

    # (2) loose end-to-end check vs pure-f32 spec semantics
    ref_f32 = ida_up_forward_ref(layers, startp, endp, params, jnp.float32)
    for i in range(startp + 1, endp):
        np.testing.assert_allclose(
            np.asarray(out_layers[i].astype(jnp.float32)),
            np.asarray(ref_f32[i]), rtol=1e-1, atol=1e-1)

    print("KERNEL_OK")
</pallas_src>

<mosaic_0001>
module attributes {stable_mosaic.version = 11 : i64} {
  func.func @_fused_ida_stage_kernel(%arg0: i32, %arg1: memref<1x8x8x128xbf16, #tpu.memory_space<vmem>>, %arg2: memref<1x16x16x128xbf16, #tpu.memory_space<vmem>>, %arg3: memref<9x128x128xbf16, #tpu.memory_space<vmem>>, %arg4: memref<1x128xf32, #tpu.memory_space<vmem>>, %arg5: memref<1x128xf32, #tpu.memory_space<vmem>>, %arg6: memref<16x8xbf16, #tpu.memory_space<vmem>>, %arg7: memref<16x8xbf16, #tpu.memory_space<vmem>>, %arg8: memref<9x128x128xbf16, #tpu.memory_space<vmem>>, %arg9: memref<1x128xf32, #tpu.memory_space<vmem>>, %arg10: memref<1x128xf32, #tpu.memory_space<vmem>>, %arg11: memref<1x16x16x128xbf16, #tpu.memory_space<vmem>>, %arg12: memref<10x10x128xbf16, #tpu.memory_space<vmem>>, %arg13: memref<8x2048xbf16, #tpu.memory_space<vmem>>, %arg14: memref<18x18x128xbf16, #tpu.memory_space<vmem>>) attributes {dimension_semantics = [#tpu.dimension_semantics<parallel>], iteration_bounds = array<i64: 2>, scalar_prefetch = 0 : i64, scratch_operands = 3 : i64, tpu.core_type = #tpu.core_type<tc>, window_params = [{transform_indices = @transform_0, window_bounds = array<i64: 1, 8, 8, 128>}, {transform_indices = @transform_1, window_bounds = array<i64: 1, 16, 16, 128>}, {pipeline_mode = #tpu.pipeline_mode<synchronous>, transform_indices = @transform_2, window_bounds = array<i64: 9, 128, 128>}, {pipeline_mode = #tpu.pipeline_mode<synchronous>, transform_indices = @transform_3, window_bounds = array<i64: 1, 128>}, {pipeline_mode = #tpu.pipeline_mode<synchronous>, transform_indices = @transform_4, window_bounds = array<i64: 1, 128>}, {pipeline_mode = #tpu.pipeline_mode<synchronous>, transform_indices = @transform_5, window_bounds = array<i64: 16, 8>}, {pipeline_mode = #tpu.pipeline_mode<synchronous>, transform_indices = @transform_6, window_bounds = array<i64: 16, 8>}, {pipeline_mode = #tpu.pipeline_mode<synchronous>, transform_indices = @transform_7, window_bounds = array<i64: 9, 128, 128>}, {pipeline_mode = #tpu.pipeline_mode<synchronous>, transform_indices = @transform_8, window_bounds = array<i64: 1, 128>}, {pipeline_mode = #tpu.pipeline_mode<synchronous>, transform_indices = @transform_9, window_bounds = array<i64: 1, 128>}, {transform_indices = @transform_10, window_bounds = array<i64: 1, 16, 16, 128>}]} {
    %cst = arith.constant 0.000000e+00 : bf16
    %0 = vector.broadcast %cst : bf16 to vector<1x10x128xbf16>
    %c0 = arith.constant 0 : index
    %c0_0 = arith.constant 0 : index
    %c0_1 = arith.constant 0 : index
    %1 = vector.load %arg12[%c0, %c0_0, %c0_1] : memref<10x10x128xbf16, #tpu.memory_space<vmem>>, vector<1x10x128xbf16>
    tpu.vector_store %arg12[%c0, %c0_0, %c0_1], %0 {strides = array<i32>} : memref<10x10x128xbf16, #tpu.memory_space<vmem>>, vector<1x10x128xbf16>,
    %cst_2 = arith.constant 0.000000e+00 : bf16
    %2 = vector.broadcast %cst_2 : bf16 to vector<1x10x128xbf16>
    %c9 = arith.constant 9 : index
    %c0_3 = arith.constant 0 : index
    %c0_4 = arith.constant 0 : index
    %3 = vector.load %arg12[%c9, %c0_3, %c0_4] : memref<10x10x128xbf16, #tpu.memory_space<vmem>>, vector<1x10x128xbf16>
    tpu.vector_store %arg12[%c9, %c0_3, %c0_4], %2 {strides = array<i32>} : memref<10x10x128xbf16, #tpu.memory_space<vmem>>, vector<1x10x128xbf16>,
    %cst_5 = arith.constant 0.000000e+00 : bf16
    %4 = vector.broadcast %cst_5 : bf16 to vector<10x1x128xbf16>
    %c0_6 = arith.constant 0 : index
    %c0_7 = arith.constant 0 : index
    %c0_8 = arith.constant 0 : index
    %5 = vector.load %arg12[%c0_6, %c0_7, %c0_8] : memref<10x10x128xbf16, #tpu.memory_space<vmem>>, vector<10x1x128xbf16>
    tpu.vector_store %arg12[%c0_6, %c0_7, %c0_8], %4 {strides = array<i32>} : memref<10x10x128xbf16, #tpu.memory_space<vmem>>, vector<10x1x128xbf16>,
    %cst_9 = arith.constant 0.000000e+00 : bf16
    %6 = vector.broadcast %cst_9 : bf16 to vector<10x1x128xbf16>
    %c0_10 = arith.constant 0 : index
    %c9_11 = arith.constant 9 : index
    %c0_12 = arith.constant 0 : index
    %7 = vector.load %arg12[%c0_10, %c9_11, %c0_12] : memref<10x10x128xbf16, #tpu.memory_space<vmem>>, vector<10x1x128xbf16>
    tpu.vector_store %arg12[%c0_10, %c9_11, %c0_12], %6 {strides = array<i32>} : memref<10x10x128xbf16, #tpu.memory_space<vmem>>, vector<10x1x128xbf16>,
    %cst_13 = arith.constant 0.000000e+00 : bf16
    %8 = vector.broadcast %cst_13 : bf16 to vector<1x18x128xbf16>
    %c0_14 = arith.constant 0 : index
    %c0_15 = arith.constant 0 : index
    %c0_16 = arith.constant 0 : index
    %9 = vector.load %arg14[%c0_14, %c0_15, %c0_16] : memref<18x18x128xbf16, #tpu.memory_space<vmem>>, vector<1x18x128xbf16>
    tpu.vector_store %arg14[%c0_14, %c0_15, %c0_16], %8 {strides = array<i32>} : memref<18x18x128xbf16, #tpu.memory_space<vmem>>, vector<1x18x128xbf16>,
    %cst_17 = arith.constant 0.000000e+00 : bf16
    %10 = vector.broadcast %cst_17 : bf16 to vector<1x18x128xbf16>
    %c17 = arith.constant 17 : index
    %c0_18 = arith.constant 0 : index
    %c0_19 = arith.constant 0 : index
    %11 = vector.load %arg14[%c17, %c0_18, %c0_19] : memref<18x18x128xbf16, #tpu.memory_space<vmem>>, vector<1x18x128xbf16>
    tpu.vector_store %arg14[%c17, %c0_18, %c0_19], %10 {strides = array<i32>} : memref<18x18x128xbf16, #tpu.memory_space<vmem>>, vector<1x18x128xbf16>,
    %cst_20 = arith.constant 0.000000e+00 : bf16
    %12 = vector.broadcast %cst_20 : bf16 to vector<18x1x128xbf16>
    %c0_21 = arith.constant 0 : index
    %c0_22 = arith.constant 0 : index
    %c0_23 = arith.constant 0 : index
    %13 = vector.load %arg14[%c0_21, %c0_22, %c0_23] : memref<18x18x128xbf16, #tpu.memory_space<vmem>>, vector<18x1x128xbf16>
    tpu.vector_store %arg14[%c0_21, %c0_22, %c0_23], %12 {strides = array<i32>} : memref<18x18x128xbf16, #tpu.memory_space<vmem>>, vector<18x1x128xbf16>,
    %cst_24 = arith.constant 0.000000e+00 : bf16
    %14 = vector.broadcast %cst_24 : bf16 to vector<18x1x128xbf16>
    %c0_25 = arith.constant 0 : index
    %c17_26 = arith.constant 17 : index
    %c0_27 = arith.constant 0 : index
    %15 = vector.load %arg14[%c0_25, %c17_26, %c0_27] : memref<18x18x128xbf16, #tpu.memory_space<vmem>>, vector<18x1x128xbf16>
    tpu.vector_store %arg14[%c0_25, %c17_26, %c0_27], %14 {strides = array<i32>} : memref<18x18x128xbf16, #tpu.memory_space<vmem>>, vector<18x1x128xbf16>,
    %c0_28 = arith.constant 0 : index
    %c0_29 = arith.constant 0 : index
    %c0_30 = arith.constant 0 : index
    %c0_31 = arith.constant 0 : index
    %16 = vector.load %arg1[%c0_28, %c0_29, %c0_30, %c0_31] : memref<1x8x8x128xbf16, #tpu.memory_space<vmem>>, vector<1x8x8x128xbf16>
    %17 = vector.shape_cast %16 : vector<1x8x8x128xbf16> to vector<8x8x128xbf16>
    %c1 = arith.constant 1 : index
    %c1_32 = arith.constant 1 : index
    %c0_33 = arith.constant 0 : index
    %18 = vector.load %arg12[%c1, %c1_32, %c0_33] : memref<10x10x128xbf16, #tpu.memory_space<vmem>>, vector<8x8x128xbf16>
    tpu.vector_store %arg12[%c1, %c1_32, %c0_33], %17 {strides = array<i32>} : memref<10x10x128xbf16, #tpu.memory_space<vmem>>, vector<8x8x128xbf16>,
    %c0_34 = arith.constant 0 : index
    %c0_35 = arith.constant 0 : index
    %c0_36 = arith.constant 0 : index
    %19 = vector.load %arg12[%c0_34, %c0_35, %c0_36] : memref<10x10x128xbf16, #tpu.memory_space<vmem>>, vector<8x8x128xbf16>
    %20 = vector.shape_cast %19 : vector<8x8x128xbf16> to vector<64x128xbf16>
    %c0_37 = arith.constant 0 : index
    %c0_38 = arith.constant 0 : index
    %c0_39 = arith.constant 0 : index
    %21 = vector.load %arg3[%c0_37, %c0_38, %c0_39] : memref<9x128x128xbf16, #tpu.memory_space<vmem>>, vector<1x128x128xbf16>
    %22 = vector.shape_cast %21 : vector<1x128x128xbf16> to vector<128x128xbf16>
    %cst_40 = arith.constant dense<0.000000e+00> : vector<64x128xf32>
    %23 = tpu.matmul %20, %22, %cst_40 {dimension_numbers = #tpu.dot_dimension_numbers<[1], [0], [0], [1], [0, 0, 1, 1], [], []>} : vector<64x128xbf16>, vector<128x128xbf16>, vector<64x128xf32> -> vector<64x128xf32>
    %c0_41 = arith.constant 0 : index
    %c1_42 = arith.constant 1 : index
    %c0_43 = arith.constant 0 : index
    %24 = vector.load %arg12[%c0_41, %c1_42, %c0_43] : memref<10x10x128xbf16, #tpu.memory_space<vmem>>, vector<8x8x128xbf16>
    %25 = vector.shape_cast %24 : vector<8x8x128xbf16> to vector<64x128xbf16>
    %c1_44 = arith.constant 1 : index
    %c0_45 = arith.constant 0 : index
    %c0_46 = arith.constant 0 : index
    %26 = vector.load %arg3[%c1_44, %c0_45, %c0_46] : memref<9x128x128xbf16, #tpu.memory_space<vmem>>, vector<1x128x128xbf16>
    %27 = vector.shape_cast %26 : vector<1x128x128xbf16> to vector<128x128xbf16>
    %cst_47 = arith.constant dense<0.000000e+00> : vector<64x128xf32>
    %28 = tpu.matmul %25, %27, %cst_47 {dimension_numbers = #tpu.dot_dimension_numbers<[1], [0], [0], [1], [0, 0, 1, 1], [], []>} : vector<64x128xbf16>, vector<128x128xbf16>, vector<64x128xf32> -> vector<64x128xf32>
    %29 = arith.addf %23, %28 : vector<64x128xf32>
    %c0_48 = arith.constant 0 : index
    %c2 = arith.constant 2 : index
    %c0_49 = arith.constant 0 : index
    %30 = vector.load %arg12[%c0_48, %c2, %c0_49] : memref<10x10x128xbf16, #tpu.memory_space<vmem>>, vector<8x8x128xbf16>
    %31 = vector.shape_cast %30 : vector<8x8x128xbf16> to vector<64x128xbf16>
    %c2_50 = arith.constant 2 : index
    %c0_51 = arith.constant 0 : index
    %c0_52 = arith.constant 0 : index
    %32 = vector.load %arg3[%c2_50, %c0_51, %c0_52] : memref<9x128x128xbf16, #tpu.memory_space<vmem>>, vector<1x128x128xbf16>
    %33 = vector.shape_cast %32 : vector<1x128x128xbf16> to vector<128x128xbf16>
    %cst_53 = arith.constant dense<0.000000e+00> : vector<64x128xf32>
    %34 = tpu.matmul %31, %33, %cst_53 {dimension_numbers = #tpu.dot_dimension_numbers<[1], [0], [0], [1], [0, 0, 1, 1], [], []>} : vector<64x128xbf16>, vector<128x128xbf16>, vector<64x128xf32> -> vector<64x128xf32>
    %35 = arith.addf %29, %34 : vector<64x128xf32>
    %c1_54 = arith.constant 1 : index
    %c0_55 = arith.constant 0 : index
    %c0_56 = arith.constant 0 : index
    %36 = vector.load %arg12[%c1_54, %c0_55, %c0_56] : memref<10x10x128xbf16, #tpu.memory_space<vmem>>, vector<8x8x128xbf16>
    %37 = vector.shape_cast %36 : vector<8x8x128xbf16> to vector<64x128xbf16>
    %c3 = arith.constant 3 : index
    %c0_57 = arith.constant 0 : index
    %c0_58 = arith.constant 0 : index
    %38 = vector.load %arg3[%c3, %c0_57, %c0_58] : memref<9x128x128xbf16, #tpu.memory_space<vmem>>, vector<1x128x128xbf16>
    %39 = vector.shape_cast %38 : vector<1x128x128xbf16> to vector<128x128xbf16>
    %cst_59 = arith.constant dense<0.000000e+00> : vector<64x128xf32>
    %40 = tpu.matmul %37, %39, %cst_59 {dimension_numbers = #tpu.dot_dimension_numbers<[1], [0], [0], [1], [0, 0, 1, 1], [], []>} : vector<64x128xbf16>, vector<128x128xbf16>, vector<64x128xf32> -> vector<64x128xf32>
    %41 = arith.addf %35, %40 : vector<64x128xf32>
    %c1_60 = arith.constant 1 : index
    %c1_61 = arith.constant 1 : index
    %c0_62 = arith.constant 0 : index
    %42 = vector.load %arg12[%c1_60, %c1_61, %c0_62] : memref<10x10x128xbf16, #tpu.memory_space<vmem>>, vector<8x8x128xbf16>
    %43 = vector.shape_cast %42 : vector<8x8x128xbf16> to vector<64x128xbf16>
    %c4 = arith.constant 4 : index
    %c0_63 = arith.constant 0 : index
    %c0_64 = arith.constant 0 : index
    %44 = vector.load %arg3[%c4, %c0_63, %c0_64] : memref<9x128x128xbf16, #tpu.memory_space<vmem>>, vector<1x128x128xbf16>
    %45 = vector.shape_cast %44 : vector<1x128x128xbf16> to vector<128x128xbf16>
    %cst_65 = arith.constant dense<0.000000e+00> : vector<64x128xf32>
    %46 = tpu.matmul %43, %45, %cst_65 {dimension_numbers = #tpu.dot_dimension_numbers<[1], [0], [0], [1], [0, 0, 1, 1], [], []>} : vector<64x128xbf16>, vector<128x128xbf16>, vector<64x128xf32> -> vector<64x128xf32>
    %47 = arith.addf %41, %46 : vector<64x128xf32>
    %c1_66 = arith.constant 1 : index
    %c2_67 = arith.constant 2 : index
    %c0_68 = arith.constant 0 : index
    %48 = vector.load %arg12[%c1_66, %c2_67, %c0_68] : memref<10x10x128xbf16, #tpu.memory_space<vmem>>, vector<8x8x128xbf16>
    %49 = vector.shape_cast %48 : vector<8x8x128xbf16> to vector<64x128xbf16>
    %c5 = arith.constant 5 : index
    %c0_69 = arith.constant 0 : index
    %c0_70 = arith.constant 0 : index
    %50 = vector.load %arg3[%c5, %c0_69, %c0_70] : memref<9x128x128xbf16, #tpu.memory_space<vmem>>, vector<1x128x128xbf16>
    %51 = vector.shape_cast %50 : vector<1x128x128xbf16> to vector<128x128xbf16>
    %cst_71 = arith.constant dense<0.000000e+00> : vector<64x128xf32>
    %52 = tpu.matmul %49, %51, %cst_71 {dimension_numbers = #tpu.dot_dimension_numbers<[1], [0], [0], [1], [0, 0, 1, 1], [], []>} : vector<64x128xbf16>, vector<128x128xbf16>, vector<64x128xf32> -> vector<64x128xf32>
    %53 = arith.addf %47, %52 : vector<64x128xf32>
    %c2_72 = arith.constant 2 : index
    %c0_73 = arith.constant 0 : index
    %c0_74 = arith.constant 0 : index
    %54 = vector.load %arg12[%c2_72, %c0_73, %c0_74] : memref<10x10x128xbf16, #tpu.memory_space<vmem>>, vector<8x8x128xbf16>
    %55 = vector.shape_cast %54 : vector<8x8x128xbf16> to vector<64x128xbf16>
    %c6 = arith.constant 6 : index
    %c0_75 = arith.constant 0 : index
    %c0_76 = arith.constant 0 : index
    %56 = vector.load %arg3[%c6, %c0_75, %c0_76] : memref<9x128x128xbf16, #tpu.memory_space<vmem>>, vector<1x128x128xbf16>
    %57 = vector.shape_cast %56 : vector<1x128x128xbf16> to vector<128x128xbf16>
    %cst_77 = arith.constant dense<0.000000e+00> : vector<64x128xf32>
    %58 = tpu.matmul %55, %57, %cst_77 {dimension_numbers = #tpu.dot_dimension_numbers<[1], [0], [0], [1], [0, 0, 1, 1], [], []>} : vector<64x128xbf16>, vector<128x128xbf16>, vector<64x128xf32> -> vector<64x128xf32>
    %59 = arith.addf %53, %58 : vector<64x128xf32>
    %c2_78 = arith.constant 2 : index
    %c1_79 = arith.constant 1 : index
    %c0_80 = arith.constant 0 : index
    %60 = vector.load %arg12[%c2_78, %c1_79, %c0_80] : memref<10x10x128xbf16, #tpu.memory_space<vmem>>, vector<8x8x128xbf16>
    %61 = vector.shape_cast %60 : vector<8x8x128xbf16> to vector<64x128xbf16>
    %c7 = arith.constant 7 : index
    %c0_81 = arith.constant 0 : index
    %c0_82 = arith.constant 0 : index
    %62 = vector.load %arg3[%c7, %c0_81, %c0_82] : memref<9x128x128xbf16, #tpu.memory_space<vmem>>, vector<1x128x128xbf16>
    %63 = vector.shape_cast %62 : vector<1x128x128xbf16> to vector<128x128xbf16>
    %cst_83 = arith.constant dense<0.000000e+00> : vector<64x128xf32>
    %64 = tpu.matmul %61, %63, %cst_83 {dimension_numbers = #tpu.dot_dimension_numbers<[1], [0], [0], [1], [0, 0, 1, 1], [], []>} : vector<64x128xbf16>, vector<128x128xbf16>, vector<64x128xf32> -> vector<64x128xf32>
    %65 = arith.addf %59, %64 : vector<64x128xf32>
    %c2_84 = arith.constant 2 : index
    %c2_85 = arith.constant 2 : index
    %c0_86 = arith.constant 0 : index
    %66 = vector.load %arg12[%c2_84, %c2_85, %c0_86] : memref<10x10x128xbf16, #tpu.memory_space<vmem>>, vector<8x8x128xbf16>
    %67 = vector.shape_cast %66 : vector<8x8x128xbf16> to vector<64x128xbf16>
    %c8 = arith.constant 8 : index
    %c0_87 = arith.constant 0 : index
    %c0_88 = arith.constant 0 : index
    %68 = vector.load %arg3[%c8, %c0_87, %c0_88] : memref<9x128x128xbf16, #tpu.memory_space<vmem>>, vector<1x128x128xbf16>
    %69 = vector.shape_cast %68 : vector<1x128x128xbf16> to vector<128x128xbf16>
    %cst_89 = arith.constant dense<0.000000e+00> : vector<64x128xf32>
    %70 = tpu.matmul %67, %69, %cst_89 {dimension_numbers = #tpu.dot_dimension_numbers<[1], [0], [0], [1], [0, 0, 1, 1], [], []>} : vector<64x128xbf16>, vector<128x128xbf16>, vector<64x128xf32> -> vector<64x128xf32>
    %71 = arith.addf %65, %70 : vector<64x128xf32>
    %c0_90 = arith.constant 0 : index
    %c0_91 = arith.constant 0 : index
    %72 = vector.load %arg4[%c0_90, %c0_91] : memref<1x128xf32, #tpu.memory_space<vmem>>, vector<1x128xf32>
    %73 = vector.broadcast %72 : vector<1x128xf32> to vector<64x128xf32>
    %74 = arith.mulf %71, %73 : vector<64x128xf32>
    %c0_92 = arith.constant 0 : index
    %c0_93 = arith.constant 0 : index
    %75 = vector.load %arg5[%c0_92, %c0_93] : memref<1x128xf32, #tpu.memory_space<vmem>>, vector<1x128xf32>
    %76 = vector.broadcast %75 : vector<1x128xf32> to vector<64x128xf32>
    %77 = arith.addf %74, %76 : vector<64x128xf32>
    %cst_94 = arith.constant 0.000000e+00 : f32
    %78 = vector.broadcast %cst_94 : f32 to vector<64x128xf32>
    %79 = arith.maximumf %77, %78 : vector<64x128xf32>
    %80 = arith.truncf %79 : vector<64x128xf32> to vector<64x128xbf16>
    %81 = vector.shape_cast %80 : vector<64x128xbf16> to vector<8x8x128xbf16>
    %c0_95 = arith.constant 0 : index
    %c0_96 = arith.constant 0 : index
    %82 = vector.load %arg6[%c0_95, %c0_96] : memref<16x8xbf16, #tpu.memory_space<vmem>>, vector<16x8xbf16>
    %83 = vector.shape_cast %82 : vector<16x8xbf16> to vector<1x16x8xbf16>
    %84 = vector.shape_cast %83 : vector<1x16x8xbf16> to vector<1x16x8xbf16>
    %85 = vector.broadcast %84 : vector<1x16x8xbf16> to vector<8x16x8xbf16>
    %cst_97 = arith.constant dense<0.000000e+00> : vector<8x16x128xf32>
    %86 = tpu.matmul %85, %81, %cst_97 {dimension_numbers = #tpu.dot_dimension_numbers<[2], [1], [1], [2], [0, 0, 0, 1, 1, 2], [0], [0]>} : vector<8x16x8xbf16>, vector<8x8x128xbf16>, vector<8x16x128xf32> -> vector<8x16x128xf32>
    %87 = vector.extract_strided_slice %86 {offsets = [0, 0, 0], sizes = [8, 1, 128], strides = [1, 1, 1]} : vector<8x16x128xf32> to vector<8x1x128xf32>
    %88 = vector.shape_cast %87 : vector<8x1x128xf32> to vector<8x128xf32>
    %89 = arith.truncf %88 : vector<8x128xf32> to vector<8x128xbf16>
    %c0_98 = arith.constant 0 : index
    %c0_99 = arith.constant 0 : index
    %90 = vector.load %arg13[%c0_98, %c0_99] : memref<8x2048xbf16, #tpu.memory_space<vmem>>, vector<8x128xbf16>
    tpu.vector_store %arg13[%c0_98, %c0_99], %89 {strides = array<i32>} : memref<8x2048xbf16, #tpu.memory_space<vmem>>, vector<8x128xbf16>,
    %91 = vector.extract_strided_slice %86 {offsets = [0, 1, 0], sizes = [8, 1, 128], strides = [1, 1, 1]} : vector<8x16x128xf32> to vector<8x1x128xf32>
    %92 = vector.shape_cast %91 : vector<8x1x128xf32> to vector<8x128xf32>
    %93 = arith.truncf %92 : vector<8x128xf32> to vector<8x128xbf16>
    %c0_100 = arith.constant 0 : index
    %c128 = arith.constant 128 : index
    %94 = vector.load %arg13[%c0_100, %c128] : memref<8x2048xbf16, #tpu.memory_space<vmem>>, vector<8x128xbf16>
    tpu.vector_store %arg13[%c0_100, %c128], %93 {strides = array<i32>} : memref<8x2048xbf16, #tpu.memory_space<vmem>>, vector<8x128xbf16>,
    %95 = vector.extract_strided_slice %86 {offsets = [0, 2, 0], sizes = [8, 1, 128], strides = [1, 1, 1]} : vector<8x16x128xf32> to vector<8x1x128xf32>
    %96 = vector.shape_cast %95 : vector<8x1x128xf32> to vector<8x128xf32>
    %97 = arith.truncf %96 : vector<8x128xf32> to vector<8x128xbf16>
    %c0_101 = arith.constant 0 : index
    %c256 = arith.constant 256 : index
    %98 = vector.load %arg13[%c0_101, %c256] : memref<8x2048xbf16, #tpu.memory_space<vmem>>, vector<8x128xbf16>
    tpu.vector_store %arg13[%c0_101, %c256], %97 {strides = array<i32>} : memref<8x2048xbf16, #tpu.memory_space<vmem>>, vector<8x128xbf16>,
    %99 = vector.extract_strided_slice %86 {offsets = [0, 3, 0], sizes = [8, 1, 128], strides = [1, 1, 1]} : vector<8x16x128xf32> to vector<8x1x128xf32>
    %100 = vector.shape_cast %99 : vector<8x1x128xf32> to vector<8x128xf32>
    %101 = arith.truncf %100 : vector<8x128xf32> to vector<8x128xbf16>
    %c0_102 = arith.constant 0 : index
    %c384 = arith.constant 384 : index
    %102 = vector.load %arg13[%c0_102, %c384] : memref<8x2048xbf16, #tpu.memory_space<vmem>>, vector<8x128xbf16>
    tpu.vector_store %arg13[%c0_102, %c384], %101 {strides = array<i32>} : memref<8x2048xbf16, #tpu.memory_space<vmem>>, vector<8x128xbf16>,
    %103 = vector.extract_strided_slice %86 {offsets = [0, 4, 0], sizes = [8, 1, 128], strides = [1, 1, 1]} : vector<8x16x128xf32> to vector<8x1x128xf32>
    %104 = vector.shape_cast %103 : vector<8x1x128xf32> to vector<8x128xf32>
    %105 = arith.truncf %104 : vector<8x128xf32> to vector<8x128xbf16>
    %c0_103 = arith.constant 0 : index
    %c512 = arith.constant 512 : index
    %106 = vector.load %arg13[%c0_103, %c512] : memref<8x2048xbf16, #tpu.memory_space<vmem>>, vector<8x128xbf16>
    tpu.vector_store %arg13[%c0_103, %c512], %105 {strides = array<i32>} : memref<8x2048xbf16, #tpu.memory_space<vmem>>, vector<8x128xbf16>,
    %107 = vector.extract_strided_slice %86 {offsets = [0, 5, 0], sizes = [8, 1, 128], strides = [1, 1, 1]} : vector<8x16x128xf32> to vector<8x1x128xf32>
    %108 = vector.shape_cast %107 : vector<8x1x128xf32> to vector<8x128xf32>
    %109 = arith.truncf %108 : vector<8x128xf32> to vector<8x128xbf16>
    %c0_104 = arith.constant 0 : index
    %c640 = arith.constant 640 : index
    %110 = vector.load %arg13[%c0_104, %c640] : memref<8x2048xbf16, #tpu.memory_space<vmem>>, vector<8x128xbf16>
    tpu.vector_store %arg13[%c0_104, %c640], %109 {strides = array<i32>} : memref<8x2048xbf16, #tpu.memory_space<vmem>>, vector<8x128xbf16>,
    %111 = vector.extract_strided_slice %86 {offsets = [0, 6, 0], sizes = [8, 1, 128], strides = [1, 1, 1]} : vector<8x16x128xf32> to vector<8x1x128xf32>
    %112 = vector.shape_cast %111 : vector<8x1x128xf32> to vector<8x128xf32>
    %113 = arith.truncf %112 : vector<8x128xf32> to vector<8x128xbf16>
    %c0_105 = arith.constant 0 : index
    %c768 = arith.constant 768 : index
    %114 = vector.load %arg13[%c0_105, %c768] : memref<8x2048xbf16, #tpu.memory_space<vmem>>, vector<8x128xbf16>
    tpu.vector_store %arg13[%c0_105, %c768], %113 {strides = array<i32>} : memref<8x2048xbf16, #tpu.memory_space<vmem>>, vector<8x128xbf16>,
    %115 = vector.extract_strided_slice %86 {offsets = [0, 7, 0], sizes = [8, 1, 128], strides = [1, 1, 1]} : vector<8x16x128xf32> to vector<8x1x128xf32>
    %116 = vector.shape_cast %115 : vector<8x1x128xf32> to vector<8x128xf32>
    %117 = arith.truncf %116 : vector<8x128xf32> to vector<8x128xbf16>
    %c0_106 = arith.constant 0 : index
    %c896 = arith.constant 896 : index
    %118 = vector.load %arg13[%c0_106, %c896] : memref<8x2048xbf16, #tpu.memory_space<vmem>>, vector<8x128xbf16>
    tpu.vector_store %arg13[%c0_106, %c896], %117 {strides = array<i32>} : memref<8x2048xbf16, #tpu.memory_space<vmem>>, vector<8x128xbf16>,
    %119 = vector.extract_strided_slice %86 {offsets = [0, 8, 0], sizes = [8, 1, 128], strides = [1, 1, 1]} : vector<8x16x128xf32> to vector<8x1x128xf32>
    %120 = vector.shape_cast %119 : vector<8x1x128xf32> to vector<8x128xf32>
    %121 = arith.truncf %120 : vector<8x128xf32> to vector<8x128xbf16>
    %c0_107 = arith.constant 0 : index
    %c1024 = arith.constant 1024 : index
    %122 = vector.load %arg13[%c0_107, %c1024] : memref<8x2048xbf16, #tpu.memory_space<vmem>>, vector<8x128xbf16>
    tpu.vector_store %arg13[%c0_107, %c1024], %121 {strides = array<i32>} : memref<8x2048xbf16, #tpu.memory_space<vmem>>, vector<8x128xbf16>,
    %123 = vector.extract_strided_slice %86 {offsets = [0, 9, 0], sizes = [8, 1, 128], strides = [1, 1, 1]} : vector<8x16x128xf32> to vector<8x1x128xf32>
    %124 = vector.shape_cast %123 : vector<8x1x128xf32> to vector<8x128xf32>
    %125 = arith.truncf %124 : vector<8x128xf32> to vector<8x128xbf16>
    %c0_108 = arith.constant 0 : index
    %c1152 = arith.constant 1152 : index
    %126 = vector.load %arg13[%c0_108, %c1152] : memref<8x2048xbf16, #tpu.memory_space<vmem>>, vector<8x128xbf16>
    tpu.vector_store %arg13[%c0_108, %c1152], %125 {strides = array<i32>} : memref<8x2048xbf16, #tpu.memory_space<vmem>>, vector<8x128xbf16>,
    %127 = vector.extract_strided_slice %86 {offsets = [0, 10, 0], sizes = [8, 1, 128], strides = [1, 1, 1]} : vector<8x16x128xf32> to vector<8x1x128xf32>
    %128 = vector.shape_cast %127 : vector<8x1x128xf32> to vector<8x128xf32>
    %129 = arith.truncf %128 : vector<8x128xf32> to vector<8x128xbf16>
    %c0_109 = arith.constant 0 : index
    %c1280 = arith.constant 1280 : index
    %130 = vector.load %arg13[%c0_109, %c1280] : memref<8x2048xbf16, #tpu.memory_space<vmem>>, vector<8x128xbf16>
    tpu.vector_store %arg13[%c0_109, %c1280], %129 {strides = array<i32>} : memref<8x2048xbf16, #tpu.memory_space<vmem>>, vector<8x128xbf16>,
    %131 = vector.extract_strided_slice %86 {offsets = [0, 11, 0], sizes = [8, 1, 128], strides = [1, 1, 1]} : vector<8x16x128xf32> to vector<8x1x128xf32>
    %132 = vector.shape_cast %131 : vector<8x1x128xf32> to vector<8x128xf32>
    %133 = arith.truncf %132 : vector<8x128xf32> to vector<8x128xbf16>
    %c0_110 = arith.constant 0 : index
    %c1408 = arith.constant 1408 : index
    %134 = vector.load %arg13[%c0_110, %c1408] : memref<8x2048xbf16, #tpu.memory_space<vmem>>, vector<8x128xbf16>
    tpu.vector_store %arg13[%c0_110, %c1408], %133 {strides = array<i32>} : memref<8x2048xbf16, #tpu.memory_space<vmem>>, vector<8x128xbf16>,
    %135 = vector.extract_strided_slice %86 {offsets = [0, 12, 0], sizes = [8, 1, 128], strides = [1, 1, 1]} : vector<8x16x128xf32> to vector<8x1x128xf32>
    %136 = vector.shape_cast %135 : vector<8x1x128xf32> to vector<8x128xf32>
    %137 = arith.truncf %136 : vector<8x128xf32> to vector<8x128xbf16>
    %c0_111 = arith.constant 0 : index
    %c1536 = arith.constant 1536 : index
    %138 = vector.load %arg13[%c0_111, %c1536] : memref<8x2048xbf16, #tpu.memory_space<vmem>>, vector<8x128xbf16>
    tpu.vector_store %arg13[%c0_111, %c1536], %137 {strides = array<i32>} : memref<8x2048xbf16, #tpu.memory_space<vmem>>, vector<8x128xbf16>,
    %139 = vector.extract_strided_slice %86 {offsets = [0, 13, 0], sizes = [8, 1, 128], strides = [1, 1, 1]} : vector<8x16x128xf32> to vector<8x1x128xf32>
    %140 = vector.shape_cast %139 : vector<8x1x128xf32> to vector<8x128xf32>
    %141 = arith.truncf %140 : vector<8x128xf32> to vector<8x128xbf16>
    %c0_112 = arith.constant 0 : index
    %c1664 = arith.constant 1664 : index
    %142 = vector.load %arg13[%c0_112, %c1664] : memref<8x2048xbf16, #tpu.memory_space<vmem>>, vector<8x128xbf16>
    tpu.vector_store %arg13[%c0_112, %c1664], %141 {strides = array<i32>} : memref<8x2048xbf16, #tpu.memory_space<vmem>>, vector<8x128xbf16>,
    %143 = vector.extract_strided_slice %86 {offsets = [0, 14, 0], sizes = [8, 1, 128], strides = [1, 1, 1]} : vector<8x16x128xf32> to vector<8x1x128xf32>
    %144 = vector.shape_cast %143 : vector<8x1x128xf32> to vector<8x128xf32>
    %145 = arith.truncf %144 : vector<8x128xf32> to vector<8x128xbf16>
    %c0_113 = arith.constant 0 : index
    %c1792 = arith.constant 1792 : index
    %146 = vector.load %arg13[%c0_113, %c1792] : memref<8x2048xbf16, #tpu.memory_space<vmem>>, vector<8x128xbf16>
    tpu.vector_store %arg13[%c0_113, %c1792], %145 {strides = array<i32>} : memref<8x2048xbf16, #tpu.memory_space<vmem>>, vector<8x128xbf16>,
    %147 = vector.extract_strided_slice %86 {offsets = [0, 15, 0], sizes = [8, 1, 128], strides = [1, 1, 1]} : vector<8x16x128xf32> to vector<8x1x128xf32>
    %148 = vector.shape_cast %147 : vector<8x1x128xf32> to vector<8x128xf32>
    %149 = arith.truncf %148 : vector<8x128xf32> to vector<8x128xbf16>
    %c0_114 = arith.constant 0 : index
    %c1920 = arith.constant 1920 : index
    %150 = vector.load %arg13[%c0_114, %c1920] : memref<8x2048xbf16, #tpu.memory_space<vmem>>, vector<8x128xbf16>
    tpu.vector_store %arg13[%c0_114, %c1920], %149 {strides = array<i32>} : memref<8x2048xbf16, #tpu.memory_space<vmem>>, vector<8x128xbf16>,
    %c0_115 = arith.constant 0 : index
    %c0_116 = arith.constant 0 : index
    %151 = vector.load %arg7[%c0_115, %c0_116] : memref<16x8xbf16, #tpu.memory_space<vmem>>, vector<16x8xbf16>
    %c0_117 = arith.constant 0 : index
    %c0_118 = arith.constant 0 : index
    %152 = vector.load %arg13[%c0_117, %c0_118] : memref<8x2048xbf16, #tpu.memory_space<vmem>>, vector<8x2048xbf16>
    %cst_119 = arith.constant dense<0.000000e+00> : vector<16x2048xf32>
    %153 = tpu.matmul %151, %152, %cst_119 {dimension_numbers = #tpu.dot_dimension_numbers<[1], [0], [0], [1], [0, 0, 1, 1], [], []>} : vector<16x8xbf16>, vector<8x2048xbf16>, vector<16x2048xf32> -> vector<16x2048xf32>
    %c0_120 = arith.constant 0 : index
    %c0_121 = arith.constant 0 : index
    %c0_122 = arith.constant 0 : index
    %c0_123 = arith.constant 0 : index
    %154 = vector.load %arg2[%c0_120, %c0_121, %c0_122, %c0_123] : memref<1x16x16x128xbf16, #tpu.memory_space<vmem>>, vector<1x16x16x128xbf16>
    %155 = vector.shape_cast %154 : vector<1x16x16x128xbf16> to vector<16x16x128xbf16>
    %156 = vector.extract_strided_slice %153 {offsets = [0, 0], sizes = [16, 128], strides = [1, 1]} : vector<16x2048xf32> to vector<16x128xf32>
    %157 = vector.extract_strided_slice %155 {offsets = [0, 0, 0], sizes = [16, 1, 128], strides = [1, 1, 1]} : vector<16x16x128xbf16> to vector<16x1x128xbf16>
    %158 = vector.shape_cast %157 : vector<16x1x128xbf16> to vector<16x128xbf16>
    %159 = arith.extf %158 : vector<16x128xbf16> to vector<16x128xf32>
    %160 = arith.addf %156, %159 : vector<16x128xf32>
    %161 = arith.truncf %160 : vector<16x128xf32> to vector<16x128xbf16>
    %162 = vector.shape_cast %161 : vector<16x128xbf16> to vector<16x1x128xbf16>
    %c1_124 = arith.constant 1 : index
    %c1_125 = arith.constant 1 : index
    %c0_126 = arith.constant 0 : index
    %163 = vector.load %arg14[%c1_124, %c1_125, %c0_126] : memref<18x18x128xbf16, #tpu.memory_space<vmem>>, vector<16x1x128xbf16>
    tpu.vector_store %arg14[%c1_124, %c1_125, %c0_126], %162 {strides = array<i32>} : memref<18x18x128xbf16, #tpu.memory_space<vmem>>, vector<16x1x128xbf16>,
    %164 = vector.extract_strided_slice %153 {offsets = [0, 128], sizes = [16, 128], strides = [1, 1]} : vector<16x2048xf32> to vector<16x128xf32>
    %165 = vector.extract_strided_slice %155 {offsets = [0, 1, 0], sizes = [16, 1, 128], strides = [1, 1, 1]} : vector<16x16x128xbf16> to vector<16x1x128xbf16>
    %166 = vector.shape_cast %165 : vector<16x1x128xbf16> to vector<16x128xbf16>
    %167 = arith.extf %166 : vector<16x128xbf16> to vector<16x128xf32>
    %168 = arith.addf %164, %167 : vector<16x128xf32>
    %169 = arith.truncf %168 : vector<16x128xf32> to vector<16x128xbf16>
    %170 = vector.shape_cast %169 : vector<16x128xbf16> to vector<16x1x128xbf16>
    %c1_127 = arith.constant 1 : index
    %c2_128 = arith.constant 2 : index
    %c0_129 = arith.constant 0 : index
    %171 = vector.load %arg14[%c1_127, %c2_128, %c0_129] : memref<18x18x128xbf16, #tpu.memory_space<vmem>>, vector<16x1x128xbf16>
    tpu.vector_store %arg14[%c1_127, %c2_128, %c0_129], %170 {strides = array<i32>} : memref<18x18x128xbf16, #tpu.memory_space<vmem>>, vector<16x1x128xbf16>,
    %172 = vector.extract_strided_slice %153 {offsets = [0, 256], sizes = [16, 128], strides = [1, 1]} : vector<16x2048xf32> to vector<16x128xf32>
    %173 = vector.extract_strided_slice %155 {offsets = [0, 2, 0], sizes = [16, 1, 128], strides = [1, 1, 1]} : vector<16x16x128xbf16> to vector<16x1x128xbf16>
    %174 = vector.shape_cast %173 : vector<16x1x128xbf16> to vector<16x128xbf16>
    %175 = arith.extf %174 : vector<16x128xbf16> to vector<16x128xf32>
    %176 = arith.addf %172, %175 : vector<16x128xf32>
    %177 = arith.truncf %176 : vector<16x128xf32> to vector<16x128xbf16>
    %178 = vector.shape_cast %177 : vector<16x128xbf16> to vector<16x1x128xbf16>
    %c1_130 = arith.constant 1 : index
    %c3_131 = arith.constant 3 : index
    %c0_132 = arith.constant 0 : index
    %179 = vector.load %arg14[%c1_130, %c3_131, %c0_132] : memref<18x18x128xbf16, #tpu.memory_space<vmem>>, vector<16x1x128xbf16>
    tpu.vector_store %arg14[%c1_130, %c3_131, %c0_132], %178 {strides = array<i32>} : memref<18x18x128xbf16, #tpu.memory_space<vmem>>, vector<16x1x128xbf16>,
    %180 = vector.extract_strided_slice %153 {offsets = [0, 384], sizes = [16, 128], strides = [1, 1]} : vector<16x2048xf32> to vector<16x128xf32>
    %181 = vector.extract_strided_slice %155 {offsets = [0, 3, 0], sizes = [16, 1, 128], strides = [1, 1, 1]} : vector<16x16x128xbf16> to vector<16x1x128xbf16>
    %182 = vector.shape_cast %181 : vector<16x1x128xbf16> to vector<16x128xbf16>
    %183 = arith.extf %182 : vector<16x128xbf16> to vector<16x128xf32>
    %184 = arith.addf %180, %183 : vector<16x128xf32>
    %185 = arith.truncf %184 : vector<16x128xf32> to vector<16x128xbf16>
    %186 = vector.shape_cast %185 : vector<16x128xbf16> to vector<16x1x128xbf16>
    %c1_133 = arith.constant 1 : index
    %c4_134 = arith.constant 4 : index
    %c0_135 = arith.constant 0 : index
    %187 = vector.load %arg14[%c1_133, %c4_134, %c0_135] : memref<18x18x128xbf16, #tpu.memory_space<vmem>>, vector<16x1x128xbf16>
    tpu.vector_store %arg14[%c1_133, %c4_134, %c0_135], %186 {strides = array<i32>} : memref<18x18x128xbf16, #tpu.memory_space<vmem>>, vector<16x1x128xbf16>,
    %188 = vector.extract_strided_slice %153 {offsets = [0, 512], sizes = [16, 128], strides = [1, 1]} : vector<16x2048xf32> to vector<16x128xf32>
    %189 = vector.extract_strided_slice %155 {offsets = [0, 4, 0], sizes = [16, 1, 128], strides = [1, 1, 1]} : vector<16x16x128xbf16> to vector<16x1x128xbf16>
    %190 = vector.shape_cast %189 : vector<16x1x128xbf16> to vector<16x128xbf16>
    %191 = arith.extf %190 : vector<16x128xbf16> to vector<16x128xf32>
    %192 = arith.addf %188, %191 : vector<16x128xf32>
    %193 = arith.truncf %192 : vector<16x128xf32> to vector<16x128xbf16>
    %194 = vector.shape_cast %193 : vector<16x128xbf16> to vector<16x1x128xbf16>
    %c1_136 = arith.constant 1 : index
    %c5_137 = arith.constant 5 : index
    %c0_138 = arith.constant 0 : index
    %195 = vector.load %arg14[%c1_136, %c5_137, %c0_138] : memref<18x18x128xbf16, #tpu.memory_space<vmem>>, vector<16x1x128xbf16>
    tpu.vector_store %arg14[%c1_136, %c5_137, %c0_138], %194 {strides = array<i32>} : memref<18x18x128xbf16, #tpu.memory_space<vmem>>, vector<16x1x128xbf16>,
    %196 = vector.extract_strided_slice %153 {offsets = [0, 640], sizes = [16, 128], strides = [1, 1]} : vector<16x2048xf32> to vector<16x128xf32>
    %197 = vector.extract_strided_slice %155 {offsets = [0, 5, 0], sizes = [16, 1, 128], strides = [1, 1, 1]} : vector<16x16x128xbf16> to vector<16x1x128xbf16>
    %198 = vector.shape_cast %197 : vector<16x1x128xbf16> to vector<16x128xbf16>
    %199 = arith.extf %198 : vector<16x128xbf16> to vector<16x128xf32>
    %200 = arith.addf %196, %199 : vector<16x128xf32>
    %201 = arith.truncf %200 : vector<16x128xf32> to vector<16x128xbf16>
    %202 = vector.shape_cast %201 : vector<16x128xbf16> to vector<16x1x128xbf16>
    %c1_139 = arith.constant 1 : index
    %c6_140 = arith.constant 6 : index
    %c0_141 = arith.constant 0 : index
    %203 = vector.load %arg14[%c1_139, %c6_140, %c0_141] : memref<18x18x128xbf16, #tpu.memory_space<vmem>>, vector<16x1x128xbf16>
    tpu.vector_store %arg14[%c1_139, %c6_140, %c0_141], %202 {strides = array<i32>} : memref<18x18x128xbf16, #tpu.memory_space<vmem>>, vector<16x1x128xbf16>,
    %204 = vector.extract_strided_slice %153 {offsets = [0, 768], sizes = [16, 128], strides = [1, 1]} : vector<16x2048xf32> to vector<16x128xf32>
    %205 = vector.extract_strided_slice %155 {offsets = [0, 6, 0], sizes = [16, 1, 128], strides = [1, 1, 1]} : vector<16x16x128xbf16> to vector<16x1x128xbf16>
    %206 = vector.shape_cast %205 : vector<16x1x128xbf16> to vector<16x128xbf16>
    %207 = arith.extf %206 : vector<16x128xbf16> to vector<16x128xf32>
    %208 = arith.addf %204, %207 : vector<16x128xf32>
    %209 = arith.truncf %208 : vector<16x128xf32> to vector<16x128xbf16>
    %210 = vector.shape_cast %209 : vector<16x128xbf16> to vector<16x1x128xbf16>
    %c1_142 = arith.constant 1 : index
    %c7_143 = arith.constant 7 : index
    %c0_144 = arith.constant 0 : index
    %211 = vector.load %arg14[%c1_142, %c7_143, %c0_144] : memref<18x18x128xbf16, #tpu.memory_space<vmem>>, vector<16x1x128xbf16>
    tpu.vector_store %arg14[%c1_142, %c7_143, %c0_144], %210 {strides = array<i32>} : memref<18x18x128xbf16, #tpu.memory_space<vmem>>, vector<16x1x128xbf16>,
    %212 = vector.extract_strided_slice %153 {offsets = [0, 896], sizes = [16, 128], strides = [1, 1]} : vector<16x2048xf32> to vector<16x128xf32>
    %213 = vector.extract_strided_slice %155 {offsets = [0, 7, 0], sizes = [16, 1, 128], strides = [1, 1, 1]} : vector<16x16x128xbf16> to vector<16x1x128xbf16>
    %214 = vector.shape_cast %213 : vector<16x1x128xbf16> to vector<16x128xbf16>
    %215 = arith.extf %214 : vector<16x128xbf16> to vector<16x128xf32>
    %216 = arith.addf %212, %215 : vector<16x128xf32>
    %217 = arith.truncf %216 : vector<16x128xf32> to vector<16x128xbf16>
    %218 = vector.shape_cast %217 : vector<16x128xbf16> to vector<16x1x128xbf16>
    %c1_145 = arith.constant 1 : index
    %c8_146 = arith.constant 8 : index
    %c0_147 = arith.constant 0 : index
    %219 = vector.load %arg14[%c1_145, %c8_146, %c0_147] : memref<18x18x128xbf16, #tpu.memory_space<vmem>>, vector<16x1x128xbf16>
    tpu.vector_store %arg14[%c1_145, %c8_146, %c0_147], %218 {strides = array<i32>} : memref<18x18x128xbf16, #tpu.memory_space<vmem>>, vector<16x1x128xbf16>,
    %220 = vector.extract_strided_slice %153 {offsets = [0, 1024], sizes = [16, 128], strides = [1, 1]} : vector<16x2048xf32> to vector<16x128xf32>
    %221 = vector.extract_strided_slice %155 {offsets = [0, 8, 0], sizes = [16, 1, 128], strides = [1, 1, 1]} : vector<16x16x128xbf16> to vector<16x1x128xbf16>
    %222 = vector.shape_cast %221 : vector<16x1x128xbf16> to vector<16x128xbf16>
    %223 = arith.extf %222 : vector<16x128xbf16> to vector<16x128xf32>
    %224 = arith.addf %220, %223 : vector<16x128xf32>
    %225 = arith.truncf %224 : vector<16x128xf32> to vector<16x128xbf16>
    %226 = vector.shape_cast %225 : vector<16x128xbf16> to vector<16x1x128xbf16>
    %c1_148 = arith.constant 1 : index
    %c9_149 = arith.constant 9 : index
    %c0_150 = arith.constant 0 : index
    %227 = vector.load %arg14[%c1_148, %c9_149, %c0_150] : memref<18x18x128xbf16, #tpu.memory_space<vmem>>, vector<16x1x128xbf16>
    tpu.vector_store %arg14[%c1_148, %c9_149, %c0_150], %226 {strides = array<i32>} : memref<18x18x128xbf16, #tpu.memory_space<vmem>>, vector<16x1x128xbf16>,
    %228 = vector.extract_strided_slice %153 {offsets = [0, 1152], sizes = [16, 128], strides = [1, 1]} : vector<16x2048xf32> to vector<16x128xf32>
    %229 = vector.extract_strided_slice %155 {offsets = [0, 9, 0], sizes = [16, 1, 128], strides = [1, 1, 1]} : vector<16x16x128xbf16> to vector<16x1x128xbf16>
    %230 = vector.shape_cast %229 : vector<16x1x128xbf16> to vector<16x128xbf16>
    %231 = arith.extf %230 : vector<16x128xbf16> to vector<16x128xf32>
    %232 = arith.addf %228, %231 : vector<16x128xf32>
    %233 = arith.truncf %232 : vector<16x128xf32> to vector<16x128xbf16>
    %234 = vector.shape_cast %233 : vector<16x128xbf16> to vector<16x1x128xbf16>
    %c1_151 = arith.constant 1 : index
    %c10 = arith.constant 10 : index
    %c0_152 = arith.constant 0 : index
    %235 = vector.load %arg14[%c1_151, %c10, %c0_152] : memref<18x18x128xbf16, #tpu.memory_space<vmem>>, vector<16x1x128xbf16>
    tpu.vector_store %arg14[%c1_151, %c10, %c0_152], %234 {strides = array<i32>} : memref<18x18x128xbf16, #tpu.memory_space<vmem>>, vector<16x1x128xbf16>,
    %236 = vector.extract_strided_slice %153 {offsets = [0, 1280], sizes = [16, 128], strides = [1, 1]} : vector<16x2048xf32> to vector<16x128xf32>
    %237 = vector.extract_strided_slice %155 {offsets = [0, 10, 0], sizes = [16, 1, 128], strides = [1, 1, 1]} : vector<16x16x128xbf16> to vector<16x1x128xbf16>
    %238 = vector.shape_cast %237 : vector<16x1x128xbf16> to vector<16x128xbf16>
    %239 = arith.extf %238 : vector<16x128xbf16> to vector<16x128xf32>
    %240 = arith.addf %236, %239 : vector<16x128xf32>
    %241 = arith.truncf %240 : vector<16x128xf32> to vector<16x128xbf16>
    %242 = vector.shape_cast %241 : vector<16x128xbf16> to vector<16x1x128xbf16>
    %c1_153 = arith.constant 1 : index
    %c11 = arith.constant 11 : index
    %c0_154 = arith.constant 0 : index
    %243 = vector.load %arg14[%c1_153, %c11, %c0_154] : memref<18x18x128xbf16, #tpu.memory_space<vmem>>, vector<16x1x128xbf16>
    tpu.vector_store %arg14[%c1_153, %c11, %c0_154], %242 {strides = array<i32>} : memref<18x18x128xbf16, #tpu.memory_space<vmem>>, vector<16x1x128xbf16>,
    %244 = vector.extract_strided_slice %153 {offsets = [0, 1408], sizes = [16, 128], strides = [1, 1]} : vector<16x2048xf32> to vector<16x128xf32>
    %245 = vector.extract_strided_slice %155 {offsets = [0, 11, 0], sizes = [16, 1, 128], strides = [1, 1, 1]} : vector<16x16x128xbf16> to vector<16x1x128xbf16>
    %246 = vector.shape_cast %245 : vector<16x1x128xbf16> to vector<16x128xbf16>
    %247 = arith.extf %246 : vector<16x128xbf16> to vector<16x128xf32>
    %248 = arith.addf %244, %247 : vector<16x128xf32>
    %249 = arith.truncf %248 : vector<16x128xf32> to vector<16x128xbf16>
    %250 = vector.shape_cast %249 : vector<16x128xbf16> to vector<16x1x128xbf16>
    %c1_155 = arith.constant 1 : index
    %c12 = arith.constant 12 : index
    %c0_156 = arith.constant 0 : index
    %251 = vector.load %arg14[%c1_155, %c12, %c0_156] : memref<18x18x128xbf16, #tpu.memory_space<vmem>>, vector<16x1x128xbf16>
    tpu.vector_store %arg14[%c1_155, %c12, %c0_156], %250 {strides = array<i32>} : memref<18x18x128xbf16, #tpu.memory_space<vmem>>, vector<16x1x128xbf16>,
    %252 = vector.extract_strided_slice %153 {offsets = [0, 1536], sizes = [16, 128], strides = [1, 1]} : vector<16x2048xf32> to vector<16x128xf32>
    %253 = vector.extract_strided_slice %155 {offsets = [0, 12, 0], sizes = [16, 1, 128], strides = [1, 1, 1]} : vector<16x16x128xbf16> to vector<16x1x128xbf16>
    %254 = vector.shape_cast %253 : vector<16x1x128xbf16> to vector<16x128xbf16>
    %255 = arith.extf %254 : vector<16x128xbf16> to vector<16x128xf32>
    %256 = arith.addf %252, %255 : vector<16x128xf32>
    %257 = arith.truncf %256 : vector<16x128xf32> to vector<16x128xbf16>
    %258 = vector.shape_cast %257 : vector<16x128xbf16> to vector<16x1x128xbf16>
    %c1_157 = arith.constant 1 : index
    %c13 = arith.constant 13 : index
    %c0_158 = arith.constant 0 : index
    %259 = vector.load %arg14[%c1_157, %c13, %c0_158] : memref<18x18x128xbf16, #tpu.memory_space<vmem>>, vector<16x1x128xbf16>
    tpu.vector_store %arg14[%c1_157, %c13, %c0_158], %258 {strides = array<i32>} : memref<18x18x128xbf16, #tpu.memory_space<vmem>>, vector<16x1x128xbf16>,
    %260 = vector.extract_strided_slice %153 {offsets = [0, 1664], sizes = [16, 128], strides = [1, 1]} : vector<16x2048xf32> to vector<16x128xf32>
    %261 = vector.extract_strided_slice %155 {offsets = [0, 13, 0], sizes = [16, 1, 128], strides = [1, 1, 1]} : vector<16x16x128xbf16> to vector<16x1x128xbf16>
    %262 = vector.shape_cast %261 : vector<16x1x128xbf16> to vector<16x128xbf16>
    %263 = arith.extf %262 : vector<16x128xbf16> to vector<16x128xf32>
    %264 = arith.addf %260, %263 : vector<16x128xf32>
    %265 = arith.truncf %264 : vector<16x128xf32> to vector<16x128xbf16>
    %266 = vector.shape_cast %265 : vector<16x128xbf16> to vector<16x1x128xbf16>
    %c1_159 = arith.constant 1 : index
    %c14 = arith.constant 14 : index
    %c0_160 = arith.constant 0 : index
    %267 = vector.load %arg14[%c1_159, %c14, %c0_160] : memref<18x18x128xbf16, #tpu.memory_space<vmem>>, vector<16x1x128xbf16>
    tpu.vector_store %arg14[%c1_159, %c14, %c0_160], %266 {strides = array<i32>} : memref<18x18x128xbf16, #tpu.memory_space<vmem>>, vector<16x1x128xbf16>,
    %268 = vector.extract_strided_slice %153 {offsets = [0, 1792], sizes = [16, 128], strides = [1, 1]} : vector<16x2048xf32> to vector<16x128xf32>
    %269 = vector.extract_strided_slice %155 {offsets = [0, 14, 0], sizes = [16, 1, 128], strides = [1, 1, 1]} : vector<16x16x128xbf16> to vector<16x1x128xbf16>
    %270 = vector.shape_cast %269 : vector<16x1x128xbf16> to vector<16x128xbf16>
    %271 = arith.extf %270 : vector<16x128xbf16> to vector<16x128xf32>
    %272 = arith.addf %268, %271 : vector<16x128xf32>
    %273 = arith.truncf %272 : vector<16x128xf32> to vector<16x128xbf16>
    %274 = vector.shape_cast %273 : vector<16x128xbf16> to vector<16x1x128xbf16>
    %c1_161 = arith.constant 1 : index
    %c15 = arith.constant 15 : index
    %c0_162 = arith.constant 0 : index
    %275 = vector.load %arg14[%c1_161, %c15, %c0_162] : memref<18x18x128xbf16, #tpu.memory_space<vmem>>, vector<16x1x128xbf16>
    tpu.vector_store %arg14[%c1_161, %c15, %c0_162], %274 {strides = array<i32>} : memref<18x18x128xbf16, #tpu.memory_space<vmem>>, vector<16x1x128xbf16>,
    %276 = vector.extract_strided_slice %153 {offsets = [0, 1920], sizes = [16, 128], strides = [1, 1]} : vector<16x2048xf32> to vector<16x128xf32>
    %277 = vector.extract_strided_slice %155 {offsets = [0, 15, 0], sizes = [16, 1, 128], strides = [1, 1, 1]} : vector<16x16x128xbf16> to vector<16x1x128xbf16>
    %278 = vector.shape_cast %277 : vector<16x1x128xbf16> to vector<16x128xbf16>
    %279 = arith.extf %278 : vector<16x128xbf16> to vector<16x128xf32>
    %280 = arith.addf %276, %279 : vector<16x128xf32>
    %281 = arith.truncf %280 : vector<16x128xf32> to vector<16x128xbf16>
    %282 = vector.shape_cast %281 : vector<16x128xbf16> to vector<16x1x128xbf16>
    %c1_163 = arith.constant 1 : index
    %c16 = arith.constant 16 : index
    %c0_164 = arith.constant 0 : index
    %283 = vector.load %arg14[%c1_163, %c16, %c0_164] : memref<18x18x128xbf16, #tpu.memory_space<vmem>>, vector<16x1x128xbf16>
    tpu.vector_store %arg14[%c1_163, %c16, %c0_164], %282 {strides = array<i32>} : memref<18x18x128xbf16, #tpu.memory_space<vmem>>, vector<16x1x128xbf16>,
    %c0_165 = arith.constant 0 : index
    %c0_166 = arith.constant 0 : index
    %c0_167 = arith.constant 0 : index
    %284 = vector.load %arg14[%c0_165, %c0_166, %c0_167] : memref<18x18x128xbf16, #tpu.memory_space<vmem>>, vector<16x16x128xbf16>
    %285 = vector.shape_cast %284 : vector<16x16x128xbf16> to vector<256x128xbf16>
    %c0_168 = arith.constant 0 : index
    %c0_169 = arith.constant 0 : index
    %c0_170 = arith.constant 0 : index
    %286 = vector.load %arg8[%c0_168, %c0_169, %c0_170] : memref<9x128x128xbf16, #tpu.memory_space<vmem>>, vector<1x128x128xbf16>
    %287 = vector.shape_cast %286 : vector<1x128x128xbf16> to vector<128x128xbf16>
    %cst_171 = arith.constant dense<0.000000e+00> : vector<256x128xf32>
    %288 = tpu.matmul %285, %287, %cst_171 {dimension_numbers = #tpu.dot_dimension_numbers<[1], [0], [0], [1], [0, 0, 1, 1], [], []>} : vector<256x128xbf16>, vector<128x128xbf16>, vector<256x128xf32> -> vector<256x128xf32>
    %c0_172 = arith.constant 0 : index
    %c1_173 = arith.constant 1 : index
    %c0_174 = arith.constant 0 : index
    %289 = vector.load %arg14[%c0_172, %c1_173, %c0_174] : memref<18x18x128xbf16, #tpu.memory_space<vmem>>, vector<16x16x128xbf16>
    %290 = vector.shape_cast %289 : vector<16x16x128xbf16> to vector<256x128xbf16>
    %c1_175 = arith.constant 1 : index
    %c0_176 = arith.constant 0 : index
    %c0_177 = arith.constant 0 : index
    %291 = vector.load %arg8[%c1_175, %c0_176, %c0_177] : memref<9x128x128xbf16, #tpu.memory_space<vmem>>, vector<1x128x128xbf16>
    %292 = vector.shape_cast %291 : vector<1x128x128xbf16> to vector<128x128xbf16>
    %cst_178 = arith.constant dense<0.000000e+00> : vector<256x128xf32>
    %293 = tpu.matmul %290, %292, %cst_178 {dimension_numbers = #tpu.dot_dimension_numbers<[1], [0], [0], [1], [0, 0, 1, 1], [], []>} : vector<256x128xbf16>, vector<128x128xbf16>, vector<256x128xf32> -> vector<256x128xf32>
    %294 = arith.addf %288, %293 : vector<256x128xf32>
    %c0_179 = arith.constant 0 : index
    %c2_180 = arith.constant 2 : index
    %c0_181 = arith.constant 0 : index
    %295 = vector.load %arg14[%c0_179, %c2_180, %c0_181] : memref<18x18x128xbf16, #tpu.memory_space<vmem>>, vector<16x16x128xbf16>
    %296 = vector.shape_cast %295 : vector<16x16x128xbf16> to vector<256x128xbf16>
    %c2_182 = arith.constant 2 : index
    %c0_183 = arith.constant 0 : index
    %c0_184 = arith.constant 0 : index
    %297 = vector.load %arg8[%c2_182, %c0_183, %c0_184] : memref<9x128x128xbf16, #tpu.memory_space<vmem>>, vector<1x128x128xbf16>
    %298 = vector.shape_cast %297 : vector<1x128x128xbf16> to vector<128x128xbf16>
    %cst_185 = arith.constant dense<0.000000e+00> : vector<256x128xf32>
    %299 = tpu.matmul %296, %298, %cst_185 {dimension_numbers = #tpu.dot_dimension_numbers<[1], [0], [0], [1], [0, 0, 1, 1], [], []>} : vector<256x128xbf16>, vector<128x128xbf16>, vector<256x128xf32> -> vector<256x128xf32>
    %300 = arith.addf %294, %299 : vector<256x128xf32>
    %c1_186 = arith.constant 1 : index
    %c0_187 = arith.constant 0 : index
    %c0_188 = arith.constant 0 : index
    %301 = vector.load %arg14[%c1_186, %c0_187, %c0_188] : memref<18x18x128xbf16, #tpu.memory_space<vmem>>, vector<16x16x128xbf16>
    %302 = vector.shape_cast %301 : vector<16x16x128xbf16> to vector<256x128xbf16>
    %c3_189 = arith.constant 3 : index
    %c0_190 = arith.constant 0 : index
    %c0_191 = arith.constant 0 : index
    %303 = vector.load %arg8[%c3_189, %c0_190, %c0_191] : memref<9x128x128xbf16, #tpu.memory_space<vmem>>, vector<1x128x128xbf16>
    %304 = vector.shape_cast %303 : vector<1x128x128xbf16> to vector<128x128xbf16>
    %cst_192 = arith.constant dense<0.000000e+00> : vector<256x128xf32>
    %305 = tpu.matmul %302, %304, %cst_192 {dimension_numbers = #tpu.dot_dimension_numbers<[1], [0], [0], [1], [0, 0, 1, 1], [], []>} : vector<256x128xbf16>, vector<128x128xbf16>, vector<256x128xf32> -> vector<256x128xf32>
    %306 = arith.addf %300, %305 : vector<256x128xf32>
    %c1_193 = arith.constant 1 : index
    %c1_194 = arith.constant 1 : index
    %c0_195 = arith.constant 0 : index
    %307 = vector.load %arg14[%c1_193, %c1_194, %c0_195] : memref<18x18x128xbf16, #tpu.memory_space<vmem>>, vector<16x16x128xbf16>
    %308 = vector.shape_cast %307 : vector<16x16x128xbf16> to vector<256x128xbf16>
    %c4_196 = arith.constant 4 : index
    %c0_197 = arith.constant 0 : index
    %c0_198 = arith.constant 0 : index
    %309 = vector.load %arg8[%c4_196, %c0_197, %c0_198] : memref<9x128x128xbf16, #tpu.memory_space<vmem>>, vector<1x128x128xbf16>
    %310 = vector.shape_cast %309 : vector<1x128x128xbf16> to vector<128x128xbf16>
    %cst_199 = arith.constant dense<0.000000e+00> : vector<256x128xf32>
    %311 = tpu.matmul %308, %310, %cst_199 {dimension_numbers = #tpu.dot_dimension_numbers<[1], [0], [0], [1], [0, 0, 1, 1], [], []>} : vector<256x128xbf16>, vector<128x128xbf16>, vector<256x128xf32> -> vector<256x128xf32>
    %312 = arith.addf %306, %311 : vector<256x128xf32>
    %c1_200 = arith.constant 1 : index
    %c2_201 = arith.constant 2 : index
    %c0_202 = arith.constant 0 : index
    %313 = vector.load %arg14[%c1_200, %c2_201, %c0_202] : memref<18x18x128xbf16, #tpu.memory_space<vmem>>, vector<16x16x128xbf16>
    %314 = vector.shape_cast %313 : vector<16x16x128xbf16> to vector<256x128xbf16>
    %c5_203 = arith.constant 5 : index
    %c0_204 = arith.constant 0 : index
    %c0_205 = arith.constant 0 : index
    %315 = vector.load %arg8[%c5_203, %c0_204, %c0_205] : memref<9x128x128xbf16, #tpu.memory_space<vmem>>, vector<1x128x128xbf16>
    %316 = vector.shape_cast %315 : vector<1x128x128xbf16> to vector<128x128xbf16>
    %cst_206 = arith.constant dense<0.000000e+00> : vector<256x128xf32>
    %317 = tpu.matmul %314, %316, %cst_206 {dimension_numbers = #tpu.dot_dimension_numbers<[1], [0], [0], [1], [0, 0, 1, 1], [], []>} : vector<256x128xbf16>, vector<128x128xbf16>, vector<256x128xf32> -> vector<256x128xf32>
    %318 = arith.addf %312, %317 : vector<256x128xf32>
    %c2_207 = arith.constant 2 : index
    %c0_208 = arith.constant 0 : index
    %c0_209 = arith.constant 0 : index
    %319 = vector.load %arg14[%c2_207, %c0_208, %c0_209] : memref<18x18x128xbf16, #tpu.memory_space<vmem>>, vector<16x16x128xbf16>
    %320 = vector.shape_cast %319 : vector<16x16x128xbf16> to vector<256x128xbf16>
    %c6_210 = arith.constant 6 : index
    %c0_211 = arith.constant 0 : index
    %c0_212 = arith.constant 0 : index
    %321 = vector.load %arg8[%c6_210, %c0_211, %c0_212] : memref<9x128x128xbf16, #tpu.memory_space<vmem>>, vector<1x128x128xbf16>
    %322 = vector.shape_cast %321 : vector<1x128x128xbf16> to vector<128x128xbf16>
    %cst_213 = arith.constant dense<0.000000e+00> : vector<256x128xf32>
    %323 = tpu.matmul %320, %322, %cst_213 {dimension_numbers = #tpu.dot_dimension_numbers<[1], [0], [0], [1], [0, 0, 1, 1], [], []>} : vector<256x128xbf16>, vector<128x128xbf16>, vector<256x128xf32> -> vector<256x128xf32>
    %324 = arith.addf %318, %323 : vector<256x128xf32>
    %c2_214 = arith.constant 2 : index
    %c1_215 = arith.constant 1 : index
    %c0_216 = arith.constant 0 : index
    %325 = vector.load %arg14[%c2_214, %c1_215, %c0_216] : memref<18x18x128xbf16, #tpu.memory_space<vmem>>, vector<16x16x128xbf16>
    %326 = vector.shape_cast %325 : vector<16x16x128xbf16> to vector<256x128xbf16>
    %c7_217 = arith.constant 7 : index
    %c0_218 = arith.constant 0 : index
    %c0_219 = arith.constant 0 : index
    %327 = vector.load %arg8[%c7_217, %c0_218, %c0_219] : memref<9x128x128xbf16, #tpu.memory_space<vmem>>, vector<1x128x128xbf16>
    %328 = vector.shape_cast %327 : vector<1x128x128xbf16> to vector<128x128xbf16>
    %cst_220 = arith.constant dense<0.000000e+00> : vector<256x128xf32>
    %329 = tpu.matmul %326, %328, %cst_220 {dimension_numbers = #tpu.dot_dimension_numbers<[1], [0], [0], [1], [0, 0, 1, 1], [], []>} : vector<256x128xbf16>, vector<128x128xbf16>, vector<256x128xf32> -> vector<256x128xf32>
    %330 = arith.addf %324, %329 : vector<256x128xf32>
    %c2_221 = arith.constant 2 : index
    %c2_222 = arith.constant 2 : index
    %c0_223 = arith.constant 0 : index
    %331 = vector.load %arg14[%c2_221, %c2_222, %c0_223] : memref<18x18x128xbf16, #tpu.memory_space<vmem>>, vector<16x16x128xbf16>
    %332 = vector.shape_cast %331 : vector<16x16x128xbf16> to vector<256x128xbf16>
    %c8_224 = arith.constant 8 : index
    %c0_225 = arith.constant 0 : index
    %c0_226 = arith.constant 0 : index
    %333 = vector.load %arg8[%c8_224, %c0_225, %c0_226] : memref<9x128x128xbf16, #tpu.memory_space<vmem>>, vector<1x128x128xbf16>
    %334 = vector.shape_cast %333 : vector<1x128x128xbf16> to vector<128x128xbf16>
    %cst_227 = arith.constant dense<0.000000e+00> : vector<256x128xf32>
    %335 = tpu.matmul %332, %334, %cst_227 {dimension_numbers = #tpu.dot_dimension_numbers<[1], [0], [0], [1], [0, 0, 1, 1], [], []>} : vector<256x128xbf16>, vector<128x128xbf16>, vector<256x128xf32> -> vector<256x128xf32>
    %336 = arith.addf %330, %335 : vector<256x128xf32>
    %c0_228 = arith.constant 0 : index
    %c0_229 = arith.constant 0 : index
    %337 = vector.load %arg9[%c0_228, %c0_229] : memref<1x128xf32, #tpu.memory_space<vmem>>, vector<1x128xf32>
    %338 = vector.broadcast %337 : vector<1x128xf32> to vector<256x128xf32>
    %339 = arith.mulf %336, %338 : vector<256x128xf32>
    %c0_230 = arith.constant 0 : index
    %c0_231 = arith.constant 0 : index
    %340 = vector.load %arg10[%c0_230, %c0_231] : memref<1x128xf32, #tpu.memory_space<vmem>>, vector<1x128xf32>
    %341 = vector.broadcast %340 : vector<1x128xf32> to vector<256x128xf32>
    %342 = arith.addf %339, %341 : vector<256x128xf32>
    %cst_232 = arith.constant 0.000000e+00 : f32
    %343 = vector.broadcast %cst_232 : f32 to vector<256x128xf32>
    %344 = arith.maximumf %342, %343 : vector<256x128xf32>
    %345 = vector.shape_cast %344 : vector<256x128xf32> to vector<16x16x128xf32>
    %346 = arith.truncf %345 : vector<16x16x128xf32> to vector<16x16x128xbf16>
    %c0_233 = arith.constant 0 : index
    %c0_234 = arith.constant 0 : index
    %c0_235 = arith.constant 0 : index
    %c0_236 = arith.constant 0 : index
    %347 = vector.load %arg11[%c0_233, %c0_234, %c0_235, %c0_236] : memref<1x16x16x128xbf16, #tpu.memory_space<vmem>>, vector<1x16x16x128xbf16>
    %348 = vector.shape_cast %347 : vector<1x16x16x128xbf16> to vector<16x16x128xbf16>
    %349 = vector.shape_cast %346 : vector<16x16x128xbf16> to vector<1x16x16x128xbf16>
    tpu.vector_store %arg11[%c0_233, %c0_234, %c0_235, %c0_236], %349 {strides = array<i32>} : memref<1x16x16x128xbf16, #tpu.memory_space<vmem>>, vector<1x16x16x128xbf16>,
    return
  }
  func.func @transform_0(%arg0: i32) -> (i32, i32, i32, i32) {
    %c0_i32 = arith.constant 0 : i32
    %c0_i32_0 = arith.constant 0 : i32
    %c0_i32_1 = arith.constant 0 : i32
    %c0_i32_2 = arith.constant 0 : i32
    return %arg0, %c0_i32, %c0_i32_0, %c0_i32_1 : i32, i32, i32, i32
  }
  func.func @transform_1(%arg0: i32) -> (i32, i32, i32, i32) {
    %c0_i32 = arith.constant 0 : i32
    %c0_i32_0 = arith.constant 0 : i32
    %c0_i32_1 = arith.constant 0 : i32
    %c0_i32_2 = arith.constant 0 : i32
    return %arg0, %c0_i32, %c0_i32_0, %c0_i32_1 : i32, i32, i32, i32
  }
  func.func @transform_2(%arg0: i32) -> (i32, i32, i32) {
    %c0_i32 = arith.constant 0 : i32
    %c0_i32_0 = arith.constant 0 : i32
    %c0_i32_1 = arith.constant 0 : i32
    %c0_i32_2 = arith.constant 0 : i32
    return %c0_i32, %c0_i32_0, %c0_i32_1 : i32, i32, i32
  }
  func.func @transform_3(%arg0: i32) -> (i32, i32) {
    %c0_i32 = arith.constant 0 : i32
    %c0_i32_0 = arith.constant 0 : i32
    %c0_i32_1 = arith.constant 0 : i32
    return %c0_i32, %c0_i32_0 : i32, i32
  }
  func.func @transform_4(%arg0: i32) -> (i32, i32) {
    %c0_i32 = arith.constant 0 : i32
    %c0_i32_0 = arith.constant 0 : i32
    %c0_i32_1 = arith.constant 0 : i32
    return %c0_i32, %c0_i32_0 : i32, i32
  }
  func.func @transform_5(%arg0: i32) -> (i32, i32) {
    %c0_i32 = arith.constant 0 : i32
    %c0_i32_0 = arith.constant 0 : i32
    %c0_i32_1 = arith.constant 0 : i32
    return %c0_i32, %c0_i32_0 : i32, i32
  }
  func.func @transform_6(%arg0: i32) -> (i32, i32) {
    %c0_i32 = arith.constant 0 : i32
    %c0_i32_0 = arith.constant 0 : i32
    %c0_i32_1 = arith.constant 0 : i32
    return %c0_i32, %c0_i32_0 : i32, i32
  }
  func.func @transform_7(%arg0: i32) -> (i32, i32, i32) {
    %c0_i32 = arith.constant 0 : i32
    %c0_i32_0 = arith.constant 0 : i32
    %c0_i32_1 = arith.constant 0 : i32
    %c0_i32_2 = arith.constant 0 : i32
    return %c0_i32, %c0_i32_0, %c0_i32_1 : i32, i32, i32
  }
  func.func @transform_8(%arg0: i32) -> (i32, i32) {
    %c0_i32 = arith.constant 0 : i32
    %c0_i32_0 = arith.constant 0 : i32
    %c0_i32_1 = arith.constant 0 : i32
    return %c0_i32, %c0_i32_0 : i32, i32
  }
  func.func @transform_9(%arg0: i32) -> (i32, i32) {
    %c0_i32 = arith.constant 0 : i32
    %c0_i32_0 = arith.constant 0 : i32
    %c0_i32_1 = arith.constant 0 : i32
    return %c0_i32, %c0_i32_0 : i32, i32
  }
  func.func @transform_10(%arg0: i32) -> (i32, i32, i32, i32) {
    %c0_i32 = arith.constant 0 : i32
    %c0_i32_0 = arith.constant 0 : i32
    %c0_i32_1 = arith.constant 0 : i32
    %c0_i32_2 = arith.constant 0 : i32
    return %arg0, %c0_i32, %c0_i32_0, %c0_i32_1 : i32, i32, i32, i32
  }
}

</mosaic_0001>

<bundles_post_ra>
// kernel: tpu_custom_call.1
= control target key start
LH: loop header
LB: loop body
LE: loop exit
PB: predicated region body
PF: predicated region fallthrough
CT: control target
= control target key end

     0   :  { %s21254_s0 = inlined_call_operand.hbm [shape: bf16[2,8,8,128], index: 0, kind: input, shape index: {}]   ;;  %s21255_s1 = inlined_call_operand.hbm [shape: bf16[2,16,16,128], index: 1, kind: input, shape index: {}]   ;;  %s21256_s2 = inlined_call_operand.hbm [shape: bf16[9,128,128], index: 2, kind: input, shape index: {}]   ;;  %s21257_s3 = inlined_call_operand.vmem [shape: f32[1,128], index: 3, kind: input, shape index: {}]   ;;  %s21258_s4 = inlined_call_operand.vmem [shape: f32[1,128], index: 4, kind: input, shape index: {}]   ;;  %s21259_s5 = inlined_call_operand.vmem [shape: bf16[16,8], index: 5, kind: input, shape index: {}]   ;;  %s21260_s6 = inlined_call_operand.vmem [shape: bf16[16,8], index: 6, kind: input, shape index: {}]   ;;  %s21261_s7 = inlined_call_operand.hbm [shape: bf16[9,128,128], index: 7, kind: input, shape index: {}]   ;;  %s21262_s8 = inlined_call_operand.vmem [shape: f32[1,128], index: 8, kind: input, shape index: {}]   ;;  %s21263_s9 = inlined_call_operand.vmem [shape: f32[1,128], index: 9, kind: input, shape index: {}]   ;;  %s21264_s10 = inlined_call_operand.hbm [shape: bf16[2,16,16,128], index: 10, kind: output, shape index: {}]  }
   0x1   :  { %21332 = sst [smem:[#allocation41_spill]] %s21254_s0 }
   0x2   :  { %21333 = sst [smem:[#allocation42_spill]] %s21256_s2 }
   0x3   :  { %21334 = sst [smem:[#allocation43_spill]] %s21261_s7 }
   0x4   :  { %15 = vsyncpa [#allocation6], 0 }
   0x5   :  { %17 = vsyncpa [#allocation6 + $0x1], 0 }
   0x6   :  { %18 = vsyncpa [#allocation9], 0 }
   0x7   :  { %20 = vsyncpa [#allocation9 + $0x1], 0 }
   0x8   :  { %21 = vsyncpa [#allocation12], 0 }
   0x9   :  { %22 = vsyncpa [#allocation7], 0 }
   0xa   :  { %24 = vsyncpa [#allocation7 + $0x1], 0  ;;  %s16812_s13 = smov 0   ;;  %s16814_s14 = smov 0  }
   0xb   :  { %s16816_s15 = smov 0   ;;  %s16818_s16 = smov 0  }
   0xc LB: > { %21335 = sst [smem:[#allocation19_spill]] %s16729_s13  ;;  %s16833_s17 = sadd.s32 4294967295, %s16741_s16   ;;  %s16741_s16 = sphi %s16818_s16, %s21579_s16   ;;  %s16737_s15 = sphi %s16816_s15, %s21581_s15   ;;  %s16733_s14 = sphi %s16814_s14, %s21583_s14   ;;  %s16729_s13 = sphi %s16812_s13, %s21582_s13  }
   0xd   : > { %21336 = sst [smem:[#allocation20_spill]] %s16737_s15  ;;  %s13943_s18 = sadd.s32 4294967294, %s16741_s16  }
   0xe   : > { %p50_p0 = scmp.ne.s32.totalorder %s16733_s14, %s16729_s13  ;;  %p21265_p1 = scmp.eq.s32.totalorder %s16833_s17, 0 }
   0xf   : > { %p274_p3 = scmp.eq.s32.totalorder %s13943_s18, 1  ;;  %p13944_p5 = scmp.ge.s32.totalorder %s16741_s16, 1 }
  0x10   : > { %p16842_p4 = por %p21265_p1, %p50_p0  ;;  %p281_p7 = scmp.lt.s32.totalorder %s16741_s16, 3 }
  0x11   : > { %p16847_p6 = por %p274_p3, %p50_p0  ;;  %s16743_s22 = smov [#allocation10]  }
  0x12   : > { %s21337_s19 = scalar_select %p16842_p4, 1, 0 }
  0x13   : > { %s21338_s20 = scalar_select %p16847_p6, 1, 0 }
  0x14   : > { %p16852_p8 = pnand %p13944_p5, %p281_p7  ;;  %s293_s23 = sshll.u32 %s16743_s22, 4  ;;  %s16856_s23 = int_to_ptr.vmem [resolvable:$true] %s293_s23 }
  0x15   : > { %21339 = sst [smem:[#allocation21_spill]] %s21338_s20  ;;  %s16744_s25 = smov [#allocation11]  }
  0x16   : > { %p16210_p9 = pneg %p16852_p8  ;;  %s318_s26 = sshll.u32 %s16744_s25, 4  ;;  %s16867_s26 = int_to_ptr.vmem [resolvable:$true] %s318_s26 }
  0x17   : > { %s21342_s2 = sld [smem:[#allocation42_spill]] }
  0x18   : > { %p16863_p11 = pnand %p16210_p9, %p21265_p1 }
  0x1a   : > { %p16549_p13 = pneg %p16863_p11 }
  0x1d   : > { %s16547_s29 = scalar_lea.hbm %s21342_s2, 9216 }
  0x1e   : > { %p16548_p12 = scmp.ne.s32.totalorder %s21342_s2, %s16547_s29  ;;  %p16554_p5 = scmp.lt.u32.totalorder %s16547_s29, %s21342_s2 }
  0x20   : > { %p16550_p0 = pnand %p16549_p13, %p16548_p12 }
  0x22   : > { %p16551_p3 = pneg %p16550_p0 }
  0x24   : > { %p16556_p7 = pnand %p16554_p5, %p16551_p3 }
  0x26   : > { %16559 = shalt.err (!%p16556_p7)
}
  0x27   : > { %s16560_s22 = scalar_lea.vmem %s16856_s23, 9216  ;;  %p16568_p2 = scmp.lt.s32.totalorder %s16856_s23, %s16856_s23 }
  0x28   : > { %p16561_p9 = scmp.ne.s32.totalorder %s16856_s23, %s16560_s22  ;;  %p16569_p12 = scmp.lt.s32.totalorder %s16560_s22, %s16560_s22 }
  0x2a   : > { %p16563_p10 = pnand %p16561_p9, %p16549_p13  ;;  %p16570_p0 = por %p16569_p12, %p16568_p2 }
  0x2c   : > { %p16564_p1 = pneg %p16563_p10 }
  0x2e   : > { %p16571_p6 = pnand %p16570_p0, %p16564_p1 }
  0x30   : > { %16574 = shalt.err (!%p16571_p6)
}
  0x31   : > { %s21268_s25 = smov 64   ;;  %s21270_s27 = smov 4  }
  0x32   : > { %16213 = dma.hbm_to_vmem [thread:$0]  (!%p16863_p11), %s21342_s2, 9216, %s16856_s23, [#allocation9], %s21268_s25, %s21268_s25, %s21270_s27  }
  0x33   : > { %s21343_s7 = sld [smem:[#allocation43_spill]] }
  0x39   : > { %s16575_s12 = scalar_lea.hbm %s21343_s7, 9216 }
  0x3a   : > { %p16576_p1 = scmp.ne.s32.totalorder %s21343_s7, %s16575_s12  ;;  %p16582_p10 = scmp.lt.u32.totalorder %s16575_s12, %s21343_s7 }
  0x3c   : > { %p16578_p2 = pnand %p16576_p1, %p16549_p13 }
  0x3e   : > { %p16579_p6 = pneg %p16578_p2 }
  0x40   : > { %p16584_p3 = pnand %p16582_p10, %p16579_p6 }
  0x42   : > { %16587 = shalt.err (!%p16584_p3)
}
  0x43   : > { %s16588_s23 = scalar_lea.vmem %s16867_s26, 9216  ;;  %p16596_p12 = scmp.lt.s32.totalorder %s16867_s26, %s16867_s26 }
  0x44   : > { %p16589_p5 = scmp.ne.s32.totalorder %s16867_s26, %s16588_s23  ;;  %p16597_p0 = scmp.lt.s32.totalorder %s16588_s23, %s16588_s23 }
  0x46   : > { %p16591_p7 = pnand %p16589_p5, %p16549_p13  ;;  %p16598_p1 = por %p16597_p0, %p16596_p12 }
  0x48   : > { %p16592_p9 = pneg %p16591_p7 }
  0x4a   : > { %p16599_p2 = pnand %p16598_p1, %p16592_p9 }
  0x4c   : > { %16602 = shalt.err (!%p16599_p2)
}
  0x4d   : > { %16216 = dma.hbm_to_vmem [thread:$0]  (!%p16863_p11), %s21343_s7, 9216, %s16867_s26, [#allocation12], %s21268_s25, %s21268_s25, %s21270_s27  }
  0x4e   : > { %s16928_s24 = sadd.s32 1, %s16741_s16   ;;  %s37_s28 = sadd.s32 1, %s16737_s15 }
  0x4f   : > { %21344 = sst [smem:[#allocation22_spill]] %s16928_s24  ;;  %s34_s29 = ssub.s32 %s16741_s16, %s16928_s24 }
  0x50   : > { %p44_p13 = scmp.ne.s32.totalorder %s16737_s15, %s16733_s14  ;;  %p35_p6 = scmp.eq.s32.totalorder %s34_s29, 0 }
  0x51   : > { %p45_p10 = scmp.eq.s32.totalorder %s16741_s16, 0  ;;  %p21345_p3 = scmp.eq.s32.totalorder %s16833_s17, 1 }
  0x52   : > { %p16230_p7 = scmp.lt.s32.totalorder %s16741_s16, 2  ;;  %s16947_s12 = sand.u32 1, %s16737_s15  }
  0x53   : > { %p16938_p5 = por %p21345_p3, %p44_p13  ;;  %p46_p9 = por %p45_p10, %p44_p13 }
  0x54   : > { %s16944_s11 = scalar_select %p35_p6, %s16737_s15, %s37_s28  }
  0x55   : > { %s21346_s30 = scalar_select %p16938_p5, 1, 0 }
  0x56   : > { %21347 = sst [smem:[#allocation23_spill]] %s16944_s11  ;;  %s13948_s26 = sshll.u32 %s16947_s12, 5 }
  0x57   : > { %s14607_s18 = sshll.u32 %s16741_s16, 9  ;;  %s21348_s0 = sld [smem:[#allocation41_spill]] }
  0x58   : > { %s342_s20 = scalar_lea.vmem [#allocation5], %s13948_s26  ;;  %p16958_p11 = pnand %p16230_p7, %p46_p9 }
  0x59   : > { %s349_s28 = sshll.u32 %s342_s20, 4  ;;  %s13951_s27 = sshll.u32 %s16947_s12, 7  ;;  %s16956_s28 = int_to_ptr.vmem [resolvable:$true] %s349_s28 }
  0x5a   : > { %s339_s2 = scalar_lea.sflag [#allocation6], %s16947_s12  ;;  %p16605_p0 = pneg %p16958_p11 }
  0x5d   : > { %s16954_s13 = scalar_lea.hbm %s21348_s0, %s14607_s18  ;;  %s16608_s23 = scalar_lea.hbm %s21348_s0, 1024 }
  0x5e   : > { %s16603_s22 = scalar_lea.hbm %s16954_s13, 512  ;;  %p16609_p13 = scmp.lt.u32.totalorder %s16954_s13, %s21348_s0 }
  0x5f   : > { %p16604_p12 = scmp.ne.s32.totalorder %s16954_s13, %s16603_s22  ;;  %p16610_p6 = scmp.lt.u32.totalorder %s16608_s23, %s16603_s22 }
  0x60   : > { %p16612_p3 = scmp.lt.u32.totalorder %s16603_s22, %s16954_s13 }
  0x61   : > { %p16606_p1 = pnand %p16605_p0, %p16604_p12  ;;  %p16611_p10 = por %p16610_p6, %p16609_p13 }
  0x63   : > { %p16607_p2 = pneg %p16606_p1  ;;  %p16613_p7 = por %p16612_p3, %p16611_p10 }
  0x65   : > { %p16614_p9 = pnand %p16613_p7, %p16607_p2 }
  0x67   : > { %16617 = shalt.err (!%p16614_p9)
}
  0x68   : > { %s16618_s25 = scalar_lea.vmem %s16956_s28, 512  ;;  %s16747_s26 = smov [#allocation5]  }
  0x69   : > { %p16619_p12 = scmp.ne.s32.totalorder %s16956_s28, %s16618_s25  ;;  %s16623_s18 = sshll.u32 %s16747_s26, 4  ;;  %s16624_s18 = int_to_ptr.vmem [resolvable:$false] %s16623_s18 }
  0x6a   : > { %s16625_s7 = scalar_lea.vmem %s16624_s18, 1024  ;;  %p16626_p4 = scmp.lt.s32.totalorder %s16956_s28, %s16624_s18 }
  0x6b   : > { %p16621_p1 = pnand %p16619_p12, %p16605_p0  ;;  %p16627_p13 = scmp.lt.s32.totalorder %s16625_s7, %s16618_s25 }
  0x6d   : > { %p16622_p5 = pneg %p16621_p1  ;;  %p16628_p6 = por %p16627_p13, %p16626_p4 }
  0x6f   : > { %p16629_p10 = pnand %p16628_p6, %p16622_p5 }
  0x71   : > { %16632 = shalt.err (!%p16629_p10)
}
  0x72   : > { %s21350_s22 = smov 4   ;;  %s21351_s23 = smov 64  }
  0x73   : > { %16220 = dma.hbm_to_vmem [thread:$0]  (!%p16958_p11), %s16954_s13, 512, %s16956_s28, %s339_s2, %s21351_s23, %s21351_s23, %s21350_s22  }
  0x74   : > { %s14608_s20 = sshll.u32 %s16741_s16, 11  ;;  %s363_s7 = scalar_lea.vmem [#allocation8], %s13951_s27 }
  0x75   : > { %s16999_s18 = scalar_lea.hbm %s21255_s1, %s14608_s20  ;;  %s370_s0 = sshll.u32 %s363_s7, 4  ;;  %s17003_s0 = int_to_ptr.vmem [resolvable:$true] %s370_s0 }
  0x76   : > { %s21352_s11 = sand.u32 1, %s16741_s16   ;;  %s16633_s24 = scalar_lea.hbm %s16999_s18, 2048 }
  0x77   : > { %s17007_s15 = scalar_lea.sflag [#allocation9], %s21352_s11  ;;  %p16634_p4 = scmp.ne.s32.totalorder %s16999_s18, %s16633_s24 }
  0x78   : > { %s16638_s12 = scalar_lea.hbm %s21255_s1, 4096  ;;  %p16639_p3 = scmp.lt.u32.totalorder %s16999_s18, %s21255_s1 }
  0x79   : > { %p16636_p5 = pnand %p16634_p4, %p16605_p0  ;;  %p16640_p7 = scmp.lt.u32.totalorder %s16638_s12, %s16633_s24 }
  0x7a   : > { %p16642_p12 = scmp.lt.u32.totalorder %s16633_s24, %s16999_s18 }
  0x7b   : > { %p16637_p2 = pneg %p16636_p5  ;;  %p16641_p9 = por %p16640_p7, %p16639_p3 }
  0x7d   : > { %p16643_p1 = por %p16642_p12, %p16641_p9 }
  0x7f   : > { %p16644_p13 = pnand %p16643_p1, %p16637_p2 }
  0x81   : > { %16647 = shalt.err (!%p16644_p13)
}
  0x82   : > { %s16648_s27 = scalar_lea.vmem %s17003_s0, 2048  ;;  %s16748_s11 = smov [#allocation8]  }
  0x83   : > { %p16649_p6 = scmp.ne.s32.totalorder %s17003_s0, %s16648_s27  ;;  %s16653_s26 = sshll.u32 %s16748_s11, 4  ;;  %s16654_s26 = int_to_ptr.vmem [resolvable:$false] %s16653_s26 }
  0x84   : > { %s16655_s25 = scalar_lea.vmem %s16654_s26, 4096  ;;  %p16656_p5 = scmp.lt.s32.totalorder %s17003_s0, %s16654_s26 }
  0x85   : > { %p16651_p10 = pnand %p16649_p6, %p16605_p0  ;;  %p16657_p3 = scmp.lt.s32.totalorder %s16655_s25, %s16648_s27 }
  0x87   : > { %p16652_p4 = pneg %p16651_p10  ;;  %p16658_p7 = por %p16657_p3, %p16656_p5 }
  0x89   : > { %p16659_p9 = pnand %p16658_p7, %p16652_p4 }
  0x8b   : > { %16662 = shalt.err (!%p16659_p9)
}
  0x8c   : > { %16223 = dma.hbm_to_vmem [thread:$0]  (!%p16958_p11), %s16999_s18, 2048, %s17003_s0, %s17007_s15, %s21351_s23, %s21351_s23, %s21350_s22  }
  0x8d   : > { %382 = sbr.rel (%p16852_p8) target bundleno = 2231 (0x8b7), region = 60 }
  0x94   : > { %s17039_s24 = sand.u32 1, %s16733_s14   ;;  %p21353_p0 = scmp.ne.s32.totalorder %s21337_s19, 0 }
  0x95   : > { %s13955_s7 = sshll.u32 %s17039_s24, 5  ;;  %s385_s2 = scalar_lea.sflag [#allocation6], %s17039_s24 }
  0x96   : > { %s17043_s13 = scalar_lea.vmem [#allocation5], %s13955_s7 }
  0x97   : > { %16708 = dma.done.wait (%p21353_p0), %s385_s2, 512  }
  0x98   : > { %16710 = vsyncadd (%p21353_p0), %s385_s2, 4294966784  ;;  %s393_s0 = sand.u32 1, %s16833_s17   ;;  %s13956_s15 = sshll.u32 %s17039_s24, 7 }
  0x99   : > { %s394_s21 = scalar_lea.sflag [#allocation9], %s393_s0  ;;  %s17053_s29 = scalar_lea.vmem [#allocation8], %s13956_s15 }
  0x9a   : > { %16712 = dma.done.wait (%p21353_p0), %s394_s21, 2048  }
  0x9b   : > { %16714 = vsyncadd (%p21353_p0), %s394_s21, 4294965248  ;;  %p21354_p8 = scmp.eq.s32.totalorder %s16833_s17, 0 }
  0x9d   : > { %16716 = dma.done.wait (%p21354_p8), [#allocation9], 9216   ;;  %p21355_p11 = pmov %p21354_p8 }
  0x9e   : > { %p21356_p2 = pmov %p21354_p8 }
  0x9f   : > { %16718 = vsyncadd (%p21355_p11), [#allocation9], 4294958080 }
  0xa0   : > { %16720 = dma.done.wait (%p21356_p2), [#allocation12], 9216   ;;  %p21357_p12 = pmov %p21356_p2 }
  0xa1   : > { %v16749_v0 = vmov 0   ;;  %v16277_v1 = vld [vmem:[#allocation10 + $0x40] sm:$0xff]   ;;  %v16278_v2 = vld [vmem:[#allocation10 + $0x48] sm:$0xff]   ;;  %vm453_vm0 = vcmask 1040384   ;;  %vm454_vm1 = vsmask.f32 256 }
  0xa2   : > { %16722 = vsyncadd (%p21357_p12), [#allocation12], 4294958080  ;;  %448 = vst [vmem:[#allocation2] sm:$0xf] %v16749_v0  ;;  %15180 = vmatprep.subr.bf16.mxu0 %v16277_v1  ;;  %vm486_vm2 = vsmask.f32 7938 }
  0xa3   : > { %449 = vst [vmem:[#allocation2 + $0x4] sm:$0x1] %v16749_v0  ;;  %451 = vst [vmem:[#allocation2 + $0x48] sm:$0xf] %v16749_v0  ;;  %15181 = vmatpush3.bf16.msra.mxu0 %v16277_v1  ;;  %v16279_v3 = vld [vmem:[#allocation10 + $0x50] sm:$0xff]   ;;  %v21358_v4 = vmov 0 }
  0xa4   : > { %452 = vst [vmem:[#allocation2 + $0x4c] sm:$0x1] %v16749_v0  ;;  %518 = vst [vmem:[#allocation4] sm:$0xf] %v16749_v0  ;;  %15182 = vmatprep.subr.bf16.mxu0 %v16278_v2  ;;  %v21361_v5 = vmov 0  ;;  %v16280_v6 = vld [vmem:[#allocation10 + $0x58] sm:$0xff]  }
  0xa5   : > { %519 = vst [vmem:[#allocation4 + $0x4] sm:$0xf] %v16749_v0  ;;  %520 = vst [vmem:[#allocation4 + $0x8] sm:$0x1] %v16749_v0  ;;  %v459_v8 = vld [vmem:[#allocation2 + $0x8] sm:$0x1] }
  0xa6   : > { %522 = vst [vmem:[#allocation4 + $0xcc] sm:$0xf] %v16749_v0  ;;  %523 = vst [vmem:[#allocation4 + $0xd0] sm:$0xf] %v16749_v0  ;;  %v491_v13 = vld [vmem:[#allocation2 + $0xc] sm:$0x1] }
  0xa7   : > { %524 = vst [vmem:[#allocation4 + $0xd4] sm:$0x1] %v16749_v0  ;;  %vm17077_vm3 = vmand %vm453_vm0, %vm454_vm1  ;;  %15183 = vmatpush3.bf16.msra.mxu0 %v16278_v2  ;;  %v633_v15 = vld [vmem:[%s17043_s13] sm:$0xf]  ;;  %vm722_vm5 = vcmask 1043456   ;;  %v16282_v30 = vld [vmem:[#allocation10 + $0x68] sm:$0xff]  }
  0xa8   : > { %v21359_v4 = vsel %vm17077_vm3, 4294967295, %v21358_v4  ;;  %vm17082_vm4 = vmand %vm453_vm0, %vm486_vm2  ;;  %15184 = vmatprep.subr.bf16.mxu0 %v16279_v3  ;;  %v460_v11 = vsel %vm17077_vm3, 0, %v459_v8  ;;  %v642_v16 = vshrl.u32 %v633_v15, 16  ;;  %v645_v17 = vshll.u32 %v633_v15, 16  ;;  %v462_v18 = vld [vmem:[#allocation2 + $0x10] sm:$0x1] }
  0xa9   : > { %21360 = vst [vmem:[#allocation24_spill] sm:$0xff] %v21359_v4  ;;  %v21362_v5 = vsel %vm17082_vm4, 4294967295, %v21361_v5  ;;  %v456_v7 = vld [vmem:[#allocation2] sm:$0x1]  ;;  %461 = vst [vmem:[#allocation2 + $0x8] sm:$0x1] %v460_v11 }
  0xaa   : > { %21363 = vst [vmem:[#allocation25_spill] sm:$0xff] %v21362_v5  ;;  %v488_v9 = vld [vmem:[#allocation2 + $0x4] sm:$0x1]  ;;  %v457_v10 = vsel %vm17077_vm3, 0, %v456_v7  ;;  %v492_v14 = vsel %vm17082_vm4, 0, %v491_v13  ;;  %v16281_v19 = vld [vmem:[#allocation10 + $0x60] sm:$0xff]   ;;  %vm17107_vm6 = vmand %vm722_vm5, %vm486_vm2 }
  0xab   : > { %v489_v12 = vsel %vm17082_vm4, 0, %v488_v9  ;;  %458 = vst [vmem:[#allocation2] sm:$0x1] %v457_v10  ;;  %15185 = vmatpush3.bf16.msra.mxu0 %v16279_v3  ;;  %493 = vst [vmem:[#allocation2 + $0xc] sm:$0x1] %v492_v14  ;;  %v463_v20 = vsel %vm17077_vm3, 0, %v462_v18 }
  0xac   : > { %490 = vst [vmem:[#allocation2 + $0x4] sm:$0x1] %v489_v12  ;;  %15186 = vmatprep.subr.bf16.mxu0 %v16280_v6  ;;  %v465_v21 = vld [vmem:[#allocation2 + $0x18] sm:$0x1]  ;;  %v494_v22 = vld [vmem:[#allocation2 + $0x14] sm:$0x1] }
  0xad   : > { %v644_v23 = vrot.slane %v642_v16, 7  ;;  %464 = vst [vmem:[#allocation2 + $0x10] sm:$0x1] %v463_v20  ;;  %v466_v24 = vsel %vm17077_vm3, 0, %v465_v21  ;;  %v495_v25 = vsel %vm17082_vm4, 0, %v494_v22  ;;  %v16283_v48 = vld [vmem:[#allocation10 + $0x70] sm:$0xff]  }
  0xae   : > { %v497_v26 = vld [vmem:[#allocation2 + $0x1c] sm:$0x1]  ;;  %467 = vst [vmem:[#allocation2 + $0x18] sm:$0x1] %v466_v24  ;;  %496 = vst [vmem:[#allocation2 + $0x14] sm:$0x1] %v495_v25 }
  0xaf   : > { %v498_v27 = vsel %vm17082_vm4, 0, %v497_v26  ;;  %v634_v28 = vld [vmem:[%s17043_s13 + $0x4] sm:$0xf]  ;;  %v635_v29 = vld [vmem:[%s17043_s13 + $0x8] sm:$0xf]  ;;  %15187 = vmatpush3.bf16.msra.mxu0 %v16280_v6  ;;  %v647_v31 = vor.u32 %v645_v17, %v644_v23  ;;  %v648_v32 = vrot.slane %v644_v23, 4 }
  0xb0   : > { %499 = vst [vmem:[#allocation2 + $0x1c] sm:$0x1] %v498_v27  ;;  %v650_v34 = vshrl.u32 %v634_v28, 16  ;;  %v653_v35 = vshll.u32 %v634_v28, 16  ;;  %15188 = vmatprep.subr.bf16.mxu0 %v16281_v19  ;;  %v658_v36 = vshrl.u32 %v635_v29, 16  ;;  %v661_v37 = vshll.u32 %v635_v29, 16 }
  0xb1   : > { %v724_v38 = vld [vmem:[#allocation2 + $0x8] sm:$0xf]  ;;  %vm804_vm7 = vsmask.f32 3328  ;;  %vm805_vm8 = vsmask.f32 7440 }
  0xb2   : > { %v17111_v39 = vld [vmem:[#allocation2] sm:$0xf]  ;;  %v725_v41 = vsel %vm17107_vm6, %v647_v31, %v724_v38  ;;  %v727_v42 = vld [vmem:[#allocation2 + $0xc] sm:$0x1]  ;;  %v652_v46 = vrot.slane %v650_v34, 7  ;;  %v660_v47 = vrot.slane %v658_v36, 7  ;;  %vm17142_vm9 = vmor %vm804_vm7, %vm805_vm8 }
  0xb3   : > { %v17113_v40 = vld [vmem:[#allocation2 + $0x4] sm:$0x1]  ;;  %v808_v43 = vshrl.u32 %v17111_v39, 16  ;;  %v811_v44 = vshll.u32 %v17111_v39, 16  ;;  %15189 = vmatpush3.bf16.msra.mxu0 %v16281_v19  ;;  %726 = vst [vmem:[#allocation2 + $0x8] sm:$0xf] %v725_v41  ;;  %v728_v45 = vsel %vm17077_vm3, %v648_v32, %v727_v42 }
  0xb4   : > { %15190 = vmatprep.subr.bf16.mxu0 %v16282_v30  ;;  %729 = vst [vmem:[#allocation2 + $0xc] sm:$0x1] %v728_v45  ;;  %v817_v51 = vshll.u32 %v17113_v40, 16  ;;  %v730_v52 = vld [vmem:[#allocation2 + $0x10] sm:$0xf]  ;;  %v655_v53 = vor.u32 %v653_v35, %v652_v46  ;;  %v656_v54 = vrot.slane %v652_v46, 4  ;;  %v663_v55 = vor.u32 %v661_v37, %v660_v47 }
  0xb5   : > { %v810_v49 = vrot.slane %v808_v43, 4  ;;  %v813_v50 = vrot.slane %v811_v44, 5  ;;  %v664_v56 = vrot.slane %v660_v47, 4  ;;  %v733_v57 = vld [vmem:[#allocation2 + $0x14] sm:$0x1]  ;;  %v16284_v2 = vld [vmem:[#allocation10 + $0x78] sm:$0xff]  }
  0xb6   : > { %v736_v58 = vld [vmem:[#allocation2 + $0x18] sm:$0xf]  ;;  %v731_v61 = vsel %vm17107_vm6, %v655_v53, %v730_v52  ;;  %v734_v62 = vsel %vm17077_vm3, %v656_v54, %v733_v57  ;;  %v468_v3 = vld [vmem:[#allocation2 + $0x20] sm:$0x1]  ;;  %v819_v6 = vrot.slane %v817_v51, 5  ;;  %v21366_v15 = vmov 0 }
  0xb7   : > { %v814_v59 = vor.u32 %v813_v50, %v810_v49  ;;  %v739_v60 = vld [vmem:[#allocation2 + $0x1c] sm:$0x1]  ;;  %15191 = vmatpush3.bf16.msra.mxu0 %v16282_v30  ;;  %v737_v63 = vsel %vm17107_vm6, %v663_v55, %v736_v58  ;;  %732 = vst [vmem:[#allocation2 + $0x10] sm:$0xf] %v731_v61  ;;  %735 = vst [vmem:[#allocation2 + $0x14] sm:$0x1] %v734_v62 }
  0xb8   : > { %v740_v1 = vsel %vm17077_vm3, %v664_v56, %v739_v60  ;;  %15192 = vmatprep.subr.bf16.mxu0 %v16283_v48  ;;  %738 = vst [vmem:[#allocation2 + $0x18] sm:$0xf] %v737_v63  ;;  %v469_v7 = vsel %vm17077_vm3, 0, %v468_v3  ;;  %v471_v8 = vld [vmem:[#allocation2 + $0x28] sm:$0x1]  ;;  %v21367_v15 = vsel %vm17142_vm9, 4294967295, %v21366_v15 }
  0xb9   : > { %741 = vst [vmem:[#allocation2 + $0x1c] sm:$0x1] %v740_v1  ;;  %v500_v9 = vld [vmem:[#allocation2 + $0x24] sm:$0x1]  ;;  %470 = vst [vmem:[#allocation2 + $0x20] sm:$0x1] %v469_v7 }
  0xba   : > { %v17132_v10 = vld [vmem:[#allocation2 + $0x8] sm:$0xf]  ;;  %v472_v11 = vsel %vm17077_vm3, 0, %v471_v8  ;;  %v501_v12 = vsel %vm17082_vm4, 0, %v500_v9  ;;  %v503_v13 = vld [vmem:[#allocation2 + $0x2c] sm:$0x1] }
  0xbb   : > { %15193 = vmatpush3.bf16.msra.mxu0 %v16283_v48  ;;  %v17138_v14 = vld [vmem:[#allocation2 + $0xc] sm:$0x1]  ;;  %21368 = vst [vmem:[#allocation26_spill] sm:$0xff] %v21367_v15  ;;  %v815_v16 = vrot.slane %v814_v59, 4  ;;  %v822_v17 = vshrl.u32 %v17132_v10, 16  ;;  %v825_v18 = vshll.u32 %v17132_v10, 16 }
  0xbc   : > { %473 = vst [vmem:[#allocation2 + $0x28] sm:$0x1] %v472_v11  ;;  %502 = vst [vmem:[#allocation2 + $0x24] sm:$0x1] %v501_v12  ;;  %v504_v19 = vsel %vm17082_vm4, 0, %v503_v13  ;;  %15194 = vmatprep.subr.bf16.mxu0 %v16284_v2  ;;  %v831_v20 = vshll.u32 %v17138_v14, 16 }
  0xbd   : > { %v17151_v21 = vld [vmem:[#allocation10] sm:$0xff]   ;;  %505 = vst [vmem:[#allocation2 + $0x2c] sm:$0x1] %v504_v19  ;;  %v636_v22 = vld [vmem:[%s17043_s13 + $0xc] sm:$0xf]  ;;  %v824_v24 = vrot.slane %v822_v17, 4  ;;  %v820_v29 = vsel %vm17142_vm9, %v815_v16, %v819_v6 }
  0xbe   : > { %v637_v23 = vld [vmem:[%s17043_s13 + $0x10] sm:$0xf]  ;;  %v827_v25 = vrot.slane %v825_v18, 5  ;;  %v833_v26 = vrot.slane %v831_v20, 5  ;;  %v666_v27 = vshrl.u32 %v636_v22, 16  ;;  %v669_v45 = vshll.u32 %v636_v22, 16 }
  0xbf   : > { %v674_v28 = vshrl.u32 %v637_v23, 16  ;;  %15195 = vmatpush3.bf16.msra.mxu0 %v16284_v2  ;;  %v17157_v31 = vld [vmem:[#allocation2 + $0x10] sm:$0xf]  ;;  %v17159_v32 = vld [vmem:[#allocation2 + $0x18] sm:$0xf]  ;;  %v677_v49 = vshll.u32 %v637_v23, 16 }
  0xc0   : > { %v828_v30 = vor.u32 %v827_v25, %v824_v24  ;;  %v17161_v34 = vld [vmem:[#allocation2 + $0x14] sm:$0x1]  ;;  %15204 = vmatprep.subr.bf16.mxu0 %v17151_v21  ;;  %v17164_v35 = vld [vmem:[#allocation2 + $0x1c] sm:$0x1]  ;;  %v836_v36 = vshrl.u32 %v17157_v31, 16  ;;  %v839_v37 = vshll.u32 %v17157_v31, 16 }
  0xc1   : > { %v845_v38 = vshll.u32 %v17161_v34, 16  ;;  %v850_v41 = vshrl.u32 %v17159_v32, 16  ;;  %v853_v43 = vshll.u32 %v17159_v32, 16  ;;  %v859_v44 = vshll.u32 %v17164_v35, 16  ;;  %v742_v53 = vld [vmem:[#allocation2 + $0x20] sm:$0xf] }
  0xc2   : > { %v829_v42 = vrot.slane %v828_v30, 4  ;;  %v838_v46 = vrot.slane %v836_v36, 4  ;;  %v841_v47 = vrot.slane %v839_v37, 5  ;;  %v668_v58 = vrot.slane %v666_v27, 7  ;;  %v474_v61 = vld [vmem:[#allocation2 + $0x30] sm:$0x1] }
  0xc3   : > { %v852_v48 = vrot.slane %v850_v41, 4  ;;  %v847_v51 = vrot.slane %v845_v38, 5  ;;  %v855_v52 = vrot.slane %v853_v43, 5  ;;  %v745_v54 = vld [vmem:[#allocation2 + $0x24] sm:$0x1]  ;;  %v676_v59 = vrot.slane %v674_v28, 7 }
  0xc4   : > { %v834_v50 = vsel %vm17142_vm9, %v829_v42, %v833_v26  ;;  %v748_v55 = vld [vmem:[#allocation2 + $0x28] sm:$0xf]  ;;  %v842_v57 = vor.u32 %v841_v47, %v838_v46  ;;  %v751_v60 = vld [vmem:[#allocation2 + $0x2c] sm:$0x1]  ;;  %v861_v63 = vrot.slane %v859_v44, 5  ;;  %v475_v1 = vsel %vm17077_vm3, 0, %v474_v61 }
  0xc5   : > { %v13960_v56 = vcombine.low %v820_v29, %v834_v50  ;;  %v856_v62 = vor.u32 %v855_v52, %v852_v48  ;;  %v477_v2 = vld [vmem:[#allocation2 + $0x38] sm:$0x1]  ;;  %v506_v3 = vld [vmem:[#allocation2 + $0x34] sm:$0x1]  ;;  %v671_v7 = vor.u32 %v669_v45, %v668_v58  ;;  %v672_v8 = vrot.slane %v668_v58, 4  ;;  %v16288_v52 = vld [vmem:[#allocation10 + $0x18] sm:$0xff]  }
  0xc6   : > { %v843_v6 = vrot.slane %v842_v57, 4  ;;  %v679_v9 = vor.u32 %v677_v49, %v676_v59  ;;  %476 = vst [vmem:[#allocation2 + $0x30] sm:$0x1] %v475_v1  ;;  %v509_v11 = vld [vmem:[#allocation2 + $0x3c] sm:$0x1]  ;;  %v680_v16 = vrot.slane %v676_v59, 4 }
  0xc7   : > { %15196 = vmatprep.mubr.bf16.mxu0 %v13960_v56  ;;  %v638_v12 = vld [vmem:[%s17043_s13 + $0x14] sm:$0xf]  ;;  %v857_v13 = vrot.slane %v856_v62, 4  ;;  %v478_v17 = vsel %vm17077_vm3, 0, %v477_v2  ;;  %v507_v18 = vsel %vm17082_vm4, 0, %v506_v3  ;;  %v743_v22 = vsel %vm17107_vm6, %v671_v7, %v742_v53  ;;  %v16286_v30 = vld [vmem:[#allocation10 + $0x8] sm:$0xff]  }
  0xc8   : > { %v639_v19 = vld [vmem:[%s17043_s13 + $0x18] sm:$0xf]  ;;  %v848_v20 = vsel %vm17142_vm9, %v843_v6, %v847_v51  ;;  %v746_v23 = vsel %vm17077_vm3, %v672_v8, %v745_v54  ;;  %v749_v24 = vsel %vm17107_vm6, %v679_v9, %v748_v55  ;;  %479 = vst [vmem:[#allocation2 + $0x38] sm:$0x1] %v478_v17  ;;  %508 = vst [vmem:[#allocation2 + $0x34] sm:$0x1] %v507_v18 }
  0xc9   : > { %v862_v25 = vsel %vm17142_vm9, %v857_v13, %v861_v63  ;;  %744 = vst [vmem:[#allocation2 + $0x20] sm:$0xf] %v743_v22  ;;  %747 = vst [vmem:[#allocation2 + $0x24] sm:$0x1] %v746_v23  ;;  %v752_v26 = vsel %vm17077_vm3, %v680_v16, %v751_v60  ;;  %v510_v27 = vsel %vm17082_vm4, 0, %v509_v11  ;;  %v682_v28 = vshrl.u32 %v638_v12, 16 }
  0xca   : > { %750 = vst [vmem:[#allocation2 + $0x28] sm:$0xf] %v749_v24  ;;  %v13961_v29 = vcombine.low %v848_v20, %v862_v25  ;;  %753 = vst [vmem:[#allocation2 + $0x2c] sm:$0x1] %v752_v26  ;;  %v685_v36 = vshll.u32 %v638_v12, 16  ;;  %v690_v37 = vshrl.u32 %v639_v19, 16 }
  0xcb   : > { %511 = vst [vmem:[#allocation2 + $0x3c] sm:$0x1] %v510_v27  ;;  %v693_v38 = vshll.u32 %v639_v19, 16  ;;  %v684_v41 = vrot.slane %v682_v28, 7  ;;  %v16287_v46 = vld [vmem:[#allocation10 + $0x10] sm:$0xff]   ;;  %vm1226_vm10 = vcmask 1042432  }
  0xcc   : > { %15197 = vmatmul.mubr.bf16.vlgmr.msra.gmra.mrb[0].mxu0 %v13961_v29  ;;  %v692_v42 = vrot.slane %v690_v37, 7  ;;  %v1239_v9 = vrot.slane %v17161_v34, 5  ;;  %v16289_v11 = vld [vmem:[#allocation10 + $0x20] sm:$0xff]   ;;  %vm1227_vm11 = vcmask 1046532   ;;  %v1243_v16 = vrot.slane %v17164_v35, 5  ;;  %v16290_v28 = vld [vmem:[#allocation10 + $0x28] sm:$0xff]  }
  0xcd   : > { %15205 = vmatpush3.bf16.msra.mxu0 %v17151_v21  ;;  %v687_v43 = vor.u32 %v685_v36, %v684_v41  ;;  %v688_v44 = vrot.slane %v684_v41, 4  ;;  %v754_v45 = vld [vmem:[#allocation2 + $0x30] sm:$0xf]  ;;  %v1205_v23 = vld [vmem:[#allocation2 + $0x18] sm:$0xe]  ;;  %vm17235_vm12 = vmor %vm1226_vm10, %vm1227_vm11  ;;  %v21369_v37 = vmov 0 }
  0xce   : > { %15206 = vmatprep.subr.bf16.mxu0 %v16286_v30  ;;  %v695_v47 = vor.u32 %v693_v38, %v692_v42  ;;  %v696_v48 = vrot.slane %v692_v42, 4  ;;  %v1204_v19 = vld [vmem:[#allocation2 + $0x10] sm:$0xe]  ;;  %v21370_v37 = vsel %vm17235_vm12, 4294967295, %v21369_v37  ;;  %vm16751_vm13 = vmmov 0   ;;  %s21107_s2 = scalar_lea.vmem [#allocation13], %s13956_s15 }
  0xcf   : > { %v755_v49 = vsel %vm17107_vm6, %v687_v43, %v754_v45  ;;  %v757_v50 = vld [vmem:[#allocation2 + $0x34] sm:$0x1]  ;;  %v760_v51 = vld [vmem:[#allocation2 + $0x38] sm:$0xf]  ;;  %v13986_v24 = vrot.slane %v1204_v19, 9  ;;  %21371 = vst [vmem:[#allocation27_spill] sm:$0xff] %v21370_v37 }
  0xd0   : > { %v17199_v53 = vld [vmem:[#allocation2 + $0x20] sm:$0xf]  ;;  %v17203_v55 = vld [vmem:[#allocation2 + $0x24] sm:$0x1]  ;;  %756 = vst [vmem:[#allocation2 + $0x30] sm:$0xf] %v755_v49  ;;  %v758_v21 = vsel %vm17077_vm3, %v688_v44, %v757_v50  ;;  %v761_v56 = vsel %vm17107_vm6, %v695_v47, %v760_v51 }
  0xd1   : > { %v17201_v54 = vld [vmem:[#allocation2 + $0x28] sm:$0xf]  ;;  %15207 = vmatpush3.bf16.msra.mxu0 %v16286_v30  ;;  %v17209_v57 = vld [vmem:[#allocation2 + $0x2c] sm:$0x1]  ;;  %v864_v58 = vshrl.u32 %v17199_v53, 16  ;;  %v867_v59 = vshll.u32 %v17199_v53, 16  ;;  %v17246_v49 = vsel %vm17235_vm12, %v13986_v24, %v1239_v9 }
  0xd2   : > { %v873_v60 = vshll.u32 %v17203_v55, 16  ;;  %v878_v61 = vshrl.u32 %v17201_v54, 16  ;;  %759 = vst [vmem:[#allocation2 + $0x34] sm:$0x1] %v758_v21  ;;  %762 = vst [vmem:[#allocation2 + $0x38] sm:$0xf] %v761_v56  ;;  %15208 = vmatprep.subr.bf16.mxu0 %v16287_v46 }
  0xd3   : > { %v881_v62 = vshll.u32 %v17201_v54, 16  ;;  %v887_v63 = vshll.u32 %v17209_v57, 16  ;;  %v763_v1 = vld [vmem:[#allocation2 + $0x3c] sm:$0x1]  ;;  %v866_v2 = vrot.slane %v864_v58, 4  ;;  %v869_v3 = vrot.slane %v867_v59, 5 }
  0xd4   : > { %v880_v6 = vrot.slane %v878_v61, 4  ;;  %v764_v8 = vsel %vm17077_vm3, %v696_v48, %v763_v1  ;;  %v875_v13 = vrot.slane %v873_v60, 5  ;;  %v13987_v50 = vrot.slane %v1205_v23, 9  ;;  %v1203_v9 = vld [vmem:[#allocation2 + $0x8] sm:$0xe]  ;;  %v16297_v19 = vld [vmem:[#allocation10 + $0x90] sm:$0xff]  }
  0xd5   : > { %v883_v7 = vrot.slane %v881_v62, 5  ;;  %15209 = vmatpush3.bf16.msra.mxu0 %v16287_v46  ;;  %v870_v12 = vor.u32 %v869_v3, %v866_v2  ;;  %765 = vst [vmem:[#allocation2 + $0x3c] sm:$0x1] %v764_v8  ;;  %v889_v18 = vrot.slane %v887_v63, 5  ;;  %v16291_v46 = vld [vmem:[#allocation10 + $0x30] sm:$0xff]   ;;  %v13972_v2 = vcombine.low %v17111_v39, %v17132_v10  ;;  %s13828_s0 = sshll.u32 %s21107_s2, 4  ;;  %s21208_s0 = int_to_ptr.vmem [resolvable:$true] %s13828_s0 }
  0xd6   : > { %15210 = vmatprep.subr.bf16.mxu0 %v16288_v52  ;;  %v17251_v58 = vsel %vm17235_vm12, %v13987_v50, %v1243_v16  ;;  %v1202_v8 = vld [vmem:[#allocation2] sm:$0xe]  ;;  %v16296_v16 = vld [vmem:[#allocation10 + $0x88] sm:$0xff]   ;;  %v13974_v39 = vcombine.low %v17199_v53, %v17201_v54  ;;  %v1251_v33 = vrot.slane %v17209_v57, 5  ;;  %vm2809_vm14 = vcmask 64512   ;;  %s16663_s19 = scalar_lea.vmem %s21208_s0, 2048 }
  0xd7   : > { %v884_v17 = vor.u32 %v883_v7, %v880_v6  ;;  %v871_v20 = vrot.slane %v870_v12, 4  ;;  %v17221_v22 = vld [vmem:[#allocation2 + $0x30] sm:$0xf]  ;;  %v13993_v61 = vcombine.low %v17246_v49, %v17251_v58  ;;  %v16292_v6 = vld [vmem:[#allocation10 + $0x38] sm:$0xff]   ;;  %v16294_v7 = vld [vmem:[#allocation10 + $0x80] sm:$0xff]   ;;  %v13973_v12 = vcombine.low %v17157_v31, %v17159_v32  ;;  %p16664_p1 = scmp.ne.s32.totalorder %s21208_s0, %s16663_s19  ;;  %p21574_p13 = scmp.ne.s32.totalorder %s21346_s30, 0 }
  0xd8   : > { %v892_v27 = vshrl.u32 %v17221_v22, 16  ;;  %v895_v29 = vshll.u32 %v17221_v22, 16  ;;  %v13984_v10 = vrot.slane %v1202_v8, 9  ;;  %v1208_v50 = vld [vmem:[#allocation2 + $0x30] sm:$0xe]  ;;  %v16309_v49 = vld [vmem:[#allocation10 + $0xe0] sm:$0xff]  }
  0xd9   : > { %v885_v25 = vrot.slane %v884_v17, 4  ;;  %v17223_v26 = vld [vmem:[#allocation2 + $0x38] sm:$0xf]  ;;  %v17225_v34 = vld [vmem:[#allocation2 + $0x34] sm:$0x1]  ;;  %15211 = vmatpush3.bf16.msra.mxu0 %v16288_v52  ;;  %v876_v35 = vsel %vm17142_vm9, %v871_v20, %v875_v13  ;;  %v1235_v13 = vrot.slane %v17138_v14, 5  ;;  %p16665_p6 = pnand %p16664_p1, %p21574_p13 }
  0xda   : > { %v901_v30 = vshll.u32 %v17225_v34, 16  ;;  %v906_v36 = vshrl.u32 %v17223_v26, 16  ;;  %15212 = vmatprep.subr.bf16.mxu0 %v16289_v11  ;;  %v894_v41 = vrot.slane %v892_v27, 4  ;;  %v909_v42 = vshll.u32 %v17223_v26, 16  ;;  %v640_v20 = vld [vmem:[%s17043_s13 + $0x1c] sm:$0xf] }
  0xdb   : > { %v890_v38 = vsel %vm17142_vm9, %v885_v25, %v889_v18  ;;  %v897_v44 = vrot.slane %v895_v29, 5  ;;  %v13985_v17 = vrot.slane %v1203_v9, 9  ;;  %v480_v18 = vld [vmem:[#allocation2 + $0x40] sm:$0x1]  ;;  %v698_v32 = vshrl.u32 %v640_v20, 16  ;;  %v16310_v8 = vld [vmem:[#allocation10 + $0xe8] sm:$0xff]   ;;  %p16666_p10 = pneg %p16665_p6 }
  0xdc   : > { %v13962_v43 = vcombine.low %v876_v35, %v890_v38  ;;  %v908_v45 = vrot.slane %v906_v36, 4  ;;  %v17242_v47 = vld [vmem:[#allocation2 + $0x3c] sm:$0x1]  ;;  %v911_v48 = vrot.slane %v909_v42, 5  ;;  %v903_v52 = vrot.slane %v901_v30, 5  ;;  %v16298_v25 = vld [vmem:[#allocation10 + $0x98] sm:$0xff]  }
  0xdd   : > { %15213 = vmatpush3.bf16.msra.mxu0 %v16289_v11  ;;  %v898_v51 = vor.u32 %v897_v44, %v894_v41  ;;  %v915_v21 = vshll.u32 %v17242_v47, 16  ;;  %v1231_v11 = vrot.slane %v17113_v40, 5  ;;  %v481_v40 = vsel %vm17077_vm3, 0, %v480_v18  ;;  %v16299_v35 = vld [vmem:[#allocation10 + $0xa0] sm:$0xff]   ;;  %v16300_v30 = vld [vmem:[#allocation10 + $0xa8] sm:$0xff]   ;;  %v16304_v42 = vld [vmem:[#allocation10 + $0xb8] sm:$0xff]  }
  0xde   : > { %15200 = vmatprep.mubr.bf16.mxu0 %v13962_v43  ;;  %15214 = vmatprep.subr.bf16.mxu0 %v16290_v28  ;;  %v912_v56 = vor.u32 %v911_v48, %v908_v45  ;;  %v1236_v31 = vsel %vm17235_vm12, %v13985_v17, %v1235_v13  ;;  %482 = vst [vmem:[#allocation2 + $0x40] sm:$0x1] %v481_v40  ;;  %v701_v53 = vshll.u32 %v640_v20, 16  ;;  %v700_v23 = vrot.slane %v698_v32, 7  ;;  %v1207_v36 = vld [vmem:[#allocation2 + $0x28] sm:$0xe] }
  0xdf   : > { %v899_v59 = vrot.slane %v898_v51, 4  ;;  %v917_v60 = vrot.slane %v915_v21, 5  ;;  %v1232_v14 = vsel %vm17235_vm12, %v13984_v10, %v1231_v11  ;;  %v13975_v54 = vcombine.low %v17221_v22, %v17223_v26  ;;  %v16302_v22 = vld [vmem:[#allocation10 + $0xb0] sm:$0xff]   ;;  %v1206_v26 = vld [vmem:[#allocation2 + $0x20] sm:$0xe]  ;;  %s14665_s13 = sshll.u32 %s16833_s17, 11 }
  0xe0   : > { %v913_v62 = vrot.slane %v912_v56, 4  ;;  %v13992_v24 = vcombine.low %v1232_v14, %v1236_v31  ;;  %v703_v27 = vor.u32 %v701_v53, %v700_v23  ;;  %v1247_v38 = vrot.slane %v17203_v55, 5  ;;  %v512_v41 = vld [vmem:[#allocation2 + $0x44] sm:$0x1]  ;;  %v1209_v51 = vld [vmem:[#allocation2 + $0x38] sm:$0xe] }
  0xe1   : > { %15215 = vmatpush3.bf16.msra.mxu0 %v16290_v28  ;;  %v904_v63 = vsel %vm17142_vm9, %v899_v59, %v903_v52  ;;  %v13988_v43 = vrot.slane %v1206_v26, 9  ;;  %v13989_v44 = vrot.slane %v1207_v36, 9  ;;  %v513_v45 = vsel %vm17082_vm4, 0, %v512_v41  ;;  %v1585_v58 = vld [vmem:[#allocation2 + $0x8] sm:$0xf]  ;;  %v16312_v31 = vld [vmem:[#allocation10 + $0xf8] sm:$0xff]  }
  0xe2   : > { %15216 = vmatprep.subr.bf16.mxu0 %v16291_v46  ;;  %v918_v1 = vsel %vm17142_vm9, %v913_v62, %v917_v60  ;;  %514 = vst [vmem:[#allocation2 + $0x44] sm:$0x1] %v513_v45  ;;  %v704_v52 = vrot.slane %v700_v23, 4  ;;  %v1255_v21 = vrot.slane %v17225_v34, 5  ;;  %v13990_v56 = vrot.slane %v1208_v50, 9  ;;  %v16306_v62 = vld [vmem:[#allocation10 + $0xc8] sm:$0xff]  }
  0xe3   : > { %v13963_v3 = vcombine.low %v904_v63, %v918_v1  ;;  %v1248_v48 = vsel %vm17235_vm12, %v13988_v43, %v1247_v38  ;;  %v1252_v55 = vsel %vm17235_vm12, %v13989_v44, %v1251_v33  ;;  %v13991_v59 = vrot.slane %v1209_v51, 9  ;;  %v483_v11 = vld [vmem:[#allocation2 + $0x48] sm:$0x1]  ;;  %v17299_v17 = vld [vmem:[#allocation2 + $0xc] sm:$0x1]  ;;  %s13815_s17 = scalar_lea.sflag [#allocation7], %s17039_s24 }
  0xe4   : > { %v13994_v57 = vcombine.low %v1248_v48, %v1252_v55  ;;  %v1259_v60 = vrot.slane %v17242_v47, 5  ;;  %v1256_v34 = vsel %vm17235_vm12, %v13990_v56, %v1255_v21  ;;  %v16307_v47 = vld [vmem:[#allocation10 + $0xd0] sm:$0xff]   ;;  %v1602_v9 = vshrl.u32 %v1585_v58, 16  ;;  %v17301_v18 = vld [vmem:[#allocation2 + $0x14] sm:$0x1]  ;;  %s16754_s22 = smov [#allocation13]  }
  0xe5   : > { %15201 = vmatmul.mubr.bf16.gmra.mrb[4].mxu0 %v13963_v3  ;;  %v766_v28 = vld [vmem:[#allocation2 + $0x40] sm:$0xf]  ;;  %v1605_v13 = vshll.u32 %v1585_v58, 16  ;;  %v1589_v32 = vld [vmem:[#allocation2 + $0x18] sm:$0xf]  ;;  %v1611_v53 = vshll.u32 %v17299_v17, 16 }
  0xe6   : > { %15217 = vmatpush3.bf16.msra.mxu0 %v16291_v46  ;;  %15220 = vmatprep.mubr.bf16.mxu0 %v13972_v2  ;;  %v767_v29 = vsel %vm17107_vm6, %v703_v27, %v766_v28  ;;  %v16305_v46 = vld [vmem:[#allocation10 + $0xc0] sm:$0xff]   ;;  %v1260_v2 = vsel %vm17235_vm12, %v13991_v59, %v1259_v60  ;;  %v1630_v27 = vshrl.u32 %v1589_v32, 16  ;;  %v1633_v36 = vshll.u32 %v1589_v32, 16  ;;  %v1595_v45 = vld [vmem:[#allocation2 + $0x30] sm:$0xf]  ;;  %v16318_v60 = vld [vmem:[#allocation10 + $0x118] sm:$0xff]  }
  0xe7   : > { %15218 = vmatprep.subr.bf16.mxu0 %v16292_v6  ;;  %768 = vst [vmem:[#allocation2 + $0x40] sm:$0xf] %v767_v29  ;;  %v13995_v3 = vcombine.low %v1256_v34, %v1260_v2  ;;  %v1607_v40 = vrot.slane %v1605_v13, 5  ;;  %v16314_v28 = vld [vmem:[#allocation10 + $0x100] sm:$0xff]   ;;  %v1672_v59 = vshrl.u32 %v1595_v45, 16  ;;  %vm21299_vm15 = vcmask 1041409  }
  0xe8   : > { %v16321_v29 = vld [vmem:[#allocation2 + $0x28] ss:$8 sps:$4 sm:$0xff]   ;;  %v1632_v43 = vrot.slane %v1630_v27, 4  ;;  %v1635_v48 = vrot.slane %v1633_v36, 5  ;;  %v17309_v34 = vld [vmem:[#allocation2 + $0x1c] sm:$0x1] }
  0xe9   : > { %v769_v63 = vld [vmem:[#allocation2 + $0x44] sm:$0x1]  ;;  %v1593_v33 = vld [vmem:[#allocation2 + $0x28] sm:$0xf]  ;;  %v515_v2 = vld [vmem:[#allocation2 + $0x4c] sm:$0x1] }
  0xea   : > { %15219 = vmatpush3.bf16.msra.mxu0 %v16292_v6  ;;  %v770_v1 = vsel %vm17077_vm3, %v704_v52, %v769_v63  ;;  %v16313_v6 = vld [vmem:[#allocation2 + $0x8] ss:$8 sps:$4 sm:$0xff]   ;;  %v1658_v51 = vshrl.u32 %v1593_v33, 16  ;;  %v1661_v56 = vshll.u32 %v1593_v33, 16  ;;  %v1674_v58 = vrot.slane %v1672_v59, 4  ;;  %s16667_s23 = sshll.u32 %s16754_s22, 4  ;;  %s16668_s23 = int_to_ptr.vmem [resolvable:$false] %s16667_s23 }
  0xeb   : > { %15228 = vmatprep.subr.bf16.mxu0 %v16294_v7  ;;  %771 = vst [vmem:[#allocation2 + $0x44] sm:$0x1] %v770_v1  ;;  %v1675_v1 = vshll.u32 %v1595_v45, 16  ;;  %v1636_v13 = vor.u32 %v1635_v48, %v1632_v43  ;;  %v1867_v45 = vld [vmem:[#allocation2 + $0x8] sm:$0xe]  ;;  %v1901_v59 = vrot.slane %v17309_v34, 5  ;;  %p16670_p4 = scmp.lt.s32.totalorder %s21208_s0, %s16668_s23 }
  0xec   : > { %v1660_v63 = vrot.slane %v1658_v51, 4  ;;  %vm21292_vm0 = vcmask 1042434   ;;  %vm3213_vm1 = vcmask 1043459   ;;  %vm21297_vm2 = vcmask 1044484   ;;  %v4604_v5 = vld [vmem:[#allocation4 + $0x78] sm:$0x2] }
  0xed   : > { %15221 = vmatmul.mubr.bf16.vlgmr.msra.gmra.mrb[0].mxu0 %v13973_v12  ;;  %v16311_v12 = vld [vmem:[#allocation10 + $0xf0] sm:$0xff]   ;;  %v1637_v27 = vrot.slane %v1636_v13, 4  ;;  %vm3219_vm6 = vcmask 1045509   ;;  %vm21298_vm8 = vcmask 1046534   ;;  %vm21291_vm10 = vcmask 1047559   ;;  %s16669_s18 = scalar_lea.vmem %s16668_s23, 4096 }
  0xee   : > { %15229 = vmatpush3.bf16.msra.mxu0 %v16294_v7  ;;  %15224 = vmatprep.mubr.bf16.mxu0 %v13974_v39  ;;  %v16308_v7 = vld [vmem:[#allocation10 + $0xd8] sm:$0xff]   ;;  %p16671_p5 = scmp.lt.s32.totalorder %s16669_s18, %s16663_s19 }
  0xef   : > { %15230 = vmatprep.subr.bf16.mxu0 %v16296_v16  ;;  %v16323_v52 = vld [vmem:[#allocation2 + $0x38] ss:$8 sps:$4 sm:$0xff]  }
  0xf0   : > { %p16672_p3 = por %p16671_p5, %p16670_p4 }
  0xf2   : > { %15231 = vmatpush3.bf16.msra.mxu0 %v16296_v16  ;;  %v484_v16 = vsel %vm17077_vm3, 0, %v483_v11  ;;  %v1597_v11 = vld [vmem:[#allocation2 + $0x38] sm:$0xf]  ;;  %v17326_v33 = vld [vmem:[#allocation2 + $0x44] sm:$0x1]  ;;  %p16673_p7 = pnand %p16672_p3, %p16666_p10 }
  0xf3   : > { %15232 = vmatprep.subr.bf16.mxu0 %v16297_v19  ;;  %485 = vst [vmem:[#allocation2 + $0x48] sm:$0x1] %v484_v16  ;;  %v1686_v32 = vshrl.u32 %v1597_v11, 16 }
  0xf5   : > { %15225 = vmatmul.mubr.bf16.gmra.mrb[4].mxu0 %v13975_v54  ;;  %v1625_v54 = vshll.u32 %v17301_v18, 16 }
  0xf6   : > { %15233 = vmatpush3.bf16.msra.mxu0 %v16297_v19  ;;  %15244 = vmatprep.mubr.bf16.mxu0 %v13992_v24  ;;  %v1604_v19 = vrot.slane %v1602_v9, 4  ;;  %v1639_v9 = vshll.u32 %v17309_v34, 16 }
  0xf7   : > { %15234 = vmatprep.subr.bf16.mxu0 %v16298_v25  ;;  %v1627_v26 = vrot.slane %v1625_v54, 5 }
  0xf8   : > { %v1608_v23 = vor.u32 %v1607_v40, %v1604_v19  ;;  %v16320_v19 = vld [vmem:[#allocation10 + $0x128] sm:$0xff]  }
  0xfa   : > { %15235 = vmatpush3.bf16.msra.mxu0 %v16298_v25  ;;  %v1591_v25 = vld [vmem:[#allocation2 + $0x20] sm:$0xf]  ;;  %v1609_v41 = vrot.slane %v1608_v23, 4 }
  0xfb   : > { %15236 = vmatprep.subr.bf16.mxu0 %v16299_v35  ;;  %v1644_v38 = vshrl.u32 %v1591_v25, 16  ;;  %v1647_v44 = vshll.u32 %v1591_v25, 16  ;;  %v1641_v25 = vrot.slane %v1639_v9, 5  ;;  %v16326_v9 = vld [vmem:[#allocation10 + $0x148] sm:$0xff]  }
  0xfd   : > { %v1646_v55 = vrot.slane %v1644_v38, 4  ;;  %v1649_v50 = vrot.slane %v1647_v44, 5  ;;  %v1688_v38 = vrot.slane %v1686_v32, 4  ;;  %v16324_v44 = vld [vmem:[#allocation10 + $0x138] sm:$0xff]   ;;  %v16327_v32 = vld [vmem:[#allocation10 + $0x150] sm:$0xff]  }
  0xfe   : > { %15237 = vmatpush3.bf16.msra.mxu0 %v16299_v35  ;;  %v16315_v35 = vld [vmem:[#allocation2 + $0x18] ss:$8 sps:$4 sm:$0xff]  }
  0xff   : > { %15238 = vmatprep.subr.bf16.mxu0 %v16300_v30  ;;  %v1650_v16 = vor.u32 %v1649_v50, %v1646_v55  ;;  %v1709_v55 = vshll.u32 %v17326_v33, 16  ;;  %v1642_v50 = vsel %vm17142_vm9, %v1637_v27, %v1641_v25 }
 0x102   : > { %15239 = vmatpush3.bf16.msra.mxu0 %v16300_v30  ;;  %v16316_v30 = vld [vmem:[#allocation10 + $0x108] sm:$0xff]  }
 0x103   : > { %15240 = vmatprep.subr.bf16.mxu0 %v16302_v22 }
 0x106   : > { %15241 = vmatpush3.bf16.msra.mxu0 %v16302_v22  ;;  %v1613_v22 = vrot.slane %v1611_v53, 5  ;;  %v1689_v53 = vshll.u32 %v1597_v11, 16  ;;  %v1711_v11 = vrot.slane %v1709_v55, 5 }
 0x107   : > { %15242 = vmatprep.subr.bf16.mxu0 %v16304_v42 }
 0x108   : > { %v1614_v21 = vsel %vm17142_vm9, %v1609_v41, %v1613_v22  ;;  %v1691_v41 = vrot.slane %v1689_v53, 5 }
 0x10a   : > { %15243 = vmatpush3.bf16.msra.mxu0 %v16304_v42  ;;  %v1692_v48 = vor.u32 %v1691_v41, %v1688_v38 }
 0x10b   : > { %15252 = vmatprep.subr.bf16.mxu0 %v16305_v46 }
 0x10d   : > { %15245 = vmatmul.mubr.bf16.vlgmr.msra.gmra.mrb[0].mxu0 %v13993_v61  ;;  %v1587_v61 = vld [vmem:[#allocation2 + $0x10] sm:$0xf] }
 0x10e   : > { %15253 = vmatpush3.bf16.msra.mxu0 %v16305_v46  ;;  %15248 = vmatprep.mubr.bf16.mxu0 %v13994_v57  ;;  %v1616_v39 = vshrl.u32 %v1587_v61, 16  ;;  %v1619_v10 = vshll.u32 %v1587_v61, 16  ;;  %v16317_v46 = vld [vmem:[#allocation10 + $0x110] sm:$0xff]   ;;  %v1677_v61 = vrot.slane %v1675_v1, 5  ;;  %v14028_v1 = vrot.slane %v1867_v45, 9 }
 0x10f   : > { %15254 = vmatprep.subr.bf16.mxu0 %v16306_v62 }
 0x110   : > { %v1618_v20 = vrot.slane %v1616_v39, 4  ;;  %v1621_v14 = vrot.slane %v1619_v10, 5 }
 0x112   : > { %15255 = vmatpush3.bf16.msra.mxu0 %v16306_v62  ;;  %v1622_v24 = vor.u32 %v1621_v14, %v1618_v20  ;;  %v1678_v20 = vor.u32 %v1677_v61, %v1674_v58 }
 0x113   : > { %15256 = vmatprep.subr.bf16.mxu0 %v16307_v47 }
 0x114   : > { %v1623_v42 = vrot.slane %v1622_v24, 4  ;;  %v16322_v24 = vld [vmem:[#allocation10 + $0x130] sm:$0xff]   ;;  %v1679_v22 = vrot.slane %v1678_v20, 4 }
 0x115   : > { %15249 = vmatmul.mubr.bf16.gmra.mrb[4].mxu0 %v13995_v3  ;;  %v17311_v3 = vld [vmem:[#allocation2 + $0x24] sm:$0x1] }
 0x116   : > { %15257 = vmatpush3.bf16.msra.mxu0 %v16307_v47  ;;  %15268 = vmatprep.mubr.bf16.mxu0 %v16313_v6  ;;  %v1628_v57 = vsel %vm17142_vm9, %v1623_v42, %v1627_v26  ;;  %v16319_v47 = vld [vmem:[#allocation10 + $0x120] sm:$0xff]   ;;  %v1653_v39 = vshll.u32 %v17311_v3, 16  ;;  %v1905_v58 = vrot.slane %v17311_v3, 5 }
 0x117   : > { %15258 = vmatprep.subr.bf16.mxu0 %v16308_v7  ;;  %v14016_v62 = vcombine.low %v1614_v21, %v1628_v57  ;;  %v17313_v6 = vld [vmem:[#allocation2 + $0x2c] sm:$0x1]  ;;  %v1893_v57 = vrot.slane %v17299_v17, 5 }
 0x118   : > { %v1667_v10 = vshll.u32 %v17313_v6, 16 }
 0x11a   : > { %15259 = vmatpush3.bf16.msra.mxu0 %v16308_v7  ;;  %v1663_v7 = vrot.slane %v1661_v56, 5  ;;  %v1897_v56 = vrot.slane %v17301_v18, 5  ;;  %v1871_v18 = vld [vmem:[#allocation2 + $0x28] sm:$0xe] }
 0x11b   : > { %15260 = vmatprep.subr.bf16.mxu0 %v16309_v49 }
 0x11c   : > { %v1664_v40 = vor.u32 %v1663_v7, %v1660_v63  ;;  %v1869_v7 = vld [vmem:[#allocation2 + $0x18] sm:$0xe] }
 0x11e   : > { %15261 = vmatpush3.bf16.msra.mxu0 %v16309_v49  ;;  %v516_v49 = vsel %vm17082_vm4, 0, %v515_v2 }
 0x11f   : > { %15262 = vmatprep.subr.bf16.mxu0 %v16310_v8  ;;  %517 = vst [vmem:[#allocation2 + $0x4c] sm:$0x1] %v516_v49  ;;  %v1870_v49 = vld [vmem:[#allocation2 + $0x20] sm:$0xe] }
 0x120   : > { %v14031_v20 = vrot.slane %v1870_v49, 9 }
 0x122   : > { %15263 = vmatpush3.bf16.msra.mxu0 %v16310_v8  ;;  %v17317_v8 = vld [vmem:[#allocation2 + $0x34] sm:$0x1]  ;;  %v1906_v41 = vsel %vm17235_vm12, %v14031_v20, %v1905_v58 }
 0x123   : > { %15264 = vmatprep.subr.bf16.mxu0 %v16311_v12  ;;  %v1681_v14 = vshll.u32 %v17317_v8, 16 }
 0x125   : > { %v1683_v26 = vrot.slane %v1681_v14, 5  ;;  %v1909_v14 = vrot.slane %v17313_v6, 5 }
 0x126   : > { %15265 = vmatpush3.bf16.msra.mxu0 %v16311_v12  ;;  %v1599_v12 = vld [vmem:[#allocation2 + $0x40] sm:$0xf] }
 0x127   : > { %15266 = vmatprep.subr.bf16.mxu0 %v16312_v31  ;;  %v1700_v54 = vshrl.u32 %v1599_v12, 16  ;;  %v1703_v23 = vshll.u32 %v1599_v12, 16  ;;  %v1872_v12 = vld [vmem:[#allocation2 + $0x30] sm:$0xe] }
 0x129   : > { %v1702_v42 = vrot.slane %v1700_v54, 4  ;;  %v1705_v43 = vrot.slane %v1703_v23, 5  ;;  %v14032_v54 = vrot.slane %v1871_v18, 9  ;;  %v14033_v23 = vrot.slane %v1872_v12, 9 }
 0x12a   : > { %15267 = vmatpush3.bf16.msra.mxu0 %v16312_v31  ;;  %v17323_v31 = vld [vmem:[#allocation2 + $0x3c] sm:$0x1] }
 0x12b   : > { %15276 = vmatprep.subr.bf16.mxu0 %v16314_v28  ;;  %v1695_v36 = vshll.u32 %v17323_v31, 16  ;;  %v1917_v27 = vrot.slane %v17323_v31, 5  ;;  %v16332_v31 = vld [vmem:[#allocation10 + $0x178] sm:$0xff]  }
 0x12d   : > { %15269 = vmatmul.mubr.bf16.vlgmr.msra.gmra.mrb[0].mxu0 %v16315_v35  ;;  %v1655_v35 = vrot.slane %v1653_v39, 5  ;;  %v1697_v63 = vrot.slane %v1695_v36, 5  ;;  %v1874_v39 = vld [vmem:[#allocation2 + $0x40] sm:$0xe]  ;;  %v16333_v36 = vld [vmem:[#allocation10 + $0x180] sm:$0xff]  }
 0x12e   : > { %15277 = vmatpush3.bf16.msra.mxu0 %v16314_v28  ;;  %15272 = vmatprep.mubr.bf16.mxu0 %v16321_v29  ;;  %v1651_v28 = vrot.slane %v1650_v16, 4  ;;  %v1669_v29 = vrot.slane %v1667_v10, 5  ;;  %v1873_v16 = vld [vmem:[#allocation2 + $0x38] sm:$0xe]  ;;  %v1894_v10 = vsel %vm17235_vm12, %v14028_v1, %v1893_v57  ;;  %v2248_v57 = vld [vmem:[#allocation2 + $0x10] sm:$0xf] }
 0x12f   : > { %15278 = vmatprep.subr.bf16.mxu0 %v16316_v30  ;;  %v14034_v25 = vrot.slane %v1873_v16, 9  ;;  %v16343_v16 = vld [vmem:[#allocation2 + $0x20] ss:$8 sps:$4 sm:$0xff]  }
 0x130   : > { %v1656_v51 = vsel %vm17142_vm9, %v1651_v28, %v1655_v35  ;;  %v14035_v28 = vrot.slane %v1874_v39, 9  ;;  %v1921_v35 = vrot.slane %v17326_v33, 5  ;;  %v16334_v33 = vld [vmem:[#allocation10 + $0x188] sm:$0xff]  }
 0x131   : > { %v14017_v61 = vcombine.low %v1642_v50, %v1656_v51  ;;  %v1918_v34 = vsel %vm17235_vm12, %v14034_v25, %v1917_v27  ;;  %v16341_v50 = vld [vmem:[#allocation2 + $0x10] ss:$8 sps:$4 sm:$0xff]   ;;  %v16336_v51 = vld [vmem:[#allocation10 + $0x198] sm:$0xff]   ;;  %v2254_v27 = vld [vmem:[#allocation2 + $0x28] sm:$0xf] }
 0x132   : > { %15279 = vmatpush3.bf16.msra.mxu0 %v16316_v30  ;;  %v1665_v30 = vrot.slane %v1664_v40, 4  ;;  %v14030_v40 = vrot.slane %v1869_v7, 9  ;;  %v16349_v39 = vld [vmem:[#allocation2 + $0x30] ss:$8 sps:$4 sm:$0xff]   ;;  %v16346_v25 = vld [vmem:[#allocation10 + $0x1d8] sm:$0xff]  }
 0x133   : > { %15280 = vmatprep.subr.bf16.mxu0 %v16317_v46 }
 0x134   : > { %v1670_v21 = vsel %vm17142_vm9, %v1665_v30, %v1669_v29  ;;  %v16328_v29 = vld [vmem:[#allocation10 + $0x158] sm:$0xff]   ;;  %v1902_v38 = vsel %vm17235_vm12, %v14030_v40, %v1901_v59  ;;  %v16339_v59 = vld [vmem:[#allocation10 + $0x1b0] sm:$0xff]  }
 0x135   : > { %15273 = vmatmul.mubr.bf16.gmra.mrb[4].mxu0 %v16323_v52  ;;  %v1706_v52 = vor.u32 %v1705_v43, %v1702_v42  ;;  %v1910_v42 = vsel %vm17235_vm12, %v14032_v54, %v1909_v14  ;;  %v16345_v14 = vld [vmem:[#allocation10 + $0x1d0] sm:$0xff]   ;;  %v16351_v54 = vld [vmem:[#allocation2 + $0x40] ss:$8 sps:$4 sm:$0xff]  }
 0x136   : > { %15281 = vmatpush3.bf16.msra.mxu0 %v16317_v46  ;;  %15292 = vmatprep.mubr.bf16.mxu0 %v14016_v62  ;;  %v1868_v46 = vld [vmem:[#allocation2 + $0x10] sm:$0xe]  ;;  %v1684_v62 = vsel %vm17142_vm9, %v1679_v22, %v1683_v26  ;;  %v16329_v22 = vld [vmem:[#allocation10 + $0x160] sm:$0xff]  }
 0x137   : > { %15282 = vmatprep.subr.bf16.mxu0 %v16318_v60  ;;  %v14029_v2 = vrot.slane %v1868_v46, 9  ;;  %v1707_v17 = vrot.slane %v1706_v52, 4  ;;  %v14018_v13 = vcombine.low %v1670_v21, %v1684_v62  ;;  %v16330_v26 = vld [vmem:[#allocation10 + $0x168] sm:$0xff]   ;;  %v1922_v46 = vsel %vm17235_vm12, %v14035_v28, %v1921_v35  ;;  %v16337_v52 = vld [vmem:[#allocation10 + $0x1a0] sm:$0xff]   ;;  %v2258_v35 = vld [vmem:[#allocation2 + $0x38] sm:$0xf] }
 0x138   : > { %v14039_v55 = vcombine.low %v1918_v34, %v1922_v46  ;;  %v16338_v21 = vld [vmem:[#allocation10 + $0x1a8] sm:$0xff]   ;;  %v2268_v62 = vshll.u32 %v2248_v57, 16  ;;  %v2260_v46 = vld [vmem:[#allocation2 + $0x40] sm:$0xf] }
 0x139   : > { %v1712_v53 = vsel %vm17142_vm9, %v1707_v17, %v1711_v11  ;;  %v16342_v17 = vld [vmem:[#allocation10 + $0x1c0] sm:$0xff]   ;;  %v2256_v28 = vld [vmem:[#allocation2 + $0x30] sm:$0xf] }
 0x13a   : > { %15283 = vmatpush3.bf16.msra.mxu0 %v16318_v60  ;;  %v16325_v60 = vld [vmem:[#allocation10 + $0x140] sm:$0xff]   ;;  %v2270_v7 = vrot.slane %v2268_v62, 5  ;;  %v2352_v62 = vshll.u32 %v2260_v46, 16 }
 0x13b   : > { %15284 = vmatprep.subr.bf16.mxu0 %v16319_v47 }
 0x13e   : > { %15285 = vmatpush3.bf16.msra.mxu0 %v16319_v47  ;;  %v1693_v47 = vrot.slane %v1692_v48, 4  ;;  %v16335_v48 = vld [vmem:[#allocation10 + $0x190] sm:$0xff]  }
 0x13f   : > { %15286 = vmatprep.subr.bf16.mxu0 %v16320_v19 }
 0x140   : > { %v1698_v3 = vsel %vm17142_vm9, %v1693_v47, %v1697_v63 }
 0x141   : > { %v14019_v30 = vcombine.low %v1698_v3, %v1712_v53 }
 0x142   : > { %15287 = vmatpush3.bf16.msra.mxu0 %v16320_v19  ;;  %v1898_v19 = vsel %vm17235_vm12, %v14029_v2, %v1897_v56  ;;  %v2250_v56 = vld [vmem:[#allocation2 + $0x18] sm:$0xf]  ;;  %v16340_v2 = vld [vmem:[#allocation10 + $0x1b8] sm:$0xff]  }
 0x143   : > { %15288 = vmatprep.subr.bf16.mxu0 %v16322_v24  ;;  %v14036_v6 = vcombine.low %v1894_v10, %v1898_v19  ;;  %v2279_v63 = vshrl.u32 %v2250_v56, 16  ;;  %v2282_v1 = vshll.u32 %v2250_v56, 16  ;;  %v16344_v10 = vld [vmem:[#allocation10 + $0x1c8] sm:$0xff]  }
 0x145   : > { %v2281_v49 = vrot.slane %v2279_v63, 4  ;;  %v2284_v58 = vrot.slane %v2282_v1, 5 }
 0x146   : > { %15289 = vmatpush3.bf16.msra.mxu0 %v16322_v24  ;;  %v1913_v24 = vrot.slane %v17317_v8, 5  ;;  %v16331_v8 = vld [vmem:[#allocation10 + $0x170] sm:$0xff]  }
 0x147   : > { %15290 = vmatprep.subr.bf16.mxu0 %v16324_v44  ;;  %v2285_v12 = vor.u32 %v2284_v58, %v2281_v49 }
 0x148   : > { %v1914_v43 = vsel %vm17235_vm12, %v14033_v23, %v1913_v24  ;;  %v2252_v24 = vld [vmem:[#allocation2 + $0x20] sm:$0xf] }
 0x149   : > { %v14038_v45 = vcombine.low %v1910_v42, %v1914_v43  ;;  %v2286_v40 = vrot.slane %v2285_v12, 4  ;;  %v17377_v42 = vld [vmem:[#allocation2 + $0x24] sm:$0x1] }
 0x14a   : > { %15291 = vmatpush3.bf16.msra.mxu0 %v16324_v44  ;;  %v14037_v44 = vcombine.low %v1902_v38, %v1906_v41  ;;  %v2338_v38 = vshll.u32 %v2258_v35, 16  ;;  %v16348_v41 = vld [vmem:[#allocation10 + $0x1e8] sm:$0xff]  }
 0x14b   : > { %15300 = vmatprep.subr.bf16.mxu0 %v16325_v60 }
 0x14d   : > { %15293 = vmatmul.mubr.bf16.vlgmr.msra.gmra.mrb[0].mxu0 %v14017_v61  ;;  %v17367_v61 = vld [vmem:[#allocation2 + $0x14] sm:$0x1] }
 0x14e   : > { %15301 = vmatpush3.bf16.msra.mxu0 %v16325_v60  ;;  %15296 = vmatprep.mubr.bf16.mxu0 %v14018_v13  ;;  %v2265_v60 = vshrl.u32 %v2248_v57, 16  ;;  %v2274_v18 = vshll.u32 %v17367_v61, 16  ;;  %v17383_v57 = vld [vmem:[#allocation2 + $0x3c] sm:$0x1] }
 0x14f   : > { %15302 = vmatprep.subr.bf16.mxu0 %v16326_v9 }
 0x150   : > { %v2267_v47 = vrot.slane %v2265_v60, 4  ;;  %v2276_v3 = vrot.slane %v2274_v18, 5  ;;  %v2349_v60 = vshrl.u32 %v2260_v46, 16  ;;  %v16352_v18 = vld [vmem:[#allocation10 + $0x1f8] sm:$0xff]   ;;  %v2556_v46 = vrot.slane %v17367_v61, 5 }
 0x152   : > { %15303 = vmatpush3.bf16.msra.mxu0 %v16326_v9  ;;  %v17369_v9 = vld [vmem:[#allocation2 + $0x1c] sm:$0x1]  ;;  %v2271_v11 = vor.u32 %v2270_v7, %v2267_v47 }
 0x153   : > { %15304 = vmatprep.subr.bf16.mxu0 %v16327_v32  ;;  %v2288_v13 = vshll.u32 %v17369_v9, 16  ;;  %v16350_v7 = vld [vmem:[#allocation10 + $0x1f0] sm:$0xff]  }
 0x154   : > { %v2272_v19 = vrot.slane %v2271_v11, 4  ;;  %v2344_v11 = vshll.u32 %v17383_v57, 16 }
 0x155   : > { %15297 = vmatmul.mubr.bf16.gmra.mrb[4].mxu0 %v14019_v30  ;;  %v2290_v20 = vrot.slane %v2288_v13, 5  ;;  %v2296_v30 = vshll.u32 %v2252_v24, 16 }
 0x156   : > { %15305 = vmatpush3.bf16.msra.mxu0 %v16327_v32  ;;  %15316 = vmatprep.mubr.bf16.mxu0 %v14036_v6  ;;  %v2277_v32 = vsel %vm17142_vm9, %v2272_v19, %v2276_v3  ;;  %v2307_v6 = vshrl.u32 %v2254_v27, 16  ;;  %v17389_v3 = vld [vmem:[#allocation2 + $0x44] sm:$0x1] }
 0x157   : > { %15306 = vmatprep.subr.bf16.mxu0 %v16328_v29  ;;  %v2291_v53 = vsel %vm17142_vm9, %v2286_v40, %v2290_v20 }
 0x158   : > { %v14060_v23 = vcombine.low %v2277_v32, %v2291_v53 }
 0x15a   : > { %15307 = vmatpush3.bf16.msra.mxu0 %v16328_v29  ;;  %v2293_v29 = vshrl.u32 %v2252_v24, 16 }
 0x15b   : > { %15308 = vmatprep.subr.bf16.mxu0 %v16329_v22 }
 0x15c   : > { %v2295_v43 = vrot.slane %v2293_v29, 4 }
 0x15e   : > { %15309 = vmatpush3.bf16.msra.mxu0 %v16329_v22  ;;  %v2310_v22 = vshll.u32 %v2254_v27, 16 }
 0x15f   : > { %15310 = vmatprep.subr.bf16.mxu0 %v16330_v26 }
 0x160   : > { %v2312_v34 = vrot.slane %v2310_v22, 5 }
 0x162   : > { %15311 = vmatpush3.bf16.msra.mxu0 %v16330_v26  ;;  %v16347_v26 = vld [vmem:[#allocation10 + $0x1e0] sm:$0xff]  }
 0x163   : > { %15312 = vmatprep.subr.bf16.mxu0 %v16331_v8 }
 0x166   : > { %15313 = vmatpush3.bf16.msra.mxu0 %v16331_v8  ;;  %v2321_v8 = vshrl.u32 %v2256_v28, 16 }
 0x167   : > { %15314 = vmatprep.subr.bf16.mxu0 %v16332_v31 }
 0x16a   : > { %15315 = vmatpush3.bf16.msra.mxu0 %v16332_v31  ;;  %v2324_v31 = vshll.u32 %v2256_v28, 16  ;;  %v2358_v28 = vshll.u32 %v17389_v3, 16 }
 0x16b   : > { %15324 = vmatprep.subr.bf16.mxu0 %v16333_v36 }
 0x16d   : > { %15317 = vmatmul.mubr.bf16.vlgmr.msra.gmra.mrb[0].mxu0 %v14037_v44  ;;  %v2298_v44 = vrot.slane %v2296_v30, 5  ;;  %v16353_v30 = vld [vmem:[#allocation10 + $0x200] sm:$0xff]  }
 0x16e   : > { %15325 = vmatpush3.bf16.msra.mxu0 %v16333_v36  ;;  %15320 = vmatprep.mubr.bf16.mxu0 %v14038_v45  ;;  %v2335_v36 = vshrl.u32 %v2258_v35, 16  ;;  %v2309_v45 = vrot.slane %v2307_v6, 4 }
 0x16f   : > { %15326 = vmatprep.subr.bf16.mxu0 %v16334_v33  ;;  %v2299_v56 = vor.u32 %v2298_v44, %v2295_v43 }
 0x170   : > { %v2313_v63 = vor.u32 %v2312_v34, %v2309_v45  ;;  %v16354_v45 = vld [vmem:[#allocation10 + $0x208] sm:$0xff]  }
 0x171   : > { %v2300_v12 = vrot.slane %v2299_v56, 4 }
 0x172   : > { %15327 = vmatpush3.bf16.msra.mxu0 %v16334_v33  ;;  %v17379_v33 = vld [vmem:[#allocation2 + $0x2c] sm:$0x1] }
 0x173   : > { %15328 = vmatprep.subr.bf16.mxu0 %v16335_v48  ;;  %v2316_v1 = vshll.u32 %v17379_v33, 16 }
 0x175   : > { %15321 = vmatmul.mubr.bf16.gmra.mrb[4].mxu0 %v14039_v55  ;;  %v2326_v55 = vrot.slane %v2324_v31, 5  ;;  %v2318_v19 = vrot.slane %v2316_v1, 5  ;;  %v16359_v1 = vld [vmem:[#allocation10 + $0x230] sm:$0xff]  }
 0x176   : > { %15329 = vmatpush3.bf16.msra.mxu0 %v16335_v48  ;;  %15340 = vmatprep.mubr.bf16.mxu0 %v16341_v50  ;;  %v2323_v48 = vrot.slane %v2321_v8, 4  ;;  %v2337_v50 = vrot.slane %v2335_v36, 4  ;;  %v2531_v8 = vld [vmem:[#allocation2 + $0x18] sm:$0xe] }
 0x177   : > { %15330 = vmatprep.subr.bf16.mxu0 %v16336_v51 }
 0x178   : > { %v2327_v49 = vor.u32 %v2326_v55, %v2323_v48  ;;  %v14073_v48 = vrot.slane %v2531_v8, 9  ;;  %v2560_v55 = vrot.slane %v17369_v9, 5 }
 0x17a   : > { %15331 = vmatpush3.bf16.msra.mxu0 %v16336_v51  ;;  %v2340_v51 = vrot.slane %v2338_v38, 5  ;;  %v2561_v61 = vsel %vm17235_vm12, %v14073_v48, %v2560_v55 }
 0x17b   : > { %15332 = vmatprep.subr.bf16.mxu0 %v16337_v52 }
 0x17e   : > { %15333 = vmatpush3.bf16.msra.mxu0 %v16337_v52  ;;  %v2262_v52 = vld [vmem:[#allocation2 + $0x48] sm:$0xf] }
 0x17f   : > { %15334 = vmatprep.subr.bf16.mxu0 %v16338_v21  ;;  %v2366_v47 = vshll.u32 %v2262_v52, 16 }
 0x181   : > { %v2368_v20 = vrot.slane %v2366_v47, 5  ;;  %v2533_v47 = vld [vmem:[#allocation2 + $0x28] sm:$0xe] }
 0x182   : > { %15335 = vmatpush3.bf16.msra.mxu0 %v16338_v21  ;;  %v17381_v21 = vld [vmem:[#allocation2 + $0x34] sm:$0x1] }
 0x183   : > { %15336 = vmatprep.subr.bf16.mxu0 %v16339_v59  ;;  %v2330_v58 = vshll.u32 %v17381_v21, 16 }
 0x185   : > { %v2332_v32 = vrot.slane %v2330_v58, 5 }
 0x186   : > { %15337 = vmatpush3.bf16.msra.mxu0 %v16339_v59  ;;  %v2302_v59 = vshll.u32 %v17377_v42, 16 }
 0x187   : > { %15338 = vmatprep.subr.bf16.mxu0 %v16340_v2 }
 0x188   : > { %v2304_v13 = vrot.slane %v2302_v59, 5 }
 0x18a   : > { %15339 = vmatpush3.bf16.msra.mxu0 %v16340_v2  ;;  %v2363_v2 = vshrl.u32 %v2262_v52, 16  ;;  %v2305_v24 = vsel %vm17142_vm9, %v2300_v12, %v2304_v13  ;;  %v16355_v52 = vld [vmem:[#allocation10 + $0x210] sm:$0xff]   ;;  %v16360_v12 = vld [vmem:[#allocation10 + $0x238] sm:$0xff]  }
 0x18b   : > { %15348 = vmatprep.subr.bf16.mxu0 %v16342_v17 }
 0x18c   : > { %v2365_v40 = vrot.slane %v2363_v2, 4  ;;  %v2532_v2 = vld [vmem:[#allocation2 + $0x20] sm:$0xe] }
 0x18d   : > { %15341 = vmatmul.mubr.bf16.vlgmr.msra.gmra.mrb[0].mxu0 %v16343_v16  ;;  %v2351_v16 = vrot.slane %v2349_v60, 4  ;;  %v16356_v60 = vld [vmem:[#allocation10 + $0x218] sm:$0xff]   ;;  %v14074_v58 = vrot.slane %v2532_v2, 9 }
 0x18e   : > { %15349 = vmatpush3.bf16.msra.mxu0 %v16342_v17  ;;  %15344 = vmatprep.mubr.bf16.mxu0 %v16349_v39  ;;  %v2341_v17 = vor.u32 %v2340_v51, %v2337_v50  ;;  %v2354_v39 = vrot.slane %v2352_v62, 5  ;;  %v2369_v35 = vor.u32 %v2368_v20, %v2365_v40  ;;  %v16357_v62 = vld [vmem:[#allocation10 + $0x220] sm:$0xff]   ;;  %v2536_v20 = vld [vmem:[#allocation2 + $0x40] sm:$0xe] }
 0x18f   : > { %15350 = vmatprep.subr.bf16.mxu0 %v16344_v10 }
 0x190   : > { %v2342_v53 = vrot.slane %v2341_v17, 4  ;;  %v2370_v43 = vrot.slane %v2369_v35, 4  ;;  %v2564_v17 = vrot.slane %v17377_v42, 5  ;;  %v16750_v35 = vmov 0.0  }
 0x191   : > { %15402 = vmatprep.subr.bf16.mxu1 %v16750_v35  ;;  %15404 = vmatprep.mubr.msk.bf16.mxu1 %vm16751_vm13, %v16750_v35 }
 0x192   : > { %15351 = vmatpush3.bf16.msra.mxu0 %v16344_v10  ;;  %v2314_v10 = vrot.slane %v2313_v63, 4  ;;  %v16358_v63 = vld [vmem:[#allocation10 + $0x228] sm:$0xff]  }
 0x193   : > { %15352 = vmatprep.subr.bf16.mxu0 %v16345_v14 }
 0x194   : > { %v2319_v27 = vsel %vm17142_vm9, %v2314_v10, %v2318_v19  ;;  %v2576_v10 = vrot.slane %v17383_v57, 5  ;;  %v2565_v19 = vsel %vm17235_vm12, %v14074_v58, %v2564_v17 }
 0x195   : > { %15345 = vmatmul.mubr.bf16.gmra.mrb[4].mxu0 %v16351_v54  ;;  %v2346_v54 = vrot.slane %v2344_v11, 5  ;;  %v14061_v31 = vcombine.low %v2305_v24, %v2319_v27  ;;  %v14075_v11 = vrot.slane %v2533_v47, 9 }
 0x196   : > { %15353 = vmatpush3.bf16.msra.mxu0 %v16345_v14  ;;  %15364 = vmatprep.mubr.bf16.mxu0 %v14060_v23  ;;  %v2328_v14 = vrot.slane %v2327_v49, 4  ;;  %v17391_v23 = vld [vmem:[#allocation2 + $0x4c] sm:$0x1]  ;;  %v2535_v49 = vld [vmem:[#allocation2 + $0x38] sm:$0xe] }
 0x197   : > { %15354 = vmatprep.subr.bf16.mxu0 %v16346_v25  ;;  %v2372_v29 = vshll.u32 %v17391_v23, 16  ;;  %v2347_v22 = vsel %vm17142_vm9, %v2342_v53, %v2346_v54  ;;  %v2580_v53 = vrot.slane %v17389_v3, 5  ;;  %v2584_v24 = vrot.slane %v17391_v23, 5  ;;  %v14092_v3 = vld [vmem:[%s21257_s3] ss:$0 sm:$0xff] }
 0x198   : > { %v2333_v6 = vsel %vm17142_vm9, %v2328_v14, %v2332_v32  ;;  %v2537_v14 = vld [vmem:[#allocation2 + $0x48] sm:$0xe]  ;;  %v14078_v32 = vrot.slane %v2536_v20, 9 }
 0x199   : > { %v14062_v38 = vcombine.low %v2333_v6, %v2347_v22  ;;  %v2374_v44 = vrot.slane %v2372_v29, 5  ;;  %v14079_v54 = vrot.slane %v2537_v14, 9 }
 0x19a   : > { %15355 = vmatpush3.bf16.msra.mxu0 %v16346_v25  ;;  %v2355_v25 = vor.u32 %v2354_v39, %v2351_v16  ;;  %v2572_v16 = vrot.slane %v17381_v21, 5  ;;  %v14077_v39 = vrot.slane %v2535_v49, 9 }
 0x19b   : > { %15356 = vmatprep.subr.bf16.mxu0 %v16347_v26  ;;  %v2375_v51 = vsel %vm17142_vm9, %v2370_v43, %v2374_v44  ;;  %v2585_v27 = vsel %vm17235_vm12, %v14079_v54, %v2584_v24 }
 0x19c   : > { %v2356_v36 = vrot.slane %v2355_v25, 4  ;;  %v2581_v25 = vsel %vm17235_vm12, %v14078_v32, %v2580_v53 }
 0x19e   : > { %15357 = vmatpush3.bf16.msra.mxu0 %v16347_v26  ;;  %v2530_v26 = vld [vmem:[#allocation2 + $0x10] sm:$0xe] }
 0x19f   : > { %15358 = vmatprep.subr.bf16.mxu0 %v16348_v41  ;;  %v14072_v34 = vrot.slane %v2530_v26, 9 }
 0x1a1   : > { %v2557_v56 = vsel %vm17235_vm12, %v14072_v34, %v2556_v46 }
 0x1a2   : > { %15359 = vmatpush3.bf16.msra.mxu0 %v16348_v41  ;;  %v2360_v41 = vrot.slane %v2358_v28, 5  ;;  %v14080_v9 = vcombine.low %v2557_v56, %v2561_v61  ;;  %v14083_v28 = vcombine.low %v2581_v25, %v2585_v27  ;;  %v16361_v56 = vld [vmem:[%s21259_s5] sm:$0xff]  }
 0x1a3   : > { %15360 = vmatprep.subr.bf16.mxu0 %v16350_v7 }
 0x1a4   : > { %v2361_v50 = vsel %vm17142_vm9, %v2356_v36, %v2360_v41  ;;  %vm21448_vm9 = vcmask 1047559  }
 0x1a5   : > { %v14063_v59 = vcombine.low %v2361_v50, %v2375_v51 }
 0x1a6   : > { %15361 = vmatpush3.bf16.msra.mxu0 %v16350_v7  ;;  %v2534_v7 = vld [vmem:[#allocation2 + $0x30] sm:$0xe] }
 0x1a7   : > { %15362 = vmatprep.subr.bf16.mxu0 %v16352_v18  ;;  %v14076_v13 = vrot.slane %v2534_v7, 9 }
 0x1a9   : > { %v2573_v42 = vsel %vm17235_vm12, %v14076_v13, %v2572_v16 }
 0x1aa   : > { %15363 = vmatpush3.bf16.msra.mxu0 %v16352_v18  ;;  %v2568_v18 = vrot.slane %v17379_v33, 5  ;;  %v2577_v33 = vsel %vm17235_vm12, %v14077_v39, %v2576_v10 }
 0x1ab   : > { %15372 = vmatprep.subr.bf16.mxu0 %v16353_v30  ;;  %v14082_v57 = vcombine.low %v2573_v42, %v2577_v33 }
 0x1ac   : > { %v2569_v40 = vsel %vm17235_vm12, %v14075_v11, %v2568_v18 }
 0x1ad   : > { %15365 = vmatmul.mubr.bf16.vlgmr.msra.gmra.mrb[0].mxu0 %v14061_v31  ;;  %v14081_v21 = vcombine.low %v2565_v19, %v2569_v40 }
 0x1ae   : > { %15373 = vmatpush3.bf16.msra.mxu0 %v16353_v30  ;;  %15368 = vmatprep.mubr.bf16.mxu0 %v14062_v38  ;;  %v17443_v30 = vld [vmem:[%s21258_s4] ss:$0 sm:$0xff] }
 0x1af   : > { %15374 = vmatprep.subr.bf16.mxu0 %v16354_v45 }
 0x1b2   : > { %15375 = vmatpush3.bf16.msra.mxu0 %v16354_v45 }
 0x1b3   : > { %15376 = vmatprep.subr.bf16.mxu0 %v16355_v52 }
 0x1b5   : > { %15369 = vmatmul.mubr.bf16.gmra.mrb[4].mxu0 %v14063_v59 }
 0x1b6   : > { %15377 = vmatpush3.bf16.msra.mxu0 %v16355_v52  ;;  %15388 = vmatprep.mubr.bf16.mxu0 %v14080_v9 }
 0x1b7   : > { %15378 = vmatprep.subr.bf16.mxu0 %v16356_v60 }
 0x1ba   : > { %15379 = vmatpush3.bf16.msra.mxu0 %v16356_v60 }
 0x1bb   : > { %15380 = vmatprep.subr.bf16.mxu0 %v16357_v62 }
 0x1be   : > { %15381 = vmatpush3.bf16.msra.mxu0 %v16357_v62 }
 0x1bf   : > { %15382 = vmatprep.subr.bf16.mxu0 %v16358_v63 }
 0x1c2   : > { %15383 = vmatpush3.bf16.msra.mxu0 %v16358_v63 }
 0x1c3   : > { %15384 = vmatprep.subr.bf16.mxu0 %v16359_v1 }
 0x1c6   : > { %15385 = vmatpush3.bf16.msra.mxu0 %v16359_v1 }
 0x1c7   : > { %15386 = vmatprep.subr.bf16.mxu0 %v16360_v12 }
 0x1ca   : > { %15387 = vmatpush3.bf16.msra.mxu0 %v16360_v12 }
 0x1cb   : > { %15396 = vmatprep.subr.bf16.mxu0 %v16750_v35 }
 0x1cd   : > { %15389 = vmatmul.mubr.bf16.vlgmr.msra.gmra.mrb[0].mxu0 %v14081_v21 }
 0x1ce   : > { %15392 = vmatprep.mubr.bf16.mxu0 %v14082_v57 }
 0x1d5   : > { %15393 = vmatmul.mubr.bf16.gmra.mrb[4].mxu0 %v14083_v28 }
 0x1d6   : > { %15398 = vmatprep.mubr.msk.bf16.mxu0 %vm16751_vm13, %v16750_v35 }
 0x2a0   : > { %v15390_v23 = vpop.f32.mrb[0].mxu0 }
 0x2a1   : > { %v2749_v29 = vmul.f32 %v15390_v23, %v14092_v3  ;;  %v2701_v6 = vpop.f32.mrb[1].mxu0 }
 0x2a2   : > { %v2747_v22 = vmul.f32 %v14092_v3, %v2701_v6  ;;  %v15391_v26 = vpop.f32.mrb[2].mxu0 }
 0x2a3   : > { %v2704_v8 = vpop.f32.mrb[3].mxu0  ;;  %v2764_v31 = vadd.f32 %v17443_v30, %v2749_v29  ;;  %v2750_v34 = vmul.f32 %v15391_v26, %v14092_v3 }
 0x2a4   : > { %v2762_v36 = vadd.f32 %v17443_v30, %v2747_v22  ;;  %v2748_v38 = vmul.f32 %v14092_v3, %v2704_v8 }
 0x2a5   : > { %v2772_v44 = vmax.f32 %v2764_v31, 0.0  ;;  %v2765_v9 = vadd.f32 %v17443_v30, %v2750_v34 }
 0x2a6   : > { %v2770_v41 = vmax.f32 %v2762_v36, 0.0  ;;  %v2763_v43 = vadd.f32 %v17443_v30, %v2748_v38 }
 0x2a7   : > { %v14611_v59 = vpack.c.bf16 %v2772_v44, %v2772_v44  ;;  %v2773_v62 = vmax.f32 %v2765_v9, 0.0 }
 0x2a8   : > { %v14609_v45 = vpack.c.bf16 %v2770_v41, %v2770_v41  ;;  %v15394_v46 = vpop.f32.mrb[4].mxu0  ;;  %v2771_v48 = vmax.f32 %v2763_v43, 0.0 }
 0x2a9   : > { %v2717_v55 = vpop.f32.mrb[5].mxu0  ;;  %v2903_v1 = vsel %vm722_vm5, %v14611_v59, 0  ;;  %v14612_v2 = vpack.c.bf16 %v2773_v62, %v2773_v62  ;;  %v2753_v18 = vmul.f32 %v15394_v46, %v14092_v3 }
 0x2aa   : > { %v15395_v50 = vpop.f32.mrb[6].mxu0  ;;  %v2815_v51 = vsel %vm722_vm5, %v14609_v45, 0  ;;  %v14610_v52 = vpack.c.bf16 %v2771_v48, %v2771_v48  ;;  %v2751_v63 = vmul.f32 %v14092_v3, %v2717_v55 }
 0x2ab   : > { %v2720_v61 = vpop.f32.mrb[7].mxu0  ;;  %15397 = vmatpush3.bf16.msra.mxu0 %v2815_v51  ;;  %v2947_v58 = vsel %vm722_vm5, %v14612_v2, 0  ;;  %v2768_v16 = vadd.f32 %v17443_v30, %v2753_v18  ;;  %v2754_v19 = vmul.f32 %v15395_v50, %v14092_v3 }
 0x2ac   : > { %v2859_v60 = vsel %vm722_vm5, %v14610_v52, 0  ;;  %v2766_v47 = vadd.f32 %v17443_v30, %v2751_v63  ;;  %v2752_v49 = vmul.f32 %v14092_v3, %v2720_v61 }
 0x2ad   : > { %15403 = vmatpush3.bf16.msra.mxu1 %v2859_v60  ;;  %v2776_v10 = vmax.f32 %v2768_v16, 0.0  ;;  %v2769_v42 = vadd.f32 %v17443_v30, %v2754_v19 }
 0x2ae   : > { %15399 = vmatmul.mubr.msk.bf16.vlgmr.msra.gmra.mrb[8].mxu0 %vm2809_vm14, %v16361_v56  ;;  %15408 = vmatprep.subr.bf16.mxu1 %v16750_v35  ;;  %v2774_v7 = vmax.f32 %v2766_v47, 0.0  ;;  %v2767_v11 = vadd.f32 %v17443_v30, %v2752_v49 }
 0x2af   : > { %v14615_v20 = vpack.c.bf16 %v2776_v10, %v2776_v10  ;;  %v2777_v33 = vmax.f32 %v2769_v42, 0.0 }
 0x2b0   : > { %15405 = vmatmul.mubr.msk.bf16.vlgmr.msra.gmra.mrb[0].mxu1 %vm2809_vm14, %v16361_v56  ;;  %v14613_v17 = vpack.c.bf16 %v2774_v7, %v2774_v7  ;;  %v2775_v12 = vmax.f32 %v2767_v11, 0.0 }
 0x2b1   : > { %15409 = vmatpush3.bf16.msra.mxu1 %v2903_v1  ;;  %15410 = vmatprep.mubr.msk.bf16.mxu1 %vm16751_vm13, %v16750_v35  ;;  %v3079_v14 = vsel %vm722_vm5, %v14615_v20, 0  ;;  %v14616_v21 = vpack.c.bf16 %v2777_v33, %v2777_v33 }
 0x2b2   : > { %15414 = vmatprep.subr.bf16.mxu1 %v16750_v35  ;;  %v2991_v13 = vsel %vm722_vm5, %v14613_v17, 0  ;;  %v14614_v39 = vpack.c.bf16 %v2775_v12, %v2775_v12 }
 0x2b3   : > { %v3123_v32 = vsel %vm722_vm5, %v14616_v21, 0 }
 0x2b4   : > { %v3035_v40 = vsel %vm722_vm5, %v14614_v39, 0 }
 0x2b8   : > { %15411 = vmatmul.mubr.msk.bf16.vlgmr.msra.gmra.mrb[4].mxu1 %vm2809_vm14, %v16361_v56 }
 0x2b9   : > { %15415 = vmatpush3.bf16.msra.mxu1 %v2947_v58  ;;  %15416 = vmatprep.mubr.msk.bf16.mxu1 %vm16751_vm13, %v16750_v35 }
 0x2ba   : > { %15420 = vmatprep.subr.bf16.mxu1 %v16750_v35 }
 0x2c0   : > { %15417 = vmatmul.mubr.msk.bf16.vlgmr.msra.gmra.mrb[8].mxu1 %vm2809_vm14, %v16361_v56 }
 0x2c1   : > { %15421 = vmatpush3.bf16.msra.mxu1 %v2991_v13  ;;  %15422 = vmatprep.mubr.msk.bf16.mxu1 %vm16751_vm13, %v16750_v35 }
 0x2c2   : > { %15426 = vmatprep.subr.bf16.mxu1 %v16750_v35 }
 0x2c8   : > { %15423 = vmatmul.mubr.msk.bf16.vlgmr.msra.gmra.mrb[12].mxu1 %vm2809_vm14, %v16361_v56 }
 0x2c9   : > { %15427 = vmatpush3.bf16.msra.mxu1 %v3035_v40  ;;  %15428 = vmatprep.mubr.msk.bf16.mxu1 %vm16751_vm13, %v16750_v35 }
 0x2ca   : > { %15432 = vmatprep.subr.bf16.mxu1 %v16750_v35 }
 0x2d0   : > { %15429 = vmatmul.mubr.msk.bf16.vlgmr.msra.gmra.mrb[16].mxu1 %vm2809_vm14, %v16361_v56 }
 0x2d1   : > { %15433 = vmatpush3.bf16.msra.mxu1 %v3079_v14  ;;  %15434 = vmatprep.mubr.msk.bf16.mxu1 %vm16751_vm13, %v16750_v35 }
 0x2d2   : > { %15438 = vmatprep.subr.bf16.mxu1 %v16750_v35 }
 0x2d8   : > { %15435 = vmatmul.mubr.msk.bf16.vlgmr.msra.gmra.mrb[20].mxu1 %vm2809_vm14, %v16361_v56 }
 0x2d9   : > { %15439 = vmatpush3.bf16.msra.mxu1 %v3123_v32  ;;  %15440 = vmatprep.mubr.msk.bf16.mxu1 %vm16751_vm13, %v16750_v35  ;;  %vm4868_vm13 = vsmask.f32 7942 }
 0x2e0   : > { %15441 = vmatmul.mubr.msk.bf16.vlgmr.msra.gmra.mrb[24].mxu1 %vm2809_vm14, %v16361_v56 }
 0x2e1   : > { %3663 = vmatprep.mubr.bf16.mxu1 %v16749_v0 }
 0x381   : > { %v2851_v57 = vpop.f32.mrb[8].mxu0 }
 0x382   : > { %v14617_v53 = vpack.c.bf16 %v2851_v57, %v2851_v57  ;;  %v15400_v54 = vpop.f32.mrb[9].mxu0 }
 0x383   : > { %v2854_v24 = vpop.f32.mrb[10].mxu0  ;;  %v2895_v25 = vpop.f32.mrb[0].mxu1 }
 0x384   : > { %v17491_v27 = vunpack.c.l.b16 %v14617_v53  ;;  %v14625_v28 = vpack.c.bf16 %v2854_v24, %v2854_v24  ;;  %v14618_v3 = vpack.c.bf16 %v2895_v25, %v2895_v25  ;;  %v15406_v23 = vpop.f32.mrb[1].mxu1  ;;  %v15401_v29 = vpop.f32.mrb[11].mxu0 }
 0x385   : > { %v2898_v30 = vpop.f32.mrb[2].mxu1 }
 0x386   : > { %v3230_v6 = vrot.slane %v17491_v27, 1  ;;  %v3247_v35 = vrot.slane %v17491_v27, 2  ;;  %v15407_v22 = vpop.f32.mrb[3].mxu1  ;;  %v3264_v26 = vrot.slane %v17491_v27, 3  ;;  %v3281_v8 = vrot.slane %v17491_v27, 4 }
 0x387   : > { %v3298_v31 = vrot.slane %v17491_v27, 5  ;;  %v17498_v36 = vunpack.c.l.b16 %v14625_v28  ;;  %v3315_v38 = vrot.slane %v17491_v27, 6  ;;  %v3332_v41 = vrot.slane %v17491_v27, 7 }
 0x388   : > { %v17502_v43 = vunpack.c.l.b16 %v14618_v3  ;;  %v14626_v44 = vpack.c.bf16 %v2898_v30, %v2898_v30 }
 0x389   : > { %v3406_v45 = vrot.slane %v17498_v36, 1  ;;  %v3423_v34 = vrot.slane %v17498_v36, 2  ;;  %v3440_v46 = vrot.slane %v17498_v36, 3  ;;  %v3457_v48 = vrot.slane %v17498_v36, 4 }
 0x38a   : > { %v3474_v55 = vrot.slane %v17498_v36, 5  ;;  %v3491_v50 = vrot.slane %v17498_v36, 6  ;;  %v3508_v51 = vrot.slane %v17498_v36, 7  ;;  %v3206_v52 = vrot.slane %v17502_v43, 7 }
 0x38b   : > { %v3231_v56 = vsel %vm21299_vm15, %v17502_v43, %v3230_v6  ;;  %v3248_v61 = vrot.slane %v17502_v43, 1  ;;  %v3265_v59 = vrot.slane %v17502_v43, 2  ;;  %v3282_v9 = vrot.slane %v17502_v43, 3  ;;  %v2939_v60 = vpop.f32.mrb[4].mxu1 }
 0x38c   : > { %v3208_v62 = vsel %vm21299_vm15, %v3206_v52, %v17491_v27  ;;  %v3299_v63 = vrot.slane %v17502_v43, 4  ;;  %v3316_v1 = vrot.slane %v17502_v43, 5  ;;  %v3333_v2 = vrot.slane %v17502_v43, 6  ;;  %v15412_v47 = vpop.f32.mrb[5].mxu1 }
 0x38d   : > { %v3283_v7 = vsel %vm21299_vm15, %v3282_v9, %v3281_v8  ;;  %v3382_v49 = vunpack.c.l.b16 %v14626_v44  ;;  %v14619_v58 = vpack.c.bf16 %v2939_v60, %v2939_v60  ;;  %v3249_v17 = vsel %vm21299_vm15, %v3248_v61, %v3247_v35  ;;  %v2942_v11 = vpop.f32.mrb[6].mxu1 }
 0x38e   : > { %v3300_v18 = vsel %vm21299_vm15, %v3299_v63, %v3298_v31  ;;  %v3317_v12 = vsel %vm21299_vm15, %v3316_v1, %v3315_v38  ;;  %v3334_v13 = vsel %vm21299_vm15, %v3333_v2, %v3332_v41  ;;  %v14627_v16 = vpack.c.bf16 %v2942_v11, %v2942_v11  ;;  %v15413_v39 = vpop.f32.mrb[7].mxu1 }
 0x38f   : > { %v3389_v10 = vrot.slane %v3382_v49, 7  ;;  %v3407_v19 = vsel %vm21299_vm15, %v3382_v49, %v3406_v45  ;;  %v3424_v40 = vrot.slane %v3382_v49, 1  ;;  %v3441_v20 = vrot.slane %v3382_v49, 2 }
 0x390   : > { %v3458_v42 = vrot.slane %v3382_v49, 3  ;;  %v3475_v33 = vrot.slane %v3382_v49, 4  ;;  %v3492_v14 = vrot.slane %v3382_v49, 5  ;;  %v3509_v21 = vrot.slane %v3382_v49, 6 }
 0x391   : > { %v3390_v32 = vsel %vm21299_vm15, %v3389_v10, %v17498_v36  ;;  %v3200_v57 = vunpack.c.l.b16 %v14619_v58  ;;  %v3383_v53 = vunpack.c.l.b16 %v14627_v16  ;;  %v3425_v54 = vsel %vm21299_vm15, %v3424_v40, %v3423_v34 }
 0x392   : > { %v3459_v24 = vsel %vm21299_vm15, %v3458_v42, %v3457_v48  ;;  %v3476_v25 = vsel %vm21299_vm15, %v3475_v33, %v3474_v55  ;;  %v3493_v28 = vsel %vm21299_vm15, %v3492_v14, %v3491_v50  ;;  %v3510_v3 = vsel %vm21299_vm15, %v3509_v21, %v3508_v51 }
 0x393   : > { %v3209_v23 = vrot.slane %v3200_v57, 6  ;;  %v3232_v29 = vrot.slane %v3200_v57, 7  ;;  %v3250_v30 = vsel %vm21292_vm0, %v3200_v57, %v3249_v17  ;;  %v3267_v6 = vrot.slane %v3200_v57, 1  ;;  %v2983_v35 = vpop.f32.mrb[8].mxu1 }
 0x394   : > { %v3284_v22 = vrot.slane %v3200_v57, 2  ;;  %v3301_v8 = vrot.slane %v3200_v57, 3  ;;  %v3318_v31 = vrot.slane %v3200_v57, 4  ;;  %v3335_v38 = vrot.slane %v3200_v57, 5  ;;  %v15418_v41 = vpop.f32.mrb[9].mxu1 }
 0x395   : > { %v3211_v44 = vsel %vm21292_vm0, %v3209_v23, %v3208_v62  ;;  %v3233_v45 = vsel %vm21292_vm0, %v3232_v29, %v3231_v56  ;;  %v3391_v34 = vrot.slane %v3383_v53, 6  ;;  %v3408_v48 = vrot.slane %v3383_v53, 7  ;;  %v2986_v55 = vpop.f32.mrb[10].mxu1 }
 0x396   : > { %v3302_v50 = vsel %vm21292_vm0, %v3301_v8, %v3300_v18  ;;  %v3319_v51 = vsel %vm21292_vm0, %v3318_v31, %v3317_v12  ;;  %v3336_v52 = vsel %vm21292_vm0, %v3335_v38, %v3334_v13  ;;  %v3426_v61 = vsel %vm21292_vm0, %v3383_v53, %v3425_v54  ;;  %v15419_v9 = vpop.f32.mrb[11].mxu1 }
 0x397   : > { %v3392_v60 = vsel %vm21292_vm0, %v3391_v34, %v3390_v32  ;;  %v3409_v63 = vsel %vm21292_vm0, %v3408_v48, %v3407_v19  ;;  %v3443_v1 = vrot.slane %v3383_v53, 1  ;;  %v3460_v62 = vrot.slane %v3383_v53, 2 }
 0x398   : > { %v3477_v2 = vrot.slane %v3383_v53, 3  ;;  %v3494_v56 = vrot.slane %v3383_v53, 4  ;;  %v3511_v47 = vrot.slane %v3383_v53, 5  ;;  %v14620_v49 = vpack.c.bf16 %v2983_v35, %v2983_v35 }
 0x399   : > { %v3266_v58 = vsel %vm21299_vm15, %v3265_v59, %v3264_v26  ;;  %v14628_v17 = vpack.c.bf16 %v2986_v55, %v2986_v55  ;;  %v3442_v11 = vsel %vm21299_vm15, %v3441_v20, %v3440_v46  ;;  %v3285_v18 = vsel %vm21292_vm0, %v3284_v22, %v3283_v7 }
 0x39a   : > { %v3478_v12 = vsel %vm21292_vm0, %v3477_v2, %v3476_v25  ;;  %v3495_v13 = vsel %vm21292_vm0, %v3494_v56, %v3493_v28  ;;  %v3512_v16 = vsel %vm21292_vm0, %v3511_v47, %v3510_v3  ;;  %v3201_v39 = vunpack.c.l.b16 %v14620_v49 }
 0x39b   : > { %v3268_v27 = vsel %vm21292_vm0, %v3267_v6, %v3266_v58  ;;  %v3384_v10 = vunpack.c.l.b16 %v14628_v17  ;;  %v3444_v43 = vsel %vm21292_vm0, %v3443_v1, %v3442_v11  ;;  %v3027_v26 = vpop.f32.mrb[12].mxu1  ;;  %v3461_v59 = vsel %vm21292_vm0, %v3460_v62, %v3459_v24 }
 0x39c   : > { %v3212_v36 = vrot.slane %v3201_v39, 5  ;;  %v3234_v19 = vrot.slane %v3201_v39, 6  ;;  %v3251_v46 = vrot.slane %v3201_v39, 7  ;;  %v3269_v7 = vsel %vm3213_vm1, %v3201_v39, %v3268_v27  ;;  %v15424_v40 = vpop.f32.mrb[13].mxu1 }
 0x39d   : > { %v3286_v20 = vrot.slane %v3201_v39, 1  ;;  %v3303_v42 = vrot.slane %v3201_v39, 2  ;;  %v3320_v33 = vrot.slane %v3201_v39, 3  ;;  %v3337_v14 = vrot.slane %v3201_v39, 4  ;;  %v3030_v21 = vpop.f32.mrb[14].mxu1 }
 0x39e   : > { %v3214_v32 = vsel %vm3213_vm1, %v3212_v36, %v3211_v44  ;;  %v3235_v57 = vsel %vm3213_vm1, %v3234_v19, %v3233_v45  ;;  %v3252_v53 = vsel %vm3213_vm1, %v3251_v46, %v3250_v30  ;;  %v3393_v54 = vrot.slane %v3384_v10, 5  ;;  %v15425_v25 = vpop.f32.mrb[15].mxu1 }
 0x39f   : > { %v17564_v24 = vsel %vm3213_vm1, %v3320_v33, %v3319_v51  ;;  %v3338_v28 = vsel %vm3213_vm1, %v3337_v14, %v3336_v52  ;;  %v3410_v3 = vrot.slane %v3384_v10, 6  ;;  %v3427_v23 = vrot.slane %v3384_v10, 7 }
 0x3a0   : > { %v3394_v29 = vsel %vm3213_vm1, %v3393_v54, %v3392_v60  ;;  %v3445_v6 = vsel %vm3213_vm1, %v3384_v10, %v3444_v43  ;;  %v3462_v35 = vrot.slane %v3384_v10, 1  ;;  %v3479_v22 = vrot.slane %v3384_v10, 2 }
 0x3a1   : > { %v3411_v8 = vsel %vm3213_vm1, %v3410_v3, %v3409_v63  ;;  %v3428_v31 = vsel %vm3213_vm1, %v3427_v23, %v3426_v61  ;;  %v3496_v30 = vrot.slane %v3384_v10, 3  ;;  %v3513_v38 = vrot.slane %v3384_v10, 4 }
 0x3a2   : > { %v14621_v41 = vpack.c.bf16 %v3027_v26, %v3027_v26  ;;  %v3287_v44 = vsel %vm3213_vm1, %v3286_v20, %v3285_v18  ;;  %v14629_v45 = vpack.c.bf16 %v3030_v21, %v3030_v21  ;;  %v3463_v34 = vsel %vm3213_vm1, %v3462_v35, %v3461_v59 }
 0x3a3   : > { %v17574_v48 = vsel %vm3213_vm1, %v3496_v30, %v3495_v13  ;;  %v3514_v55 = vsel %vm3213_vm1, %v3513_v38, %v3512_v16  ;;  %v3071_v51 = vpop.f32.mrb[16].mxu1  ;;  %v3304_v52 = vsel %vm3213_vm1, %v3303_v42, %v3302_v50  ;;  %v3480_v9 = vsel %vm3213_vm1, %v3479_v22, %v3478_v12 }
 0x3a4   : > { %v3202_v60 = vunpack.c.l.b16 %v14621_v41  ;;  %v15430_v61 = vpop.f32.mrb[17].mxu1  ;;  %v3385_v63 = vunpack.c.l.b16 %v14629_v45  ;;  %v14622_v1 = vpack.c.bf16 %v3071_v51, %v3071_v51 }
 0x3a5   : > { %v3074_v62 = vpop.f32.mrb[18].mxu1 }
 0x3a6   : > { %v3215_v2 = vrot.slane %v3202_v60, 4  ;;  %v3236_v56 = vrot.slane %v3202_v60, 5  ;;  %v3253_v47 = vrot.slane %v3202_v60, 6  ;;  %v3270_v49 = vrot.slane %v3202_v60, 7  ;;  %v15431_v58 = vpop.f32.mrb[19].mxu1 }
 0x3a7   : > { %v3288_v17 = vsel %vm21297_vm2, %v3202_v60, %v3287_v44  ;;  %v3305_v11 = vrot.slane %v3202_v60, 1  ;;  %v3322_v18 = vrot.slane %v3202_v60, 2  ;;  %v3339_v13 = vrot.slane %v3202_v60, 3 }
 0x3a8   : > { %v3217_v50 = vsel %vm21297_vm2, %v3215_v2, %v3214_v32  ;;  %v3237_v12 = vsel %vm21297_vm2, %v3236_v56, %v3235_v57  ;;  %v3254_v16 = vsel %vm21297_vm2, %v3253_v47, %v3252_v53  ;;  %v3271_v39 = vsel %vm21297_vm2, %v3270_v49, %v3269_v7 }
 0x3a9   : > { %v3340_v27 = vsel %vm21297_vm2, %v3339_v13, %v3338_v28  ;;  %v3395_v10 = vrot.slane %v3385_v63, 4  ;;  %v3412_v43 = vrot.slane %v3385_v63, 5  ;;  %v3429_v26 = vrot.slane %v3385_v63, 6 }
 0x3aa   : > { %v3446_v59 = vrot.slane %v3385_v63, 7  ;;  %v3464_v36 = vsel %vm21297_vm2, %v3385_v63, %v3463_v34  ;;  %v3481_v19 = vrot.slane %v3385_v63, 1  ;;  %v3498_v46 = vrot.slane %v3385_v63, 2 }
 0x3ab   : > { %v3396_v40 = vsel %vm21297_vm2, %v3395_v10, %v3394_v29  ;;  %v3413_v20 = vsel %vm21297_vm2, %v3412_v43, %v3411_v8  ;;  %v3430_v42 = vsel %vm21297_vm2, %v3429_v26, %v3428_v31  ;;  %v3515_v33 = vrot.slane %v3385_v63, 3  ;;  %v3115_v14 = vpop.f32.mrb[20].mxu1 }
 0x3ac   : > { %v3447_v7 = vsel %vm21297_vm2, %v3446_v59, %v3445_v6  ;;  %v3203_v21 = vunpack.c.l.b16 %v14622_v1  ;;  %v3306_v32 = vsel %vm21297_vm2, %v3305_v11, %v3304_v52  ;;  %v14630_v57 = vpack.c.bf16 %v3074_v62, %v3074_v62  ;;  %v15436_v53 = vpop.f32.mrb[21].mxu1 }
 0x3ad   : > { %v17592_v54 = vsel %vm21297_vm2, %v3515_v33, %v3514_v55  ;;  %v3482_v25 = vsel %vm21297_vm2, %v3481_v19, %v3480_v9  ;;  %v14623_v28 = vpack.c.bf16 %v3115_v14, %v3115_v14  ;;  %v3323_v3 = vsel %vm21297_vm2, %v3322_v18, %v17564_v24  ;;  %v3118_v23 = vpop.f32.mrb[22].mxu1 }
 0x3ae   : > { %v3218_v29 = vrot.slane %v3203_v21, 3  ;;  %v3238_v35 = vrot.slane %v3203_v21, 4  ;;  %v3255_v22 = vrot.slane %v3203_v21, 5  ;;  %v3272_v8 = vrot.slane %v3203_v21, 6  ;;  %v15437_v6 = vpop.f32.mrb[23].mxu1 }
 0x3af   : > { %v3289_v31 = vrot.slane %v3203_v21, 7  ;;  %v3307_v30 = vsel %vm3219_vm6, %v3203_v21, %v3306_v32  ;;  %v3324_v38 = vrot.slane %v3203_v21, 1  ;;  %v3341_v41 = vrot.slane %v3203_v21, 2 }
 0x3b0   : > { %v3220_v44 = vsel %vm3219_vm6, %v3218_v29, %v3217_v50  ;;  %v3239_v45 = vsel %vm3219_vm6, %v3238_v35, %v3237_v12  ;;  %v3256_v34 = vsel %vm3219_vm6, %v3255_v22, %v3254_v16  ;;  %v3273_v55 = vsel %vm3219_vm6, %v3272_v8, %v3271_v39 }
 0x3b1   : > { %v3290_v24 = vsel %vm3219_vm6, %v3289_v31, %v3288_v17  ;;  %v3386_v51 = vunpack.c.l.b16 %v14630_v57  ;;  %v3325_v52 = vsel %vm3219_vm6, %v3324_v38, %v3323_v3  ;;  %v3204_v9 = vunpack.c.l.b16 %v14623_v28 }
 0x3b2   : > { %v14631_v60 = vpack.c.bf16 %v3118_v23, %v3118_v23  ;;  %v3499_v61 = vsel %vm21297_vm2, %v3498_v46, %v17574_v48  ;;  %v3342_v63 = vsel %vm3219_vm6, %v3341_v41, %v3340_v27 }
 0x3b3   : > { %v3397_v1 = vrot.slane %v3386_v51, 3  ;;  %v3414_v62 = vrot.slane %v3386_v51, 4  ;;  %v3431_v2 = vrot.slane %v3386_v51, 5  ;;  %v3448_v56 = vrot.slane %v3386_v51, 6  ;;  %v3159_v47 = vpop.f32.mrb[24].mxu1 }
 0x3b4   : > { %v3465_v49 = vrot.slane %v3386_v51, 7  ;;  %v3483_v58 = vsel %vm3219_vm6, %v3386_v51, %v3482_v25  ;;  %v3500_v17 = vrot.slane %v3386_v51, 1  ;;  %v3517_v11 = vrot.slane %v3386_v51, 2  ;;  %v15442_v18 = vpop.f32.mrb[25].mxu1 }
 0x3b5   : > { %v3398_v13 = vsel %vm3219_vm6, %v3397_v1, %v3396_v40  ;;  %v3415_v50 = vsel %vm3219_vm6, %v3414_v62, %v3413_v20  ;;  %v3432_v12 = vsel %vm3219_vm6, %v3431_v2, %v3430_v42  ;;  %v3449_v48 = vsel %vm3219_vm6, %v3448_v56, %v3447_v7  ;;  %v3162_v16 = vpop.f32.mrb[26].mxu1 }
 0x3b6   : > { %v3466_v39 = vsel %vm3219_vm6, %v3465_v49, %v3464_v36  ;;  %v3221_v27 = vrot.slane %v3204_v9, 2  ;;  %v3240_v10 = vrot.slane %v3204_v9, 3  ;;  %v3257_v43 = vrot.slane %v3204_v9, 4  ;;  %v15443_v26 = vpop.f32.mrb[27].mxu1 }
 0x3b7   : > { %v3274_v59 = vrot.slane %v3204_v9, 5  ;;  %v3291_v19 = vrot.slane %v3204_v9, 6  ;;  %v3308_v46 = vrot.slane %v3204_v9, 7  ;;  %v3326_v33 = vsel %vm21298_vm8, %v3204_v9, %v3325_v52 }
 0x3b8   : > { %v3223_v40 = vsel %vm21298_vm8, %v3221_v27, %v3220_v44  ;;  %v3241_v20 = vsel %vm21298_vm8, %v3240_v10, %v3239_v45  ;;  %v3258_v42 = vsel %vm21298_vm8, %v3257_v43, %v3256_v34  ;;  %v3343_v14 = vrot.slane %v3204_v9, 1 }
 0x3b9   : > { %v3275_v7 = vsel %vm21298_vm8, %v3274_v59, %v3273_v55  ;;  %v3292_v36 = vsel %vm21298_vm8, %v3291_v19, %v3290_v24  ;;  %v3309_v21 = vsel %vm21298_vm8, %v3308_v46, %v3307_v30  ;;  %v17620_v32 = vunpack.c.l.b16 %v14631_v60 }
 0x3ba   : > { %v3501_v57 = vsel %vm3219_vm6, %v3500_v17, %v3499_v61  ;;  %v14624_v53 = vpack.c.bf16 %v3159_v47, %v3159_v47  ;;  %v3344_v25 = vsel %vm21298_vm8, %v3343_v14, %v3342_v63  ;;  %v14632_v28 = vpack.c.bf16 %v3162_v16, %v3162_v16 }
 0x3bb   : > { %v3399_v3 = vrot.slane %v17620_v32, 2  ;;  %v3416_v23 = vrot.slane %v17620_v32, 3  ;;  %v3433_v29 = vrot.slane %v17620_v32, 4  ;;  %v3450_v35 = vrot.slane %v17620_v32, 5 }
 0x3bc   : > { %v3467_v22 = vrot.slane %v17620_v32, 6  ;;  %v3484_v8 = vrot.slane %v17620_v32, 7  ;;  %v17632_v6 = vsel %vm21298_vm8, %v17620_v32, %v3501_v57  ;;  %v3205_v34 = vunpack.c.l.b16 %v14624_v53 }
 0x3bd   : > { %v3400_v31 = vsel %vm21298_vm8, %v3399_v3, %v3398_v13  ;;  %v3417_v30 = vsel %vm21298_vm8, %v3416_v23, %v3415_v50  ;;  %v3434_v38 = vsel %vm21298_vm8, %v3433_v29, %v3432_v12  ;;  %v3451_v41 = vsel %vm21298_vm8, %v3450_v35, %v3449_v48 }
 0x3be   : > { %v3468_v44 = vsel %vm21298_vm8, %v3467_v22, %v3466_v39  ;;  %v3485_v45 = vsel %vm21298_vm8, %v3484_v8, %v3483_v58  ;;  %v3519_v55 = vrot.slane %v17620_v32, 1  ;;  %v3388_v24 = vunpack.c.l.b16 %v14632_v28 }
 0x3bf   : > { %v3518_v51 = vsel %vm3219_vm6, %v3517_v11, %v17592_v54  ;;  %v3224_v52 = vrot.slane %v3205_v34, 1  ;;  %v3242_v9 = vrot.slane %v3205_v34, 2  ;;  %v3259_v60 = vrot.slane %v3205_v34, 3 }
 0x3c0   : > { %v3276_v61 = vrot.slane %v3205_v34, 4  ;;  %v3293_v63 = vrot.slane %v3205_v34, 5  ;;  %v3310_v1 = vrot.slane %v3205_v34, 6  ;;  %v3327_v62 = vrot.slane %v3205_v34, 7 }
 0x3c1   : > { %v3345_v2 = vsel %vm21291_vm10, %v3205_v34, %v3344_v25  ;;  %v3226_v56 = vsel %vm21291_vm10, %v3224_v52, %v3223_v40  ;;  %v3243_v47 = vsel %vm21291_vm10, %v3242_v9, %v3241_v20  ;;  %v3260_v49 = vsel %vm21291_vm10, %v3259_v60, %v3258_v42 }
 0x3c2   : > { %v3277_v58 = vsel %vm21291_vm10, %v3276_v61, %v3275_v7  ;;  %v3227_v17 = vpack.c.b16 %v3226_v56, %v3226_v56  ;;  %v3244_v18 = vpack.c.b16 %v3243_v47, %v3243_v47  ;;  %v3261_v54 = vpack.c.b16 %v3260_v49, %v3260_v49 }
 0x3c3   : > { %v3278_v11 = vpack.c.b16 %v3277_v58, %v3277_v58  ;;  %v3294_v13 = vsel %vm21291_vm10, %v3293_v63, %v3292_v36  ;;  %v3311_v50 = vsel %vm21291_vm10, %v3310_v1, %v3309_v21  ;;  %v3328_v12 = vsel %vm21291_vm10, %v3327_v62, %v3326_v33 }
 0x3c4   : > { %v3346_v48 = vpack.c.b16 %v3345_v2, %v3345_v2  ;;  %3229 = vst [vmem:[#allocation3] sm:$0xf] %v3227_v17  ;;  %3246 = vst [vmem:[#allocation3 + $0x4] sm:$0xf] %v3244_v18  ;;  %v3295_v16 = vpack.c.b16 %v3294_v13, %v3294_v13  ;;  %v3312_v39 = vpack.c.b16 %v3311_v50, %v3311_v50  ;;  %v3401_v10 = vrot.slane %v3388_v24, 1 }
 0x3c5   : > { %3263 = vst [vmem:[#allocation3 + $0x8] sm:$0xf] %v3261_v54  ;;  %3280 = vst [vmem:[#allocation3 + $0xc] sm:$0xf] %v3278_v11  ;;  %v3329_v27 = vpack.c.b16 %v3328_v12, %v3328_v12  ;;  %v3418_v43 = vrot.slane %v3388_v24, 2  ;;  %v3435_v26 = vrot.slane %v3388_v24, 3  ;;  %v3520_v20 = vsel %vm21298_vm8, %v3519_v55, %v3518_v51 }
 0x3c6   : > { %3348 = vst [vmem:[#allocation3 + $0x1c] sm:$0xf] %v3346_v48  ;;  %v3452_v59 = vrot.slane %v3388_v24, 4  ;;  %v3469_v19 = vrot.slane %v3388_v24, 5  ;;  %3297 = vst [vmem:[#allocation3 + $0x10] sm:$0xf] %v3295_v16  ;;  %v3402_v46 = vsel %vm21291_vm10, %v3401_v10, %v3400_v31  ;;  %v3521_v23 = vsel %vm21291_vm10, %v3388_v24, %v3520_v20 }
 0x3c7   : > { %3314 = vst [vmem:[#allocation3 + $0x14] sm:$0xf] %v3312_v39  ;;  %3331 = vst [vmem:[#allocation3 + $0x18] sm:$0xf] %v3329_v27  ;;  %v3486_v33 = vrot.slane %v3388_v24, 6  ;;  %v3503_v40 = vrot.slane %v3388_v24, 7  ;;  %v3403_v42 = vpack.c.b16 %v3402_v46, %v3402_v46  ;;  %v3419_v14 = vsel %vm21291_vm10, %v3418_v43, %v3417_v30 }
 0x3c8   : > { %v3436_v7 = vsel %vm21291_vm10, %v3435_v26, %v3434_v38  ;;  %v3453_v36 = vsel %vm21291_vm10, %v3452_v59, %v3451_v41  ;;  %v3420_v21 = vpack.c.b16 %v3419_v14, %v3419_v14  ;;  %v3470_v53 = vsel %vm21291_vm10, %v3469_v19, %v3468_v44  ;;  %v16365_v44 = vld [vmem:[%s21260_s6] sm:$0xff]   ;;  %v528_v39 = vld [vmem:[#allocation4 + $0xc] sm:$0x1]  ;;  %v531_v27 = vld [vmem:[#allocation4 + $0x18] sm:$0x1] }
 0x3c9   : > { %v3437_v32 = vpack.c.b16 %v3436_v7, %v3436_v7  ;;  %v3454_v57 = vpack.c.b16 %v3453_v36, %v3453_v36  ;;  %3405 = vst [vmem:[#allocation3 + $0x20] sm:$0xf] %v3403_v42  ;;  %v3471_v25 = vpack.c.b16 %v3470_v53, %v3470_v53  ;;  %v3487_v28 = vsel %vm21291_vm10, %v3486_v33, %v3485_v45  ;;  %v534_v10 = vld [vmem:[#allocation4 + $0x24] sm:$0x1]  ;;  %v537_v43 = vld [vmem:[#allocation4 + $0x30] sm:$0x1] }
 0x3ca   : > { %v3504_v3 = vsel %vm21291_vm10, %v3503_v40, %v17632_v6  ;;  %3422 = vst [vmem:[#allocation3 + $0x24] sm:$0xf] %v3420_v21  ;;  %v3488_v29 = vpack.c.b16 %v3487_v28, %v3487_v28  ;;  %v3522_v22 = vpack.c.b16 %v3521_v23, %v3521_v23  ;;  %v540_v26 = vld [vmem:[#allocation4 + $0x3c] sm:$0x1]  ;;  %v543_v59 = vld [vmem:[#allocation4 + $0x48] sm:$0x1] }
 0x3cb   : > { %3439 = vst [vmem:[#allocation3 + $0x28] sm:$0xf] %v3437_v32  ;;  %3456 = vst [vmem:[#allocation3 + $0x2c] sm:$0xf] %v3454_v57  ;;  %v3505_v35 = vpack.c.b16 %v3504_v3, %v3504_v3  ;;  %v3527_v8 = vld [vmem:[#allocation3] sm:$0xff]  ;;  %v529_v33 = vsel %vm17077_vm3, 0, %v528_v39 }
 0x3cc   : > { %3473 = vst [vmem:[#allocation3 + $0x30] sm:$0xf] %v3471_v25  ;;  %v3528_v31 = vld [vmem:[#allocation3 + $0x8] sm:$0xff]  ;;  %3490 = vst [vmem:[#allocation3 + $0x34] sm:$0xf] %v3488_v29  ;;  %v14129_v30 = vcombine.high %v3527_v8, %v3527_v8  ;;  %v14128_v38 = vcombine.low %v3527_v8, %v3527_v8  ;;  %v532_v42 = vsel %vm17077_vm3, 0, %v531_v27 }
 0x3cd   : > { %3507 = vst [vmem:[#allocation3 + $0x38] sm:$0xf] %v3505_v35  ;;  %3524 = vst [vmem:[#allocation3 + $0x3c] sm:$0xf] %v3522_v22  ;;  %v14131_v41 = vcombine.high %v3528_v31, %v3528_v31  ;;  %v14130_v45 = vcombine.low %v3528_v31, %v3528_v31  ;;  %v546_v19 = vld [vmem:[#allocation4 + $0x54] sm:$0x1] }
 0x3ce   : > { %14144 = vmatprep.subr.msk.bf16.mxu1 %vm722_vm5, %v14129_v30  ;;  %v3584_v6 = vsel %vm722_vm5, %v14128_v38, 0  ;;  %v3529_v34 = vld [vmem:[#allocation3 + $0x10] sm:$0xff]  ;;  %v3530_v52 = vld [vmem:[#allocation3 + $0x18] sm:$0xff]  ;;  %v549_v46 = vld [vmem:[#allocation4 + $0x60] sm:$0x1]  ;;  %v538_v36 = vsel %vm17077_vm3, 0, %v537_v43 }
 0x3cf   : > { %3632 = vmatpush1.bf16.msra.mxu1 %v3584_v6  ;;  %v3590_v55 = vsel %vm722_vm5, %v14130_v45, 0  ;;  %v14133_v24 = vcombine.high %v3529_v34, %v3529_v34  ;;  %v14132_v51 = vcombine.low %v3529_v34, %v3529_v34  ;;  %v14135_v60 = vcombine.high %v3530_v52, %v3530_v52  ;;  %v552_v40 = vld [vmem:[#allocation4 + $0x6c] sm:$0x1]  ;;  %v555_v20 = vld [vmem:[#allocation4 + $0x78] sm:$0x1]  ;;  %v14820_v39 = vld [vmem:[%s17053_s29 + $0x58] sm:$0xff]  }
 0x3d0   : > { %14146 = vmatprep.subr.msk.bf16.mxu1 %vm722_vm5, %v14131_v41  ;;  %v14134_v61 = vcombine.low %v3530_v52, %v3530_v52  ;;  %530 = vst [vmem:[#allocation4 + $0xc] sm:$0x1] %v529_v33  ;;  %v558_v14 = vld [vmem:[#allocation4 + $0x84] sm:$0x1]  ;;  %v561_v7 = vld [vmem:[#allocation4 + $0x90] sm:$0x1] }
 0x3d1   : > { %v3596_v9 = vsel %vm722_vm5, %v14132_v51, 0  ;;  %v3531_v63 = vld [vmem:[#allocation3 + $0x20] sm:$0xff]  ;;  %533 = vst [vmem:[#allocation4 + $0x18] sm:$0x1] %v532_v42  ;;  %v541_v21 = vsel %vm17077_vm3, 0, %v540_v26  ;;  %v544_v53 = vsel %vm17077_vm3, 0, %v543_v59 }
 0x3d2   : > { %14145 = vmatmul.mubr.msk.bf16.vlgmr.msra.gmra.mrb[28].mxu1 %vm2809_vm14, %v16365_v44  ;;  %v3602_v1 = vsel %vm722_vm5, %v14134_v61, 0  ;;  %v14137_v62 = vcombine.high %v3531_v63, %v3531_v63  ;;  %v14136_v2 = vcombine.low %v3531_v63, %v3531_v63  ;;  %v3532_v56 = vld [vmem:[#allocation3 + $0x28] sm:$0xff]  ;;  %v564_v32 = vld [vmem:[#allocation4 + $0x9c] sm:$0x1]  ;;  %539 = vst [vmem:[#allocation4 + $0x30] sm:$0x1] %v538_v36 }
 0x3d3   : > { %3675 = vmatpush1.bf16.msra.mxu1 %v3590_v55  ;;  %3706 = vmatprep.mubr.bf16.mxu1 %v16749_v0  ;;  %v14139_v49 = vcombine.high %v3532_v56, %v3532_v56  ;;  %v14138_v58 = vcombine.low %v3532_v56, %v3532_v56  ;;  %v3533_v17 = vld [vmem:[#allocation3 + $0x30] sm:$0xff]  ;;  %v567_v57 = vld [vmem:[#allocation4 + $0xa8] sm:$0x1]  ;;  %542 = vst [vmem:[#allocation4 + $0x3c] sm:$0x1] %v541_v21  ;;  %v547_v25 = vsel %vm17077_vm3, 0, %v546_v19 }
 0x3d4   : > { %14148 = vmatprep.subr.msk.bf16.mxu1 %vm722_vm5, %v14133_v24  ;;  %v3608_v47 = vsel %vm722_vm5, %v14136_v2, 0  ;;  %v14141_v54 = vcombine.high %v3533_v17, %v3533_v17  ;;  %v14140_v11 = vcombine.low %v3533_v17, %v3533_v17  ;;  %v3534_v13 = vld [vmem:[#allocation3 + $0x38] sm:$0xff]  ;;  %v570_v28 = vld [vmem:[#allocation4 + $0xb4] sm:$0x1]  ;;  %v573_v3 = vld [vmem:[#allocation4 + $0xc0] sm:$0x1] }
 0x3d5   : > { %v3614_v18 = vsel %vm722_vm5, %v14138_v58, 0  ;;  %v14143_v12 = vcombine.high %v3534_v13, %v3534_v13  ;;  %v14142_v48 = vcombine.low %v3534_v13, %v3534_v13  ;;  %545 = vst [vmem:[#allocation4 + $0x48] sm:$0x1] %v544_v53  ;;  %548 = vst [vmem:[#allocation4 + $0x54] sm:$0x1] %v547_v25  ;;  %v550_v23 = vsel %vm17077_vm3, 0, %v549_v46 }
 0x3d6   : > { %v3620_v50 = vsel %vm722_vm5, %v14140_v11, 0  ;;  %v553_v29 = vsel %vm17077_vm3, 0, %v552_v40  ;;  %v556_v35 = vsel %vm17077_vm3, 0, %v555_v20  ;;  %551 = vst [vmem:[#allocation4 + $0x60] sm:$0x1] %v550_v23  ;;  %v559_v22 = vsel %vm17077_vm3, 0, %v558_v14 }
 0x3d7   : > { %v3626_v16 = vsel %vm722_vm5, %v14142_v48, 0  ;;  %554 = vst [vmem:[#allocation4 + $0x6c] sm:$0x1] %v553_v29  ;;  %557 = vst [vmem:[#allocation4 + $0x78] sm:$0x1] %v556_v35  ;;  %v562_v8 = vsel %vm17077_vm3, 0, %v561_v7  ;;  %v17788_v40 = vunpack.c.l.bf16 %v14820_v39 }
 0x3d8   : > { %v565_v31 = vsel %vm17077_vm3, 0, %v564_v32  ;;  %v568_v30 = vsel %vm17077_vm3, 0, %v567_v57  ;;  %560 = vst [vmem:[#allocation4 + $0x84] sm:$0x1] %v559_v22  ;;  %563 = vst [vmem:[#allocation4 + $0x90] sm:$0x1] %v562_v8 }
 0x3d9   : > { %566 = vst [vmem:[#allocation4 + $0x9c] sm:$0x1] %v565_v31  ;;  %569 = vst [vmem:[#allocation4 + $0xa8] sm:$0x1] %v568_v30  ;;  %v571_v38 = vsel %vm17077_vm3, 0, %v570_v28  ;;  %v574_v6 = vsel %vm17077_vm3, 0, %v573_v3 }
 0x3da   : > { %14147 = vmatmul.mubr.msk.bf16.vlgmr.msra.gmra.mrb[32].mxu1 %vm2809_vm14, %v16365_v44  ;;  %572 = vst [vmem:[#allocation4 + $0xb4] sm:$0x1] %v571_v38  ;;  %575 = vst [vmem:[#allocation4 + $0xc0] sm:$0x1] %v574_v6  ;;  %v17728_v41 = vld [vmem:[%s17053_s29] sm:$0xff]   ;;  %v17740_v55 = vld [vmem:[%s17053_s29 + $0x10] sm:$0xff]  }
 0x3db   : > { %3718 = vmatpush1.bf16.msra.mxu1 %v3596_v9  ;;  %3749 = vmatprep.mubr.bf16.mxu1 %v16749_v0  ;;  %v17734_v45 = vunpack.c.l.bf16 %v17728_v41  ;;  %v17743_v24 = vunpack.c.l.bf16 %v17740_v55  ;;  %v17746_v51 = vld [vmem:[%s17053_s29 + $0x18] sm:$0xff]   ;;  %v14813_v61 = vld [vmem:[%s17053_s29 + $0x20] sm:$0xff]   ;;  %v14818_v63 = vld [vmem:[%s17053_s29 + $0x48] sm:$0xff]   ;;  %v4057_v3 = vrot.slane %v17788_v40, 5  ;;  %v16752_v39 = vmov 1966171168  }
 0x3dc   : > { %14150 = vmatprep.subr.msk.bf16.mxu1 %vm722_vm5, %v14135_v60  ;;  %v17751_v60 = vunpack.c.l.bf16 %v17746_v51  ;;  %v17764_v58 = vunpack.c.l.bf16 %v14818_v63  ;;  %v14819_v17 = vld [vmem:[%s17053_s29 + $0x50] sm:$0xff]   ;;  %v14817_v11 = vld [vmem:[%s17053_s29 + $0x40] sm:$0xff]   ;;  %v14816_v33 = vld [vmem:[%s17053_s29 + $0x38] sm:$0xff]  }
 0x3dd   : > { %v4331_v9 = vrot.slane %v17734_v45, 1  ;;  %v14815_v48 = vld [vmem:[%s17053_s29 + $0x30] sm:$0xff]   ;;  %v17780_v43 = vunpack.c.l.bf16 %v14817_v11  ;;  %v14821_v20 = vld [vmem:[%s17053_s29 + $0x60] sm:$0xff]   ;;  %v17798_v32 = vunpack.c.l.bf16 %v14816_v33  ;;  %v14822_v53 = vld [vmem:[%s17053_s29 + $0x68] sm:$0xff]   ;;  %v4918_v11 = vrot.slane %v17734_v45, 3 }
 0x3de   : > { %v4053_v26 = vrot.slane %v17764_v58, 7  ;;  %v17785_v46 = vunpack.c.l.bf16 %v14815_v48  ;;  %v17800_v57 = vunpack.c.l.bf16 %v14821_v20  ;;  %v17809_v22 = vunpack.c.l.bf16 %v14822_v53  ;;  %v14823_v30 = vld [vmem:[%s17053_s29 + $0x70] sm:$0xff]   ;;  %v14824_v63 = vld [vmem:[%s17053_s29 + $0x78] sm:$0xff]   ;;  %v4304_v37 = vld [vmem:[#allocation4 + $0x60] sm:$0x1] }
 0x3df   : > { %v4345_v8 = vrot.slane %v17780_v43, 1  ;;  %v4051_v31 = vrot.slane %v17798_v32, 1  ;;  %v17837_v48 = vunpack.c.l.bf16 %v14824_v63  ;;  %v4639_v53 = vrot.slane %v17780_v43, 2  ;;  %v4310_v4 = vld [vmem:[#allocation4 + $0x78] sm:$0x1] }
 0x3e0   : > { %v4054_v21 = vsel %vm21299_vm15, %v4053_v26, %v17780_v43  ;;  %v4049_v25 = vrot.slane %v17785_v46, 2  ;;  %v4341_v28 = vrot.slane %v17785_v46, 3  ;;  %v4059_v38 = vrot.slane %v17800_v57, 4 }
 0x3e1   : > { %v4077_v26 = vlaneseq }
 0x3e2   : > { %14149 = vmatmul.mubr.msk.bf16.vlgmr.msra.gmra.mrb[36].mxu1 %vm2809_vm14, %v16365_v44 }
 0x3e3   : > { %3761 = vmatpush1.bf16.msra.mxu1 %v3602_v1  ;;  %3792 = vmatprep.mubr.bf16.mxu1 %v16749_v0  ;;  %v4041_v1 = vrot.slane %v17743_v24, 6 }
 0x3e4   : > { %14152 = vmatprep.subr.msk.bf16.mxu1 %vm722_vm5, %v14137_v62  ;;  %v4333_v62 = vrot.slane %v17743_v24, 7 }
 0x3ea   : > { %14151 = vmatmul.mubr.msk.bf16.vlgmr.msra.gmra.mrb[40].mxu1 %vm2809_vm14, %v16365_v44 }
 0x3eb   : > { %3804 = vmatpush1.bf16.msra.mxu1 %v3608_v47  ;;  %3835 = vmatprep.mubr.bf16.mxu1 %v16749_v0  ;;  %v17761_v47 = vunpack.c.l.bf16 %v14813_v61 }
 0x3ec   : > { %14154 = vmatprep.subr.msk.bf16.mxu1 %vm722_vm5, %v14139_v49  ;;  %v14814_v49 = vld [vmem:[%s17053_s29 + $0x28] sm:$0xff]  }
 0x3ed   : > { %v4045_v27 = vrot.slane %v17761_v47, 4 }
 0x3f2   : > { %14153 = vmatmul.mubr.msk.bf16.vlgmr.msra.gmra.mrb[44].mxu1 %vm2809_vm14, %v16365_v44 }
 0x3f3   : > { %3847 = vmatpush1.bf16.msra.mxu1 %v3614_v18  ;;  %3878 = vmatprep.mubr.bf16.mxu1 %v16749_v0  ;;  %v4043_v18 = vrot.slane %v17751_v60, 5 }
 0x3f4   : > { %14156 = vmatprep.subr.msk.bf16.mxu1 %vm722_vm5, %v14141_v54  ;;  %v4335_v54 = vrot.slane %v17751_v60, 6 }
 0x3fa   : > { %14155 = vmatmul.mubr.msk.bf16.vlgmr.msra.gmra.mrb[48].mxu1 %vm2809_vm14, %v16365_v44 }
 0x3fb   : > { %3890 = vmatpush1.bf16.msra.mxu1 %v3620_v50  ;;  %3921 = vmatprep.mubr.bf16.mxu1 %v16749_v0 }
 0x3fc   : > { %14158 = vmatprep.subr.msk.bf16.mxu1 %vm722_vm5, %v14143_v12  ;;  %v17772_v12 = vunpack.c.l.bf16 %v14814_v49  ;;  %v4061_v49 = vrot.slane %v17809_v22, 3  ;;  %vm4575_vm5 = vsmask.f32 1280 }
 0x3fd   : > { %vm18236_vm11 = vmand %vm21299_vm15, %vm4575_vm5  ;;  %vm5162_vm5 = vsmask.f32 2304 }
 0x3fe   : > { %v4047_v42 = vrot.slane %v17772_v12, 3 }
 0x402   : > { %14157 = vmatmul.mubr.msk.bf16.vlgmr.msra.gmra.mrb[52].mxu1 %vm2809_vm14, %v16365_v44 }
 0x403   : > { %3933 = vmatpush1.bf16.msra.mxu1 %v3626_v16  ;;  %3964 = vmatprep.mubr.bf16.mxu1 %v16749_v0  ;;  %v535_v0 = vsel %vm17077_vm3, 0, %v534_v10  ;;  %v17775_v16 = vunpack.c.l.bf16 %v14819_v17  ;;  %v4337_v10 = vrot.slane %v17761_v47, 5  ;;  %v4346_v17 = vsel %vm21299_vm15, %v17764_v58, %v4345_v8 }
 0x404   : > { %536 = vst [vmem:[#allocation4 + $0x24] sm:$0x1] %v535_v0  ;;  %v4339_v0 = vrot.slane %v17772_v12, 4 }
 0x405   : > { %v4055_v14 = vrot.slane %v17775_v16, 6 }
 0x407   : > { %v4056_v35 = vsel %vm21292_vm0, %v4055_v14, %v4054_v21  ;;  %v4351_v14 = vrot.slane %v17800_v57, 5 }
 0x408   : > { %v4058_v61 = vsel %vm3213_vm1, %v4057_v3, %v4056_v35  ;;  %v4065_v35 = vrot.slane %v17837_v48, 1 }
 0x40a   : > { %14159 = vmatmul.mubr.msk.bf16.vlgmr.msra.gmra.mrb[56].mxu1 %vm2809_vm14, %v16365_v44  ;;  %v17731_v44 = vld [vmem:[%s17053_s29 + $0x8] sm:$0xff]   ;;  %vm18348_vm14 = vmand %vm21299_vm15, %vm4868_vm13 }
 0x40b   : > { %v17737_v34 = vunpack.c.l.bf16 %v17731_v44  ;;  %vm18425_vm13 = vmand %vm21292_vm0, %vm5162_vm5  ;;  %vm5455_vm5 = vsmask.f32 7946 }
 0x40d   : > { %v4039_v52 = vrot.slane %v17737_v34, 7  ;;  %v4332_v56 = vsel %vm21299_vm15, %v17737_v34, %v4331_v9  ;;  %v4343_v9 = vrot.slane %v17798_v32, 2 }
 0x40e   : > { %v4334_v50 = vsel %vm21292_vm0, %v4333_v62, %v4332_v56  ;;  %v4625_v62 = vrot.slane %v17734_v45, 2  ;;  %v17823_v56 = vunpack.c.l.bf16 %v14823_v30 }
 0x40f   : > { %v4040_v2 = vsel %vm21299_vm15, %v4039_v52, %v17734_v45  ;;  %v4336_v19 = vsel %vm3213_vm1, %v4335_v54, %v4334_v50  ;;  %v4060_v54 = vsel %vm21297_vm2, %v4059_v38, %v4058_v61 }
 0x410   : > { %v4042_v13 = vsel %vm21292_vm0, %v4041_v1, %v4040_v2  ;;  %v4338_v36 = vsel %vm21297_vm2, %v4337_v10, %v4336_v19  ;;  %v4347_v1 = vrot.slane %v17775_v16, 7  ;;  %v4626_v2 = vrot.slane %v17737_v34, 1 }
 0x411   : > { %v4044_v59 = vsel %vm3213_vm1, %v4043_v18, %v4042_v13  ;;  %v4340_v29 = vsel %vm3219_vm6, %v4339_v0, %v4338_v36  ;;  %v4919_v13 = vrot.slane %v17737_v34, 2  ;;  %v4349_v10 = vrot.slane %v17788_v40, 6 }
 0x412   : > { %v4046_v7 = vsel %vm21297_vm2, %v4045_v27, %v4044_v59  ;;  %v4342_v52 = vsel %vm21298_vm8, %v4341_v28, %v4340_v29  ;;  %v4075_v27 = vunpack.c.l.s4 %v16752_v39  ;;  %v16753_v59 = vmov 286326784  }
 0x413   : > { %v4048_v23 = vsel %vm3219_vm6, %v4047_v42, %v4046_v7  ;;  %v17835_v50 = vsel %vm21291_vm10, %v4343_v9, %v4342_v52  ;;  %v17840_v19 = vunpack.c.l.s4 %v16753_v59  ;;  %v4348_v33 = vsel %vm21292_vm0, %v4347_v1, %v4346_v17 }
 0x414   : > { %v4050_v6 = vsel %vm21298_vm8, %v4049_v25, %v4048_v23  ;;  %v4627_v20 = vsel %vm21299_vm15, %v4626_v2, %v4625_v62  ;;  %v4062_v42 = vsel %vm3219_vm6, %v4061_v49, %v4060_v54  ;;  %v4063_v0 = vrot.slane %v17823_v56, 2 }
 0x415   : > { %v17829_v18 = vsel %vm21291_vm10, %v4051_v31, %v4050_v6  ;;  %v4921_v7 = vrot.slane %v17743_v24, 1  ;;  %v4629_v36 = vrot.slane %v17751_v60, 7  ;;  %v4920_v21 = vsel %vm21299_vm15, %v4919_v13, %v4918_v11 }
 0x416   : > { %v4640_v25 = vrot.slane %v17764_v58, 1  ;;  %v4350_v28 = vsel %vm3213_vm1, %v4349_v10, %v4348_v33  ;;  %v4628_v3 = vsel %vm21292_vm0, %v17743_v24, %v4627_v20  ;;  %v4932_v23 = vrot.slane %v17780_v43, 3 }
 0x417   : > { %v4933_v29 = vrot.slane %v17764_v58, 2  ;;  %v4076_v8 = vunpack.c.0.s8 %v4075_v27  ;;  %v4078_v31 = vshrl.u32 %v4077_v26, 7  ;;  %v4156_v30 = vunpack.c.0.s8 %v17840_v19 }
 0x418   : > { %v4064_v38 = vsel %vm21298_vm8, %v4063_v0, %v4062_v42  ;;  %v4353_v6 = vrot.slane %v17809_v22, 4  ;;  %v4631_v52 = vrot.slane %v17761_v47, 6  ;;  %v4922_v9 = vsel %vm21292_vm0, %v4921_v7, %v4920_v21 }
 0x419   : > { %v4352_v61 = vsel %vm21297_vm2, %v4351_v14, %v4350_v28  ;;  %v4630_v63 = vsel %vm3213_vm1, %v4629_v36, %v4628_v3  ;;  %v4641_v1 = vsel %vm21299_vm15, %v4640_v25, %v4639_v53  ;;  %v4935_v62 = vrot.slane %v17775_v16, 1 }
 0x41a   : > { %v4924_v2 = vrot.slane %v17761_v47, 7  ;;  %v4934_v49 = vsel %vm21299_vm15, %v4933_v29, %v4932_v23  ;;  %v5212_v17 = vrot.slane %v17734_v45, 4  ;;  %v5213_v54 = vrot.slane %v17737_v34, 3 }
 0x41b   : > { %v17871_v11 = vsub.s32 %v4076_v8, %v4078_v31  ;;  %v4633_v13 = vrot.slane %v17772_v12, 5  ;;  %v4923_v39 = vsel %vm3213_vm1, %v17751_v60, %v4922_v9  ;;  %v4643_v27 = vrot.slane %v17788_v40, 7 }
 0x41c   : > { %v17878_v10 = vsel %vm21291_vm10, %v4065_v35, %v4064_v38  ;;  %v4354_v26 = vsel %vm3219_vm6, %v4353_v6, %v4352_v61  ;;  %v4632_v59 = vsel %vm21297_vm2, %v4631_v52, %v4630_v63  ;;  %v4642_v19 = vsel %vm21292_vm0, %v17775_v16, %v4641_v1 }
 0x41d   : > { %v4355_v33 = vrot.slane %v17823_v56, 3  ;;  %v4926_v20 = vrot.slane %v17772_v12, 6  ;;  %v4936_v42 = vsel %vm21292_vm0, %v4935_v62, %v4934_v49  ;;  %v5215_v0 = vrot.slane %v17743_v24, 2 }
 0x41e   : > { %v4635_v14 = vrot.slane %v17785_v46, 4  ;;  %v4925_v7 = vsel %vm21297_vm2, %v4924_v2, %v4923_v39  ;;  %v4645_v36 = vrot.slane %v17800_v57, 6  ;;  %v5214_v21 = vsel %vm21299_vm15, %v5213_v54, %v5212_v17 }
 0x41f   : > { %v4634_v53 = vsel %vm3219_vm6, %v4633_v13, %v4632_v59  ;;  %v4928_v25 = vrot.slane %v17785_v46, 5  ;;  %v4644_v28 = vsel %vm3213_vm1, %v4643_v27, %v4642_v19  ;;  %v4938_v3 = vrot.slane %v17800_v57, 7 }
 0x420   : > { %v4937_v23 = vsel %vm3213_vm1, %v17788_v40, %v4936_v42  ;;  %v5217_v29 = vrot.slane %v17751_v60, 1  ;;  %v5505_v35 = vrot.slane %v17734_v45, 5  ;;  %v5506_v8 = vrot.slane %v17737_v34, 4 }
 0x421   : > { %v4357_v38 = vrot.slane %v17837_v48, 2  ;;  %v4927_v6 = vsel %vm3219_vm6, %v4926_v20, %v4925_v7  ;;  %v4647_v52 = vrot.slane %v17809_v22, 5  ;;  %v5216_v9 = vsel %vm21292_vm0, %v5215_v0, %v5214_v21 }
 0x422   : > { %v4356_v61 = vsel %vm21298_vm8, %v4355_v33, %v4354_v26  ;;  %v4637_v63 = vrot.slane %v17798_v32, 3  ;;  %v4646_v1 = vsel %vm21297_vm2, %v4645_v36, %v4644_v28  ;;  %v4940_v62 = vrot.slane %v17809_v22, 6 }
 0x423   : > { %v4636_v2 = vsel %vm21298_vm8, %v4635_v14, %v4634_v53  ;;  %v4930_v49 = vrot.slane %v17798_v32, 4  ;;  %v4939_v17 = vsel %vm21297_vm2, %v4938_v3, %v4937_v23  ;;  %v5508_v54 = vrot.slane %v17743_v24, 3 }
 0x424   : > { %v4929_v13 = vsel %vm21298_vm8, %v4928_v25, %v4927_v6  ;;  %v4649_v39 = vrot.slane %v17823_v56, 4  ;;  %v5218_v27 = vsel %vm3213_vm1, %v5217_v29, %v5216_v9  ;;  %v5507_v26 = vsel %vm21299_vm15, %v5506_v8, %v5505_v35 }
 0x425   : > { %v17917_v59 = vsub.s32 %v4156_v30, %v4078_v31  ;;  %v17920_v19 = vsel %vm21291_vm10, %v4357_v38, %v4356_v61  ;;  %v4648_v33 = vsel %vm3219_vm6, %v4647_v52, %v4646_v1  ;;  %v4942_v20 = vrot.slane %v17823_v56, 5 }
 0x426   : > { %v17925_v42 = vsel %vm21291_vm10, %v4637_v63, %v4636_v2  ;;  %v4941_v0 = vsel %vm3219_vm6, %v4940_v62, %v4939_v17  ;;  %v5220_v14 = vrot.slane %v17772_v12, 7  ;;  %v5510_v7 = vrot.slane %v17751_v60, 2 }
 0x427   : > { %v17931_v36 = vsel %vm21291_vm10, %v4930_v49, %v4929_v13  ;;  %v4651_v31 = vrot.slane %v17837_v48, 3  ;;  %v5219_v30 = vsel %vm21297_vm2, %v17761_v47, %v5218_v27  ;;  %v5509_v21 = vsel %vm21292_vm0, %v5508_v54, %v5507_v26 }
 0x428   : > { %v17938_v53 = vsel %vm21298_vm8, %v4649_v39, %v4648_v33  ;;  %v4944_v25 = vrot.slane %v17837_v48, 4  ;;  %v5226_v28 = vrot.slane %v17780_v43, 4  ;;  %v5227_v3 = vrot.slane %v17764_v58, 3 }
 0x429   : > { %v17944_v23 = vsel %vm21298_vm8, %v4942_v20, %v4941_v0  ;;  %v5512_v29 = vrot.slane %v17761_v47, 1  ;;  %v5519_v35 = vrot.slane %v17780_v43, 5  ;;  %v5520_v8 = vrot.slane %v17764_v58, 4 }
 0x42a   : > { %v5221_v38 = vsel %vm3219_vm6, %v5220_v14, %v5219_v30  ;;  %v5222_v6 = vrot.slane %v17785_v46, 6  ;;  %v5511_v52 = vsel %vm3213_vm1, %v5510_v7, %v5509_v21  ;;  %v5229_v9 = vrot.slane %v17775_v16, 2 }
 0x42b   : > { %v5798_v61 = vrot.slane %v17734_v45, 6  ;;  %v5799_v63 = vrot.slane %v17737_v34, 5  ;;  %v6091_v1 = vrot.slane %v17734_v45, 7  ;;  %v6092_v62 = vrot.slane %v17737_v34, 6 }
 0x42c   : > { %v5228_v2 = vsel %vm21299_vm15, %v5227_v3, %v5226_v28  ;;  %v5522_v49 = vrot.slane %v17775_v16, 3  ;;  %v5812_v17 = vrot.slane %v17780_v43, 6  ;;  %v5813_v54 = vrot.slane %v17764_v58, 5 }
 0x42d   : > { %v5224_v13 = vrot.slane %v17798_v32, 5  ;;  %v5513_v39 = vsel %vm21297_vm2, %v5512_v29, %v5511_v52  ;;  %v5515_v27 = vrot.slane %v17785_v46, 7  ;;  %v5521_v26 = vsel %vm21299_vm15, %v5520_v8, %v5519_v35 }
 0x42e   : > { %v17966_v45 = vsel %vm21298_vm8, %v5222_v6, %v5221_v38  ;;  %v5231_v34 = vrot.slane %v17788_v40, 1  ;;  %v5801_v33 = vrot.slane %v17743_v24, 4  ;;  %v6094_v20 = vrot.slane %v17743_v24, 5 }
 0x42f   : > { %v5230_v0 = vsel %vm21292_vm0, %v5229_v9, %v5228_v2  ;;  %v5800_v14 = vsel %vm21299_vm15, %v5799_v63, %v5798_v61  ;;  %v6093_v7 = vsel %vm21299_vm15, %v6092_v62, %v6091_v1  ;;  %v5815_v30 = vrot.slane %v17775_v16, 4 }
 0x430   : > { %v5523_v21 = vsel %vm21292_vm0, %v5522_v49, %v5521_v26  ;;  %v5524_v28 = vrot.slane %v17788_v40, 2  ;;  %v5803_v3 = vrot.slane %v17751_v60, 3  ;;  %v5814_v29 = vsel %vm21299_vm15, %v5813_v54, %v5812_v17 }
 0x431   : > { %v6096_v35 = vrot.slane %v17751_v60, 4  ;;  %v6105_v24 = vrot.slane %v17780_v43, 7  ;;  %v6106_v8 = vrot.slane %v17764_v58, 6  ;;  %v6108_v38 = vrot.slane %v17775_v16, 5 }
 0x432   : > { %v5232_v6 = vsel %vm3213_vm1, %v5231_v34, %v5230_v0  ;;  %v5802_v52 = vsel %vm21292_vm0, %v5801_v33, %v5800_v14  ;;  %v6095_v9 = vsel %vm21292_vm0, %v6094_v20, %v6093_v7  ;;  %v5817_v61 = vrot.slane %v17788_v40, 3 }
 0x433   : > { %v5526_v63 = vrot.slane %v17800_v57, 1  ;;  %v5816_v1 = vsel %vm21292_vm0, %v5815_v30, %v5814_v29  ;;  %v6107_v60 = vsel %vm21299_vm15, %v6106_v8, %v6105_v24  ;;  %v6110_v43 = vrot.slane %v17788_v40, 4 }
 0x434   : > { %v5525_v58 = vsel %vm3213_vm1, %v5524_v28, %v5523_v21  ;;  %v5805_v16 = vrot.slane %v17761_v47, 2  ;;  %v6098_v62 = vrot.slane %v17761_v47, 3  ;;  %v6109_v2 = vsel %vm21292_vm0, %v6108_v38, %v6107_v60 }
 0x435   : > { %v5234_v49 = vrot.slane %v17809_v22, 7  ;;  %v5804_v17 = vsel %vm3213_vm1, %v5803_v3, %v5802_v52  ;;  %v6097_v54 = vsel %vm3213_vm1, %v6096_v35, %v6095_v9  ;;  %v5819_v26 = vrot.slane %v17800_v57, 2 }
 0x436   : > { %v5514_v34 = vsel %vm3219_vm6, %v17772_v12, %v5513_v39  ;;  %v5233_v40 = vsel %vm21297_vm2, %v17800_v57, %v5232_v6  ;;  %v5818_v33 = vsel %vm3213_vm1, %v5817_v61, %v5816_v1  ;;  %v6112_v47 = vrot.slane %v17800_v57, 3 }
 0x437   : > { %v5527_v20 = vsel %vm21297_vm2, %v5526_v63, %v5525_v58  ;;  %v5807_v0 = vrot.slane %v17772_v12, 1  ;;  %v6100_v14 = vrot.slane %v17772_v12, 2  ;;  %v6111_v7 = vsel %vm3213_vm1, %v6110_v43, %v6109_v2 }
 0x438   : > { %v5236_v30 = vrot.slane %v17823_v56, 6  ;;  %v5806_v21 = vsel %vm21297_vm2, %v5805_v16, %v5804_v17  ;;  %v6099_v39 = vsel %vm21297_vm2, %v6098_v62, %v6097_v54  ;;  %v5821_v28 = vrot.slane %v17809_v22, 1 }
 0x439   : > { %v5235_v3 = vsel %vm3219_vm6, %v5234_v49, %v5233_v40  ;;  %v5529_v57 = vrot.slane %v17823_v56, 7  ;;  %v5820_v29 = vsel %vm21297_vm2, %v5819_v26, %v5818_v33  ;;  %v6114_v35 = vrot.slane %v17809_v22, 2 }
 0x43a   : > { %v5517_v12 = vrot.slane %v17798_v32, 6  ;;  %v5528_v24 = vsel %vm3219_vm6, %v17809_v22, %v5527_v20  ;;  %v6102_v8 = vrot.slane %v17785_v46, 1  ;;  %v6113_v38 = vsel %vm21297_vm2, %v6112_v47, %v6111_v7 }
 0x43b   : > { %v5516_v6 = vsel %vm21298_vm8, %v5515_v27, %v5514_v34  ;;  %v5238_v52 = vrot.slane %v17837_v48, 5  ;;  %v5808_v9 = vsel %vm3219_vm6, %v5807_v0, %v5806_v21  ;;  %v6101_v61 = vsel %vm3219_vm6, %v6100_v14, %v6099_v39 }
 0x43c   : > { %v5237_v63 = vsel %vm21298_vm8, %v5236_v30, %v5235_v3  ;;  %v5531_v1 = vrot.slane %v17837_v48, 6  ;;  %v5822_v60 = vsel %vm3219_vm6, %v5821_v28, %v5820_v29  ;;  %v6116_v22 = vrot.slane %v17823_v56, 1 }
 0x43d   : > { %v18034_v27 = vsel %vm21291_vm10, %v4651_v31, %v17938_v53  ;;  %v5530_v58 = vsel %vm21298_vm8, %v5529_v57, %v5528_v24  ;;  %v5810_v16 = vrot.slane %v17798_v32, 7  ;;  %v6115_v62 = vsel %vm3219_vm6, %v6114_v35, %v6113_v38 }
 0x43e   : > { %v18043_v49 = vsel %vm21291_vm10, %v4944_v25, %v17944_v23  ;;  %v5809_v17 = vsel %vm21298_vm8, %v17785_v46, %v5808_v9  ;;  %v6103_v54 = vsel %vm21298_vm8, %v6102_v8, %v6101_v61  ;;  %v5824_v31 = vrot.slane %v17837_v48, 7  ;;  %v4298_v8 = vld [vmem:[#allocation4 + $0x48] sm:$0x1] }
 0x43f   : > { %v18053_v26 = vsel %vm21291_vm10, %v5224_v13, %v17966_v45  ;;  %v18056_v34 = vsel %vm21291_vm10, %v5517_v12, %v5516_v6  ;;  %v18059_v25 = vsel %vm21291_vm10, %v5238_v52, %v5237_v63  ;;  %v5823_v46 = vsel %vm21298_vm8, %v17823_v56, %v5822_v60 }
 0x440   : > { %v18066_v47 = vsel %vm21291_vm10, %v5531_v1, %v5530_v58  ;;  %v6117_v13 = vsel %vm21298_vm8, %v6116_v22, %v6115_v62  ;;  %v18072_v0 = vsel %vm21291_vm10, %v5810_v16, %v5809_v17  ;;  %v18076_v56 = vsel %vm21291_vm10, %v17798_v32, %v6103_v54 }
 0x441   : > { %v18082_v7 = vunpack.c.h.bf16 %v17731_v44  ;;  %v18094_v28 = vunpack.c.h.bf16 %v17728_v41  ;;  %v18097_v3 = vunpack.c.h.bf16 %v17746_v51 }
 0x443   : > { %21372 = vst [vmem:[#allocation28_spill] sm:$0xff] %v18082_v7  ;;  %21374 = vst [vmem:[#allocation30_spill] sm:$0xff] %v18094_v28  ;;  %v4328_v7 = vld [vmem:[#allocation4 + $0xc0] sm:$0x1]  ;;  %v4622_v28 = vld [vmem:[#allocation4 + $0xc0] sm:$0x2] }
 0x444   : > { %21375 = vst [vmem:[#allocation31_spill] sm:$0xff] %v18097_v3 }
 0x4a5   : > { %v3665_v43 = vpop.f32.mrb[28].mxu1 }
 0x4a6   : > { %v3667_v2 = vpop.f32.mrb[29].mxu1  ;;  %v4069_v23 = vadd.f32 %v17829_v18, %v3665_v43 }
 0x4a7   : > { %v3669_v53 = vpop.f32.mrb[30].mxu1  ;;  %v4361_v45 = vadd.f32 %v17835_v50, %v3667_v2  ;;  %v18086_v50 = vsel %vm21291_vm10, %v17837_v48, %v6117_v13 }
 0x4a8   : > { %v4070_v40 = vadd.f32 %v17878_v10, %v3669_v53  ;;  %v3671_v33 = vpop.f32.mrb[31].mxu1  ;;  %v18079_v10 = vsel %vm21291_vm10, %v5824_v31, %v5823_v46  ;;  %vm18509_vm10 = vmand %vm21292_vm0, %vm5455_vm5 }
 0x4a9   : > { %v4362_v20 = vadd.f32 %v17920_v19, %v3671_v33  ;;  %v18089_v19 = vunpack.c.h.bf16 %v17740_v55  ;;  %vm18588_vm5 = vmand %vm3213_vm1, %vm804_vm7  ;;  %vm6041_vm7 = vsmask.f32 7950 }
 0x4aa   : > { %v4071_v18 = vpack.c.bf16 %v4070_v40, %v4069_v23  ;;  %v14160_v14 = vpack.c.bf16 %v4070_v40, %v4070_v40 }
 0x4ab   : > { %v4363_v30 = vpack.c.bf16 %v4362_v20, %v4361_v45  ;;  %v14169_v21 = vpack.c.bf16 %v4362_v20, %v4362_v20  ;;  %21373 = vst [vmem:[#allocation29_spill] sm:$0xff] %v18089_v19  ;;  %v4319_v19 = vld [vmem:[#allocation4 + $0x9c] sm:$0x1] }
 0x4ac   : > { %v4080_v32 = vrot.slane %v4071_v18, %v17871_v11  ;;  %v4087_v39 = vrot.slane %v14160_v14, %v17871_v11 }
 0x4ad   : > { %v18100_v44 = vrot.slane %v4363_v30, %v17871_v11  ;;  %v18103_v57 = vrot.slane %v14169_v21, %v17871_v11  ;;  %v18105_v48 = vpop.f32.mrb[32].mxu1 }
 0x4ae   : > { %v4088_v35 = vcombine.high %v4080_v32, %v4080_v32  ;;  %v4089_v12 = vcombine.high %v4087_v39, %v4087_v39  ;;  %v4096_v41 = vrot.slane %v4080_v32, %v17871_v11  ;;  %v4103_v24 = vrot.slane %v4087_v39, %v17871_v11  ;;  %v18111_v51 = vpop.f32.mrb[33].mxu1 }
 0x4af   : > { %v18119_v6 = vrot.slane %v18100_v44, %v17871_v11  ;;  %v18123_v52 = vrot.slane %v18103_v57, %v17871_v11  ;;  %v18125_v9 = vpop.f32.mrb[34].mxu1 }
 0x4b0   : > { %v4110_v61 = vrot.slane %v4088_v35, %v17871_v11  ;;  %v4117_v63 = vrot.slane %v4089_v12, %v17871_v11  ;;  %v4118_v1 = vcombine.high %v4096_v41, %v4096_v41  ;;  %v4119_v60 = vcombine.high %v4103_v24, %v4103_v24  ;;  %v18129_v22 = vpop.f32.mrb[35].mxu1 }
 0x4b1   : > { %v4123_v43 = vunpack.i.h.s16 %v4096_v41  ;;  %v4131_v58 = vunpack.i.h.s16 %v4103_v24  ;;  %v14161_v16 = vpack.i.b16 %v4096_v41, %v4096_v41  ;;  %v14165_v62 = vpack.i.b16 %v4103_v24, %v4103_v24  ;;  %v4283_v24 = vld [vmem:[#allocation4 + $0xc] sm:$0x1] }
 0x4b2   : > { %v4120_v2 = vcombine.high %v4110_v61, %v4110_v61  ;;  %v4121_v17 = vcombine.high %v4117_v63, %v4117_v63  ;;  %v4125_v54 = vunpack.i.h.s16 %v4110_v61  ;;  %v4127_v31 = vunpack.i.h.s16 %v4118_v1 }
 0x4b3   : > { %v4133_v53 = vunpack.i.h.s16 %v4117_v63  ;;  %v4135_v46 = vunpack.i.h.s16 %v4119_v60  ;;  %v4139_v23 = vpack.i.b16 %v4123_v43, %v4123_v43  ;;  %v14162_v40 = vpack.i.b16 %v4110_v61, %v4110_v61 }
 0x4b4   : > { %v4129_v33 = vunpack.i.h.s16 %v4120_v2  ;;  %v4137_v13 = vunpack.i.h.s16 %v4121_v17  ;;  %v4141_v45 = vpack.i.b16 %v4125_v54, %v4125_v54  ;;  %v14163_v20 = vpack.i.b16 %v4118_v1, %v4118_v1 }
 0x4b5   : > { %v4143_v18 = vpack.i.b16 %v4127_v31, %v4127_v31  ;;  %v14164_v14 = vpack.i.b16 %v4120_v2, %v4120_v2  ;;  %v4147_v30 = vpack.i.b16 %v4131_v58, %v4131_v58  ;;  %v14166_v21 = vpack.i.b16 %v4117_v63, %v4117_v63  ;;  %v18131_v32 = vpop.f32.mrb[36].mxu1  ;;  %v4286_v58 = vld [vmem:[#allocation4 + $0x18] sm:$0x1]  ;;  %v4289_v63 = vld [vmem:[#allocation4 + $0x24] sm:$0x1] }
 0x4b6   : > { %v4145_v39 = vpack.i.b16 %v4129_v33, %v4129_v33  ;;  %v18133_v35 = vpack.i.b16 %v4133_v53, %v4133_v53  ;;  %v14167_v12 = vpack.i.b16 %v4119_v60, %v4119_v60  ;;  %v18135_v41 = vpack.i.b16 %v4135_v46, %v4135_v46  ;;  %v18137_v29 = vpop.f32.mrb[37].mxu1  ;;  %v4292_v33 = vld [vmem:[#allocation4 + $0x30] sm:$0x1] }
 0x4b7   : > { %v14168_v61 = vpack.i.b16 %v4121_v17, %v4121_v17  ;;  %v18139_v43 = vpack.i.b16 %v4137_v13, %v4137_v13  ;;  %v4160_v1 = vrot.slane %v14161_v16, %v17917_v59  ;;  %v4167_v2 = vrot.slane %v4139_v23, %v17917_v59  ;;  %v18143_v54 = vpop.f32.mrb[38].mxu1  ;;  %v4295_v17 = vld [vmem:[#allocation4 + $0x3c] sm:$0x1] }
 0x4b8   : > { %v4174_v31 = vrot.slane %v14162_v40, %v17917_v59  ;;  %v4181_v60 = vrot.slane %v4141_v45, %v17917_v59  ;;  %v4188_v53 = vrot.slane %v14163_v20, %v17917_v59  ;;  %v4195_v46 = vrot.slane %v4143_v18, %v17917_v59  ;;  %v18149_v13 = vpop.f32.mrb[39].mxu1  ;;  %v4301_v40 = vld [vmem:[#allocation4 + $0x54] sm:$0x1] }
 0x4b9   : > { %v4202_v16 = vrot.slane %v14164_v14, %v17917_v59  ;;  %v4209_v23 = vrot.slane %v4145_v39, %v17917_v59  ;;  %v4216_v55 = vrot.slane %v14165_v62, %v17917_v59  ;;  %v4223_v38 = vrot.slane %v4147_v30, %v17917_v59  ;;  %v4307_v14 = vld [vmem:[#allocation4 + $0x6c] sm:$0x1]  ;;  %v4313_v39 = vld [vmem:[#allocation4 + $0x84] sm:$0x1] }
 0x4ba   : > { %v4230_v45 = vrot.slane %v14166_v21, %v17917_v59  ;;  %v4237_v20 = vrot.slane %v18133_v35, %v17917_v59  ;;  %v4244_v18 = vrot.slane %v14167_v12, %v17917_v59  ;;  %v4251_v15 = vrot.slane %v18135_v41, %v17917_v59  ;;  %v4316_v35 = vld [vmem:[#allocation4 + $0x90] sm:$0x1]  ;;  %v4322_v12 = vld [vmem:[#allocation4 + $0xa8] sm:$0x1] }
 0x4bb   : > { %v4258_v62 = vrot.slane %v14168_v61, %v17917_v59  ;;  %v4265_v30 = vrot.slane %v18139_v43, %v17917_v59  ;;  %v4284_v3 = vsel %vm17082_vm4, %v4160_v1, %v4283_v24  ;;  %v4287_v21 = vsel %vm17082_vm4, %v4167_v2, %v4286_v58  ;;  %v4325_v1 = vld [vmem:[#allocation4 + $0xb4] sm:$0x1] }
 0x4bc   : > { %4285 = vst [vmem:[#allocation4 + $0xc] sm:$0x1] %v4284_v3  ;;  %4288 = vst [vmem:[#allocation4 + $0x18] sm:$0x1] %v4287_v21  ;;  %v4290_v41 = vsel %vm17082_vm4, %v4174_v31, %v4289_v63  ;;  %v4293_v61 = vsel %vm17082_vm4, %v4181_v60, %v4292_v33  ;;  %v4296_v43 = vsel %vm17082_vm4, %v4188_v53, %v4295_v17 }
 0x4bd   : > { %v4299_v24 = vsel %vm17082_vm4, %v4195_v46, %v4298_v8  ;;  %4291 = vst [vmem:[#allocation4 + $0x24] sm:$0x1] %v4290_v41  ;;  %4294 = vst [vmem:[#allocation4 + $0x30] sm:$0x1] %v4293_v61  ;;  %v4302_v3 = vsel %vm17082_vm4, %v4202_v16, %v4301_v40  ;;  %v4305_v2 = vsel %vm17082_vm4, %v4209_v23, %v4304_v37  ;;  %v18184_v8 = vpop.f32.mrb[40].mxu1  ;;  %v4415_v23 = vunpack.i.h.s16 %v18119_v6 }
 0x4be   : > { %4297 = vst [vmem:[#allocation4 + $0x3c] sm:$0x1] %v4296_v43  ;;  %4300 = vst [vmem:[#allocation4 + $0x48] sm:$0x1] %v4299_v24  ;;  %v4308_v58 = vsel %vm17082_vm4, %v4216_v55, %v4307_v14  ;;  %v4311_v63 = vsel %vm17082_vm4, %v4223_v38, %v4310_v4  ;;  %v4314_v31 = vsel %vm17082_vm4, %v4230_v45, %v4313_v39  ;;  %v18194_v53 = vpop.f32.mrb[41].mxu1 }
 0x4bf   : > { %4303 = vst [vmem:[#allocation4 + $0x54] sm:$0x1] %v4302_v3  ;;  %4306 = vst [vmem:[#allocation4 + $0x60] sm:$0x1] %v4305_v2  ;;  %v4317_v60 = vsel %vm17082_vm4, %v4237_v20, %v4316_v35  ;;  %v4320_v37 = vsel %vm17082_vm4, %v4244_v18, %v4319_v19  ;;  %v4323_v55 = vsel %vm17082_vm4, %v4251_v15, %v4322_v12  ;;  %v18208_v17 = vpop.f32.mrb[42].mxu1 }
 0x4c0   : > { %4309 = vst [vmem:[#allocation4 + $0x6c] sm:$0x1] %v4308_v58  ;;  %4312 = vst [vmem:[#allocation4 + $0x78] sm:$0x1] %v4311_v63  ;;  %v4326_v4 = vsel %vm17082_vm4, %v4258_v62, %v4325_v1  ;;  %v4329_v38 = vsel %vm17082_vm4, %v4265_v30, %v4328_v7  ;;  %v21376_v46 = vcombine.high %v18100_v44, %v18100_v44  ;;  %v4423_v44 = vunpack.i.h.s16 %v18123_v52  ;;  %v18216_v40 = vpop.f32.mrb[43].mxu1 }
 0x4c1   : > { %4315 = vst [vmem:[#allocation4 + $0x84] sm:$0x1] %v4314_v31  ;;  %4318 = vst [vmem:[#allocation4 + $0x90] sm:$0x1] %v4317_v60  ;;  %v21377_v15 = vcombine.high %v18103_v57, %v18103_v57  ;;  %v4410_v16 = vcombine.high %v18119_v6, %v18119_v6  ;;  %v4411_v7 = vcombine.high %v18123_v52, %v18123_v52 }
 0x4c2   : > { %4321 = vst [vmem:[#allocation4 + $0x9c] sm:$0x1] %v4320_v37  ;;  %4324 = vst [vmem:[#allocation4 + $0xa8] sm:$0x1] %v4323_v55  ;;  %v4402_v19 = vrot.slane %v21376_v46, %v17871_v11  ;;  %v14170_v62 = vpack.i.b16 %v18119_v6, %v18119_v6  ;;  %v4431_v30 = vpack.i.b16 %v4415_v23, %v4415_v23 }
 0x4c3   : > { %v4409_v33 = vrot.slane %v21377_v15, %v17871_v11  ;;  %4327 = vst [vmem:[#allocation4 + $0xb4] sm:$0x1] %v4326_v4  ;;  %4330 = vst [vmem:[#allocation4 + $0xc0] sm:$0x1] %v4329_v38  ;;  %v4419_v14 = vunpack.i.h.s16 %v4410_v16  ;;  %v4427_v39 = vunpack.i.h.s16 %v4411_v7  ;;  %v14172_v61 = vpack.i.b16 %v4410_v16, %v4410_v16  ;;  %v4577_v4 = vld [vmem:[#allocation4 + $0xc] sm:$0x2] }
 0x4c4   : > { %v4412_v45 = vcombine.high %v4402_v19, %v4402_v19  ;;  %v4417_v57 = vunpack.i.h.s16 %v4402_v19  ;;  %v14171_v12 = vpack.i.b16 %v4402_v19, %v4402_v19  ;;  %v14174_v1 = vpack.i.b16 %v18123_v52, %v18123_v52  ;;  %v4580_v16 = vld [vmem:[#allocation4 + $0x18] sm:$0x2] }
 0x4c5   : > { %v4413_v20 = vcombine.high %v4409_v33, %v4409_v33  ;;  %v4425_v18 = vunpack.i.h.s16 %v4409_v33  ;;  %v4435_v43 = vpack.i.b16 %v4419_v14, %v4419_v14  ;;  %v4439_v2 = vpack.i.b16 %v4423_v44, %v4423_v44  ;;  %v18222_v31 = vpop.f32.mrb[44].mxu1  ;;  %v4589_v14 = vld [vmem:[#allocation4 + $0x3c] sm:$0x2] }
 0x4c6   : > { %v4421_v21 = vunpack.i.h.s16 %v4412_v45  ;;  %v4433_v41 = vpack.i.b16 %v4417_v57, %v4417_v57  ;;  %v14173_v24 = vpack.i.b16 %v4412_v45, %v4412_v45  ;;  %v14175_v58 = vpack.i.b16 %v4409_v33, %v4409_v33  ;;  %21378 = vst [vmem:[#allocation32_spill] sm:$0xff] %v18222_v31  ;;  %v18228_v38 = vpop.f32.mrb[45].mxu1  ;;  %v4616_v31 = vld [vmem:[#allocation4 + $0xa8] sm:$0x2] }
 0x4c7   : > { %v4429_v35 = vunpack.i.h.s16 %v4413_v20  ;;  %v4441_v63 = vpack.i.b16 %v4425_v18, %v4425_v18  ;;  %v14176_v60 = vpack.i.b16 %v4411_v7, %v4411_v7  ;;  %v18224_v37 = vpack.i.b16 %v4427_v39, %v4427_v39  ;;  %21379 = vst [vmem:[#allocation33_spill] sm:$0xff] %v18228_v38  ;;  %v4583_v7 = vld [vmem:[#allocation4 + $0x24] sm:$0x2]  ;;  %v18240_v23 = vpop.f32.mrb[46].mxu1  ;;  %v4586_v18 = vld [vmem:[#allocation4 + $0x30] sm:$0x2] }
 0x4c8   : > { %v4437_v3 = vpack.i.b16 %v4421_v21, %v4421_v21  ;;  %v14177_v6 = vpack.i.b16 %v4413_v20, %v4413_v20  ;;  %v4452_v46 = vrot.slane %v14170_v62, %v17917_v59  ;;  %v4459_v19 = vrot.slane %v4431_v30, %v17917_v59  ;;  %21382 = vst [vmem:[#allocation34_spill] sm:$0xff] %v18240_v23  ;;  %v4592_v39 = vld [vmem:[#allocation4 + $0x48] sm:$0x2]  ;;  %v4601_v62 = vld [vmem:[#allocation4 + $0x6c] sm:$0x2] }
 0x4c9   : > { %v18226_v55 = vpack.i.b16 %v4429_v35, %v4429_v35  ;;  %v4466_v52 = vrot.slane %v14171_v12, %v17917_v59  ;;  %v4473_v15 = vrot.slane %v4433_v41, %v17917_v59  ;;  %v4480_v44 = vrot.slane %v14172_v61, %v17917_v59  ;;  %v4595_v41 = vld [vmem:[#allocation4 + $0x54] sm:$0x2]  ;;  %v4598_v61 = vld [vmem:[#allocation4 + $0x60] sm:$0x2]  ;;  %v4610_v23 = vld [vmem:[#allocation4 + $0x90] sm:$0x2] }
 0x4ca   : > { %v4487_v45 = vrot.slane %v4435_v43, %v17917_v59  ;;  %v4494_v20 = vrot.slane %v14173_v24, %v17917_v59  ;;  %v4501_v57 = vrot.slane %v4437_v3, %v17917_v59  ;;  %v4508_v30 = vrot.slane %v14174_v1, %v17917_v59  ;;  %v4607_v1 = vld [vmem:[#allocation4 + $0x84] sm:$0x2] }
 0x4cb   : > { %v4515_v21 = vrot.slane %v4439_v2, %v17917_v59  ;;  %v4522_v35 = vrot.slane %v14175_v58, %v17917_v59  ;;  %v4529_v12 = vrot.slane %v4441_v63, %v17917_v59  ;;  %v4536_v43 = vrot.slane %v14176_v60, %v17917_v59  ;;  %v4613_v2 = vld [vmem:[#allocation4 + $0x9c] sm:$0x2] }
 0x4cc   : > { %v4543_v24 = vrot.slane %v18224_v37, %v17917_v59  ;;  %v4550_v3 = vrot.slane %v14177_v6, %v17917_v59  ;;  %v4557_v38 = vrot.slane %v18226_v55, %v17917_v59  ;;  %v4578_v58 = vsel %vm18236_vm11, %v4452_v46, %v4577_v4  ;;  %v4619_v6 = vld [vmem:[#allocation4 + $0xb4] sm:$0x2] }
 0x4cd   : > { %v4581_v63 = vsel %vm18236_vm11, %v4459_v19, %v4580_v16  ;;  %v4584_v60 = vsel %vm18236_vm11, %v4466_v52, %v4583_v7  ;;  %v4587_v37 = vsel %vm18236_vm11, %v4473_v15, %v4586_v18  ;;  %4579 = vst [vmem:[#allocation4 + $0xc] sm:$0x2] %v4578_v58  ;;  %v4590_v55 = vsel %vm18236_vm11, %v4480_v44, %v4589_v14 }
 0x4ce   : > { %4582 = vst [vmem:[#allocation4 + $0x18] sm:$0x2] %v4581_v63  ;;  %4585 = vst [vmem:[#allocation4 + $0x24] sm:$0x2] %v4584_v60  ;;  %v4593_v4 = vsel %vm18236_vm11, %v4487_v45, %v4592_v39  ;;  %v4596_v46 = vsel %vm18236_vm11, %v4494_v20, %v4595_v41  ;;  %v4599_v19 = vsel %vm18236_vm11, %v4501_v57, %v4598_v61 }
 0x4cf   : > { %4588 = vst [vmem:[#allocation4 + $0x30] sm:$0x2] %v4587_v37  ;;  %4591 = vst [vmem:[#allocation4 + $0x3c] sm:$0x2] %v4590_v55  ;;  %v4602_v52 = vsel %vm18236_vm11, %v4508_v30, %v4601_v62  ;;  %v4605_v15 = vsel %vm18236_vm11, %v4515_v21, %v4604_v5  ;;  %v4608_v16 = vsel %vm18236_vm11, %v4522_v35, %v4607_v1 }
 0x4d0   : > { %4594 = vst [vmem:[#allocation4 + $0x48] sm:$0x2] %v4593_v4  ;;  %4597 = vst [vmem:[#allocation4 + $0x54] sm:$0x2] %v4596_v46  ;;  %v4611_v7 = vsel %vm18236_vm11, %v4529_v12, %v4610_v23  ;;  %v4614_v44 = vsel %vm18236_vm11, %v4536_v43, %v4613_v2  ;;  %v4617_v45 = vsel %vm18236_vm11, %v4543_v24, %v4616_v31 }
 0x4d1   : > { %4600 = vst [vmem:[#allocation4 + $0x60] sm:$0x2] %v4599_v19  ;;  %4603 = vst [vmem:[#allocation4 + $0x6c] sm:$0x2] %v4602_v52  ;;  %v4620_v20 = vsel %vm18236_vm11, %v4550_v3, %v4619_v6  ;;  %v4623_v5 = vsel %vm18236_vm11, %v4557_v38, %v4622_v28  ;;  %v4655_v23 = vadd.f32 %v17925_v42, %v18105_v48  ;;  %v18340_v6 = vpop.f32.mrb[47].mxu1 }
 0x4d2   : > { %4606 = vst [vmem:[#allocation4 + $0x78] sm:$0x2] %v4605_v15  ;;  %4609 = vst [vmem:[#allocation4 + $0x84] sm:$0x2] %v4608_v16  ;;  %v4948_v57 = vadd.f32 %v17931_v36, %v18111_v51  ;;  %v4656_v18 = vadd.f32 %v18034_v27, %v18125_v9  ;;  %v4949_v31 = vadd.f32 %v18043_v49, %v18129_v22 }
 0x4d3   : > { %4612 = vst [vmem:[#allocation4 + $0x90] sm:$0x2] %v4611_v7  ;;  %4615 = vst [vmem:[#allocation4 + $0x9c] sm:$0x2] %v4614_v44  ;;  %v5242_v14 = vadd.f32 %v18053_v26, %v18131_v32  ;;  %v5535_v28 = vadd.f32 %v18056_v34, %v18137_v29  ;;  %v5243_v38 = vadd.f32 %v18059_v25, %v18143_v54 }
 0x4d4   : > { %4618 = vst [vmem:[#allocation4 + $0xa8] sm:$0x2] %v4617_v45  ;;  %4621 = vst [vmem:[#allocation4 + $0xb4] sm:$0x2] %v4620_v20  ;;  %v5536_v42 = vadd.f32 %v18066_v47, %v18149_v13  ;;  %v4657_v48 = vpack.c.bf16 %v4656_v18, %v4655_v23  ;;  %v14178_v36 = vpack.c.bf16 %v4656_v18, %v4656_v18 }
 0x4d5   : > { %4624 = vst [vmem:[#allocation4 + $0xc0] sm:$0x2] %v4623_v5  ;;  %v4950_v51 = vpack.c.bf16 %v4949_v31, %v4948_v57  ;;  %v14187_v39 = vpack.c.bf16 %v4949_v31, %v4949_v31  ;;  %v5244_v27 = vpack.c.bf16 %v5243_v38, %v5242_v14  ;;  %v14196_v9 = vpack.c.bf16 %v5243_v38, %v5243_v38 }
 0x4d6   : > { %v5537_v62 = vpack.c.bf16 %v5536_v42, %v5535_v28  ;;  %v14205_v49 = vpack.c.bf16 %v5536_v42, %v5536_v42  ;;  %v4666_v22 = vrot.slane %v4657_v48, %v17871_v11  ;;  %v4673_v26 = vrot.slane %v14178_v36, %v17871_v11 }
 0x4d7   : > { %v18307_v34 = vrot.slane %v4950_v51, %v17871_v11  ;;  %v18310_v25 = vrot.slane %v14187_v39, %v17871_v11  ;;  %v18313_v47 = vrot.slane %v5244_v27, %v17871_v11  ;;  %v18316_v29 = vrot.slane %v14196_v9, %v17871_v11  ;;  %v4870_v9 = vld [vmem:[#allocation4 + $0xc] sm:$0x2] }
 0x4d8   : > { %v18319_v32 = vrot.slane %v5537_v62, %v17871_v11  ;;  %v18322_v54 = vrot.slane %v14205_v49, %v17871_v11  ;;  %v4674_v13 = vcombine.high %v4666_v22, %v4666_v22  ;;  %v4675_v30 = vcombine.high %v4673_v26, %v4673_v26  ;;  %v4873_v62 = vld [vmem:[#allocation4 + $0x18] sm:$0x2] }
 0x4d9   : > { %v4682_v21 = vrot.slane %v4666_v22, %v17871_v11  ;;  %v4689_v35 = vrot.slane %v4673_v26, %v17871_v11  ;;  %v4967_v12 = vcombine.high %v18307_v34, %v18307_v34  ;;  %v4968_v41 = vcombine.high %v18310_v25, %v18310_v25 }
 0x4da   : > { %v18332_v61 = vrot.slane %v18307_v34, %v17871_v11  ;;  %v18336_v43 = vrot.slane %v18310_v25, %v17871_v11  ;;  %v4696_v24 = vrot.slane %v4674_v13, %v17871_v11  ;;  %v4703_v3 = vrot.slane %v4675_v30, %v17871_v11  ;;  %v4876_v30 = vld [vmem:[#allocation4 + $0x24] sm:$0x2] }
 0x4db   : > { %v4704_v1 = vcombine.high %v4682_v21, %v4682_v21  ;;  %v4705_v2 = vcombine.high %v4689_v35, %v4689_v35  ;;  %v4709_v58 = vunpack.i.h.s16 %v4682_v21  ;;  %v4717_v63 = vunpack.i.h.s16 %v4689_v35 }
 0x4dc   : > { %v14179_v60 = vpack.i.b16 %v4682_v21, %v4682_v21  ;;  %v14183_v37 = vpack.i.b16 %v4689_v35, %v4689_v35  ;;  %v4706_v55 = vcombine.high %v4696_v24, %v4696_v24  ;;  %v4707_v4 = vcombine.high %v4703_v3, %v4703_v3  ;;  %v4879_v21 = vld [vmem:[#allocation4 + $0x30] sm:$0x2]  ;;  %v4882_v35 = vld [vmem:[#allocation4 + $0x3c] sm:$0x2] }
 0x4dd   : > { %v4711_v46 = vunpack.i.h.s16 %v4696_v24  ;;  %v4713_v19 = vunpack.i.h.s16 %v4704_v1  ;;  %v4719_v52 = vunpack.i.h.s16 %v4703_v3  ;;  %v4721_v15 = vunpack.i.h.s16 %v4705_v2 }
 0x4de   : > { %v4725_v16 = vpack.i.b16 %v4709_v58, %v4709_v58  ;;  %v14180_v7 = vpack.i.b16 %v4696_v24, %v4696_v24  ;;  %v4715_v44 = vunpack.i.h.s16 %v4706_v55  ;;  %v4723_v45 = vunpack.i.h.s16 %v4707_v4  ;;  %v4885_v58 = vld [vmem:[#allocation4 + $0x48] sm:$0x2] }
 0x4df   : > { %v4727_v20 = vpack.i.b16 %v4711_v46, %v4711_v46  ;;  %v14181_v5 = vpack.i.b16 %v4704_v1, %v4704_v1  ;;  %v4729_v23 = vpack.i.b16 %v4713_v19, %v4713_v19  ;;  %v14182_v57 = vpack.i.b16 %v4706_v55, %v4706_v55 }
 0x4e0   : > { %v4733_v18 = vpack.i.b16 %v4717_v63, %v4717_v63  ;;  %v14184_v31 = vpack.i.b16 %v4703_v3, %v4703_v3  ;;  %v4731_v14 = vpack.i.b16 %v4715_v44, %v4715_v44  ;;  %v4735_v28 = vpack.i.b16 %v4719_v52, %v4719_v52  ;;  %v4888_v63 = vld [vmem:[#allocation4 + $0x54] sm:$0x2]  ;;  %v4894_v52 = vld [vmem:[#allocation4 + $0x6c] sm:$0x2] }
 0x4e1   : > { %v14185_v38 = vpack.i.b16 %v4705_v2, %v4705_v2  ;;  %v4737_v42 = vpack.i.b16 %v4721_v15, %v4721_v15  ;;  %v14186_v48 = vpack.i.b16 %v4707_v4, %v4707_v4  ;;  %v18342_v36 = vpack.i.b16 %v4723_v45, %v4723_v45  ;;  %v4897_v15 = vld [vmem:[#allocation4 + $0x78] sm:$0x2] }
 0x4e2   : > { %v4746_v51 = vrot.slane %v14179_v60, %v17917_v59  ;;  %v4753_v39 = vrot.slane %v4725_v16, %v17917_v59  ;;  %v21383_v27 = vmov 0  ;;  %v4760_v49 = vrot.slane %v14180_v7, %v17917_v59  ;;  %v4891_v60 = vld [vmem:[#allocation4 + $0x60] sm:$0x2]  ;;  %v4900_v16 = vld [vmem:[#allocation4 + $0x84] sm:$0x2] }
 0x4e3   : > { %v21384_v27 = vsel %vm18348_vm14, 4294967295, %v21383_v27  ;;  %v4767_v22 = vrot.slane %v4727_v20, %v17917_v59  ;;  %v4774_v26 = vrot.slane %v14181_v5, %v17917_v59  ;;  %v4781_v13 = vrot.slane %v4729_v23, %v17917_v59  ;;  %v4903_v20 = vld [vmem:[#allocation4 + $0x90] sm:$0x2]  ;;  %v4906_v5 = vld [vmem:[#allocation4 + $0x9c] sm:$0x2] }
 0x4e4   : > { %21385 = vst [vmem:[#allocation35_spill] sm:$0xff] %v21384_v27  ;;  %v4788_v24 = vrot.slane %v14182_v57, %v17917_v59  ;;  %v4795_v3 = vrot.slane %v4731_v14, %v17917_v59  ;;  %v4802_v1 = vrot.slane %v14183_v37, %v17917_v59  ;;  %v4809_v2 = vrot.slane %v4733_v18, %v17917_v59  ;;  %v4909_v23 = vld [vmem:[#allocation4 + $0xa8] sm:$0x2] }
 0x4e5   : > { %v4816_v55 = vrot.slane %v14184_v31, %v17917_v59  ;;  %v4823_v4 = vrot.slane %v4735_v28, %v17917_v59  ;;  %v4830_v46 = vrot.slane %v14185_v38, %v17917_v59  ;;  %v4837_v19 = vrot.slane %v4737_v42, %v17917_v59  ;;  %v4912_v28 = vld [vmem:[#allocation4 + $0xb4] sm:$0x2]  ;;  %v4915_v38 = vld [vmem:[#allocation4 + $0xc0] sm:$0x2] }
 0x4e6   : > { %v4844_v7 = vrot.slane %v14186_v48, %v17917_v59  ;;  %v4851_v37 = vrot.slane %v18342_v36, %v17917_v59  ;;  %v4871_v44 = vsel %vm18348_vm14, %v4746_v51, %v4870_v9  ;;  %v4874_v45 = vsel %vm18348_vm14, %v4753_v39, %v4873_v62 }
 0x4e7   : > { %4872 = vst [vmem:[#allocation4 + $0xc] sm:$0x2] %v4871_v44  ;;  %4875 = vst [vmem:[#allocation4 + $0x18] sm:$0x2] %v4874_v45  ;;  %v4877_v57 = vsel %vm18348_vm14, %v4760_v49, %v4876_v30  ;;  %v4880_v18 = vsel %vm18348_vm14, %v4767_v22, %v4879_v21  ;;  %v4883_v31 = vsel %vm18348_vm14, %v4774_v26, %v4882_v35 }
 0x4e8   : > { %v4886_v14 = vsel %vm18348_vm14, %v4781_v13, %v4885_v58  ;;  %4878 = vst [vmem:[#allocation4 + $0x24] sm:$0x2] %v4877_v57  ;;  %4881 = vst [vmem:[#allocation4 + $0x30] sm:$0x2] %v4880_v18  ;;  %v4889_v42 = vsel %vm18348_vm14, %v4788_v24, %v4888_v63  ;;  %v4892_v48 = vsel %vm18348_vm14, %v4795_v3, %v4891_v60  ;;  %v5002_v24 = vunpack.i.h.s16 %v18332_v61 }
 0x4e9   : > { %4884 = vst [vmem:[#allocation4 + $0x3c] sm:$0x2] %v4883_v31  ;;  %4887 = vst [vmem:[#allocation4 + $0x48] sm:$0x2] %v4886_v14  ;;  %v4895_v36 = vsel %vm18348_vm14, %v4802_v1, %v4894_v52  ;;  %v4898_v51 = vsel %vm18348_vm14, %v4809_v2, %v4897_v15  ;;  %v4901_v39 = vsel %vm18348_vm14, %v4816_v55, %v4900_v16  ;;  %v5010_v3 = vunpack.i.h.s16 %v18336_v43 }
 0x4ea   : > { %4890 = vst [vmem:[#allocation4 + $0x54] sm:$0x2] %v4889_v42  ;;  %4893 = vst [vmem:[#allocation4 + $0x60] sm:$0x2] %v4892_v48  ;;  %v4904_v9 = vsel %vm18348_vm14, %v4823_v4, %v4903_v20  ;;  %v4907_v62 = vsel %vm18348_vm14, %v4830_v46, %v4906_v5  ;;  %v4910_v49 = vsel %vm18348_vm14, %v4837_v19, %v4909_v23  ;;  %v18417_v20 = vpop.f32.mrb[48].mxu1  ;;  %v21386_v18 = vmov 0 }
 0x4eb   : > { %4896 = vst [vmem:[#allocation4 + $0x6c] sm:$0x2] %v4895_v36  ;;  %4899 = vst [vmem:[#allocation4 + $0x78] sm:$0x2] %v4898_v51  ;;  %v4913_v22 = vsel %vm18348_vm14, %v4844_v7, %v4912_v28  ;;  %v4916_v26 = vsel %vm18348_vm14, %v4851_v37, %v4915_v38  ;;  %v4989_v13 = vrot.slane %v4967_v12, %v17871_v11  ;;  %v21387_v18 = vsel %vm18425_vm13, 4294967295, %v21386_v18  ;;  %v18429_v31 = vpop.f32.mrb[49].mxu1 }
 0x4ec   : > { %4902 = vst [vmem:[#allocation4 + $0x84] sm:$0x2] %v4901_v39  ;;  %4905 = vst [vmem:[#allocation4 + $0x90] sm:$0x2] %v4904_v9  ;;  %v4996_v30 = vrot.slane %v4968_v41, %v17871_v11  ;;  %v4997_v21 = vcombine.high %v18332_v61, %v18332_v61  ;;  %v4998_v35 = vcombine.high %v18336_v43, %v18336_v43  ;;  %v5164_v42 = vld [vmem:[#allocation4 + $0xc] sm:$0x4] }
 0x4ed   : > { %4908 = vst [vmem:[#allocation4 + $0x9c] sm:$0x2] %v4907_v62  ;;  %4911 = vst [vmem:[#allocation4 + $0xa8] sm:$0x2] %v4910_v49  ;;  %v4999_v1 = vcombine.high %v4989_v13, %v4989_v13  ;;  %v5004_v12 = vunpack.i.h.s16 %v4989_v13  ;;  %v14188_v25 = vpack.i.b16 %v18332_v61, %v18332_v61  ;;  %v5018_v41 = vpack.i.b16 %v5002_v24, %v5002_v24  ;;  %v5167_v48 = vld [vmem:[#allocation4 + $0x18] sm:$0x4] }
 0x4ee   : > { %4914 = vst [vmem:[#allocation4 + $0xb4] sm:$0x2] %v4913_v22  ;;  %4917 = vst [vmem:[#allocation4 + $0xc0] sm:$0x2] %v4916_v26  ;;  %v5000_v34 = vcombine.high %v4996_v30, %v4996_v30  ;;  %v5012_v2 = vunpack.i.h.s16 %v4996_v30  ;;  %v5006_v58 = vunpack.i.h.s16 %v4997_v21  ;;  %v5014_v63 = vunpack.i.h.s16 %v4998_v35  ;;  %v5170_v36 = vld [vmem:[#allocation4 + $0x24] sm:$0x4] }
 0x4ef   : > { %v5008_v60 = vunpack.i.h.s16 %v4999_v1  ;;  %v14189_v4 = vpack.i.b16 %v4989_v13, %v4989_v13  ;;  %v5020_v46 = vpack.i.b16 %v5004_v12, %v5004_v12  ;;  %v14190_v19 = vpack.i.b16 %v4997_v21, %v4997_v21  ;;  %21388 = vst [vmem:[#allocation36_spill] sm:$0xff] %v21387_v18  ;;  %v5173_v49 = vld [vmem:[#allocation4 + $0x30] sm:$0x4]  ;;  %v5176_v22 = vld [vmem:[#allocation4 + $0x3c] sm:$0x4] }
 0x4f0   : > { %v5016_v55 = vunpack.i.h.s16 %v5000_v34  ;;  %v5022_v52 = vpack.i.b16 %v5006_v58, %v5006_v58  ;;  %v14191_v15 = vpack.i.b16 %v4999_v1, %v4999_v1  ;;  %v14192_v16 = vpack.i.b16 %v18336_v43, %v18336_v43  ;;  %v5179_v26 = vld [vmem:[#allocation4 + $0x48] sm:$0x4]  ;;  %v5188_v13 = vld [vmem:[#allocation4 + $0x6c] sm:$0x4]  ;;  %v5185_v1 = vld [vmem:[#allocation4 + $0x60] sm:$0x4] }
 0x4f1   : > { %v5024_v7 = vpack.i.b16 %v5008_v60, %v5008_v60  ;;  %v5026_v37 = vpack.i.b16 %v5010_v3, %v5010_v3  ;;  %v14193_v44 = vpack.i.b16 %v4996_v30, %v4996_v30  ;;  %v5028_v45 = vpack.i.b16 %v5012_v2, %v5012_v2  ;;  %v5182_v3 = vld [vmem:[#allocation4 + $0x54] sm:$0x4]  ;;  %v5200_v60 = vld [vmem:[#allocation4 + $0x9c] sm:$0x4] }
 0x4f2   : > { %v14194_v5 = vpack.i.b16 %v4998_v35, %v4998_v35  ;;  %v18419_v23 = vpack.i.b16 %v5014_v63, %v5014_v63  ;;  %v14195_v61 = vpack.i.b16 %v5000_v34, %v5000_v34  ;;  %v18421_v57 = vpack.i.b16 %v5016_v55, %v5016_v55  ;;  %v5191_v34 = vld [vmem:[#allocation4 + $0x78] sm:$0x4] }
 0x4f3   : > { %v5039_v43 = vrot.slane %v14188_v25, %v17917_v59  ;;  %v5046_v14 = vrot.slane %v5018_v41, %v17917_v59  ;;  %v5053_v28 = vrot.slane %v14189_v4, %v17917_v59  ;;  %v5060_v38 = vrot.slane %v5020_v46, %v17917_v59  ;;  %v5194_v25 = vld [vmem:[#allocation4 + $0x84] sm:$0x4]  ;;  %v5197_v41 = vld [vmem:[#allocation4 + $0x90] sm:$0x4] }
 0x4f4   : > { %v5067_v51 = vrot.slane %v14190_v19, %v17917_v59  ;;  %v5074_v39 = vrot.slane %v5022_v52, %v17917_v59  ;;  %v5081_v9 = vrot.slane %v14191_v15, %v17917_v59  ;;  %v5088_v62 = vrot.slane %v5024_v7, %v17917_v59  ;;  %v5203_v52 = vld [vmem:[#allocation4 + $0xa8] sm:$0x4]  ;;  %v5206_v15 = vld [vmem:[#allocation4 + $0xb4] sm:$0x4] }
 0x4f5   : > { %v5095_v30 = vrot.slane %v14192_v16, %v17917_v59  ;;  %v5102_v21 = vrot.slane %v5026_v37, %v17917_v59  ;;  %v5109_v35 = vrot.slane %v14193_v44, %v17917_v59  ;;  %v5116_v24 = vrot.slane %v5028_v45, %v17917_v59  ;;  %v5209_v16 = vld [vmem:[#allocation4 + $0xc0] sm:$0x4] }
 0x4f6   : > { %v5123_v12 = vrot.slane %v14194_v5, %v17917_v59  ;;  %v5130_v2 = vrot.slane %v18419_v23, %v17917_v59  ;;  %v5137_v58 = vrot.slane %v14195_v61, %v17917_v59  ;;  %v5144_v63 = vrot.slane %v18421_v57, %v17917_v59 }
 0x4f7   : > { %v5165_v55 = vsel %vm18425_vm13, %v5039_v43, %v5164_v42  ;;  %v5168_v4 = vsel %vm18425_vm13, %v5046_v14, %v5167_v48  ;;  %v5171_v46 = vsel %vm18425_vm13, %v5053_v28, %v5170_v36  ;;  %v5174_v19 = vsel %vm18425_vm13, %v5060_v38, %v5173_v49 }
 0x4f8   : > { %5166 = vst [vmem:[#allocation4 + $0xc] sm:$0x4] %v5165_v55  ;;  %5169 = vst [vmem:[#allocation4 + $0x18] sm:$0x4] %v5168_v4  ;;  %v5177_v7 = vsel %vm18425_vm13, %v5067_v51, %v5176_v22  ;;  %v5180_v37 = vsel %vm18425_vm13, %v5074_v39, %v5179_v26  ;;  %v5183_v44 = vsel %vm18425_vm13, %v5081_v9, %v5182_v3 }
 0x4f9   : > { %5172 = vst [vmem:[#allocation4 + $0x24] sm:$0x4] %v5171_v46  ;;  %5175 = vst [vmem:[#allocation4 + $0x30] sm:$0x4] %v5174_v19  ;;  %v5186_v45 = vsel %vm18425_vm13, %v5088_v62, %v5185_v1  ;;  %v5189_v5 = vsel %vm18425_vm13, %v5095_v30, %v5188_v13  ;;  %v5192_v23 = vsel %vm18425_vm13, %v5102_v21, %v5191_v34 }
 0x4fa   : > { %5178 = vst [vmem:[#allocation4 + $0x3c] sm:$0x4] %v5177_v7  ;;  %5181 = vst [vmem:[#allocation4 + $0x48] sm:$0x4] %v5180_v37  ;;  %v5195_v61 = vsel %vm18425_vm13, %v5109_v35, %v5194_v25  ;;  %v5198_v57 = vsel %vm18425_vm13, %v5116_v24, %v5197_v41  ;;  %v5201_v43 = vsel %vm18425_vm13, %v5123_v12, %v5200_v60 }
 0x4fb   : > { %5184 = vst [vmem:[#allocation4 + $0x54] sm:$0x4] %v5183_v44  ;;  %5187 = vst [vmem:[#allocation4 + $0x60] sm:$0x4] %v5186_v45  ;;  %v5204_v14 = vsel %vm18425_vm13, %v5130_v2, %v5203_v52  ;;  %v5207_v28 = vsel %vm18425_vm13, %v5137_v58, %v5206_v15  ;;  %v5210_v38 = vsel %vm18425_vm13, %v5144_v63, %v5209_v16 }
 0x4fc   : > { %5190 = vst [vmem:[#allocation4 + $0x6c] sm:$0x4] %v5189_v5  ;;  %5193 = vst [vmem:[#allocation4 + $0x78] sm:$0x4] %v5192_v23  ;;  %v5261_v42 = vcombine.high %v18313_v47, %v18313_v47  ;;  %v5262_v48 = vcombine.high %v18316_v29, %v18316_v29  ;;  %v5269_v36 = vrot.slane %v18313_v47, %v17871_v11 }
 0x4fd   : > { %5196 = vst [vmem:[#allocation4 + $0x84] sm:$0x4] %v5195_v61  ;;  %5199 = vst [vmem:[#allocation4 + $0x90] sm:$0x4] %v5198_v57  ;;  %v5276_v51 = vrot.slane %v18316_v29, %v17871_v11  ;;  %v5554_v39 = vcombine.high %v18319_v32, %v18319_v32  ;;  %v5555_v9 = vcombine.high %v18322_v54, %v18322_v54  ;;  %v21389_v61 = vmov 0 }
 0x4fe   : > { %5202 = vst [vmem:[#allocation4 + $0x9c] sm:$0x4] %v5201_v43  ;;  %5205 = vst [vmem:[#allocation4 + $0xa8] sm:$0x4] %v5204_v14  ;;  %v18495_v62 = vrot.slane %v18319_v32, %v17871_v11  ;;  %v18499_v49 = vrot.slane %v18322_v54, %v17871_v11  ;;  %v5283_v22 = vrot.slane %v5261_v42, %v17871_v11  ;;  %v5296_v13 = vunpack.i.h.s16 %v5269_v36  ;;  %v18513_v14 = vpop.f32.mrb[50].mxu1 }
 0x4ff   : > { %5208 = vst [vmem:[#allocation4 + $0xb4] sm:$0x4] %v5207_v28  ;;  %5211 = vst [vmem:[#allocation4 + $0xc0] sm:$0x4] %v5210_v38  ;;  %v5290_v47 = vrot.slane %v5262_v48, %v17871_v11  ;;  %v5291_v26 = vcombine.high %v5269_v36, %v5269_v36  ;;  %v5292_v29 = vcombine.high %v5276_v51, %v5276_v51  ;;  %v5304_v30 = vunpack.i.h.s16 %v5276_v51  ;;  %v5457_v57 = vld [vmem:[#allocation4 + $0xc] sm:$0x4] }
 0x500   : > { %v14197_v21 = vpack.i.b16 %v5269_v36, %v5269_v36  ;;  %v14201_v35 = vpack.i.b16 %v5276_v51, %v5276_v51  ;;  %v5293_v24 = vcombine.high %v5283_v22, %v5283_v22  ;;  %v5298_v1 = vunpack.i.h.s16 %v5283_v22  ;;  %v5460_v43 = vld [vmem:[#allocation4 + $0x18] sm:$0x4]  ;;  %v5463_v36 = vld [vmem:[#allocation4 + $0x24] sm:$0x4]  ;;  %v5466_v51 = vld [vmem:[#allocation4 + $0x30] sm:$0x4] }
 0x501   : > { %v5294_v3 = vcombine.high %v5290_v47, %v5290_v47  ;;  %v5300_v34 = vunpack.i.h.s16 %v5291_v26  ;;  %v5306_v12 = vunpack.i.h.s16 %v5290_v47  ;;  %v5308_v2 = vunpack.i.h.s16 %v5292_v29 }
 0x502   : > { %v5312_v58 = vpack.i.b16 %v5296_v13, %v5296_v13  ;;  %v14198_v63 = vpack.i.b16 %v5283_v22, %v5283_v22  ;;  %v5302_v25 = vunpack.i.h.s16 %v5293_v24  ;;  %v5314_v60 = vpack.i.b16 %v5298_v1, %v5298_v1  ;;  %v5469_v22 = vld [vmem:[#allocation4 + $0x3c] sm:$0x4] }
 0x503   : > { %v5310_v41 = vunpack.i.h.s16 %v5294_v3  ;;  %v14199_v55 = vpack.i.b16 %v5291_v26, %v5291_v26  ;;  %v5316_v4 = vpack.i.b16 %v5300_v34, %v5300_v34  ;;  %v14200_v46 = vpack.i.b16 %v5293_v24, %v5293_v24  ;;  %v5478_v24 = vld [vmem:[#allocation4 + $0x60] sm:$0x4] }
 0x504   : > { %v5320_v19 = vpack.i.b16 %v5304_v30, %v5304_v30  ;;  %v14202_v52 = vpack.i.b16 %v5290_v47, %v5290_v47  ;;  %v5318_v15 = vpack.i.b16 %v5302_v25, %v5302_v25  ;;  %v5322_v16 = vpack.i.b16 %v5306_v12, %v5306_v12  ;;  %v5472_v30 = vld [vmem:[#allocation4 + $0x48] sm:$0x4] }
 0x505   : > { %v14203_v7 = vpack.i.b16 %v5292_v29, %v5292_v29  ;;  %v5324_v37 = vpack.i.b16 %v5308_v2, %v5308_v2  ;;  %v14204_v44 = vpack.i.b16 %v5294_v3, %v5294_v3  ;;  %v18503_v45 = vpack.i.b16 %v5310_v41, %v5310_v41  ;;  %v5481_v2 = vld [vmem:[#allocation4 + $0x6c] sm:$0x4] }
 0x506   : > { %v5333_v5 = vrot.slane %v14197_v21, %v17917_v59  ;;  %v5340_v23 = vrot.slane %v5312_v58, %v17917_v59  ;;  %v21390_v61 = vsel %vm18509_vm10, 4294967295, %v21389_v61  ;;  %v5347_v28 = vrot.slane %v14198_v63, %v17917_v59  ;;  %v5475_v21 = vld [vmem:[#allocation4 + $0x54] sm:$0x4]  ;;  %v5484_v58 = vld [vmem:[#allocation4 + $0x78] sm:$0x4] }
 0x507   : > { %21391 = vst [vmem:[#allocation37_spill] sm:$0xff] %v21390_v61  ;;  %v5354_v38 = vrot.slane %v5314_v60, %v17917_v59  ;;  %v5361_v42 = vrot.slane %v14199_v55, %v17917_v59  ;;  %v5368_v48 = vrot.slane %v5316_v4, %v17917_v59  ;;  %v5375_v47 = vrot.slane %v14200_v46, %v17917_v59  ;;  %v5487_v63 = vld [vmem:[#allocation4 + $0x84] sm:$0x4]  ;;  %v5490_v55 = vld [vmem:[#allocation4 + $0x90] sm:$0x4] }
 0x508   : > { %v5382_v26 = vrot.slane %v5318_v15, %v17917_v59  ;;  %v5389_v29 = vrot.slane %v14201_v35, %v17917_v59  ;;  %v5396_v13 = vrot.slane %v5320_v19, %v17917_v59  ;;  %v5403_v3 = vrot.slane %v14202_v52, %v17917_v59  ;;  %v5493_v4 = vld [vmem:[#allocation4 + $0x9c] sm:$0x4]  ;;  %v5496_v46 = vld [vmem:[#allocation4 + $0xa8] sm:$0x4] }
 0x509   : > { %v5410_v1 = vrot.slane %v5322_v16, %v17917_v59  ;;  %v5417_v34 = vrot.slane %v14203_v7, %v17917_v59  ;;  %v5424_v12 = vrot.slane %v5324_v37, %v17917_v59  ;;  %v5431_v25 = vrot.slane %v14204_v44, %v17917_v59  ;;  %v5499_v7 = vld [vmem:[#allocation4 + $0xb4] sm:$0x4]  ;;  %v5502_v37 = vld [vmem:[#allocation4 + $0xc0] sm:$0x4] }
 0x50a   : > { %v5438_v35 = vrot.slane %v18503_v45, %v17917_v59  ;;  %v5458_v41 = vsel %vm18509_vm10, %v5333_v5, %v5457_v57  ;;  %v5461_v60 = vsel %vm18509_vm10, %v5340_v23, %v5460_v43  ;;  %v5464_v19 = vsel %vm18509_vm10, %v5347_v28, %v5463_v36 }
 0x50b   : > { %5459 = vst [vmem:[#allocation4 + $0xc] sm:$0x4] %v5458_v41  ;;  %5462 = vst [vmem:[#allocation4 + $0x18] sm:$0x4] %v5461_v60  ;;  %v5467_v52 = vsel %vm18509_vm10, %v5354_v38, %v5466_v51  ;;  %v5470_v15 = vsel %vm18509_vm10, %v5361_v42, %v5469_v22  ;;  %v5473_v16 = vsel %vm18509_vm10, %v5368_v48, %v5472_v30  ;;  %v18570_v22 = vpop.f32.mrb[51].mxu1  ;;  %v5597_v32 = vunpack.i.h.s16 %v18499_v49 }
 0x50c   : > { %5465 = vst [vmem:[#allocation4 + $0x24] sm:$0x4] %v5464_v19  ;;  %5468 = vst [vmem:[#allocation4 + $0x30] sm:$0x4] %v5467_v52  ;;  %v5476_v44 = vsel %vm18509_vm10, %v5375_v47, %v5475_v21  ;;  %v5479_v45 = vsel %vm18509_vm10, %v5382_v26, %v5478_v24  ;;  %v5482_v5 = vsel %vm18509_vm10, %v5389_v29, %v5481_v2  ;;  %v5589_v29 = vunpack.i.h.s16 %v18495_v62 }
 0x50d   : > { %5471 = vst [vmem:[#allocation4 + $0x3c] sm:$0x4] %v5470_v15  ;;  %5474 = vst [vmem:[#allocation4 + $0x48] sm:$0x4] %v5473_v16  ;;  %v5485_v23 = vsel %vm18509_vm10, %v5396_v13, %v5484_v58  ;;  %v5488_v57 = vsel %vm18509_vm10, %v5403_v3, %v5487_v63  ;;  %v5491_v43 = vsel %vm18509_vm10, %v5410_v1, %v5490_v55  ;;  %v21392_v15 = vmov 0 }
 0x50e   : > { %5477 = vst [vmem:[#allocation4 + $0x54] sm:$0x4] %v5476_v44  ;;  %5480 = vst [vmem:[#allocation4 + $0x60] sm:$0x4] %v5479_v45  ;;  %v5494_v28 = vsel %vm18509_vm10, %v5417_v34, %v5493_v4  ;;  %v5497_v38 = vsel %vm18509_vm10, %v5424_v12, %v5496_v46  ;;  %v5500_v42 = vsel %vm18509_vm10, %v5431_v25, %v5499_v7  ;;  %v21393_v15 = vsel %vm18588_vm5, 4294967295, %v21392_v15 }
 0x50f   : > { %5483 = vst [vmem:[#allocation4 + $0x6c] sm:$0x4] %v5482_v5  ;;  %5486 = vst [vmem:[#allocation4 + $0x78] sm:$0x4] %v5485_v23  ;;  %v5503_v48 = vsel %vm18509_vm10, %v5438_v35, %v5502_v37  ;;  %v5576_v36 = vrot.slane %v5554_v39, %v17871_v11  ;;  %v5583_v51 = vrot.slane %v5555_v9, %v17871_v11  ;;  %v5750_v44 = vld [vmem:[#allocation4 + $0xc] sm:$0x8] }
 0x510   : > { %5489 = vst [vmem:[#allocation4 + $0x84] sm:$0x4] %v5488_v57  ;;  %5492 = vst [vmem:[#allocation4 + $0x90] sm:$0x4] %v5491_v43  ;;  %v5584_v47 = vcombine.high %v18495_v62, %v18495_v62  ;;  %v5585_v26 = vcombine.high %v18499_v49, %v18499_v49  ;;  %v14206_v24 = vpack.i.b16 %v18495_v62, %v18495_v62  ;;  %v5753_v45 = vld [vmem:[#allocation4 + $0x18] sm:$0x8] }
 0x511   : > { %5495 = vst [vmem:[#allocation4 + $0x9c] sm:$0x4] %v5494_v28  ;;  %5498 = vst [vmem:[#allocation4 + $0xa8] sm:$0x4] %v5497_v38  ;;  %v5586_v39 = vcombine.high %v5576_v36, %v5576_v36  ;;  %v5587_v13 = vcombine.high %v5583_v51, %v5583_v51  ;;  %v5591_v30 = vunpack.i.h.s16 %v5576_v36  ;;  %v5599_v21 = vunpack.i.h.s16 %v5583_v51  ;;  %v5756_v5 = vld [vmem:[#allocation4 + $0x24] sm:$0x8] }
 0x512   : > { %5501 = vst [vmem:[#allocation4 + $0xb4] sm:$0x4] %v5500_v42  ;;  %5504 = vst [vmem:[#allocation4 + $0xc0] sm:$0x4] %v5503_v48  ;;  %v5593_v54 = vunpack.i.h.s16 %v5584_v47  ;;  %v5601_v9 = vunpack.i.h.s16 %v5585_v26  ;;  %v5605_v3 = vpack.i.b16 %v5589_v29, %v5589_v29  ;;  %v14207_v12 = vpack.i.b16 %v5576_v36, %v5576_v36  ;;  %v5759_v38 = vld [vmem:[#allocation4 + $0x30] sm:$0x8] }
 0x513   : > { %v5595_v1 = vunpack.i.h.s16 %v5586_v39  ;;  %v5603_v34 = vunpack.i.h.s16 %v5587_v13  ;;  %v5607_v2 = vpack.i.b16 %v5591_v30, %v5591_v30  ;;  %v14208_v58 = vpack.i.b16 %v5584_v47, %v5584_v47  ;;  %21394 = vst [vmem:[#allocation38_spill] sm:$0xff] %v21393_v15  ;;  %v5762_v42 = vld [vmem:[#allocation4 + $0x3c] sm:$0x8]  ;;  %v5765_v48 = vld [vmem:[#allocation4 + $0x48] sm:$0x8] }
 0x514   : > { %v5609_v63 = vpack.i.b16 %v5593_v54, %v5593_v54  ;;  %v14209_v25 = vpack.i.b16 %v5586_v39, %v5586_v39  ;;  %v14210_v35 = vpack.i.b16 %v18499_v49, %v18499_v49  ;;  %v5613_v60 = vpack.i.b16 %v5597_v32, %v5597_v32  ;;  %v5774_v36 = vld [vmem:[#allocation4 + $0x6c] sm:$0x8]  ;;  %v5768_v32 = vld [vmem:[#allocation4 + $0x54] sm:$0x8]  ;;  %v5771_v39 = vld [vmem:[#allocation4 + $0x60] sm:$0x8] }
 0x515   : > { %v5611_v41 = vpack.i.b16 %v5595_v1, %v5595_v1  ;;  %v14211_v55 = vpack.i.b16 %v5583_v51, %v5583_v51  ;;  %v5615_v4 = vpack.i.b16 %v5599_v21, %v5599_v21  ;;  %v14212_v46 = vpack.i.b16 %v5585_v26, %v5585_v26  ;;  %v5786_v1 = vld [vmem:[#allocation4 + $0x9c] sm:$0x8] }
 0x516   : > { %v18582_v19 = vpack.i.b16 %v5601_v9, %v5601_v9  ;;  %v14213_v52 = vpack.i.b16 %v5587_v13, %v5587_v13  ;;  %v18584_v62 = vpack.i.b16 %v5603_v34, %v5603_v34  ;;  %v5626_v16 = vrot.slane %v14206_v24, %v17917_v59  ;;  %v5777_v13 = vld [vmem:[#allocation4 + $0x78] sm:$0x8]  ;;  %v5780_v24 = vld [vmem:[#allocation4 + $0x84] sm:$0x8] }
 0x517   : > { %v5633_v49 = vrot.slane %v5605_v3, %v17917_v59  ;;  %v5640_v7 = vrot.slane %v14207_v12, %v17917_v59  ;;  %v5647_v37 = vrot.slane %v5607_v2, %v17917_v59  ;;  %v5654_v23 = vrot.slane %v14208_v58, %v17917_v59  ;;  %v5783_v3 = vld [vmem:[#allocation4 + $0x90] sm:$0x8] }
 0x518   : > { %v5661_v57 = vrot.slane %v5609_v63, %v17917_v59  ;;  %v5668_v43 = vrot.slane %v14209_v25, %v17917_v59  ;;  %v5675_v28 = vrot.slane %v5611_v41, %v17917_v59  ;;  %v5682_v51 = vrot.slane %v14210_v35, %v17917_v59  ;;  %v5789_v63 = vld [vmem:[#allocation4 + $0xa8] sm:$0x8]  ;;  %v5792_v25 = vld [vmem:[#allocation4 + $0xb4] sm:$0x8]  ;;  %v5795_v35 = vld [vmem:[#allocation4 + $0xc0] sm:$0x8] }
 0x519   : > { %v5689_v47 = vrot.slane %v5613_v60, %v17917_v59  ;;  %v5696_v26 = vrot.slane %v14211_v55, %v17917_v59  ;;  %v5703_v29 = vrot.slane %v5615_v4, %v17917_v59  ;;  %v5710_v30 = vrot.slane %v14212_v46, %v17917_v59 }
 0x51a   : > { %v5717_v21 = vrot.slane %v18582_v19, %v17917_v59  ;;  %v5724_v54 = vrot.slane %v14213_v52, %v17917_v59  ;;  %v5731_v9 = vrot.slane %v18584_v62, %v17917_v59  ;;  %v5751_v34 = vsel %vm18588_vm5, %v5626_v16, %v5750_v44 }
 0x51b   : > { %v5754_v12 = vsel %vm18588_vm5, %v5633_v49, %v5753_v45  ;;  %v5757_v2 = vsel %vm18588_vm5, %v5640_v7, %v5756_v5  ;;  %v5760_v58 = vsel %vm18588_vm5, %v5647_v37, %v5759_v38  ;;  %5752 = vst [vmem:[#allocation4 + $0xc] sm:$0x8] %v5751_v34  ;;  %v5763_v41 = vsel %vm18588_vm5, %v5654_v23, %v5762_v42  ;;  %v21395_v42 = vld [vmem:[#allocation30_spill] sm:$0xff] }
 0x51c   : > { %5755 = vst [vmem:[#allocation4 + $0x18] sm:$0x8] %v5754_v12  ;;  %5758 = vst [vmem:[#allocation4 + $0x24] sm:$0x8] %v5757_v2  ;;  %v5766_v60 = vsel %vm18588_vm5, %v5661_v57, %v5765_v48  ;;  %v5769_v55 = vsel %vm18588_vm5, %v5668_v43, %v5768_v32  ;;  %v5772_v4 = vsel %vm18588_vm5, %v5675_v28, %v5771_v39  ;;  %v16499_v57 = vld [vmem:[%s17053_s29 + $0x20] sm:$0xff]   ;;  %v16500_v28 = vld [vmem:[%s17053_s29 + $0x28] sm:$0xff]  }
 0x51d   : > { %5761 = vst [vmem:[#allocation4 + $0x30] sm:$0x8] %v5760_v58  ;;  %5764 = vst [vmem:[#allocation4 + $0x3c] sm:$0x8] %v5763_v41  ;;  %v5775_v46 = vsel %vm18588_vm5, %v5682_v51, %v5774_v36  ;;  %v5778_v19 = vsel %vm18588_vm5, %v5689_v47, %v5777_v13  ;;  %v5781_v52 = vsel %vm18588_vm5, %v5696_v26, %v5780_v24  ;;  %v18651_v43 = vunpack.c.h.bf16 %v16499_v57  ;;  %v21396_v48 = vld [vmem:[#allocation28_spill] sm:$0xff]  ;;  %v21398_v47 = vld [vmem:[#allocation29_spill] sm:$0xff] }
 0x51e   : > { %5767 = vst [vmem:[#allocation4 + $0x48] sm:$0x8] %v5766_v60  ;;  %5770 = vst [vmem:[#allocation4 + $0x54] sm:$0x8] %v5769_v55  ;;  %v5784_v62 = vsel %vm18588_vm5, %v5703_v29, %v5783_v3  ;;  %v5787_v16 = vsel %vm18588_vm5, %v5710_v30, %v5786_v1  ;;  %v5790_v49 = vsel %vm18588_vm5, %v5717_v21, %v5789_v63  ;;  %v18654_v38 = vunpack.c.h.bf16 %v16500_v28  ;;  %v21400_v32 = vld [vmem:[#allocation31_spill] sm:$0xff]  ;;  %v16503_v1 = vld [vmem:[%s17053_s29 + $0x40] sm:$0xff]  }
 0x51f   : > { %5773 = vst [vmem:[#allocation4 + $0x60] sm:$0x8] %v5772_v4  ;;  %5776 = vst [vmem:[#allocation4 + $0x6c] sm:$0x8] %v5775_v46  ;;  %v5793_v7 = vsel %vm18588_vm5, %v5724_v54, %v5792_v25  ;;  %v5796_v37 = vsel %vm18588_vm5, %v5731_v9, %v5795_v35  ;;  %v5828_v44 = vadd.f32 %v18072_v0, %v18184_v8  ;;  %v21397_v36 = vrot.slane %v21396_v48, 7 }
 0x520   : > { %5779 = vst [vmem:[#allocation4 + $0x78] sm:$0x8] %v5778_v19  ;;  %5782 = vst [vmem:[#allocation4 + $0x84] sm:$0x8] %v5781_v52  ;;  %v6121_v45 = vadd.f32 %v18076_v56, %v18194_v53  ;;  %v5829_v5 = vadd.f32 %v18079_v10, %v18208_v17  ;;  %v6122_v23 = vadd.f32 %v18086_v50, %v18216_v40  ;;  %v16501_v10 = vld [vmem:[%s17053_s29 + $0x30] sm:$0xff]   ;;  %v16502_v50 = vld [vmem:[%s17053_s29 + $0x38] sm:$0xff]   ;;  %v18684_v34 = vunpack.c.h.bf16 %v16503_v1 }
 0x521   : > { %5785 = vst [vmem:[#allocation4 + $0x90] sm:$0x8] %v5784_v62  ;;  %5788 = vst [vmem:[#allocation4 + $0x9c] sm:$0x8] %v5787_v16  ;;  %v6415_v0 = vsel %vm21299_vm15, %v21397_v36, %v21395_v42  ;;  %v18661_v17 = vunpack.c.h.bf16 %v16501_v10  ;;  %v18664_v40 = vunpack.c.h.bf16 %v16502_v50  ;;  %v21399_v26 = vrot.slane %v21398_v47, 6 }
 0x522   : > { %5791 = vst [vmem:[#allocation4 + $0xa8] sm:$0x8] %v5790_v49  ;;  %5794 = vst [vmem:[#allocation4 + $0xb4] sm:$0x8] %v5793_v7  ;;  %v5830_v8 = vpack.c.bf16 %v5829_v5, %v5828_v44  ;;  %v14214_v51 = vpack.c.bf16 %v5829_v5, %v5829_v5  ;;  %v6123_v56 = vpack.c.bf16 %v6122_v23, %v6121_v45  ;;  %v6418_v39 = vrot.slane %v21400_v32, 5  ;;  %v18702_v7 = vpop.f32.mrb[52].mxu1 }
 0x523   : > { %5797 = vst [vmem:[#allocation4 + $0xc0] sm:$0x8] %v5796_v37  ;;  %v14223_v53 = vpack.c.bf16 %v6122_v23, %v6122_v23  ;;  %v6417_v29 = vsel %vm21292_vm0, %v21399_v26, %v6415_v0  ;;  %21401 = vst [vmem:[#allocation30_spill] sm:$0xff] %v18702_v7  ;;  %v21440_v33 = vrot.slane %v18654_v38, 6 }
 0x524   : > { %v5839_v13 = vrot.slane %v5830_v8, %v17871_v11  ;;  %v5846_v30 = vrot.slane %v14214_v51, %v17871_v11  ;;  %v18673_v21 = vrot.slane %v6123_v56, %v17871_v11  ;;  %v18679_v9 = vsel %vm3213_vm1, %v6418_v39, %v6417_v29  ;;  %vm18710_vm0 = vmand %vm3213_vm1, %vm6041_vm7 }
 0x525   : > { %v18676_v54 = vrot.slane %v14223_v53, %v17871_v11  ;;  %vm21413_vm7 = vcmask 1042434  }
 0x526   : > { %v5847_v12 = vcombine.high %v5839_v13, %v5839_v13  ;;  %v5848_v2 = vcombine.high %v5846_v30, %v5846_v30  ;;  %v5855_v58 = vrot.slane %v5839_v13, %v17871_v11  ;;  %v5862_v63 = vrot.slane %v5846_v30, %v17871_v11  ;;  %v6067_v3 = vld [vmem:[#allocation4 + $0x6c] sm:$0x8] }
 0x527   : > { %v18694_v41 = vrot.slane %v18673_v21, %v17871_v11  ;;  %v18698_v60 = vrot.slane %v18676_v54, %v17871_v11  ;;  %v6070_v24 = vld [vmem:[#allocation4 + $0x78] sm:$0x8] }
 0x528   : > { %v5869_v55 = vrot.slane %v5847_v12, %v17871_v11  ;;  %v5876_v4 = vrot.slane %v5848_v2, %v17871_v11  ;;  %v5877_v46 = vcombine.high %v5855_v58, %v5855_v58  ;;  %v5878_v19 = vcombine.high %v5862_v63, %v5862_v63  ;;  %v6076_v35 = vld [vmem:[#allocation4 + $0x90] sm:$0x8] }
 0x529   : > { %v5882_v52 = vunpack.i.h.s16 %v5855_v58  ;;  %v5890_v62 = vunpack.i.h.s16 %v5862_v63  ;;  %v14215_v16 = vpack.i.b16 %v5855_v58, %v5855_v58  ;;  %v14219_v49 = vpack.i.b16 %v5862_v63, %v5862_v63  ;;  %v6082_v25 = vld [vmem:[#allocation4 + $0xa8] sm:$0x8] }
 0x52a   : > { %v5879_v37 = vcombine.high %v5869_v55, %v5869_v55  ;;  %v5880_v44 = vcombine.high %v5876_v4, %v5876_v4  ;;  %v5884_v45 = vunpack.i.h.s16 %v5869_v55  ;;  %v5886_v5 = vunpack.i.h.s16 %v5877_v46 }
 0x52b   : > { %v5892_v23 = vunpack.i.h.s16 %v5876_v4  ;;  %v5894_v57 = vunpack.i.h.s16 %v5878_v19  ;;  %v5898_v28 = vpack.i.b16 %v5882_v52, %v5882_v52  ;;  %v14216_v36 = vpack.i.b16 %v5869_v55, %v5869_v55  ;;  %v6043_v55 = vld [vmem:[#allocation4 + $0xc] sm:$0x8] }
 0x52c   : > { %v5888_v0 = vunpack.i.h.s16 %v5879_v37  ;;  %v5896_v8 = vunpack.i.h.s16 %v5880_v44  ;;  %v5900_v51 = vpack.i.b16 %v5884_v45, %v5884_v45  ;;  %v14217_v56 = vpack.i.b16 %v5877_v46, %v5877_v46  ;;  %v6046_v46 = vld [vmem:[#allocation4 + $0x18] sm:$0x8] }
 0x52d   : > { %v5902_v53 = vpack.i.b16 %v5886_v5, %v5886_v5  ;;  %v14218_v10 = vpack.i.b16 %v5879_v37, %v5879_v37  ;;  %v5906_v50 = vpack.i.b16 %v5890_v62, %v5890_v62  ;;  %v14220_v26 = vpack.i.b16 %v5876_v4, %v5876_v4  ;;  %v6049_v37 = vld [vmem:[#allocation4 + $0x24] sm:$0x8] }
 0x52e   : > { %v5904_v29 = vpack.i.b16 %v5888_v0, %v5888_v0  ;;  %v5908_v39 = vpack.i.b16 %v5892_v23, %v5892_v23  ;;  %v14221_v13 = vpack.i.b16 %v5878_v19, %v5878_v19  ;;  %v5910_v30 = vpack.i.b16 %v5894_v57, %v5894_v57  ;;  %v6061_v0 = vld [vmem:[#allocation4 + $0x54] sm:$0x8] }
 0x52f   : > { %v14222_v1 = vpack.i.b16 %v5880_v44, %v5880_v44  ;;  %v18704_v12 = vpack.i.b16 %v5896_v8, %v5896_v8  ;;  %v5919_v2 = vrot.slane %v14215_v16, %v17917_v59  ;;  %v5926_v58 = vrot.slane %v5898_v28, %v17917_v59  ;;  %v6052_v16 = vld [vmem:[#allocation4 + $0x30] sm:$0x8]  ;;  %v6055_v44 = vld [vmem:[#allocation4 + $0x3c] sm:$0x8]  ;;  %v6058_v28 = vld [vmem:[#allocation4 + $0x48] sm:$0x8] }
 0x530   : > { %v21402_v63 = vmov 0  ;;  %v5933_v4 = vrot.slane %v14216_v36, %v17917_v59  ;;  %v5940_v19 = vrot.slane %v5900_v51, %v17917_v59  ;;  %v5947_v52 = vrot.slane %v14217_v56, %v17917_v59  ;;  %v6064_v36 = vld [vmem:[#allocation4 + $0x60] sm:$0x8] }
 0x531   : > { %v21403_v63 = vsel %vm18710_vm0, 4294967295, %v21402_v63  ;;  %v5954_v62 = vrot.slane %v5902_v53, %v17917_v59  ;;  %v5961_v45 = vrot.slane %v14218_v10, %v17917_v59  ;;  %v5968_v5 = vrot.slane %v5904_v29, %v17917_v59  ;;  %v6073_v10 = vld [vmem:[#allocation4 + $0x84] sm:$0x8] }
 0x532   : > { %21404 = vst [vmem:[#allocation28_spill] sm:$0xff] %v21403_v63  ;;  %v5975_v23 = vrot.slane %v14219_v49, %v17917_v59  ;;  %v5982_v57 = vrot.slane %v5906_v50, %v17917_v59  ;;  %v5989_v8 = vrot.slane %v14220_v26, %v17917_v59  ;;  %v5996_v51 = vrot.slane %v5908_v39, %v17917_v59  ;;  %v6079_v39 = vld [vmem:[#allocation4 + $0x9c] sm:$0x8] }
 0x533   : > { %v6003_v56 = vrot.slane %v14221_v13, %v17917_v59  ;;  %v6010_v53 = vrot.slane %v5910_v30, %v17917_v59  ;;  %v6017_v29 = vrot.slane %v14222_v1, %v17917_v59  ;;  %v6024_v49 = vrot.slane %v18704_v12, %v17917_v59 }
 0x534   : > { %v6044_v50 = vsel %vm18710_vm0, %v5919_v2, %v6043_v55  ;;  %v6047_v26 = vsel %vm18710_vm0, %v5926_v58, %v6046_v46  ;;  %v6050_v13 = vsel %vm18710_vm0, %v5933_v4, %v6049_v37  ;;  %v6053_v30 = vsel %vm18710_vm0, %v5940_v19, %v6052_v16  ;;  %v6085_v2 = vld [vmem:[#allocation4 + $0xb4] sm:$0x8]  ;;  %v6088_v55 = vld [vmem:[#allocation4 + $0xc0] sm:$0x8]  ;;  %v18741_v58 = vpop.f32.mrb[53].mxu1 }
 0x535   : > { %6045 = vst [vmem:[#allocation4 + $0xc] sm:$0x8] %v6044_v50  ;;  %6048 = vst [vmem:[#allocation4 + $0x18] sm:$0x8] %v6047_v26  ;;  %v6056_v1 = vsel %vm18710_vm0, %v5947_v52, %v6055_v44  ;;  %v6059_v12 = vsel %vm18710_vm0, %v5954_v62, %v6058_v28  ;;  %v6062_v46 = vsel %vm18710_vm0, %v5961_v45, %v6061_v0  ;;  %v6175_v0 = vunpack.i.h.s16 %v18694_v41 }
 0x536   : > { %21405 = vst [vmem:[#allocation29_spill] sm:$0xff] %v18741_v58  ;;  %6051 = vst [vmem:[#allocation4 + $0x24] sm:$0x8] %v6050_v13  ;;  %v6065_v4 = vsel %vm18710_vm0, %v5968_v5, %v6064_v36  ;;  %v6068_v19 = vsel %vm18710_vm0, %v5975_v23, %v6067_v3  ;;  %v6071_v52 = vsel %vm18710_vm0, %v5982_v57, %v6070_v24  ;;  %v18771_v23 = vpop.f32.mrb[54].mxu1 }
 0x537   : > { %6054 = vst [vmem:[#allocation4 + $0x30] sm:$0x8] %v6053_v30  ;;  %6057 = vst [vmem:[#allocation4 + $0x3c] sm:$0x8] %v6056_v1  ;;  %v6074_v62 = vsel %vm18710_vm0, %v5989_v8, %v6073_v10  ;;  %v6077_v37 = vsel %vm18710_vm0, %v5996_v51, %v6076_v35  ;;  %v6080_v16 = vsel %vm18710_vm0, %v6003_v56, %v6079_v39 }
 0x538   : > { %6060 = vst [vmem:[#allocation4 + $0x48] sm:$0x8] %v6059_v12  ;;  %6063 = vst [vmem:[#allocation4 + $0x54] sm:$0x8] %v6062_v46  ;;  %v6083_v44 = vsel %vm18710_vm0, %v6010_v53, %v6082_v25  ;;  %v6086_v24 = vsel %vm18710_vm0, %v6017_v29, %v6085_v2  ;;  %v6089_v3 = vsel %vm18710_vm0, %v6024_v49, %v6088_v55 }
 0x539   : > { %6066 = vst [vmem:[#allocation4 + $0x60] sm:$0x8] %v6065_v4  ;;  %6069 = vst [vmem:[#allocation4 + $0x6c] sm:$0x8] %v6068_v19  ;;  %v21406_v35 = vcombine.high %v18673_v21, %v18673_v21  ;;  %v21407_v5 = vcombine.high %v18676_v54, %v18676_v54  ;;  %v6170_v57 = vcombine.high %v18694_v41, %v18694_v41  ;;  %v6183_v21 = vunpack.i.h.s16 %v18698_v60 }
 0x53a   : > { %6072 = vst [vmem:[#allocation4 + $0x78] sm:$0x8] %v6071_v52  ;;  %6075 = vst [vmem:[#allocation4 + $0x84] sm:$0x8] %v6074_v62  ;;  %v6171_v28 = vcombine.high %v18698_v60, %v18698_v60  ;;  %v14224_v10 = vpack.i.b16 %v18694_v41, %v18694_v41  ;;  %v6191_v29 = vpack.i.b16 %v6175_v0, %v6175_v0 }
 0x53b   : > { %6078 = vst [vmem:[#allocation4 + $0x90] sm:$0x8] %v6077_v37  ;;  %6081 = vst [vmem:[#allocation4 + $0x9c] sm:$0x8] %v6080_v16  ;;  %v6162_v45 = vrot.slane %v21406_v35, %v17871_v11  ;;  %v6169_v25 = vrot.slane %v21407_v5, %v17871_v11  ;;  %v6179_v54 = vunpack.i.h.s16 %v6170_v57  ;;  %v14226_v13 = vpack.i.b16 %v6170_v57, %v6170_v57  ;;  %v6334_v37 = vld [vmem:[#allocation4 + $0x10] sm:$0x1] }
 0x53c   : > { %6084 = vst [vmem:[#allocation4 + $0xa8] sm:$0x8] %v6083_v44  ;;  %21408 = vst [vmem:[#allocation31_spill] sm:$0xff] %v18771_v23  ;;  %v6187_v53 = vunpack.i.h.s16 %v6171_v28  ;;  %v14228_v12 = vpack.i.b16 %v18698_v60, %v18698_v60  ;;  %v6199_v55 = vpack.i.b16 %v6183_v21, %v6183_v21  ;;  %v14230_v19 = vpack.i.b16 %v6171_v28, %v6171_v28  ;;  %v6337_v16 = vld [vmem:[#allocation4 + $0x1c] sm:$0x1] }
 0x53d   : > { %6087 = vst [vmem:[#allocation4 + $0xb4] sm:$0x8] %v6086_v24  ;;  %6090 = vst [vmem:[#allocation4 + $0xc0] sm:$0x8] %v6089_v3  ;;  %v6172_v36 = vcombine.high %v6162_v45, %v6162_v45  ;;  %v6173_v8 = vcombine.high %v6169_v25, %v6169_v25  ;;  %v6177_v51 = vunpack.i.h.s16 %v6162_v45  ;;  %v6185_v56 = vunpack.i.h.s16 %v6169_v25  ;;  %v6340_v44 = vld [vmem:[#allocation4 + $0x28] sm:$0x1] }
 0x53e   : > { %v14225_v26 = vpack.i.b16 %v6162_v45, %v6162_v45  ;;  %v6195_v30 = vpack.i.b16 %v6179_v54, %v6179_v54  ;;  %v14229_v46 = vpack.i.b16 %v6169_v25, %v6169_v25  ;;  %v18783_v52 = vpack.i.b16 %v6187_v53, %v6187_v53  ;;  %v6343_v24 = vld [vmem:[#allocation4 + $0x34] sm:$0x1]  ;;  %v6346_v5 = vld [vmem:[#allocation4 + $0x40] sm:$0x1]  ;;  %v6349_v25 = vld [vmem:[#allocation4 + $0x4c] sm:$0x1] }
 0x53f   : > { %v6181_v49 = vunpack.i.h.s16 %v6172_v36  ;;  %v6189_v50 = vunpack.i.h.s16 %v6173_v8  ;;  %v6193_v39 = vpack.i.b16 %v6177_v51, %v6177_v51  ;;  %v14227_v1 = vpack.i.b16 %v6172_v36, %v6172_v36  ;;  %v6352_v57 = vld [vmem:[#allocation4 + $0x58] sm:$0x1]  ;;  %v6355_v28 = vld [vmem:[#allocation4 + $0x64] sm:$0x1]  ;;  %v6358_v51 = vld [vmem:[#allocation4 + $0x70] sm:$0x1] }
 0x540   : > { %v6201_v4 = vpack.i.b16 %v6185_v56, %v6185_v56  ;;  %v14231_v62 = vpack.i.b16 %v6173_v8, %v6173_v8  ;;  %v6212_v3 = vrot.slane %v14224_v10, %v17917_v59  ;;  %v6219_v35 = vrot.slane %v6191_v29, %v17917_v59  ;;  %v6361_v56 = vld [vmem:[#allocation4 + $0x7c] sm:$0x1]  ;;  %v6364_v54 = vld [vmem:[#allocation4 + $0x88] sm:$0x1]  ;;  %v6367_v53 = vld [vmem:[#allocation4 + $0x94] sm:$0x1] }
 0x541   : > { %v6197_v2 = vpack.i.b16 %v6181_v49, %v6181_v49  ;;  %v18785_v41 = vpack.i.b16 %v6189_v50, %v6189_v50  ;;  %v6226_v60 = vrot.slane %v14225_v26, %v17917_v59  ;;  %v6233_v45 = vrot.slane %v6193_v39, %v17917_v59  ;;  %v6370_v26 = vld [vmem:[#allocation4 + $0xa0] sm:$0x1]  ;;  %v6373_v39 = vld [vmem:[#allocation4 + $0xac] sm:$0x1] }
 0x542   : > { %v6240_v0 = vrot.slane %v14226_v13, %v17917_v59  ;;  %v6247_v21 = vrot.slane %v6195_v30, %v17917_v59  ;;  %v6254_v36 = vrot.slane %v14227_v1, %v17917_v59  ;;  %v6268_v10 = vrot.slane %v14228_v12, %v17917_v59  ;;  %v6376_v13 = vld [vmem:[#allocation4 + $0xb8] sm:$0x1]  ;;  %v6379_v30 = vld [vmem:[#allocation4 + $0xc4] sm:$0x1] }
 0x543   : > { %v6261_v8 = vrot.slane %v6197_v2, %v17917_v59  ;;  %v6275_v29 = vrot.slane %v6199_v55, %v17917_v59  ;;  %v6282_v49 = vrot.slane %v14229_v46, %v17917_v59  ;;  %v6289_v50 = vrot.slane %v6201_v4, %v17917_v59 }
 0x544   : > { %v6296_v1 = vrot.slane %v14230_v19, %v17917_v59  ;;  %v6303_v2 = vrot.slane %v18783_v52, %v17917_v59  ;;  %v6310_v63 = vrot.slane %v14231_v62, %v17917_v59  ;;  %v6317_v12 = vrot.slane %v18785_v41, %v17917_v59 }
 0x545   : > { %v6335_v55 = vsel %vm17077_vm3, %v6212_v3, %v6334_v37  ;;  %v6338_v46 = vsel %vm17077_vm3, %v6219_v35, %v6337_v16  ;;  %v6341_v4 = vsel %vm17077_vm3, %v6226_v60, %v6340_v44  ;;  %v6344_v19 = vsel %vm17077_vm3, %v6233_v45, %v6343_v24  ;;  %v18821_v16 = vpop.f32.mrb[55].mxu1 }
 0x546   : > { %6336 = vst [vmem:[#allocation4 + $0x10] sm:$0x1] %v6335_v55  ;;  %6339 = vst [vmem:[#allocation4 + $0x1c] sm:$0x1] %v6338_v46  ;;  %v6347_v52 = vsel %vm17077_vm3, %v6240_v0, %v6346_v5  ;;  %v6350_v62 = vsel %vm17077_vm3, %v6247_v21, %v6349_v25  ;;  %v6353_v41 = vsel %vm17077_vm3, %v6254_v36, %v6352_v57  ;;  %v21411_v57 = vrot.slane %v18651_v43, 4  ;;  %v16504_v36 = vld [vmem:[%s17053_s29 + $0x48] sm:$0xff]  }
 0x547   : > { %6342 = vst [vmem:[#allocation4 + $0x28] sm:$0x1] %v6341_v4  ;;  %6345 = vst [vmem:[#allocation4 + $0x34] sm:$0x1] %v6344_v19  ;;  %v6356_v37 = vsel %vm17077_vm3, %v6261_v8, %v6355_v28  ;;  %v6359_v44 = vsel %vm17077_vm3, %v6268_v10, %v6358_v51  ;;  %v6362_v24 = vsel %vm17077_vm3, %v6275_v29, %v6361_v56  ;;  %v6424_v0 = vrot.slane %v18661_v17, 2  ;;  %v16507_v55 = vld [vmem:[%s17053_s29 + $0x60] sm:$0xff]  }
 0x548   : > { %21410 = vst [vmem:[#allocation39_spill] sm:$0xff] %v18821_v16  ;;  %6348 = vst [vmem:[#allocation4 + $0x40] sm:$0x1] %v6347_v52  ;;  %v6365_v3 = vsel %vm17077_vm3, %v6282_v49, %v6364_v54  ;;  %v6368_v35 = vsel %vm17077_vm3, %v6289_v50, %v6367_v53  ;;  %v6371_v60 = vsel %vm17077_vm3, %v6296_v1, %v6370_v26  ;;  %v6705_v21 = vrot.slane %v21395_v42, 1  ;;  %v16505_v49 = vld [vmem:[%s17053_s29 + $0x50] sm:$0xff]   ;;  %v16508_v4 = vld [vmem:[%s17053_s29 + $0x68] sm:$0xff]  }
 0x549   : > { %6351 = vst [vmem:[#allocation4 + $0x4c] sm:$0x1] %v6350_v62  ;;  %6354 = vst [vmem:[#allocation4 + $0x58] sm:$0x1] %v6353_v41  ;;  %v6374_v45 = vsel %vm17077_vm3, %v6303_v2, %v6373_v39  ;;  %v6377_v5 = vsel %vm17077_vm3, %v6310_v63, %v6376_v13  ;;  %v6380_v25 = vsel %vm17077_vm3, %v6317_v12, %v6379_v30  ;;  %v18846_v63 = vunpack.c.h.bf16 %v16504_v36  ;;  %v16506_v30 = vld [vmem:[%s17053_s29 + $0x58] sm:$0xff]   ;;  %v16509_v62 = vld [vmem:[%s17053_s29 + $0x70] sm:$0xff]  }
 0x54a   : > { %6357 = vst [vmem:[#allocation4 + $0x64] sm:$0x1] %v6356_v37  ;;  %6360 = vst [vmem:[#allocation4 + $0x70] sm:$0x1] %v6359_v44  ;;  %v6421_v28 = vsel %vm21297_vm2, %v21411_v57, %v18679_v9  ;;  %v21412_v8 = vrot.slane %v18654_v38, 3  ;;  %v6707_v56 = vrot.slane %v21398_v47, 7  ;;  %v6706_v10 = vsel %vm21299_vm15, %v21396_v48, %v6705_v21 }
 0x54b   : > { %6363 = vst [vmem:[#allocation4 + $0x7c] sm:$0x1] %v6362_v24  ;;  %6366 = vst [vmem:[#allocation4 + $0x88] sm:$0x1] %v6365_v3  ;;  %v6709_v54 = vrot.slane %v21400_v32, 6  ;;  %v6711_v9 = vrot.slane %v18651_v43, 5  ;;  %v18859_v50 = vunpack.c.h.bf16 %v16505_v49  ;;  %v18865_v1 = vunpack.c.h.bf16 %v16506_v30 }
 0x54c   : > { %6369 = vst [vmem:[#allocation4 + $0x94] sm:$0x1] %v6368_v35  ;;  %6372 = vst [vmem:[#allocation4 + $0xa0] sm:$0x1] %v6371_v60  ;;  %v6423_v51 = vsel %vm3219_vm6, %v21412_v8, %v6421_v28  ;;  %v6426_v53 = vrot.slane %v18664_v40, 1  ;;  %v6713_v29 = vrot.slane %v18654_v38, 4  ;;  %v6708_v39 = vsel %vm21413_vm7, %v6707_v56, %v6706_v10 }
 0x54d   : > { %6375 = vst [vmem:[#allocation4 + $0xac] sm:$0x1] %v6374_v45  ;;  %6378 = vst [vmem:[#allocation4 + $0xb8] sm:$0x1] %v6377_v5  ;;  %v6425_v26 = vsel %vm21298_vm8, %v6424_v0, %v6423_v51  ;;  %v6715_v13 = vrot.slane %v18661_v17, 3  ;;  %v6710_v2 = vsel %vm3213_vm1, %v6709_v54, %v6708_v39  ;;  %v6717_v12 = vrot.slane %v18664_v40, 2 }
 0x54e   : > { %6381 = vst [vmem:[#allocation4 + $0xc4] sm:$0x1] %v6380_v25  ;;  %v18870_v46 = vunpack.c.h.bf16 %v16507_v55  ;;  %v18873_v19 = vunpack.c.h.bf16 %v16508_v4  ;;  %v6712_v52 = vsel %vm21297_vm2, %v6711_v9, %v6710_v2  ;;  %v18877_v41 = vunpack.c.h.bf16 %v16509_v62  ;;  %v16510_v37 = vld [vmem:[%s17053_s29 + $0x78] sm:$0xff]   ;;  %v21416_v56 = vld [vmem:[#allocation32_spill] sm:$0xff]  ;;  %s21206_s29 = scalar_lea.hbm %s21264_s10, %s14665_s13 }
 0x54f   : > { %v18880_v44 = vunpack.c.h.bf16 %v16510_v37  ;;  %v6428_v24 = vrot.slane %v18846_v63, 7  ;;  %v6714_v3 = vsel %vm3219_vm6, %v6713_v29, %v6712_v52  ;;  %v6430_v35 = vrot.slane %v18859_v50, 6  ;;  %v21421_v37 = vld [vmem:[#allocation34_spill] sm:$0xff]  ;;  %v6660_v58 = vld [vmem:[#allocation4 + $0x1c] sm:$0x1] }
 0x550   : > { %v6432_v60 = vrot.slane %v18865_v1, 5  ;;  %v6434_v45 = vrot.slane %v18870_v46, 4  ;;  %vm21414_vm7 = vcmask 1047559   ;;  %v6716_v25 = vsel %vm21298_vm8, %v6715_v13, %v6714_v3 }
 0x551   : > { %v6427_v5 = vsel %vm21414_vm7, %v6426_v53, %v6425_v26  ;;  %v6429_v57 = vsel %vm21299_vm15, %v6428_v24, %v18684_v34  ;;  %v6436_v28 = vrot.slane %v18873_v19, 3  ;;  %vm21415_vm2 = vcmask 1042434  }
 0x552   : > { %v6431_v0 = vsel %vm21415_vm2, %v6430_v35, %v6429_v57  ;;  %v6438_v21 = vrot.slane %v18877_v41, 2  ;;  %v6719_v36 = vrot.slane %v18684_v34, 1  ;;  %v6440_v51 = vrot.slane %v18880_v44, 1  ;;  %v6684_v23 = vld [vmem:[#allocation4 + $0x7c] sm:$0x1] }
 0x553   : > { %v6433_v8 = vsel %vm3213_vm1, %v6432_v60, %v6431_v0  ;;  %v6444_v54 = vadd.f32 %v6427_v5, %v21416_v56  ;;  %v6718_v9 = vsel %vm21414_vm7, %v6717_v12, %v6716_v25  ;;  %vm21417_vm8 = vcmask 1044484   ;;  %v6690_v18 = vld [vmem:[#allocation4 + $0x94] sm:$0x1] }
 0x554   : > { %v6435_v53 = vsel %vm21417_vm8, %v6434_v45, %v6433_v8  ;;  %v6720_v10 = vsel %vm21299_vm15, %v18846_v63, %v6719_v36  ;;  %v6721_v49 = vrot.slane %v18859_v50, 7  ;;  %v6723_v26 = vrot.slane %v18865_v1, 6  ;;  %vm21419_vm8 = vmmov %vm21414_vm7  ;;  %v21424_v36 = vld [vmem:[#allocation33_spill] sm:$0xff]  ;;  %v6696_v27 = vld [vmem:[#allocation4 + $0xac] sm:$0x1] }
 0x555   : > { %v6437_v29 = vsel %vm3219_vm6, %v6436_v28, %v6435_v53  ;;  %v6725_v39 = vrot.slane %v18870_v46, 5  ;;  %vm21418_vm2 = vcmask 1046534   ;;  %v6727_v30 = vrot.slane %v18873_v19, 4 }
 0x556   : > { %v6439_v13 = vsel %vm21418_vm2, %v6438_v21, %v6437_v29  ;;  %v6729_v2 = vrot.slane %v18877_v41, 3  ;;  %v6731_v12 = vrot.slane %v18880_v44, 2  ;;  %vm21420_vm7 = vcmask 1042434  }
 0x557   : > { %v6441_v55 = vsel %vm21419_vm8, %v6440_v51, %v6439_v13  ;;  %v6722_v4 = vsel %vm21420_vm7, %v6721_v49, %v6720_v10  ;;  %v6996_v52 = vrot.slane %v21395_v42, 2  ;;  %v6997_v62 = vrot.slane %v21396_v48, 1  ;;  %vm21423_vm8 = vmmov %vm21420_vm7 }
 0x558   : > { %v6445_v24 = vadd.f32 %v6441_v55, %v21421_v37  ;;  %v6724_v3 = vsel %vm3213_vm1, %v6723_v26, %v6722_v4  ;;  %v7000_v35 = vrot.slane %v21400_v32, 7  ;;  %v7002_v60 = vrot.slane %v18651_v43, 6 }
 0x559   : > { %vm21422_vm2 = vcmask 1044484   ;;  %v6998_v5 = vsel %vm21299_vm15, %v6997_v62, %v6996_v52  ;;  %v7004_v25 = vrot.slane %v18654_v38, 5  ;;  %v18925_v8 = vadd.f32 %v6718_v9, %v21424_v36 }
 0x55a   : > { %v6726_v45 = vsel %vm21422_vm2, %v6725_v39, %v6724_v3  ;;  %v6446_v57 = vpack.c.bf16 %v6445_v24, %v6444_v54  ;;  %v14232_v28 = vpack.c.bf16 %v6445_v24, %v6445_v24  ;;  %v6999_v21 = vsel %vm21423_vm8, %v21398_v47, %v6998_v5 }
 0x55b   : > { %v6728_v0 = vsel %vm3219_vm6, %v6727_v30, %v6726_v45  ;;  %vm21425_vm7 = vcmask 1046534   ;;  %v7001_v56 = vsel %vm3213_vm1, %v7000_v35, %v6999_v21  ;;  %v7287_v53 = vrot.slane %v21395_v42, 3  ;;  %v16379_v30 = vld [vmem:[#allocation11 + $0xc0] sm:$0xff]  }
 0x55c   : > { %v6730_v51 = vsel %vm21425_vm7, %v6729_v2, %v6728_v0  ;;  %v6455_v10 = vrot.slane %v6446_v57, %v17871_v11  ;;  %v6462_v29 = vrot.slane %v14232_v28, %v17871_v11  ;;  %vm21426_vm2 = vcmask 1047559   ;;  %15588 = vmatprep.subr.bf16.mxu1 %v16379_v30  ;;  %v16380_v28 = vld [vmem:[#allocation11 + $0xc8] sm:$0xff]  }
 0x55d   : > { %v6732_v54 = vsel %vm21426_vm2, %v6731_v12, %v6730_v51  ;;  %vm21427_vm15 = vcmask 1044484   ;;  %v7288_v13 = vrot.slane %v21396_v48, 2  ;;  %15589 = vmatpush3.bf16.msra.mxu1 %v16379_v30  ;;  %vm21437_vm2 = vcmask 1044484  }
 0x55e   : > { %v7003_v49 = vsel %vm21427_vm15, %v7002_v60, %v7001_v56  ;;  %v18935_v26 = vadd.f32 %v6732_v54, %v18340_v6  ;;  %v6463_v2 = vcombine.high %v6455_v10, %v6455_v10  ;;  %v6464_v55 = vcombine.high %v6462_v29, %v6462_v29  ;;  %v18954_v56 = vpop.f32.mrb[56].mxu1  ;;  %15590 = vmatprep.subr.bf16.mxu1 %v16380_v28 }
 0x55f   : > { %v18938_v9 = vsel %vm3219_vm6, %v7004_v25, %v7003_v49  ;;  %v6471_v4 = vrot.slane %v6455_v10, %v17871_v11  ;;  %v6478_v52 = vrot.slane %v6462_v29, %v17871_v11  ;;  %vm21428_vm15 = vcmask 1041409   ;;  %21429 = vst [vmem:[#allocation32_spill] sm:$0xff] %v18954_v56  ;;  %v18956_v49 = vpop.f32.mrb[57].mxu1 }
 0x560   : > { %v18949_v62 = vsel %vm21428_vm15, %v7288_v13, %v7287_v53  ;;  %v6485_v24 = vrot.slane %v6463_v2, %v17871_v11  ;;  %v6492_v3 = vrot.slane %v6464_v55, %v17871_v11  ;;  %21430 = vst [vmem:[#allocation34_spill] sm:$0xff] %v18956_v49  ;;  %v6657_v49 = vld [vmem:[#allocation4 + $0x10] sm:$0x1]  ;;  %vm21439_vm15 = vcmask 1047559  }
 0x561   : > { %v6493_v35 = vcombine.high %v6471_v4, %v6471_v4  ;;  %v6494_v60 = vcombine.high %v6478_v52, %v6478_v52  ;;  %v6498_v45 = vunpack.i.h.s16 %v6471_v4  ;;  %v6506_v5 = vunpack.i.h.s16 %v6478_v52  ;;  %15591 = vmatpush3.bf16.msra.mxu1 %v16380_v28 }
 0x562   : > { %v14233_v25 = vpack.i.b16 %v6471_v4, %v6471_v4  ;;  %v14237_v57 = vpack.i.b16 %v6478_v52, %v6478_v52  ;;  %v6495_v0 = vcombine.high %v6485_v24, %v6485_v24  ;;  %v6496_v21 = vcombine.high %v6492_v3, %v6492_v3 }
 0x563   : > { %v6500_v36 = vunpack.i.h.s16 %v6485_v24  ;;  %v6502_v51 = vunpack.i.h.s16 %v6493_v35  ;;  %v6508_v53 = vunpack.i.h.s16 %v6492_v3  ;;  %v6510_v10 = vunpack.i.h.s16 %v6494_v60 }
 0x564   : > { %v6514_v29 = vpack.i.b16 %v6498_v45, %v6498_v45  ;;  %v14234_v54 = vpack.i.b16 %v6485_v24, %v6485_v24  ;;  %v6504_v13 = vunpack.i.h.s16 %v6495_v0  ;;  %v6512_v30 = vunpack.i.h.s16 %v6496_v21 }
 0x565   : > { %v6516_v2 = vpack.i.b16 %v6500_v36, %v6500_v36  ;;  %v14235_v55 = vpack.i.b16 %v6493_v35, %v6493_v35  ;;  %v6518_v4 = vpack.i.b16 %v6502_v51, %v6502_v51  ;;  %v14236_v52 = vpack.i.b16 %v6495_v0, %v6495_v0  ;;  %v6663_v0 = vld [vmem:[#allocation4 + $0x28] sm:$0x1]  ;;  %v6669_v36 = vld [vmem:[#allocation4 + $0x40] sm:$0x1] }
 0x566   : > { %v6522_v39 = vpack.i.b16 %v6506_v5, %v6506_v5  ;;  %v14238_v37 = vpack.i.b16 %v6492_v3, %v6492_v3  ;;  %v6520_v6 = vpack.i.b16 %v6504_v13, %v6504_v13  ;;  %v6524_v12 = vpack.i.b16 %v6508_v53, %v6508_v53 }
 0x567   : > { %v14239_v15 = vpack.i.b16 %v6494_v60, %v6494_v60  ;;  %v6526_v56 = vpack.i.b16 %v6510_v10, %v6510_v10  ;;  %v14240_v61 = vpack.i.b16 %v6496_v21, %v6496_v21  ;;  %v18958_v16 = vpack.i.b16 %v6512_v30, %v6512_v30  ;;  %v6666_v60 = vld [vmem:[#allocation4 + $0x34] sm:$0x1]  ;;  %v6672_v10 = vld [vmem:[#allocation4 + $0x4c] sm:$0x1] }
 0x568   : > { %v6535_v24 = vrot.slane %v14233_v25, %v17917_v59  ;;  %v6542_v45 = vrot.slane %v6514_v29, %v17917_v59  ;;  %v6549_v35 = vrot.slane %v14234_v54, %v17917_v59  ;;  %v6556_v28 = vrot.slane %v6516_v2, %v17917_v59  ;;  %v6675_v29 = vld [vmem:[#allocation4 + $0x58] sm:$0x1]  ;;  %v6678_v54 = vld [vmem:[#allocation4 + $0x64] sm:$0x1] }
 0x569   : > { %v6563_v5 = vrot.slane %v14235_v55, %v17917_v59  ;;  %v6570_v3 = vrot.slane %v6518_v4, %v17917_v59  ;;  %v6577_v21 = vrot.slane %v14236_v52, %v17917_v59  ;;  %v6584_v51 = vrot.slane %v6520_v6, %v17917_v59  ;;  %v6681_v4 = vld [vmem:[#allocation4 + $0x70] sm:$0x1]  ;;  %v6687_v52 = vld [vmem:[#allocation4 + $0x88] sm:$0x1] }
 0x56a   : > { %v6591_v25 = vrot.slane %v14237_v57, %v17917_v59  ;;  %v6598_v53 = vrot.slane %v6522_v39, %v17917_v59  ;;  %v6605_v13 = vrot.slane %v14238_v37, %v17917_v59  ;;  %v6612_v30 = vrot.slane %v6524_v12, %v17917_v59  ;;  %v6693_v12 = vld [vmem:[#allocation4 + $0xa0] sm:$0x1] }
 0x56b   : > { %v6619_v2 = vrot.slane %v14239_v15, %v17917_v59  ;;  %v6626_v55 = vrot.slane %v6526_v56, %v17917_v59  ;;  %v6633_v6 = vrot.slane %v14240_v61, %v17917_v59  ;;  %v6640_v57 = vrot.slane %v18958_v16, %v17917_v59 }
 0x56c   : > { %v6658_v7 = vsel %vm17082_vm4, %v6535_v24, %v6657_v49  ;;  %v6661_v37 = vsel %vm17082_vm4, %v6542_v45, %v6660_v58  ;;  %v6664_v15 = vsel %vm17082_vm4, %v6549_v35, %v6663_v0  ;;  %v6667_v61 = vsel %vm17082_vm4, %v6556_v28, %v6666_v60  ;;  %v6699_v49 = vld [vmem:[#allocation4 + $0xb8] sm:$0x1]  ;;  %v6702_v24 = vld [vmem:[#allocation4 + $0xc4] sm:$0x1]  ;;  %v19005_v60 = vpop.f32.mrb[58].mxu1 }
 0x56d   : > { %6659 = vst [vmem:[#allocation4 + $0x10] sm:$0x1] %v6658_v7  ;;  %6662 = vst [vmem:[#allocation4 + $0x1c] sm:$0x1] %v6661_v37  ;;  %v6670_v16 = vsel %vm17082_vm4, %v6563_v5, %v6669_v36  ;;  %v6673_v56 = vsel %vm17082_vm4, %v6570_v3, %v6672_v10  ;;  %v6676_v7 = vsel %vm17082_vm4, %v6577_v21, %v6675_v29 }
 0x56e   : > { %6665 = vst [vmem:[#allocation4 + $0x28] sm:$0x1] %v6664_v15  ;;  %6668 = vst [vmem:[#allocation4 + $0x34] sm:$0x1] %v6667_v61  ;;  %v6679_v58 = vsel %vm17082_vm4, %v6584_v51, %v6678_v54  ;;  %v6682_v45 = vsel %vm17082_vm4, %v6591_v25, %v6681_v4  ;;  %v6685_v35 = vsel %vm17082_vm4, %v6598_v53, %v6684_v23  ;;  %v21434_v53 = vrot.slane %v21398_v47, 1 }
 0x56f   : > { %6671 = vst [vmem:[#allocation4 + $0x40] sm:$0x1] %v6670_v16  ;;  %6674 = vst [vmem:[#allocation4 + $0x4c] sm:$0x1] %v6673_v56  ;;  %v6688_v28 = vsel %vm17082_vm4, %v6605_v13, %v6687_v52  ;;  %v6691_v5 = vsel %vm17082_vm4, %v6612_v30, %v6690_v18  ;;  %v6694_v3 = vsel %vm17082_vm4, %v6619_v2, %v6693_v12  ;;  %v21435_v30 = vrot.slane %v18661_v17, 4 }
 0x570   : > { %6677 = vst [vmem:[#allocation4 + $0x58] sm:$0x1] %v6676_v7  ;;  %6680 = vst [vmem:[#allocation4 + $0x64] sm:$0x1] %v6679_v58  ;;  %v6697_v0 = vsel %vm17082_vm4, %v6626_v55, %v6696_v27  ;;  %v6700_v23 = vsel %vm17082_vm4, %v6633_v6, %v6699_v49  ;;  %v6703_v36 = vsel %vm17082_vm4, %v6640_v57, %v6702_v24  ;;  %v6981_v25 = vld [vmem:[#allocation4 + $0x94] sm:$0x2] }
 0x571   : > { %6683 = vst [vmem:[#allocation4 + $0x70] sm:$0x1] %v6682_v45  ;;  %6686 = vst [vmem:[#allocation4 + $0x7c] sm:$0x1] %v6685_v35  ;;  %v21432_v18 = vpack.c.bf16 %v18935_v26, %v18925_v8  ;;  %v21433_v27 = vpack.c.bf16 %v18935_v26, %v18935_v26  ;;  %v7291_v10 = vsel %vm21423_vm8, %v21434_v53, %v18949_v62  ;;  %v6975_v62 = vld [vmem:[#allocation4 + $0x7c] sm:$0x2] }
 0x572   : > { %6689 = vst [vmem:[#allocation4 + $0x88] sm:$0x1] %v6688_v28  ;;  %6692 = vst [vmem:[#allocation4 + $0x94] sm:$0x1] %v6691_v5  ;;  %v19030_v26 = vsel %vm21425_vm7, %v21435_v30, %v18938_v9  ;;  %v19034_v2 = vsel %vm3213_vm1, %v21400_v32, %v7291_v10  ;;  %v6951_v30 = vld [vmem:[#allocation4 + $0x1c] sm:$0x2] }
 0x573   : > { %6695 = vst [vmem:[#allocation4 + $0xa0] sm:$0x1] %v6694_v3  ;;  %6698 = vst [vmem:[#allocation4 + $0xac] sm:$0x1] %v6697_v0  ;;  %v6746_v21 = vrot.slane %v21432_v18, %v17871_v11  ;;  %v6753_v51 = vrot.slane %v21433_v27, %v17871_v11  ;;  %v6987_v55 = vld [vmem:[#allocation4 + $0xac] sm:$0x2] }
 0x574   : > { %6701 = vst [vmem:[#allocation4 + $0xb8] sm:$0x1] %v6700_v23  ;;  %6704 = vst [vmem:[#allocation4 + $0xc4] sm:$0x1] %v6703_v36 }
 0x575   : > { %v6754_v29 = vcombine.high %v6746_v21, %v6746_v21  ;;  %v6755_v54 = vcombine.high %v6753_v51, %v6753_v51  ;;  %v6762_v13 = vrot.slane %v6746_v21, %v17871_v11  ;;  %v6769_v8 = vrot.slane %v6753_v51, %v17871_v11 }
 0x577   : > { %v6776_v4 = vrot.slane %v6754_v29, %v17871_v11  ;;  %v6783_v52 = vrot.slane %v6755_v54, %v17871_v11  ;;  %v6784_v6 = vcombine.high %v6762_v13, %v6762_v13  ;;  %v6785_v57 = vcombine.high %v6769_v8, %v6769_v8 }
 0x578   : > { %v6789_v37 = vunpack.i.h.s16 %v6762_v13  ;;  %v6797_v12 = vunpack.i.h.s16 %v6769_v8  ;;  %v14242_v15 = vpack.i.b16 %v6762_v13, %v6762_v13  ;;  %v14246_v61 = vpack.i.b16 %v6769_v8, %v6769_v8  ;;  %v6948_v8 = vld [vmem:[#allocation4 + $0x10] sm:$0x2] }
 0x579   : > { %v6786_v9 = vcombine.high %v6776_v4, %v6776_v4  ;;  %v6787_v16 = vcombine.high %v6783_v52, %v6783_v52  ;;  %v6791_v56 = vunpack.i.h.s16 %v6776_v4  ;;  %v6793_v49 = vunpack.i.h.s16 %v6784_v6 }
 0x57a   : > { %v6799_v24 = vunpack.i.h.s16 %v6783_v52  ;;  %v6801_v7 = vunpack.i.h.s16 %v6785_v57  ;;  %v6805_v58 = vpack.i.b16 %v6789_v37, %v6789_v37  ;;  %v14243_v45 = vpack.i.b16 %v6776_v4, %v6776_v4 }
 0x57b   : > { %v6795_v35 = vunpack.i.h.s16 %v6786_v9  ;;  %v6803_v28 = vunpack.i.h.s16 %v6787_v16  ;;  %v6807_v5 = vpack.i.b16 %v6791_v56, %v6791_v56  ;;  %v14244_v3 = vpack.i.b16 %v6784_v6, %v6784_v6  ;;  %v19052_v56 = vpop.f32.mrb[59].mxu1 }
 0x57c   : > { %v6809_v0 = vpack.i.b16 %v6793_v49, %v6793_v49  ;;  %v14245_v23 = vpack.i.b16 %v6786_v9, %v6786_v9  ;;  %v6813_v36 = vpack.i.b16 %v6797_v12, %v6797_v12  ;;  %v14247_v18 = vpack.i.b16 %v6783_v52, %v6783_v52  ;;  %v6960_v12 = vld [vmem:[#allocation4 + $0x40] sm:$0x2]  ;;  %v6972_v9 = vld [vmem:[#allocation4 + $0x70] sm:$0x2] }
 0x57d   : > { %v6811_v21 = vpack.i.b16 %v6795_v35, %v6795_v35  ;;  %v19040_v27 = vpack.i.b16 %v6799_v24, %v6799_v24  ;;  %v14248_v51 = vpack.i.b16 %v6785_v57, %v6785_v57  ;;  %v19042_v53 = vpack.i.b16 %v6801_v7, %v6801_v7  ;;  %v6954_v57 = vld [vmem:[#allocation4 + $0x28] sm:$0x2]  ;;  %v6966_v35 = vld [vmem:[#allocation4 + $0x58] sm:$0x2] }
 0x57e   : > { %v14249_v10 = vpack.i.b16 %v6787_v16, %v6787_v16  ;;  %v19044_v29 = vpack.i.b16 %v6803_v28, %v6803_v28  ;;  %v6826_v54 = vrot.slane %v14242_v15, %v17917_v59  ;;  %v6833_v13 = vrot.slane %v6805_v58, %v17917_v59  ;;  %v16381_v16 = vld [vmem:[#allocation11 + $0x40] sm:$0xff]   ;;  %v6957_v58 = vld [vmem:[#allocation4 + $0x34] sm:$0x2] }
 0x57f   : > { %v6840_v4 = vrot.slane %v14243_v45, %v17917_v59  ;;  %v6847_v6 = vrot.slane %v6807_v5, %v17917_v59  ;;  %v6854_v52 = vrot.slane %v14244_v3, %v17917_v59  ;;  %v6861_v37 = vrot.slane %v6809_v0, %v17917_v59  ;;  %v6963_v45 = vld [vmem:[#allocation4 + $0x4c] sm:$0x2]  ;;  %15444 = vmatprep.subr.bf16.mxu0 %v16381_v16 }
 0x580   : > { %v6868_v15 = vrot.slane %v14245_v23, %v17917_v59  ;;  %v6875_v49 = vrot.slane %v6811_v21, %v17917_v59  ;;  %v6882_v24 = vrot.slane %v14246_v61, %v17917_v59  ;;  %v6889_v7 = vrot.slane %v6813_v36, %v17917_v59  ;;  %v6969_v23 = vld [vmem:[#allocation4 + $0x64] sm:$0x2]  ;;  %v6978_v21 = vld [vmem:[#allocation4 + $0x88] sm:$0x2]  ;;  %15445 = vmatpush3.bf16.msra.mxu0 %v16381_v16 }
 0x581   : > { %v6896_v28 = vrot.slane %v14247_v18, %v17917_v59  ;;  %v6903_v5 = vrot.slane %v19040_v27, %v17917_v59  ;;  %v6910_v3 = vrot.slane %v14248_v51, %v17917_v59  ;;  %v6917_v0 = vrot.slane %v19042_v53, %v17917_v59  ;;  %v6984_v51 = vld [vmem:[#allocation4 + $0xa0] sm:$0x2] }
 0x582   : > { %v6924_v61 = vrot.slane %v14249_v10, %v17917_v59  ;;  %v6931_v36 = vrot.slane %v19044_v29, %v17917_v59  ;;  %v6949_v18 = vsel %vm18236_vm11, %v6826_v54, %v6948_v8  ;;  %v6952_v27 = vsel %vm18236_vm11, %v6833_v13, %v6951_v30  ;;  %v6990_v8 = vld [vmem:[#allocation4 + $0xb8] sm:$0x2]  ;;  %v6993_v13 = vld [vmem:[#allocation4 + $0xc4] sm:$0x2] }
 0x583   : > { %6950 = vst [vmem:[#allocation4 + $0x10] sm:$0x2] %v6949_v18  ;;  %6953 = vst [vmem:[#allocation4 + $0x1c] sm:$0x2] %v6952_v27  ;;  %v6955_v53 = vsel %vm18236_vm11, %v6840_v4, %v6954_v57  ;;  %v6958_v10 = vsel %vm18236_vm11, %v6847_v6, %v6957_v58  ;;  %v6961_v29 = vsel %vm18236_vm11, %v6854_v52, %v6960_v12  ;;  %v7022_v27 = vrot.slane %v18880_v44, 3 }
 0x584   : > { %v6964_v54 = vsel %vm18236_vm11, %v6861_v37, %v6963_v45  ;;  %6956 = vst [vmem:[#allocation4 + $0x28] sm:$0x2] %v6955_v53  ;;  %6959 = vst [vmem:[#allocation4 + $0x34] sm:$0x2] %v6958_v10  ;;  %v6967_v30 = vsel %vm18236_vm11, %v6868_v15, %v6966_v35  ;;  %v6970_v4 = vsel %vm18236_vm11, %v6875_v49, %v6969_v23  ;;  %v21436_v15 = vrot.slane %v18651_v43, 7 }
 0x585   : > { %6962 = vst [vmem:[#allocation4 + $0x40] sm:$0x2] %v6961_v29  ;;  %6965 = vst [vmem:[#allocation4 + $0x4c] sm:$0x2] %v6964_v54  ;;  %v6973_v6 = vsel %vm18236_vm11, %v6882_v24, %v6972_v9  ;;  %v6976_v52 = vsel %vm18236_vm11, %v6889_v7, %v6975_v62  ;;  %v6979_v37 = vsel %vm18236_vm11, %v6896_v28, %v6978_v21  ;;  %v7010_v49 = vrot.slane %v18684_v34, 2 }
 0x586   : > { %6968 = vst [vmem:[#allocation4 + $0x58] sm:$0x2] %v6967_v30  ;;  %6971 = vst [vmem:[#allocation4 + $0x64] sm:$0x2] %v6970_v4  ;;  %v6982_v57 = vsel %vm18236_vm11, %v6903_v5, %v6981_v25  ;;  %v6985_v12 = vsel %vm18236_vm11, %v6910_v3, %v6984_v51  ;;  %v6988_v16 = vsel %vm18236_vm11, %v6917_v0, %v6987_v55  ;;  %v7011_v55 = vrot.slane %v18846_v63, 1 }
 0x587   : > { %6974 = vst [vmem:[#allocation4 + $0x70] sm:$0x2] %v6973_v6  ;;  %6977 = vst [vmem:[#allocation4 + $0x7c] sm:$0x2] %v6976_v52  ;;  %v6991_v62 = vsel %vm18236_vm11, %v6924_v61, %v6990_v8  ;;  %v6994_v9 = vsel %vm18236_vm11, %v6931_v36, %v6993_v13  ;;  %v7294_v25 = vsel %vm21437_vm2, %v21436_v15, %v19034_v2  ;;  %v7014_v24 = vrot.slane %v18865_v1, 7 }
 0x588   : > { %6980 = vst [vmem:[#allocation4 + $0x88] sm:$0x2] %v6979_v37  ;;  %6983 = vst [vmem:[#allocation4 + $0x94] sm:$0x2] %v6982_v57  ;;  %v21438_v7 = vrot.slane %v18664_v40, 3  ;;  %v7296_v45 = vsel %vm3219_vm6, %v21440_v33, %v7294_v25  ;;  %v7297_v35 = vrot.slane %v18661_v17, 5 }
 0x589   : > { %6986 = vst [vmem:[#allocation4 + $0xa0] sm:$0x2] %v6985_v12  ;;  %6989 = vst [vmem:[#allocation4 + $0xac] sm:$0x2] %v6988_v16  ;;  %v7016_v2 = vrot.slane %v18870_v46, 6  ;;  %vm21441_vm11 = vcmask 1041409  }
 0x58a   : > { %6992 = vst [vmem:[#allocation4 + $0xb8] sm:$0x2] %v6991_v62  ;;  %6995 = vst [vmem:[#allocation4 + $0xc4] sm:$0x2] %v6994_v9  ;;  %v7009_v58 = vsel %vm21439_vm15, %v21438_v7, %v19030_v26  ;;  %v7012_v28 = vsel %vm21441_vm11, %v7011_v55, %v7010_v49  ;;  %v7018_v5 = vrot.slane %v18873_v19, 5  ;;  %v7301_v3 = vrot.slane %v18684_v34, 3 }
 0x58b   : > { %v7302_v0 = vrot.slane %v18846_v63, 2  ;;  %v7013_v23 = vsel %vm21423_vm8, %v18859_v50, %v7012_v28  ;;  %v7020_v26 = vrot.slane %v18877_v41, 4  ;;  %v7304_v21 = vrot.slane %v18859_v50, 1  ;;  %vm21442_vm7 = vmmov %vm21441_vm11 }
 0x58c   : > { %v7307_v61 = vrot.slane %v18870_v46, 7  ;;  %v7299_v36 = vrot.slane %v18664_v40, 4  ;;  %v7015_v18 = vsel %vm3213_vm1, %v7014_v24, %v7013_v23  ;;  %vm21443_vm2 = vcmask 1046534   ;;  %vm21445_vm11 = vmmov %vm21423_vm8 }
 0x58d   : > { %v7303_v51 = vsel %vm21442_vm7, %v7302_v0, %v7301_v3  ;;  %v7298_v53 = vsel %vm21443_vm2, %v7297_v35, %v7296_v45  ;;  %vm21444_vm15 = vcmask 1044484   ;;  %v7026_v13 = vadd.f32 %v7009_v58, %v18417_v20  ;;  %vm21446_vm8 = vmmov %vm21443_vm2 }
 0x58e   : > { %v7017_v10 = vsel %vm21444_vm15, %v7016_v2, %v7015_v18  ;;  %v7305_v29 = vsel %vm21445_vm11, %v7304_v21, %v7303_v51  ;;  %vm21447_vm12 = vmmov %vm21444_vm15  ;;  %v7300_v6 = vsel %vm21448_vm9, %v7299_v36, %v7298_v53  ;;  %v7309_v37 = vrot.slane %v18873_v19, 6 }
 0x58f   : > { %v7019_v54 = vsel %vm3219_vm6, %v7018_v5, %v7017_v10  ;;  %v7306_v8 = vsel %vm3213_vm1, %v18865_v1, %v7305_v29  ;;  %vm21449_vm7 = vmmov %vm21448_vm9  ;;  %v7311_v57 = vrot.slane %v18877_v41, 5  ;;  %v7313_v16 = vrot.slane %v18880_v44, 4 }
 0x590   : > { %v7021_v30 = vsel %vm21446_vm8, %v7020_v26, %v7019_v54  ;;  %v7308_v4 = vsel %vm21447_vm12, %v7307_v61, %v7306_v8  ;;  %v7578_v62 = vrot.slane %v21395_v42, 4  ;;  %v7579_v20 = vrot.slane %v21396_v48, 3  ;;  %vm21450_vm9 = vmmov %vm21443_vm2  ;;  %v7275_v36 = vld [vmem:[#allocation4 + $0xa0] sm:$0x2] }
 0x591   : > { %v7023_v52 = vsel %vm21449_vm7, %v7022_v27, %v7021_v30  ;;  %v7310_v9 = vsel %vm3219_vm6, %v7309_v37, %v7308_v4  ;;  %v7581_v15 = vrot.slane %v21398_v47, 2  ;;  %v7583_v25 = vrot.slane %v21400_v32, 1  ;;  %vm21452_vm2 = vmmov %vm21449_vm7 }
 0x592   : > { %v7027_v12 = vadd.f32 %v7023_v52, %v18513_v14  ;;  %v7312_v24 = vsel %vm21450_vm9, %v7311_v57, %v7310_v9  ;;  %vm21451_vm12 = vcmask 1041409   ;;  %v19151_v14 = vadd.f32 %v7300_v6, %v18429_v31  ;;  %vm21453_vm15 = vmmov %vm21445_vm11 }
 0x593   : > { %v7580_v7 = vsel %vm21451_vm12, %v7579_v20, %v7578_v62  ;;  %v7314_v58 = vsel %vm21452_vm2, %v7313_v16, %v7312_v24  ;;  %vm21454_vm11 = vcmask 1044484   ;;  %v7869_v3 = vrot.slane %v21395_v42, 5  ;;  %vm21455_vm8 = vmmov %vm21451_vm12 }
 0x594   : > { %v7028_v49 = vpack.c.bf16 %v7027_v12, %v7026_v13  ;;  %v14250_v55 = vpack.c.bf16 %v7027_v12, %v7027_v12  ;;  %v7582_v33 = vsel %vm21453_vm15, %v7581_v15, %v7580_v7  ;;  %v19158_v2 = vadd.f32 %v7314_v58, %v18570_v22  ;;  %v16382_v58 = vld [vmem:[#allocation11 + $0xd0] sm:$0xff]   ;;  %vm21459_vm7 = vmmov %vm21453_vm15 }
 0x595   : > { %v7584_v28 = vsel %vm3213_vm1, %v7583_v25, %v7582_v33  ;;  %v7870_v0 = vrot.slane %v21396_v48, 4  ;;  %15592 = vmatprep.subr.bf16.mxu1 %v16382_v58  ;;  %v7874_v31 = vrot.slane %v21400_v32, 2  ;;  %vm21465_vm12 = vmmov %vm21459_vm7 }
 0x596   : > { %v7037_v45 = vrot.slane %v7028_v49, %v17871_v11  ;;  %v7044_v35 = vrot.slane %v14250_v55, %v17871_v11  ;;  %v19163_v5 = vsel %vm21454_vm11, %v18651_v43, %v7584_v28  ;;  %v7319_v22 = vpack.c.bf16 %v19158_v2, %v19151_v14  ;;  %15593 = vmatpush3.bf16.msra.mxu1 %v16382_v58  ;;  %v7266_v58 = vld [vmem:[#allocation4 + $0x7c] sm:$0x2]  ;;  %vm21466_vm15 = vmmov %vm21450_vm9 }
 0x597   : > { %v19175_v18 = vsel %vm21455_vm8, %v7870_v0, %v7869_v3  ;;  %v7239_v3 = vld [vmem:[#allocation4 + $0x10] sm:$0x2] }
 0x598   : > { %v7045_v23 = vcombine.high %v7037_v45, %v7037_v45  ;;  %v7046_v26 = vcombine.high %v7044_v35, %v7044_v35  ;;  %v7053_v21 = vrot.slane %v7037_v45, %v17871_v11  ;;  %v7060_v61 = vrot.slane %v7044_v35, %v17871_v11 }
 0x59a   : > { %v7067_v51 = vrot.slane %v7045_v23, %v17871_v11  ;;  %v7074_v53 = vrot.slane %v7046_v26, %v17871_v11  ;;  %v7075_v10 = vcombine.high %v7053_v21, %v7053_v21  ;;  %v7076_v29 = vcombine.high %v7060_v61, %v7060_v61 }
 0x59b   : > { %v7080_v54 = vunpack.i.h.s16 %v7053_v21  ;;  %v7088_v8 = vunpack.i.h.s16 %v7060_v61  ;;  %v14251_v13 = vpack.i.b16 %v7053_v21, %v7053_v21  ;;  %v14255_v30 = vpack.i.b16 %v7060_v61, %v7060_v61  ;;  %v7242_v61 = vld [vmem:[#allocation4 + $0x1c] sm:$0x2] }
 0x59c   : > { %v7077_v4 = vcombine.high %v7067_v51, %v7067_v51  ;;  %v7078_v6 = vcombine.high %v7074_v53, %v7074_v53  ;;  %v7082_v52 = vunpack.i.h.s16 %v7067_v51  ;;  %v7084_v37 = vunpack.i.h.s16 %v7075_v10 }
 0x59d   : > { %v7090_v57 = vunpack.i.h.s16 %v7074_v53  ;;  %v7092_v12 = vunpack.i.h.s16 %v7076_v29  ;;  %v7096_v16 = vpack.i.b16 %v7080_v54, %v7080_v54  ;;  %v14252_v62 = vpack.i.b16 %v7067_v51, %v7067_v51  ;;  %v7245_v51 = vld [vmem:[#allocation4 + $0x28] sm:$0x2] }
 0x59e   : > { %v7086_v20 = vunpack.i.h.s16 %v7077_v4  ;;  %v7094_v9 = vunpack.i.h.s16 %v7078_v6  ;;  %v7098_v15 = vpack.i.b16 %v7082_v52, %v7082_v52  ;;  %v14253_v25 = vpack.i.b16 %v7075_v10, %v7075_v10  ;;  %v7248_v10 = vld [vmem:[#allocation4 + $0x34] sm:$0x2]  ;;  %v7257_v52 = vld [vmem:[#allocation4 + $0x58] sm:$0x2] }
 0x59f   : > { %v7100_v49 = vpack.i.b16 %v7084_v37, %v7084_v37  ;;  %v14254_v55 = vpack.i.b16 %v7077_v4, %v7077_v4  ;;  %v19180_v24 = vpack.i.b16 %v7088_v8, %v7088_v8  ;;  %v14256_v7 = vpack.i.b16 %v7074_v53, %v7074_v53  ;;  %v7251_v4 = vld [vmem:[#allocation4 + $0x40] sm:$0x2] }
 0x5a0   : > { %v7102_v33 = vpack.i.b16 %v7086_v20, %v7086_v20  ;;  %v19182_v45 = vpack.i.b16 %v7090_v57, %v7090_v57  ;;  %v14257_v35 = vpack.i.b16 %v7076_v29, %v7076_v29  ;;  %v19184_v28 = vpack.i.b16 %v7092_v12, %v7092_v12  ;;  %v16384_v20 = vld [vmem:[#allocation11 + $0xd8] sm:$0xff]  }
 0x5a1   : > { %v14258_v0 = vpack.i.b16 %v7078_v6, %v7078_v6  ;;  %v19186_v23 = vpack.i.b16 %v7094_v9, %v7094_v9  ;;  %v7117_v26 = vrot.slane %v14251_v13, %v17917_v59  ;;  %v7124_v21 = vrot.slane %v7096_v16, %v17917_v59  ;;  %v7254_v6 = vld [vmem:[#allocation4 + $0x4c] sm:$0x2]  ;;  %v7260_v16 = vld [vmem:[#allocation4 + $0x64] sm:$0x2]  ;;  %15594 = vmatprep.subr.bf16.mxu1 %v16384_v20 }
 0x5a2   : > { %v7131_v53 = vrot.slane %v14252_v62, %v17917_v59  ;;  %v7138_v54 = vrot.slane %v7098_v15, %v17917_v59  ;;  %v7145_v29 = vrot.slane %v14253_v25, %v17917_v59  ;;  %v7152_v8 = vrot.slane %v7100_v49, %v17917_v59  ;;  %v16383_v62 = vld [vmem:[#allocation11 + $0x48] sm:$0xff]   ;;  %15595 = vmatpush3.bf16.msra.mxu1 %v16384_v20 }
 0x5a3   : > { %v7159_v13 = vrot.slane %v14254_v55, %v17917_v59  ;;  %v7166_v37 = vrot.slane %v7102_v33, %v17917_v59  ;;  %v7173_v57 = vrot.slane %v14255_v30, %v17917_v59  ;;  %v7180_v12 = vrot.slane %v19180_v24, %v17917_v59  ;;  %v7263_v55 = vld [vmem:[#allocation4 + $0x70] sm:$0x2]  ;;  %v7269_v33 = vld [vmem:[#allocation4 + $0x88] sm:$0x2]  ;;  %15446 = vmatprep.subr.bf16.mxu0 %v16383_v62 }
 0x5a4   : > { %v7187_v9 = vrot.slane %v14256_v7, %v17917_v59  ;;  %v7194_v15 = vrot.slane %v19182_v45, %v17917_v59  ;;  %v7201_v25 = vrot.slane %v14257_v35, %v17917_v59  ;;  %v7208_v49 = vrot.slane %v19184_v28, %v17917_v59  ;;  %v7272_v45 = vld [vmem:[#allocation4 + $0x94] sm:$0x2]  ;;  %v7278_v35 = vld [vmem:[#allocation4 + $0xac] sm:$0x2]  ;;  %15447 = vmatpush3.bf16.msra.mxu0 %v16383_v62 }
 0x5a5   : > { %v7215_v30 = vrot.slane %v14258_v0, %v17917_v59  ;;  %v7222_v24 = vrot.slane %v19186_v23, %v17917_v59  ;;  %v7240_v27 = vsel %vm18348_vm14, %v7117_v26, %v7239_v3  ;;  %v7243_v7 = vsel %vm18348_vm14, %v7124_v21, %v7242_v61  ;;  %v7281_v26 = vld [vmem:[#allocation4 + $0xb8] sm:$0x2]  ;;  %v7284_v21 = vld [vmem:[#allocation4 + $0xc4] sm:$0x2] }
 0x5a6   : > { %7241 = vst [vmem:[#allocation4 + $0x10] sm:$0x2] %v7240_v27  ;;  %7244 = vst [vmem:[#allocation4 + $0x1c] sm:$0x2] %v7243_v7  ;;  %v7246_v28 = vsel %vm18348_vm14, %v7131_v53, %v7245_v51  ;;  %v7249_v0 = vsel %vm18348_vm14, %v7138_v54, %v7248_v10  ;;  %v7252_v23 = vsel %vm18348_vm14, %v7145_v29, %v7251_v4  ;;  %v16385_v53 = vld [vmem:[#allocation11 + $0x50] sm:$0xff]   ;;  %v16386_v54 = vld [vmem:[#allocation11 + $0xe0] sm:$0xff]  }
 0x5a7   : > { %v7255_v3 = vsel %vm18348_vm14, %v7152_v8, %v7254_v6  ;;  %7247 = vst [vmem:[#allocation4 + $0x28] sm:$0x2] %v7246_v28  ;;  %7250 = vst [vmem:[#allocation4 + $0x34] sm:$0x2] %v7249_v0  ;;  %v7258_v27 = vsel %vm18348_vm14, %v7159_v13, %v7257_v52  ;;  %v7261_v61 = vsel %vm18348_vm14, %v7166_v37, %v7260_v16  ;;  %15448 = vmatprep.subr.bf16.mxu0 %v16385_v53 }
 0x5a8   : > { %7253 = vst [vmem:[#allocation4 + $0x40] sm:$0x2] %v7252_v23  ;;  %7256 = vst [vmem:[#allocation4 + $0x4c] sm:$0x2] %v7255_v3  ;;  %v7264_v51 = vsel %vm18348_vm14, %v7173_v57, %v7263_v55  ;;  %v7267_v10 = vsel %vm18348_vm14, %v7180_v12, %v7266_v58  ;;  %v7270_v29 = vsel %vm18348_vm14, %v7187_v9, %v7269_v33  ;;  %v21458_v12 = vrot.slane %v21398_v47, 3  ;;  %v16388_v9 = vld [vmem:[#allocation11 + $0xe8] sm:$0xff]  }
 0x5a9   : > { %7259 = vst [vmem:[#allocation4 + $0x58] sm:$0x2] %v7258_v27  ;;  %7262 = vst [vmem:[#allocation4 + $0x64] sm:$0x2] %v7261_v61  ;;  %v7273_v8 = vsel %vm18348_vm14, %v7194_v15, %v7272_v45  ;;  %v7276_v4 = vsel %vm18348_vm14, %v7201_v25, %v7275_v36  ;;  %v7279_v6 = vsel %vm18348_vm14, %v7208_v49, %v7278_v35  ;;  %15449 = vmatpush3.bf16.msra.mxu0 %v16385_v53  ;;  %v16391_v27 = vld [vmem:[#allocation11 + $0x68] sm:$0xff]  }
 0x5aa   : > { %7265 = vst [vmem:[#allocation4 + $0x70] sm:$0x2] %v7264_v51  ;;  %7268 = vst [vmem:[#allocation4 + $0x7c] sm:$0x2] %v7267_v10  ;;  %v7282_v52 = vsel %vm18348_vm14, %v7215_v30, %v7281_v26  ;;  %v7285_v13 = vsel %vm18348_vm14, %v7222_v24, %v7284_v21  ;;  %v7328_v37 = vrot.slane %v7319_v22, %v17871_v11  ;;  %15596 = vmatprep.subr.bf16.mxu1 %v16386_v54  ;;  %v16389_v26 = vld [vmem:[#allocation11 + $0x60] sm:$0xff]   ;;  %v16390_v21 = vld [vmem:[#allocation11 + $0xf0] sm:$0xff]  }
 0x5ab   : > { %7271 = vst [vmem:[#allocation4 + $0x88] sm:$0x2] %v7270_v29  ;;  %7274 = vst [vmem:[#allocation4 + $0x94] sm:$0x2] %v7273_v8  ;;  %v21457_v36 = vpack.c.bf16 %v19158_v2, %v19158_v2  ;;  %v7873_v16 = vsel %vm21459_vm7, %v21458_v12, %v19175_v18  ;;  %v16387_v2 = vld [vmem:[#allocation11 + $0x58] sm:$0xff]   ;;  %v21460_v15 = vrot.slane %v18654_v38, 7  ;;  %15597 = vmatpush3.bf16.msra.mxu1 %v16386_v54 }
 0x5ac   : > { %7277 = vst [vmem:[#allocation4 + $0xa0] sm:$0x2] %v7276_v4  ;;  %7280 = vst [vmem:[#allocation4 + $0xac] sm:$0x2] %v7279_v6  ;;  %v7336_v62 = vcombine.high %v7328_v37, %v7328_v37  ;;  %v7344_v22 = vrot.slane %v7328_v37, %v17871_v11  ;;  %v19265_v49 = vsel %vm3213_vm1, %v7874_v31, %v7873_v16  ;;  %v7876_v55 = vrot.slane %v18651_v43, 1  ;;  %v16392_v6 = vld [vmem:[#allocation11 + $0xf8] sm:$0xff]  }
 0x5ad   : > { %v7335_v57 = vrot.slane %v21457_v36, %v17871_v11  ;;  %7283 = vst [vmem:[#allocation4 + $0xb8] sm:$0x2] %v7282_v52  ;;  %7286 = vst [vmem:[#allocation4 + $0xc4] sm:$0x2] %v7285_v13  ;;  %v19261_v25 = vsel %vm3219_vm6, %v21460_v15, %v19163_v5  ;;  %15450 = vmatprep.subr.bf16.mxu0 %v16387_v2  ;;  %15598 = vmatprep.subr.bf16.mxu1 %v16388_v9  ;;  %v7533_v15 = vld [vmem:[#allocation4 + $0x1c] sm:$0x4] }
 0x5ae   : > { %v7358_v58 = vrot.slane %v7336_v62, %v17871_v11  ;;  %v7366_v30 = vcombine.high %v7344_v22, %v7344_v22  ;;  %v7371_v5 = vunpack.i.h.s16 %v7344_v22  ;;  %v14260_v45 = vpack.i.b16 %v7344_v22, %v7344_v22  ;;  %15451 = vmatpush3.bf16.msra.mxu0 %v16387_v2  ;;  %v16394_v62 = vld [vmem:[#allocation11 + $0x70] sm:$0xff]   ;;  %vm21462_vm14 = vmmov %vm21454_vm11 }
 0x5af   : > { %v7337_v14 = vcombine.high %v7335_v57, %v7335_v57  ;;  %v19255_v20 = vrot.slane %v7335_v57, %v17871_v11  ;;  %15599 = vmatpush3.bf16.msra.mxu1 %v16388_v9  ;;  %15452 = vmatprep.subr.bf16.mxu0 %v16389_v26  ;;  %v7530_v9 = vld [vmem:[#allocation4 + $0x10] sm:$0x4]  ;;  %v7569_v18 = vld [vmem:[#allocation4 + $0xac] sm:$0x4]  ;;  %vm21468_vm7 = vmmov %vm21450_vm9 }
 0x5b0   : > { %v7368_v28 = vcombine.high %v7358_v58, %v7358_v58  ;;  %v7373_v23 = vunpack.i.h.s16 %v7358_v58  ;;  %v7375_v3 = vunpack.i.h.s16 %v7366_v30  ;;  %v7387_v10 = vpack.i.b16 %v7371_v5, %v7371_v5  ;;  %15600 = vmatprep.subr.bf16.mxu1 %v16390_v21 }
 0x5b1   : > { %v19270_v33 = vrot.slane %v7337_v14, %v17871_v11  ;;  %v19274_v24 = vcombine.high %v19255_v20, %v19255_v20  ;;  %v7379_v7 = vunpack.i.h.s16 %v19255_v20  ;;  %v14264_v35 = vpack.i.b16 %v19255_v20, %v19255_v20 }
 0x5b2   : > { %v14261_v53 = vpack.i.b16 %v7358_v58, %v7358_v58  ;;  %v7377_v54 = vunpack.i.h.s16 %v7368_v28  ;;  %v7389_v8 = vpack.i.b16 %v7373_v23, %v7373_v23  ;;  %v14262_v4 = vpack.i.b16 %v7366_v30, %v7366_v30  ;;  %15453 = vmatpush3.bf16.msra.mxu0 %v16389_v26  ;;  %v7536_v58 = vld [vmem:[#allocation4 + $0x28] sm:$0x4]  ;;  %v16398_v23 = vld [vmem:[#allocation11 + $0x100] sm:$0xff]  }
 0x5b3   : > { %v19281_v0 = vcombine.high %v19270_v33, %v19270_v33  ;;  %v7381_v61 = vunpack.i.h.s16 %v19270_v33  ;;  %v7383_v51 = vunpack.i.h.s16 %v19274_v24  ;;  %v7391_v52 = vpack.i.b16 %v7375_v3, %v7375_v3  ;;  %15454 = vmatprep.subr.bf16.mxu0 %v16391_v27  ;;  %15601 = vmatpush3.bf16.msra.mxu1 %v16390_v21 }
 0x5b4   : > { %v14263_v13 = vpack.i.b16 %v7368_v28, %v7368_v28  ;;  %v19286_v37 = vpack.i.b16 %v7379_v7, %v7379_v7  ;;  %v14265_v36 = vpack.i.b16 %v19270_v33, %v19270_v33  ;;  %v19290_v57 = vpack.i.b16 %v7377_v54, %v7377_v54  ;;  %v7539_v7 = vld [vmem:[#allocation4 + $0x34] sm:$0x4]  ;;  %v7542_v28 = vld [vmem:[#allocation4 + $0x40] sm:$0x4]  ;;  %15602 = vmatprep.subr.bf16.mxu1 %v16392_v6 }
 0x5b5   : > { %v7385_v29 = vunpack.i.h.s16 %v19281_v0  ;;  %v19292_v12 = vpack.i.b16 %v7381_v61, %v7381_v61  ;;  %v14266_v16 = vpack.i.b16 %v19274_v24, %v19274_v24  ;;  %v19296_v31 = vpack.i.b16 %v7383_v51, %v7383_v51  ;;  %v7545_v61 = vld [vmem:[#allocation4 + $0x4c] sm:$0x4]  ;;  %v7548_v51 = vld [vmem:[#allocation4 + $0x58] sm:$0x4] }
 0x5b6   : > { %v14267_v14 = vpack.i.b16 %v19281_v0, %v19281_v0  ;;  %v7408_v20 = vrot.slane %v14260_v45, %v17917_v59  ;;  %v7415_v2 = vrot.slane %v7387_v10, %v17917_v59  ;;  %v7422_v33 = vrot.slane %v14261_v53, %v17917_v59  ;;  %v7554_v0 = vld [vmem:[#allocation4 + $0x70] sm:$0x4]  ;;  %v7551_v10 = vld [vmem:[#allocation4 + $0x64] sm:$0x4]  ;;  %15455 = vmatpush3.bf16.msra.mxu0 %v16391_v27 }
 0x5b7   : > { %v19300_v22 = vpack.i.b16 %v7385_v29, %v7385_v29  ;;  %v7429_v30 = vrot.slane %v7389_v8, %v17917_v59  ;;  %v7436_v24 = vrot.slane %v14262_v4, %v17917_v59  ;;  %v7443_v5 = vrot.slane %v7391_v52, %v17917_v59  ;;  %v7557_v4 = vld [vmem:[#allocation4 + $0x7c] sm:$0x4]  ;;  %v7560_v52 = vld [vmem:[#allocation4 + $0x88] sm:$0x4]  ;;  %15456 = vmatprep.subr.bf16.mxu0 %v16394_v62 }
 0x5b8   : > { %v7450_v45 = vrot.slane %v14263_v13, %v17917_v59  ;;  %v7457_v3 = vrot.slane %v19290_v57, %v17917_v59  ;;  %v7464_v26 = vrot.slane %v14264_v35, %v17917_v59  ;;  %v7471_v21 = vrot.slane %v19286_v37, %v17917_v59  ;;  %v16397_v35 = vld [vmem:[#allocation11 + $0x78] sm:$0xff]   ;;  %15603 = vmatpush3.bf16.msra.mxu1 %v16392_v6 }
 0x5b9   : > { %v7478_v53 = vrot.slane %v14265_v36, %v17917_v59  ;;  %v7485_v54 = vrot.slane %v19292_v12, %v17917_v59  ;;  %v7492_v29 = vrot.slane %v14266_v16, %v17917_v59  ;;  %v7499_v8 = vrot.slane %v19296_v31, %v17917_v59  ;;  %v7563_v12 = vld [vmem:[#allocation4 + $0x94] sm:$0x4]  ;;  %v7566_v16 = vld [vmem:[#allocation4 + $0xa0] sm:$0x4]  ;;  %15636 = vmatprep.subr.bf16.mxu1 %v16398_v23 }
 0x5ba   : > { %v7506_v13 = vrot.slane %v14267_v14, %v17917_v59  ;;  %v7513_v37 = vrot.slane %v19300_v22, %v17917_v59  ;;  %v7531_v36 = vsel %vm18425_vm13, %v7408_v20, %v7530_v9  ;;  %v7534_v57 = vsel %vm18425_vm13, %v7415_v2, %v7533_v15  ;;  %v7572_v9 = vld [vmem:[#allocation4 + $0xb8] sm:$0x4]  ;;  %v7575_v2 = vld [vmem:[#allocation4 + $0xc4] sm:$0x4]  ;;  %15457 = vmatpush3.bf16.msra.mxu0 %v16394_v62 }
 0x5bb   : > { %7532 = vst [vmem:[#allocation4 + $0x10] sm:$0x4] %v7531_v36  ;;  %7535 = vst [vmem:[#allocation4 + $0x1c] sm:$0x4] %v7534_v57  ;;  %v7537_v31 = vsel %vm18425_vm13, %v7422_v33, %v7536_v58  ;;  %v7540_v14 = vsel %vm18425_vm13, %v7429_v30, %v7539_v7  ;;  %v7543_v22 = vsel %vm18425_vm13, %v7436_v24, %v7542_v28  ;;  %15458 = vmatprep.subr.bf16.mxu0 %v16397_v35 }
 0x5bc   : > { %v7546_v20 = vsel %vm18425_vm13, %v7443_v5, %v7545_v61  ;;  %7538 = vst [vmem:[#allocation4 + $0x28] sm:$0x4] %v7537_v31  ;;  %7541 = vst [vmem:[#allocation4 + $0x34] sm:$0x4] %v7540_v14  ;;  %v7549_v6 = vsel %vm18425_vm13, %v7450_v45, %v7548_v51  ;;  %v7552_v15 = vsel %vm18425_vm13, %v7457_v3, %v7551_v10  ;;  %v7592_v23 = vrot.slane %v18684_v34, 4 }
 0x5bd   : > { %7544 = vst [vmem:[#allocation4 + $0x40] sm:$0x4] %v7543_v22  ;;  %7547 = vst [vmem:[#allocation4 + $0x4c] sm:$0x4] %v7546_v20  ;;  %v7555_v58 = vsel %vm18425_vm13, %v7464_v26, %v7554_v0  ;;  %v7558_v33 = vsel %vm18425_vm13, %v7471_v21, %v7557_v4  ;;  %v7561_v30 = vsel %vm18425_vm13, %v7478_v53, %v7560_v52  ;;  %v7593_v45 = vrot.slane %v18846_v63, 3 }
 0x5be   : > { %7550 = vst [vmem:[#allocation4 + $0x58] sm:$0x4] %v7549_v6  ;;  %7553 = vst [vmem:[#allocation4 + $0x64] sm:$0x4] %v7552_v15  ;;  %v7564_v24 = vsel %vm18425_vm13, %v7485_v54, %v7563_v12  ;;  %v7567_v5 = vsel %vm18425_vm13, %v7492_v29, %v7566_v16  ;;  %v7570_v7 = vsel %vm18425_vm13, %v7499_v8, %v7569_v18  ;;  %v7590_v18 = vrot.slane %v18664_v40, 5  ;;  %v21467_v12 = vld [vmem:[#allocation30_spill] sm:$0xff] }
 0x5bf   : > { %7556 = vst [vmem:[#allocation4 + $0x70] sm:$0x4] %v7555_v58  ;;  %7559 = vst [vmem:[#allocation4 + $0x7c] sm:$0x4] %v7558_v33  ;;  %v7573_v62 = vsel %vm18425_vm13, %v7506_v13, %v7572_v9  ;;  %v7576_v28 = vsel %vm18425_vm13, %v7513_v37, %v7575_v2  ;;  %v7877_v0 = vsel %vm21462_vm14, %v7876_v55, %v19265_v49  ;;  %v7595_v3 = vrot.slane %v18859_v50, 2  ;;  %v21472_v6 = vld [vmem:[#allocation31_spill] sm:$0xff] }
 0x5c0   : > { %7562 = vst [vmem:[#allocation4 + $0x88] sm:$0x4] %v7561_v30  ;;  %7565 = vst [vmem:[#allocation4 + $0x94] sm:$0x4] %v7564_v24  ;;  %v21463_v26 = vrot.slane %v18661_v17, 6  ;;  %v7879_v61 = vrot.slane %v18661_v17, 7  ;;  %15459 = vmatpush3.bf16.msra.mxu0 %v16397_v35  ;;  %v7878_v49 = vsel %vm3219_vm6, %v18654_v38, %v7877_v0 }
 0x5c1   : > { %7568 = vst [vmem:[#allocation4 + $0xa0] sm:$0x4] %v7567_v5  ;;  %7571 = vst [vmem:[#allocation4 + $0xac] sm:$0x4] %v7570_v7  ;;  %v7597_v51 = vrot.slane %v18865_v1, 1  ;;  %v7600_v10 = vrot.slane %v18873_v19, 7 }
 0x5c2   : > { %7574 = vst [vmem:[#allocation4 + $0xb8] sm:$0x4] %v7573_v62  ;;  %7577 = vst [vmem:[#allocation4 + $0xc4] sm:$0x4] %v7576_v28  ;;  %v7589_v21 = vsel %vm21450_vm9, %v21463_v26, %v19261_v25  ;;  %v7883_v53 = vrot.slane %v18684_v34, 5  ;;  %v7602_v29 = vrot.slane %v18877_v41, 6  ;;  %v7880_v37 = vsel %vm21466_vm15, %v7879_v61, %v7878_v49 }
 0x5c3   : > { %vm21464_vm13 = vmmov %vm21455_vm8  ;;  %v7884_v25 = vrot.slane %v18846_v63, 4  ;;  %v7886_v8 = vrot.slane %v18859_v50, 3  ;;  %v7591_v4 = vsel %vm21452_vm2, %v7590_v18, %v7589_v21  ;;  %v7881_v52 = vrot.slane %v18664_v40, 6  ;;  %v21473_v28 = vld [vmem:[#allocation29_spill] sm:$0xff] }
 0x5c4   : > { %v7594_v55 = vsel %vm21464_vm13, %v7593_v45, %v7592_v23  ;;  %v7604_v13 = vrot.slane %v18880_v44, 5  ;;  %v7608_v16 = vadd.f32 %v7591_v4, %v21467_v12  ;;  %vm21469_vm14 = vmmov %vm21465_vm12  ;;  %v7888_v9 = vrot.slane %v18865_v1, 2 }
 0x5c5   : > { %v7596_v54 = vsel %vm21465_vm12, %v7595_v3, %v7594_v55  ;;  %v7885_v36 = vsel %vm21455_vm8, %v7884_v25, %v7883_v53  ;;  %vm21470_vm9 = vmmov %vm21452_vm2  ;;  %v7890_v2 = vrot.slane %v18870_v46, 1  ;;  %v7893_v58 = vrot.slane %v18877_v41, 7 }
 0x5c6   : > { %v7598_v35 = vsel %vm3213_vm1, %v7597_v51, %v7596_v54  ;;  %v7887_v14 = vsel %vm21469_vm14, %v7886_v8, %v7885_v36  ;;  %v7882_v22 = vsel %vm21470_vm9, %v7881_v52, %v7880_v37  ;;  %vm21471_vm13 = vmmov %vm21452_vm2  ;;  %v7895_v33 = vrot.slane %v18880_v44, 6 }
 0x5c7   : > { %v7599_v27 = vsel %vm21454_vm11, %v18870_v46, %v7598_v35  ;;  %v8160_v30 = vrot.slane %v21395_v42, 6  ;;  %v7889_v24 = vsel %vm3213_vm1, %v7888_v9, %v7887_v14  ;;  %v8161_v5 = vrot.slane %v21396_v48, 5  ;;  %vm21474_vm12 = vmmov %vm21454_vm11 }
 0x5c8   : > { %v7601_v57 = vsel %vm3219_vm6, %v7600_v10, %v7599_v27  ;;  %v8163_v7 = vrot.slane %v21398_v47, 4  ;;  %v8165_v62 = vrot.slane %v21400_v32, 3  ;;  %v19403_v0 = vadd.f32 %v7882_v22, %v21473_v28  ;;  %vm21475_vm2 = vmmov %vm21455_vm8 }
 0x5c9   : > { %v7603_v31 = vsel %vm21468_vm7, %v7602_v29, %v7601_v57  ;;  %v7891_v45 = vsel %vm21474_vm12, %v7890_v2, %v7889_v24  ;;  %v8162_v26 = vsel %vm21475_vm2, %v8161_v5, %v8160_v30  ;;  %v8167_v21 = vrot.slane %v18651_v43, 2  ;;  %vm21476_vm15 = vmmov %vm21468_vm7 }
 0x5ca   : > { %v7605_v20 = vsel %vm21471_vm13, %v7604_v13, %v7603_v31  ;;  %v7892_v3 = vsel %vm3219_vm6, %v18873_v19, %v7891_v45  ;;  %v8169_v61 = vrot.slane %v18654_v38, 1  ;;  %vm21477_vm11 = vmmov %vm21469_vm14  ;;  %v8451_v29 = vrot.slane %v21395_v42, 7  ;;  %v21479_v13 = vld [vmem:[#allocation39_spill] sm:$0xff] }
 0x5cb   : > { %v7609_v15 = vadd.f32 %v7605_v20, %v21472_v6  ;;  %v7894_v55 = vsel %vm21476_vm15, %v7893_v58, %v7892_v3  ;;  %v8164_v10 = vsel %vm21477_vm11, %v8163_v7, %v8162_v26  ;;  %vm21478_vm8 = vmmov %vm21470_vm9  ;;  %v8452_v25 = vrot.slane %v21396_v48, 6 }
 0x5cc   : > { %v7896_v53 = vsel %vm21478_vm8, %v7895_v33, %v7894_v55  ;;  %v8166_v54 = vsel %vm3213_vm1, %v8165_v62, %v8164_v10  ;;  %vm21480_vm7 = vmmov %vm21474_vm12  ;;  %v8454_v57 = vrot.slane %v21398_v47, 5  ;;  %v8460_v47 = vrot.slane %v18654_v38, 2 }
 0x5cd   : > { %v7610_v18 = vpack.c.bf16 %v7609_v15, %v7608_v16  ;;  %v14268_v23 = vpack.c.bf16 %v7609_v15, %v7609_v15  ;;  %v19422_v37 = vadd.f32 %v7896_v53, %v21479_v13  ;;  %v19425_v27 = vsel %vm21480_vm7, %v8167_v21, %v8166_v54  ;;  %vm21481_vm14 = vmmov %vm21475_vm2  ;;  %v7827_v13 = vld [vmem:[#allocation4 + $0x28] sm:$0x4] }
 0x5ce   : > { %v19428_v36 = vsel %vm21481_vm14, %v8452_v25, %v8451_v29  ;;  %v7821_v29 = vld [vmem:[#allocation4 + $0x10] sm:$0x4]  ;;  %v7824_v25 = vld [vmem:[#allocation4 + $0x1c] sm:$0x4]  ;;  %vm21483_vm9 = vmmov %vm21477_vm11 }
 0x5cf   : > { %v7619_v51 = vrot.slane %v7610_v18, %v17871_v11  ;;  %v7626_v49 = vrot.slane %v14268_v23, %v17871_v11  ;;  %vm21485_vm13 = vmmov %vm21480_vm7 }
 0x5d0   : > { %vm21487_vm12 = vmmov %vm21475_vm2 }
 0x5d1   : > { %v7627_v8 = vcombine.high %v7619_v51, %v7619_v51  ;;  %v7628_v4 = vcombine.high %v7626_v49, %v7626_v49  ;;  %v7635_v52 = vrot.slane %v7619_v51, %v17871_v11  ;;  %v7642_v35 = vrot.slane %v7626_v49, %v17871_v11  ;;  %vm21488_vm2 = vmmov %vm21478_vm8 }
 0x5d2   : > { %vm21495_vm14 = vmmov %vm21488_vm2 }
 0x5d3   : > { %v7649_v42 = vrot.slane %v7627_v8, %v17871_v11  ;;  %v7656_v48 = vrot.slane %v7628_v4, %v17871_v11  ;;  %v7657_v12 = vcombine.high %v7635_v52, %v7635_v52  ;;  %v7658_v16 = vcombine.high %v7642_v35, %v7642_v35 }
 0x5d4   : > { %v7662_v31 = vunpack.i.h.s16 %v7635_v52  ;;  %v7670_v14 = vunpack.i.h.s16 %v7642_v35  ;;  %v14269_v22 = vpack.i.b16 %v7635_v52, %v7635_v52  ;;  %v14273_v20 = vpack.i.b16 %v7642_v35, %v7642_v35 }
 0x5d5   : > { %v7659_v9 = vcombine.high %v7649_v42, %v7649_v42  ;;  %v7660_v2 = vcombine.high %v7656_v48, %v7656_v48  ;;  %v7664_v6 = vunpack.i.h.s16 %v7649_v42  ;;  %v7666_v15 = vunpack.i.h.s16 %v7657_v12 }
 0x5d6   : > { %v7672_v58 = vunpack.i.h.s16 %v7656_v48  ;;  %v7674_v33 = vunpack.i.h.s16 %v7658_v16  ;;  %v7678_v30 = vpack.i.b16 %v7662_v31, %v7662_v31  ;;  %v14270_v24 = vpack.i.b16 %v7649_v42, %v7649_v42  ;;  %v7830_v42 = vld [vmem:[#allocation4 + $0x34] sm:$0x4] }
 0x5d7   : > { %v7668_v5 = vunpack.i.h.s16 %v7659_v9  ;;  %v7676_v7 = vunpack.i.h.s16 %v7660_v2  ;;  %v7680_v62 = vpack.i.b16 %v7664_v6, %v7664_v6  ;;  %v14271_v28 = vpack.i.b16 %v7657_v12, %v7657_v12 }
 0x5d8   : > { %v7682_v18 = vpack.i.b16 %v7666_v15, %v7666_v15  ;;  %v14272_v23 = vpack.i.b16 %v7659_v9, %v7659_v9  ;;  %v7686_v45 = vpack.i.b16 %v7670_v14, %v7670_v14  ;;  %v14274_v3 = vpack.i.b16 %v7656_v48, %v7656_v48  ;;  %v7833_v48 = vld [vmem:[#allocation4 + $0x40] sm:$0x4]  ;;  %v7839_v9 = vld [vmem:[#allocation4 + $0x58] sm:$0x4] }
 0x5d9   : > { %v7684_v26 = vpack.i.b16 %v7668_v5, %v7668_v5  ;;  %v7688_v21 = vpack.i.b16 %v7672_v58, %v7672_v58  ;;  %v14275_v51 = vpack.i.b16 %v7658_v16, %v7658_v16  ;;  %v7690_v49 = vpack.i.b16 %v7674_v33, %v7674_v33  ;;  %v7851_v5 = vld [vmem:[#allocation4 + $0x88] sm:$0x4] }
 0x5da   : > { %v14276_v55 = vpack.i.b16 %v7660_v2, %v7660_v2  ;;  %v19433_v10 = vpack.i.b16 %v7676_v7, %v7676_v7  ;;  %v7699_v53 = vrot.slane %v14269_v22, %v17917_v59  ;;  %v7706_v54 = vrot.slane %v7678_v30, %v17917_v59  ;;  %v7836_v22 = vld [vmem:[#allocation4 + $0x4c] sm:$0x4]  ;;  %v7842_v2 = vld [vmem:[#allocation4 + $0x64] sm:$0x4]  ;;  %v7845_v30 = vld [vmem:[#allocation4 + $0x70] sm:$0x4] }
 0x5db   : > { %v7713_v8 = vrot.slane %v14270_v24, %v17917_v59  ;;  %v7720_v4 = vrot.slane %v7680_v62, %v17917_v59  ;;  %v7727_v52 = vrot.slane %v14271_v28, %v17917_v59  ;;  %v7734_v35 = vrot.slane %v7682_v18, %v17917_v59  ;;  %v7848_v24 = vld [vmem:[#allocation4 + $0x7c] sm:$0x4] }
 0x5dc   : > { %v7741_v12 = vrot.slane %v14272_v23, %v17917_v59  ;;  %v7748_v16 = vrot.slane %v7684_v26, %v17917_v59  ;;  %v7755_v31 = vrot.slane %v14273_v20, %v17917_v59  ;;  %v7762_v14 = vrot.slane %v7686_v45, %v17917_v59  ;;  %v7854_v23 = vld [vmem:[#allocation4 + $0x94] sm:$0x4]  ;;  %v7857_v45 = vld [vmem:[#allocation4 + $0xa0] sm:$0x4] }
 0x5dd   : > { %v7769_v6 = vrot.slane %v14274_v3, %v17917_v59  ;;  %v7776_v15 = vrot.slane %v7688_v21, %v17917_v59  ;;  %v7783_v58 = vrot.slane %v14275_v51, %v17917_v59  ;;  %v7790_v33 = vrot.slane %v7690_v49, %v17917_v59  ;;  %v7860_v3 = vld [vmem:[#allocation4 + $0xac] sm:$0x4] }
 0x5de   : > { %v7797_v7 = vrot.slane %v14276_v55, %v17917_v59  ;;  %v7804_v20 = vrot.slane %v19433_v10, %v17917_v59  ;;  %v7822_v28 = vsel %vm18509_vm10, %v7699_v53, %v7821_v29  ;;  %v7825_v18 = vsel %vm18509_vm10, %v7706_v54, %v7824_v25  ;;  %v7863_v55 = vld [vmem:[#allocation4 + $0xb8] sm:$0x4]  ;;  %v7866_v10 = vld [vmem:[#allocation4 + $0xc4] sm:$0x4] }
 0x5df   : > { %7823 = vst [vmem:[#allocation4 + $0x10] sm:$0x4] %v7822_v28  ;;  %7826 = vst [vmem:[#allocation4 + $0x1c] sm:$0x4] %v7825_v18  ;;  %v7828_v26 = vsel %vm18509_vm10, %v7713_v8, %v7827_v13  ;;  %v7831_v21 = vsel %vm18509_vm10, %v7720_v4, %v7830_v42  ;;  %v7834_v51 = vsel %vm18509_vm10, %v7727_v52, %v7833_v48  ;;  %v16411_v53 = vld [vmem:[#allocation11] sm:$0xff]  }
 0x5e0   : > { %v7837_v49 = vsel %vm18509_vm10, %v7734_v35, %v7836_v22  ;;  %7829 = vst [vmem:[#allocation4 + $0x28] sm:$0x4] %v7828_v26  ;;  %7832 = vst [vmem:[#allocation4 + $0x34] sm:$0x4] %v7831_v21  ;;  %v7840_v54 = vsel %vm18509_vm10, %v7741_v12, %v7839_v9  ;;  %v7843_v29 = vsel %vm18509_vm10, %v7748_v16, %v7842_v2  ;;  %15492 = vmatprep.subr.bf16.mxu0 %v16411_v53 }
 0x5e1   : > { %7835 = vst [vmem:[#allocation4 + $0x40] sm:$0x4] %v7834_v51  ;;  %7838 = vst [vmem:[#allocation4 + $0x4c] sm:$0x4] %v7837_v49  ;;  %v7846_v25 = vsel %vm18509_vm10, %v7755_v31, %v7845_v30  ;;  %v7849_v8 = vsel %vm18509_vm10, %v7762_v14, %v7848_v24  ;;  %v7852_v4 = vsel %vm18509_vm10, %v7769_v6, %v7851_v5  ;;  %v8456_v22 = vrot.slane %v21400_v32, 4 }
 0x5e2   : > { %7841 = vst [vmem:[#allocation4 + $0x58] sm:$0x4] %v7840_v54  ;;  %7844 = vst [vmem:[#allocation4 + $0x64] sm:$0x4] %v7843_v29  ;;  %v7855_v52 = vsel %vm18509_vm10, %v7776_v15, %v7854_v23  ;;  %v7858_v35 = vsel %vm18509_vm10, %v7783_v58, %v7857_v45  ;;  %v7861_v13 = vsel %vm18509_vm10, %v7790_v33, %v7860_v3  ;;  %v8458_v9 = vrot.slane %v18651_v43, 3 }
 0x5e3   : > { %7847 = vst [vmem:[#allocation4 + $0x70] sm:$0x4] %v7846_v25  ;;  %7850 = vst [vmem:[#allocation4 + $0x7c] sm:$0x4] %v7849_v8  ;;  %v7864_v42 = vsel %vm18509_vm10, %v7797_v7, %v7863_v55  ;;  %v7867_v48 = vsel %vm18509_vm10, %v7804_v20, %v7866_v10  ;;  %v7901_v12 = vpack.c.bf16 %v19422_v37, %v19403_v0  ;;  %v8172_v6 = vrot.slane %v18664_v40, 7 }
 0x5e4   : > { %7853 = vst [vmem:[#allocation4 + $0x88] sm:$0x4] %v7852_v4  ;;  %7856 = vst [vmem:[#allocation4 + $0x94] sm:$0x4] %v7855_v52  ;;  %v14277_v16 = vpack.c.bf16 %v19422_v37, %v19422_v37  ;;  %v8170_v31 = vsel %vm3219_vm6, %v8169_v61, %v19425_v27  ;;  %v8455_v14 = vsel %vm21483_vm9, %v8454_v57, %v19428_v36  ;;  %v8174_v15 = vrot.slane %v18684_v34, 6 }
 0x5e5   : > { %7859 = vst [vmem:[#allocation4 + $0xa0] sm:$0x4] %v7858_v35  ;;  %7862 = vst [vmem:[#allocation4 + $0xac] sm:$0x4] %v7861_v13  ;;  %v7910_v0 = vrot.slane %v7901_v12, %v17871_v11  ;;  %v8457_v61 = vsel %vm3213_vm1, %v8456_v22, %v8455_v14  ;;  %v8175_v58 = vrot.slane %v18846_v63, 5  ;;  %v8177_v33 = vrot.slane %v18859_v50, 4 }
 0x5e6   : > { %7865 = vst [vmem:[#allocation4 + $0xb8] sm:$0x4] %v7864_v42  ;;  %7868 = vst [vmem:[#allocation4 + $0xc4] sm:$0x4] %v7867_v48  ;;  %v7917_v37 = vrot.slane %v14277_v16, %v17871_v11  ;;  %v19510_v57 = vsel %vm21485_vm13, %v8458_v9, %v8457_v61  ;;  %v8112_v22 = vld [vmem:[#allocation4 + $0x10] sm:$0x8] }
 0x5e7   : > { %vm21484_vm10 = vmmov %vm21476_vm15  ;;  %v7918_v27 = vcombine.high %v7910_v0, %v7910_v0  ;;  %v7926_v32 = vrot.slane %v7910_v0, %v17871_v11 }
 0x5e8   : > { %v19502_v2 = vsel %vm21484_vm10, %v18661_v17, %v8170_v31  ;;  %v7919_v36 = vcombine.high %v7917_v37, %v7917_v37  ;;  %v7933_v43 = vrot.slane %v7917_v37, %v17871_v11  ;;  %vm21489_vm15 = vmmov %vm21483_vm9 }
 0x5e9   : > { %v7940_v30 = vrot.slane %v7918_v27, %v17871_v11  ;;  %v7948_v5 = vcombine.high %v7926_v32, %v7926_v32  ;;  %v7953_v20 = vunpack.i.h.s16 %v7926_v32  ;;  %v14278_v28 = vpack.i.b16 %v7926_v32, %v7926_v32  ;;  %v8115_v27 = vld [vmem:[#allocation4 + $0x1c] sm:$0x8]  ;;  %v8124_v32 = vld [vmem:[#allocation4 + $0x40] sm:$0x8]  ;;  %vm21492_vm11 = vmmov %vm21484_vm10 }
 0x5ea   : > { %v7947_v24 = vrot.slane %v7919_v36, %v17871_v11  ;;  %v7949_v7 = vcombine.high %v7933_v43, %v7933_v43  ;;  %v7961_v62 = vunpack.i.h.s16 %v7933_v43  ;;  %v14282_v18 = vpack.i.b16 %v7933_v43, %v7933_v43  ;;  %v8118_v36 = vld [vmem:[#allocation4 + $0x28] sm:$0x8]  ;;  %v8136_v43 = vld [vmem:[#allocation4 + $0x70] sm:$0x8]  ;;  %vm21493_vm8 = vmmov %vm21484_vm10 }
 0x5eb   : > { %v7950_v23 = vcombine.high %v7940_v30, %v7940_v30  ;;  %v7955_v3 = vunpack.i.h.s16 %v7940_v30  ;;  %v7957_v26 = vunpack.i.h.s16 %v7948_v5  ;;  %v7969_v49 = vpack.i.b16 %v7953_v20, %v7953_v20  ;;  %v8121_v20 = vld [vmem:[#allocation4 + $0x34] sm:$0x8]  ;;  %vm21496_vm9 = vmmov %vm21487_vm12 }
 0x5ec   : > { %v7951_v45 = vcombine.high %v7947_v24, %v7947_v24  ;;  %v7963_v21 = vunpack.i.h.s16 %v7947_v24  ;;  %v7965_v51 = vunpack.i.h.s16 %v7949_v7  ;;  %v14279_v55 = vpack.i.b16 %v7940_v30, %v7940_v30  ;;  %vm21498_vm10 = vmmov %vm21489_vm15 }
 0x5ed   : > { %v7959_v10 = vunpack.i.h.s16 %v7950_v23  ;;  %v7971_v54 = vpack.i.b16 %v7955_v3, %v7955_v3  ;;  %v14280_v29 = vpack.i.b16 %v7948_v5, %v7948_v5  ;;  %v7973_v25 = vpack.i.b16 %v7957_v26, %v7957_v26  ;;  %vm21503_vm13 = vmmov %vm21488_vm2 }
 0x5ee   : > { %v7967_v53 = vunpack.i.h.s16 %v7951_v45  ;;  %v14281_v8 = vpack.i.b16 %v7950_v23, %v7950_v23  ;;  %v7977_v4 = vpack.i.b16 %v7961_v62, %v7961_v62  ;;  %v14283_v52 = vpack.i.b16 %v7947_v24, %v7947_v24  ;;  %v8127_v62 = vld [vmem:[#allocation4 + $0x4c] sm:$0x8] }
 0x5ef   : > { %v7975_v35 = vpack.i.b16 %v7959_v10, %v7959_v10  ;;  %v7979_v13 = vpack.i.b16 %v7963_v21, %v7963_v21  ;;  %v14284_v42 = vpack.i.b16 %v7949_v7, %v7949_v7  ;;  %v7981_v48 = vpack.i.b16 %v7965_v51, %v7965_v51  ;;  %v8133_v21 = vld [vmem:[#allocation4 + $0x64] sm:$0x8]  ;;  %v8139_v51 = vld [vmem:[#allocation4 + $0x7c] sm:$0x8] }
 0x5f0   : > { %v14285_v12 = vpack.i.b16 %v7951_v45, %v7951_v45  ;;  %v19517_v16 = vpack.i.b16 %v7967_v53, %v7967_v53  ;;  %v7990_v31 = vrot.slane %v14278_v28, %v17917_v59  ;;  %v7997_v14 = vrot.slane %v7969_v49, %v17917_v59  ;;  %v8130_v28 = vld [vmem:[#allocation4 + $0x58] sm:$0x8]  ;;  %v8142_v49 = vld [vmem:[#allocation4 + $0x88] sm:$0x8] }
 0x5f1   : > { %v8004_v9 = vrot.slane %v14279_v55, %v17917_v59  ;;  %v8011_v0 = vrot.slane %v7971_v54, %v17917_v59  ;;  %v8018_v37 = vrot.slane %v14280_v29, %v17917_v59  ;;  %v8025_v61 = vrot.slane %v7973_v25, %v17917_v59  ;;  %v8145_v29 = vld [vmem:[#allocation4 + $0x94] sm:$0x8]  ;;  %v8148_v25 = vld [vmem:[#allocation4 + $0xa0] sm:$0x8] }
 0x5f2   : > { %v8032_v30 = vrot.slane %v14281_v8, %v17917_v59  ;;  %v8039_v24 = vrot.slane %v7975_v35, %v17917_v59  ;;  %v8046_v5 = vrot.slane %v14282_v18, %v17917_v59  ;;  %v8053_v7 = vrot.slane %v7977_v4, %v17917_v59  ;;  %v8151_v8 = vld [vmem:[#allocation4 + $0xac] sm:$0x8] }
 0x5f3   : > { %v8060_v23 = vrot.slane %v14283_v52, %v17917_v59  ;;  %v8067_v45 = vrot.slane %v7979_v13, %v17917_v59  ;;  %v8074_v3 = vrot.slane %v14284_v42, %v17917_v59  ;;  %v8081_v26 = vrot.slane %v7981_v48, %v17917_v59  ;;  %v8154_v42 = vld [vmem:[#allocation4 + $0xb8] sm:$0x8]  ;;  %v8157_v48 = vld [vmem:[#allocation4 + $0xc4] sm:$0x8] }
 0x5f4   : > { %v8088_v55 = vrot.slane %v14285_v12, %v17917_v59  ;;  %v8095_v18 = vrot.slane %v19517_v16, %v17917_v59  ;;  %v8113_v53 = vsel %vm18588_vm5, %v7990_v31, %v8112_v22  ;;  %v8116_v54 = vsel %vm18588_vm5, %v7997_v14, %v8115_v27 }
 0x5f5   : > { %8114 = vst [vmem:[#allocation4 + $0x10] sm:$0x8] %v8113_v53  ;;  %8117 = vst [vmem:[#allocation4 + $0x1c] sm:$0x8] %v8116_v54  ;;  %v8119_v4 = vsel %vm18588_vm5, %v8004_v9, %v8118_v36  ;;  %v8122_v52 = vsel %vm18588_vm5, %v8011_v0, %v8121_v20  ;;  %v8125_v35 = vsel %vm18588_vm5, %v8018_v37, %v8124_v32  ;;  %v8181_v20 = vrot.slane %v18870_v46, 2 }
 0x5f6   : > { %v8128_v13 = vsel %vm18588_vm5, %v8025_v61, %v8127_v62  ;;  %8120 = vst [vmem:[#allocation4 + $0x28] sm:$0x8] %v8119_v4  ;;  %8123 = vst [vmem:[#allocation4 + $0x34] sm:$0x8] %v8122_v52  ;;  %v8131_v12 = vsel %vm18588_vm5, %v8032_v30, %v8130_v28  ;;  %v8134_v16 = vsel %vm18588_vm5, %v8039_v24, %v8133_v21  ;;  %v582_v61 = vld [vmem:[#allocation4 + $0x14] sm:$0x1] }
 0x5f7   : > { %8126 = vst [vmem:[#allocation4 + $0x40] sm:$0x8] %v8125_v35  ;;  %8129 = vst [vmem:[#allocation4 + $0x4c] sm:$0x8] %v8128_v13  ;;  %v8137_v31 = vsel %vm18588_vm5, %v8046_v5, %v8136_v43  ;;  %v8140_v14 = vsel %vm18588_vm5, %v8053_v7, %v8139_v51  ;;  %v8143_v22 = vsel %vm18588_vm5, %v8060_v23, %v8142_v49  ;;  %v585_v43 = vld [vmem:[#allocation4 + $0x20] sm:$0x1] }
 0x5f8   : > { %8132 = vst [vmem:[#allocation4 + $0x58] sm:$0x8] %v8131_v12  ;;  %8135 = vst [vmem:[#allocation4 + $0x64] sm:$0x8] %v8134_v16  ;;  %v8146_v9 = vsel %vm18588_vm5, %v8067_v45, %v8145_v29  ;;  %v8149_v0 = vsel %vm18588_vm5, %v8074_v3, %v8148_v25  ;;  %v8152_v37 = vsel %vm18588_vm5, %v8081_v26, %v8151_v8  ;;  %v588_v30 = vld [vmem:[#allocation4 + $0x2c] sm:$0x1] }
 0x5f9   : > { %8138 = vst [vmem:[#allocation4 + $0x70] sm:$0x8] %v8137_v31  ;;  %8141 = vst [vmem:[#allocation4 + $0x7c] sm:$0x8] %v8140_v14  ;;  %v8155_v27 = vsel %vm18588_vm5, %v8088_v55, %v8154_v42  ;;  %v8158_v36 = vsel %vm18588_vm5, %v8095_v18, %v8157_v48  ;;  %v8176_v32 = vsel %vm21487_vm12, %v8175_v58, %v8174_v15  ;;  %v8179_v7 = vrot.slane %v18865_v1, 3  ;;  %v21491_v26 = vld [vmem:[#allocation32_spill] sm:$0xff] }
 0x5fa   : > { %8144 = vst [vmem:[#allocation4 + $0x88] sm:$0x8] %v8143_v22  ;;  %8147 = vst [vmem:[#allocation4 + $0x94] sm:$0x8] %v8146_v9  ;;  %v8173_v24 = vsel %vm21488_vm2, %v8172_v6, %v19502_v2  ;;  %v8178_v5 = vsel %vm21489_vm15, %v8177_v33, %v8176_v32  ;;  %v591_v62 = vld [vmem:[#allocation4 + $0x38] sm:$0x1]  ;;  %v8461_v15 = vsel %vm3219_vm6, %v8460_v47, %v19510_v57 }
 0x5fb   : > { %8150 = vst [vmem:[#allocation4 + $0xa0] sm:$0x8] %v8149_v0  ;;  %8153 = vst [vmem:[#allocation4 + $0xac] sm:$0x8] %v8152_v37  ;;  %v594_v28 = vld [vmem:[#allocation4 + $0x44] sm:$0x1]  ;;  %v8180_v6 = vsel %vm3213_vm1, %v8179_v7, %v8178_v5  ;;  %v8190_v21 = vadd.f32 %v8173_v24, %v21491_v26 }
 0x5fc   : > { %8156 = vst [vmem:[#allocation4 + $0xb8] sm:$0x8] %v8155_v27  ;;  %8159 = vst [vmem:[#allocation4 + $0xc4] sm:$0x8] %v8158_v36  ;;  %v8462_v58 = vrot.slane %v18661_v17, 1  ;;  %v8183_v23 = vrot.slane %v18873_v19, 1 }
 0x5fd   : > { %v583_v2 = vsel %vm17082_vm4, 0, %v582_v61  ;;  %v8186_v33 = vrot.slane %v18880_v44, 7  ;;  %v586_v45 = vsel %vm17082_vm4, 0, %v585_v43  ;;  %v589_v38 = vsel %vm17082_vm4, 0, %v588_v30  ;;  %vm21490_vm5 = vmmov %vm21480_vm7  ;;  %v597_v55 = vld [vmem:[#allocation4 + $0x50] sm:$0x1] }
 0x5fe   : > { %584 = vst [vmem:[#allocation4 + $0x14] sm:$0x1] %v583_v2  ;;  %v8182_v47 = vsel %vm21490_vm5, %v8181_v20, %v8180_v6  ;;  %587 = vst [vmem:[#allocation4 + $0x20] sm:$0x1] %v586_v45  ;;  %v592_v17 = vsel %vm17082_vm4, 0, %v591_v62  ;;  %v595_v57 = vsel %vm17082_vm4, 0, %v594_v28  ;;  %v8463_v51 = vsel %vm21492_vm11, %v8462_v58, %v8461_v15 }
 0x5ff   : > { %590 = vst [vmem:[#allocation4 + $0x2c] sm:$0x1] %v589_v38  ;;  %v8184_v3 = vsel %vm3219_vm6, %v8183_v23, %v8182_v47  ;;  %593 = vst [vmem:[#allocation4 + $0x38] sm:$0x1] %v592_v17  ;;  %v600_v18 = vld [vmem:[#allocation4 + $0x5c] sm:$0x1]  ;;  %v19610_v35 = vsel %vm21495_vm14, %v18664_v40, %v8463_v51 }
 0x600   : > { %596 = vst [vmem:[#allocation4 + $0x44] sm:$0x1] %v595_v57  ;;  %v8185_v49 = vsel %vm21493_vm8, %v18877_v41, %v8184_v3  ;;  %vm21494_vm7 = vmmov %vm21488_vm2  ;;  %v603_v53 = vld [vmem:[#allocation4 + $0x68] sm:$0x1]  ;;  %v606_v54 = vld [vmem:[#allocation4 + $0x74] sm:$0x1] }
 0x601   : > { %v8187_v10 = vsel %vm21494_vm7, %v8186_v33, %v8185_v49  ;;  %v609_v29 = vld [vmem:[#allocation4 + $0x80] sm:$0x1]  ;;  %v612_v8 = vld [vmem:[#allocation4 + $0x8c] sm:$0x1]  ;;  %v615_v4 = vld [vmem:[#allocation4 + $0x98] sm:$0x1] }
 0x602   : > { %v8191_v25 = vadd.f32 %v8187_v10, %v19005_v60  ;;  %v618_v52 = vld [vmem:[#allocation4 + $0xa4] sm:$0x1]  ;;  %v598_v13 = vsel %vm17082_vm4, 0, %v597_v55  ;;  %v601_v42 = vsel %vm17082_vm4, 0, %v600_v18  ;;  %v621_v48 = vld [vmem:[#allocation4 + $0xb0] sm:$0x1] }
 0x603   : > { %v624_v12 = vld [vmem:[#allocation4 + $0xbc] sm:$0x1]  ;;  %599 = vst [vmem:[#allocation4 + $0x50] sm:$0x1] %v598_v13  ;;  %602 = vst [vmem:[#allocation4 + $0x5c] sm:$0x1] %v601_v42 }
 0x604   : > { %v8192_v16 = vpack.c.bf16 %v8191_v25, %v8190_v21  ;;  %v14286_v31 = vpack.c.bf16 %v8191_v25, %v8191_v25  ;;  %v604_v60 = vsel %vm17082_vm4, 0, %v603_v53  ;;  %v607_v14 = vsel %vm17082_vm4, 0, %v606_v54  ;;  %v627_v40 = vld [vmem:[#allocation4 + $0xc8] sm:$0x1] }
 0x605   : > { %605 = vst [vmem:[#allocation4 + $0x68] sm:$0x1] %v604_v60  ;;  %608 = vst [vmem:[#allocation4 + $0x74] sm:$0x1] %v607_v14  ;;  %v610_v22 = vsel %vm17082_vm4, 0, %v609_v29  ;;  %v613_v9 = vsel %vm17082_vm4, 0, %v612_v8 }
 0x606   : > { %v616_v0 = vsel %vm17082_vm4, 0, %v615_v4  ;;  %v619_v37 = vsel %vm17082_vm4, 0, %v618_v52  ;;  %v8201_v61 = vrot.slane %v8192_v16, %v17871_v11  ;;  %v8208_v27 = vrot.slane %v14286_v31, %v17871_v11  ;;  %611 = vst [vmem:[#allocation4 + $0x80] sm:$0x1] %v610_v22  ;;  %614 = vst [vmem:[#allocation4 + $0x8c] sm:$0x1] %v613_v9 }
 0x607   : > { %617 = vst [vmem:[#allocation4 + $0x98] sm:$0x1] %v616_v0  ;;  %620 = vst [vmem:[#allocation4 + $0xa4] sm:$0x1] %v619_v37  ;;  %v622_v36 = vsel %vm17082_vm4, 0, %v621_v48  ;;  %v625_v32 = vsel %vm17082_vm4, 0, %v624_v12 }
 0x608   : > { %623 = vst [vmem:[#allocation4 + $0xb0] sm:$0x1] %v622_v36  ;;  %626 = vst [vmem:[#allocation4 + $0xbc] sm:$0x1] %v625_v32  ;;  %v628_v43 = vsel %vm17082_vm4, 0, %v627_v40  ;;  %v8465_v30 = vrot.slane %v18684_v34, 7  ;;  %v8209_v7 = vcombine.high %v8201_v61, %v8201_v61  ;;  %v8210_v20 = vcombine.high %v8208_v27, %v8208_v27 }
 0x609   : > { %v8466_v24 = vrot.slane %v18846_v63, 6  ;;  %v8468_v5 = vrot.slane %v18859_v50, 5  ;;  %v8217_v62 = vrot.slane %v8201_v61, %v17871_v11  ;;  %v8224_v28 = vrot.slane %v8208_v27, %v17871_v11  ;;  %629 = vst [vmem:[#allocation4 + $0xc8] sm:$0x1] %v628_v43  ;;  %v8403_v40 = vld [vmem:[#allocation4 + $0x10] sm:$0x8] }
 0x60a   : > { %v8470_v58 = vrot.slane %v18865_v1, 4  ;;  %v8472_v23 = vrot.slane %v18870_v46, 3  ;;  %v8474_v34 = vrot.slane %v18873_v19, 2  ;;  %v8231_v63 = vrot.slane %v8209_v7, %v17871_v11  ;;  %v8406_v22 = vld [vmem:[#allocation4 + $0x1c] sm:$0x8]  ;;  %v21501_v46 = vld [vmem:[#allocation34_spill] sm:$0xff] }
 0x60b   : > { %v19642_v15 = vsel %vm21496_vm9, %v8466_v24, %v8465_v30  ;;  %v8238_v2 = vrot.slane %v8210_v20, %v17871_v11  ;;  %v8239_v6 = vcombine.high %v8217_v62, %v8217_v62  ;;  %v8240_v33 = vcombine.high %v8224_v28, %v8224_v28  ;;  %v8409_v27 = vld [vmem:[#allocation4 + $0x28] sm:$0x8]  ;;  %v8412_v36 = vld [vmem:[#allocation4 + $0x34] sm:$0x8]  ;;  %v8415_v32 = vld [vmem:[#allocation4 + $0x40] sm:$0x8] }
 0x60c   : > { %v8244_v45 = vunpack.i.h.s16 %v8217_v62  ;;  %v8252_v38 = vunpack.i.h.s16 %v8224_v28  ;;  %v14287_v47 = vpack.i.b16 %v8217_v62, %v8217_v62  ;;  %v14291_v17 = vpack.i.b16 %v8224_v28, %v8224_v28  ;;  %v8418_v20 = vld [vmem:[#allocation4 + $0x4c] sm:$0x8]  ;;  %v8421_v62 = vld [vmem:[#allocation4 + $0x58] sm:$0x8]  ;;  %v8424_v28 = vld [vmem:[#allocation4 + $0x64] sm:$0x8] }
 0x60d   : > { %v8241_v57 = vcombine.high %v8231_v63, %v8231_v63  ;;  %v8242_v3 = vcombine.high %v8238_v2, %v8238_v2  ;;  %v8246_v26 = vunpack.i.h.s16 %v8231_v63  ;;  %v8248_v21 = vunpack.i.h.s16 %v8239_v6 }
 0x60e   : > { %v8254_v51 = vunpack.i.h.s16 %v8238_v2  ;;  %v8256_v49 = vunpack.i.h.s16 %v8240_v33  ;;  %v8260_v55 = vpack.i.b16 %v8244_v45, %v8244_v45  ;;  %v14288_v18 = vpack.i.b16 %v8231_v63, %v8231_v63  ;;  %v8427_v45 = vld [vmem:[#allocation4 + $0x70] sm:$0x8] }
 0x60f   : > { %v8250_v10 = vunpack.i.h.s16 %v8241_v57  ;;  %v8258_v53 = vunpack.i.h.s16 %v8242_v3  ;;  %v8262_v54 = vpack.i.b16 %v8246_v26, %v8246_v26  ;;  %v14289_v29 = vpack.i.b16 %v8239_v6, %v8239_v6 }
 0x610   : > { %v8264_v25 = vpack.i.b16 %v8248_v21, %v8248_v21  ;;  %v14290_v8 = vpack.i.b16 %v8241_v57, %v8241_v57  ;;  %v8268_v4 = vpack.i.b16 %v8252_v38, %v8252_v38  ;;  %v14292_v52 = vpack.i.b16 %v8238_v2, %v8238_v2  ;;  %v8430_v38 = vld [vmem:[#allocation4 + $0x7c] sm:$0x8] }
 0x611   : > { %v8266_v13 = vpack.i.b16 %v8250_v10, %v8250_v10  ;;  %v19649_v42 = vpack.i.b16 %v8254_v51, %v8254_v51  ;;  %v14293_v48 = vpack.i.b16 %v8240_v33, %v8240_v33  ;;  %v19651_v12 = vpack.i.b16 %v8256_v49, %v8256_v49  ;;  %v8436_v51 = vld [vmem:[#allocation4 + $0x94] sm:$0x8]  ;;  %v8439_v49 = vld [vmem:[#allocation4 + $0xa0] sm:$0x8] }
 0x612   : > { %v14294_v16 = vpack.i.b16 %v8242_v3, %v8242_v3  ;;  %v19653_v31 = vpack.i.b16 %v8258_v53, %v8258_v53  ;;  %v8281_v60 = vrot.slane %v14287_v47, %v17917_v59  ;;  %v8288_v14 = vrot.slane %v8260_v55, %v17917_v59  ;;  %v8433_v47 = vld [vmem:[#allocation4 + $0x88] sm:$0x8]  ;;  %v8442_v55 = vld [vmem:[#allocation4 + $0xac] sm:$0x8] }
 0x613   : > { %v8295_v9 = vrot.slane %v14288_v18, %v17917_v59  ;;  %v8302_v0 = vrot.slane %v8262_v54, %v17917_v59  ;;  %v8309_v37 = vrot.slane %v14289_v29, %v17917_v59  ;;  %v8316_v61 = vrot.slane %v8264_v25, %v17917_v59  ;;  %v8445_v29 = vld [vmem:[#allocation4 + $0xb8] sm:$0x8]  ;;  %v8448_v25 = vld [vmem:[#allocation4 + $0xc4] sm:$0x8] }
 0x614   : > { %v8323_v43 = vrot.slane %v14290_v8, %v17917_v59  ;;  %v8330_v30 = vrot.slane %v8266_v13, %v17917_v59  ;;  %v8337_v24 = vrot.slane %v14291_v17, %v17917_v59  ;;  %v8344_v7 = vrot.slane %v8268_v4, %v17917_v59 }
 0x615   : > { %v8351_v63 = vrot.slane %v14292_v52, %v17917_v59  ;;  %v8358_v2 = vrot.slane %v19649_v42, %v17917_v59  ;;  %v8365_v6 = vrot.slane %v14293_v48, %v17917_v59  ;;  %v8372_v33 = vrot.slane %v19651_v12, %v17917_v59  ;;  %v525_v42 = vld [vmem:[#allocation4] sm:$0x1]  ;;  %v579_v48 = vld [vmem:[#allocation4 + $0x8] sm:$0x1]  ;;  %v19694_v12 = vld [vmem:[#allocation4 + $0x4] sm:$0xf] }
 0x616   : > { %v8379_v17 = vrot.slane %v14294_v16, %v17917_v59  ;;  %v8386_v57 = vrot.slane %v19653_v31, %v17917_v59  ;;  %v8404_v26 = vsel %vm18710_vm0, %v8281_v60, %v8403_v40  ;;  %v8407_v21 = vsel %vm18710_vm0, %v8288_v14, %v8406_v22  ;;  %v19704_v40 = vld [vmem:[#allocation4 + $0xc] sm:$0xf] }
 0x617   : > { %8405 = vst [vmem:[#allocation4 + $0x10] sm:$0x8] %v8404_v26  ;;  %8408 = vst [vmem:[#allocation4 + $0x1c] sm:$0x8] %v8407_v21  ;;  %v8410_v18 = vsel %vm18710_vm0, %v8295_v9, %v8409_v27  ;;  %v8413_v10 = vsel %vm18710_vm0, %v8302_v0, %v8412_v36  ;;  %v8416_v53 = vsel %vm18710_vm0, %v8309_v37, %v8415_v32  ;;  %v8476_v37 = vrot.slane %v18877_v41, 1 }
 0x618   : > { %v8419_v54 = vsel %vm18710_vm0, %v8316_v61, %v8418_v20  ;;  %8411 = vst [vmem:[#allocation4 + $0x28] sm:$0x8] %v8410_v18  ;;  %8414 = vst [vmem:[#allocation4 + $0x34] sm:$0x8] %v8413_v10  ;;  %v8422_v8 = vsel %vm18710_vm0, %v8323_v43, %v8421_v62  ;;  %v8425_v4 = vsel %vm18710_vm0, %v8330_v30, %v8424_v28  ;;  %v8746_v61 = vld [vmem:[#allocation4 + $0x18] sm:$0xf] }
 0x619   : > { %8417 = vst [vmem:[#allocation4 + $0x40] sm:$0x8] %v8416_v53  ;;  %8420 = vst [vmem:[#allocation4 + $0x4c] sm:$0x8] %v8419_v54  ;;  %v8428_v52 = vsel %vm18710_vm0, %v8337_v24, %v8427_v45  ;;  %v8431_v13 = vsel %vm18710_vm0, %v8344_v7, %v8430_v38  ;;  %v8434_v16 = vsel %vm18710_vm0, %v8351_v63, %v8433_v47  ;;  %v526_v32 = vsel %vm17077_vm3, 0, %v525_v42  ;;  %v16401_v20 = vld [vmem:[#allocation11 + $0x108] sm:$0xff]  }
 0x61a   : > { %8423 = vst [vmem:[#allocation4 + $0x58] sm:$0x8] %v8422_v8  ;;  %8426 = vst [vmem:[#allocation4 + $0x64] sm:$0x8] %v8425_v4  ;;  %v8437_v31 = vsel %vm18710_vm0, %v8358_v2, %v8436_v51  ;;  %v8440_v60 = vsel %vm18710_vm0, %v8365_v6, %v8439_v49  ;;  %v8443_v14 = vsel %vm18710_vm0, %v8372_v33, %v8442_v55  ;;  %v580_v43 = vsel %vm17082_vm4, 0, %v579_v48  ;;  %v16404_v18 = vld [vmem:[#allocation11 + $0x110] sm:$0xff]  }
 0x61b   : > { %8429 = vst [vmem:[#allocation4 + $0x70] sm:$0x8] %v8428_v52  ;;  %8432 = vst [vmem:[#allocation4 + $0x7c] sm:$0x8] %v8431_v13  ;;  %v8446_v22 = vsel %vm18710_vm0, %v8379_v17, %v8445_v29  ;;  %v8449_v9 = vsel %vm18710_vm0, %v8386_v57, %v8448_v25  ;;  %v8469_v0 = vsel %vm21498_vm10, %v8468_v5, %v19642_v15  ;;  %v8816_v30 = vshll.u32 %v19694_v12, 16  ;;  %v21504_v48 = vld [vmem:[#allocation26_spill] sm:$0xff] }
 0x61c   : > { %8435 = vst [vmem:[#allocation4 + $0x88] sm:$0x8] %v8434_v16  ;;  %8438 = vst [vmem:[#allocation4 + $0x94] sm:$0x8] %v8437_v31  ;;  %v8471_v27 = vsel %vm3213_vm1, %v8470_v58, %v8469_v0  ;;  %v8820_v41 = vshrl.u32 %v19694_v12, 16  ;;  %v8831_v1 = vshrl.u32 %v19704_v40, 16 }
 0x61d   : > { %8441 = vst [vmem:[#allocation4 + $0xa0] sm:$0x8] %v8440_v60  ;;  %8444 = vst [vmem:[#allocation4 + $0xac] sm:$0x8] %v8443_v14  ;;  %v8834_v5 = vshll.u32 %v19704_v40, 16  ;;  %v19732_v58 = vrot.slane %v8816_v30, 5 }
 0x61e   : > { %8447 = vst [vmem:[#allocation4 + $0xb8] sm:$0x8] %v8446_v22  ;;  %8450 = vst [vmem:[#allocation4 + $0xc4] sm:$0x8] %v8449_v9  ;;  %v8855_v24 = vshrl.u32 %v8746_v61, 16  ;;  %v8858_v7 = vshll.u32 %v8746_v61, 16 }
 0x61f   : > { %vm21500_vm0 = vmmov %vm21490_vm5  ;;  %527 = vst [vmem:[#allocation4] sm:$0x1] %v526_v32  ;;  %v16393_v28 = vld [vmem:[#allocation4 + $0xc] sm:$0xff]   ;;  %v8822_v63 = vrot.slane %v8820_v41, 4  ;;  %v16395_v6 = vld [vmem:[#allocation4 + $0x18] sm:$0xff]   ;;  %v8833_v19 = vrot.slane %v8831_v1, 4 }
 0x620   : > { %v8473_v50 = vsel %vm21500_vm0, %v8472_v23, %v8471_v27  ;;  %581 = vst [vmem:[#allocation4 + $0x8] sm:$0x1] %v580_v43  ;;  %v8481_v23 = vadd.f32 %v19610_v35, %v21501_v46  ;;  %vm21502_vm1 = vmmov %vm21493_vm8  ;;  %v16396_v33 = vld [vmem:[#allocation4 + $0x24] sm:$0xff]   ;;  %v8836_v45 = vrot.slane %v8834_v5, 5  ;;  %15604 = vmatprep.mubr.bf16.mxu1 %v16393_v28  ;;  %v19741_v47 = vld [vmem:[#allocation4 + $0x10] sm:$0xf] }
 0x621   : > { %v8475_v15 = vsel %vm3219_vm6, %v8474_v34, %v8473_v50  ;;  %v8823_v38 = vor.u32 %v8822_v63, %v19732_v58  ;;  %v19743_v17 = vrot.slane %v8855_v24, 4  ;;  %15605 = vmatmul.mubr.bf16.vlgmr.msra.gmra.mrb[60].mxu1 %v16395_v6  ;;  %v8840_v57 = vshll.u32 %v19741_v47, 16  ;;  %v16399_v30 = vld [vmem:[#allocation4 + $0x30] sm:$0xff]  }
 0x622   : > { %v8477_v62 = vsel %vm21502_vm1, %v8476_v37, %v8475_v15  ;;  %v8837_v35 = vor.u32 %v8836_v45, %v8833_v19  ;;  %v8844_v3 = vshrl.u32 %v19741_v47, 16  ;;  %v19749_v26 = vrot.slane %v8858_v7, 5  ;;  %15608 = vmatprep.mubr.bf16.mxu1 %v16396_v33  ;;  %v16407_v37 = vld [vmem:[#allocation11 + $0x118] sm:$0xff]   ;;  %v16400_v15 = vld [vmem:[#allocation4 + $0x3c] sm:$0xff]  }
 0x623   : > { %v8478_v2 = vsel %vm21503_vm13, %v18880_v44, %v8477_v62  ;;  %v19747_v44 = vld [vmem:[#allocation4 + $0x1c] sm:$0xf]  ;;  %v19751_v49 = vrot.slane %v8823_v38, 4  ;;  %v19758_v29 = vrot.slane %v8840_v57, 5  ;;  %vm21505_vm6 = vnez %v21504_v48 }
 0x624   : > { %v8482_v34 = vadd.f32 %v8478_v2, %v19052_v56  ;;  %v16511_v56 = vld [vmem:[#allocation11 + $0x100] sm:$0xff]   ;;  %v8864_v55 = vshll.u32 %v19747_v44, 16  ;;  %v19756_v54 = vrot.slane %v8837_v35, 4  ;;  %v8861_v25 = vor.u32 %v19749_v26, %v19743_v17  ;;  %v16406_v26 = vld [vmem:[#allocation4 + $0x6c] sm:$0xff]  }
 0x625   : > { %15637 = vmatpush3.bf16.msra.mxu1 %v16511_v56  ;;  %v19770_v31 = vrot.slane %v8844_v3, 4  ;;  %v16410_v19 = vld [vmem:[#allocation11 + $0x120] sm:$0xff]  }
 0x626   : > { %v8483_v21 = vpack.c.bf16 %v8482_v34, %v8481_v23  ;;  %v14295_v51 = vpack.c.bf16 %v8482_v34, %v8482_v34  ;;  %v19754_v10 = vld [vmem:[#allocation4] sm:$0xf]  ;;  %15638 = vmatprep.subr.bf16.mxu1 %v16401_v20  ;;  %v8843_v16 = vsel %vm21505_vm6, %v19756_v54, %v19758_v29 }
 0x627   : > { %v8790_v53 = vld [vmem:[#allocation4 + $0x8] sm:$0x1]  ;;  %v8807_v52 = vshrl.u32 %v19754_v10, 16  ;;  %v8810_v13 = vshll.u32 %v19754_v10, 16  ;;  %v8847_v43 = vor.u32 %v19770_v31, %v19758_v29 }
 0x628   : > { %v8492_v8 = vrot.slane %v8483_v21, %v17871_v11  ;;  %v8499_v4 = vrot.slane %v14295_v51, %v17871_v11  ;;  %v8826_v42 = vshll.u32 %v8790_v53, 16 }
 0x629   : > { %15639 = vmatpush3.bf16.msra.mxu1 %v16401_v20  ;;  %v19778_v61 = vrot.slane %v8807_v52, 4  ;;  %v19780_v27 = vrot.slane %v8810_v13, 5  ;;  %v8697_v52 = vld [vmem:[#allocation4 + $0x20] sm:$0x1] }
 0x62a   : > { %v8500_v14 = vcombine.high %v8492_v8, %v8492_v8  ;;  %v8501_v22 = vcombine.high %v8499_v4, %v8499_v4  ;;  %v8508_v9 = vrot.slane %v8492_v8, %v17871_v11  ;;  %v19776_v0 = vrot.slane %v8499_v4, %v17871_v11  ;;  %15640 = vmatprep.subr.bf16.mxu1 %v16404_v18  ;;  %v8694_v4 = vld [vmem:[#allocation4 + $0x14] sm:$0x1]  ;;  %v19801_v13 = vld [vmem:[#allocation11 + $0x128] sm:$0xff]  }
 0x62b   : > { %v19782_v32 = vrot.slane %v8826_v42, 5  ;;  %15609 = vmatmul.mubr.bf16.gmra.mrb[64].mxu1 %v16399_v30  ;;  %v16402_v30 = vld [vmem:[#allocation4 + $0x48] sm:$0xff]  }
 0x62c   : > { %v8522_v50 = vrot.slane %v8500_v14, %v17871_v11  ;;  %v8529_v41 = vrot.slane %v8501_v22, %v17871_v11  ;;  %v8530_v1 = vcombine.high %v8508_v9, %v8508_v9  ;;  %v8531_v5 = vcombine.high %v19776_v0, %v19776_v0  ;;  %15612 = vmatprep.mubr.bf16.mxu1 %v16400_v15  ;;  %v8706_v15 = vld [vmem:[#allocation4 + $0x44] sm:$0x1] }
 0x62d   : > { %v8535_v24 = vunpack.i.h.s16 %v8508_v9  ;;  %v8543_v7 = vunpack.i.h.s16 %v19776_v0  ;;  %v14296_v20 = vpack.i.b16 %v8508_v9, %v8508_v9  ;;  %v14300_v46 = vpack.i.b16 %v19776_v0, %v19776_v0  ;;  %15641 = vmatpush3.bf16.msra.mxu1 %v16404_v18  ;;  %v8700_v0 = vld [vmem:[#allocation4 + $0x2c] sm:$0x1] }
 0x62e   : > { %v8532_v23 = vcombine.high %v8522_v50, %v8522_v50  ;;  %v8533_v62 = vcombine.high %v8529_v41, %v8529_v41  ;;  %v8537_v28 = vunpack.i.h.s16 %v8522_v50  ;;  %v8539_v63 = vunpack.i.h.s16 %v8530_v1  ;;  %15642 = vmatprep.subr.bf16.mxu1 %v16407_v37 }
 0x62f   : > { %v8545_v11 = vunpack.i.h.s16 %v8529_v41  ;;  %v8547_v2 = vunpack.i.h.s16 %v8531_v5  ;;  %v8551_v6 = vpack.i.b16 %v8535_v24, %v8535_v24  ;;  %v14297_v33 = vpack.i.b16 %v8522_v50, %v8522_v50  ;;  %v16403_v24 = vld [vmem:[#allocation4 + $0x54] sm:$0xff]  }
 0x630   : > { %v8541_v45 = vunpack.i.h.s16 %v8532_v23  ;;  %v8549_v34 = vunpack.i.h.s16 %v8533_v62  ;;  %v8553_v38 = vpack.i.b16 %v8537_v28, %v8537_v28  ;;  %v14298_v35 = vpack.i.b16 %v8530_v1, %v8530_v1  ;;  %v8709_v28 = vld [vmem:[#allocation4 + $0x50] sm:$0x1] }
 0x631   : > { %v8555_v57 = vpack.i.b16 %v8539_v63, %v8539_v63  ;;  %v14299_v3 = vpack.i.b16 %v8532_v23, %v8532_v23  ;;  %v19793_v21 = vpack.i.b16 %v8543_v7, %v8543_v7  ;;  %v14301_v51 = vpack.i.b16 %v8529_v41, %v8529_v41  ;;  %15643 = vmatpush3.bf16.msra.mxu1 %v16407_v37  ;;  %v8712_v63 = vld [vmem:[#allocation4 + $0x5c] sm:$0x1] }
 0x632   : > { %v19795_v56 = vpack.i.b16 %v8541_v45, %v8541_v45  ;;  %v19797_v53 = vpack.i.b16 %v8545_v11, %v8545_v11  ;;  %v14302_v18 = vpack.i.b16 %v8531_v5, %v8531_v5  ;;  %v19799_v8 = vpack.i.b16 %v8547_v2, %v8547_v2  ;;  %15644 = vmatprep.subr.bf16.mxu1 %v16410_v19  ;;  %v8703_v5 = vld [vmem:[#allocation4 + $0x38] sm:$0x1]  ;;  %v8715_v11 = vld [vmem:[#allocation4 + $0x68] sm:$0x1] }
 0x633   : > { %v14303_v42 = vpack.i.b16 %v8533_v62, %v8533_v62  ;;  %v19803_v14 = vpack.i.b16 %v8549_v34, %v8549_v34  ;;  %v8572_v22 = vrot.slane %v14296_v20, %v17917_v59  ;;  %v8579_v9 = vrot.slane %v8551_v6, %v17917_v59  ;;  %15613 = vmatmul.mubr.bf16.gmra.mrb[68].mxu1 %v16402_v30  ;;  %v8718_v34 = vld [vmem:[#allocation4 + $0x74] sm:$0x1]  ;;  %v19847_v30 = vld [vmem:[#allocation4 + $0x24] sm:$0xf] }
 0x634   : > { %v8586_v50 = vrot.slane %v14297_v33, %v17917_v59  ;;  %v8593_v41 = vrot.slane %v8553_v38, %v17917_v59  ;;  %v8600_v1 = vrot.slane %v14298_v35, %v17917_v59  ;;  %v8607_v37 = vrot.slane %v8555_v57, %v17917_v59  ;;  %v8721_v38 = vld [vmem:[#allocation4 + $0x80] sm:$0x1]  ;;  %15616 = vmatprep.mubr.bf16.mxu1 %v16403_v24 }
 0x635   : > { %v8614_v7 = vrot.slane %v14299_v3, %v17917_v59  ;;  %v8621_v20 = vrot.slane %v19795_v56, %v17917_v59  ;;  %v8628_v23 = vrot.slane %v14300_v46, %v17917_v59  ;;  %v8635_v62 = vrot.slane %v19793_v21, %v17917_v59  ;;  %v8724_v46 = vld [vmem:[#allocation4 + $0x8c] sm:$0x1]  ;;  %v8730_v56 = vld [vmem:[#allocation4 + $0xa4] sm:$0x1]  ;;  %15645 = vmatpush3.bf16.msra.mxu1 %v16410_v19 }
 0x636   : > { %v8642_v2 = vrot.slane %v14301_v51, %v17917_v59  ;;  %v8649_v6 = vrot.slane %v19797_v53, %v17917_v59  ;;  %v8656_v33 = vrot.slane %v14302_v18, %v17917_v59  ;;  %v8663_v45 = vrot.slane %v19799_v8, %v17917_v59  ;;  %v8727_v51 = vld [vmem:[#allocation4 + $0x98] sm:$0x1]  ;;  %v8733_v53 = vld [vmem:[#allocation4 + $0xb0] sm:$0x1]  ;;  %15646 = vmatprep.subr.bf16.mxu1 %v19801_v13 }
 0x637   : > { %v8670_v35 = vrot.slane %v14303_v42, %v17917_v59  ;;  %v8677_v57 = vrot.slane %v19803_v14, %v17917_v59  ;;  %v8695_v3 = vsel %vm17077_vm3, %v8572_v22, %v8694_v4  ;;  %v8698_v21 = vsel %vm17077_vm3, %v8579_v9, %v8697_v52  ;;  %v8736_v42 = vld [vmem:[#allocation4 + $0xbc] sm:$0x1]  ;;  %v8739_v52 = vld [vmem:[#allocation4 + $0xc8] sm:$0x1] }
 0x638   : > { %8696 = vst [vmem:[#allocation4 + $0x14] sm:$0x1] %v8695_v3  ;;  %8699 = vst [vmem:[#allocation4 + $0x20] sm:$0x1] %v8698_v21  ;;  %v8701_v18 = vsel %vm17077_vm3, %v8586_v50, %v8700_v0  ;;  %v8704_v8 = vsel %vm17077_vm3, %v8593_v41, %v8703_v5  ;;  %v8707_v59 = vsel %vm17077_vm3, %v8600_v1, %v8706_v15  ;;  %v16420_v14 = vld [vmem:[#allocation11 + $0x130] sm:$0xff]   ;;  %v8879_v17 = vshrl.u32 %v19847_v30, 16 }
 0x639   : > { %v8710_v4 = vsel %vm17077_vm3, %v8607_v37, %v8709_v28  ;;  %8702 = vst [vmem:[#allocation4 + $0x2c] sm:$0x1] %v8701_v18  ;;  %8705 = vst [vmem:[#allocation4 + $0x38] sm:$0x1] %v8704_v8  ;;  %v8713_v19 = vsel %vm17077_vm3, %v8614_v7, %v8712_v63  ;;  %v8716_v22 = vsel %vm17077_vm3, %v8621_v20, %v8715_v11  ;;  %v19857_v5 = vld [vmem:[#allocation4 + $0x28] sm:$0xf]  ;;  %15647 = vmatpush3.bf16.msra.mxu1 %v19801_v13 }
 0x63a   : > { %8708 = vst [vmem:[#allocation4 + $0x44] sm:$0x1] %v8707_v59  ;;  %8711 = vst [vmem:[#allocation4 + $0x50] sm:$0x1] %v8710_v4  ;;  %v8719_v9 = vsel %vm17077_vm3, %v8628_v23, %v8718_v34  ;;  %v8722_v0 = vsel %vm17077_vm3, %v8635_v62, %v8721_v38  ;;  %v8725_v50 = vsel %vm17077_vm3, %v8642_v2, %v8724_v46  ;;  %v19868_v20 = vrot.slane %v8861_v25, 4  ;;  %v16405_v62 = vld [vmem:[#allocation4 + $0x60] sm:$0xff]  }
 0x63b   : > { %8714 = vst [vmem:[#allocation4 + $0x5c] sm:$0x1] %v8713_v19  ;;  %8717 = vst [vmem:[#allocation4 + $0x68] sm:$0x1] %v8716_v22  ;;  %v8728_v41 = vsel %vm17077_vm3, %v8649_v6, %v8727_v51  ;;  %v8731_v1 = vsel %vm17077_vm3, %v8656_v33, %v8730_v56  ;;  %v8734_v37 = vsel %vm17077_vm3, %v8663_v45, %v8733_v53  ;;  %v19870_v23 = vld [vmem:[#allocation4 + $0x30] sm:$0xf]  ;;  %15648 = vmatprep.subr.bf16.mxu1 %v16420_v14 }
 0x63c   : > { %8720 = vst [vmem:[#allocation4 + $0x74] sm:$0x1] %v8719_v9  ;;  %8723 = vst [vmem:[#allocation4 + $0x80] sm:$0x1] %v8722_v0  ;;  %v8737_v15 = vsel %vm17077_vm3, %v8670_v35, %v8736_v42  ;;  %v8740_v24 = vsel %vm17077_vm3, %v8677_v57, %v8739_v52  ;;  %v8813_v7 = vor.u32 %v19780_v27, %v19778_v61  ;;  %v8866_v61 = vrot.slane %v8864_v55, 5  ;;  %v16424_v25 = vld [vmem:[#allocation11 + $0x138] sm:$0xff]  }
 0x63d   : > { %8726 = vst [vmem:[#allocation4 + $0x8c] sm:$0x1] %v8725_v50  ;;  %8729 = vst [vmem:[#allocation4 + $0x98] sm:$0x1] %v8728_v41  ;;  %v8829_v28 = vsel %vm21505_vm6, %v19751_v49, %v19782_v32  ;;  %v8868_v27 = vshrl.u32 %v19747_v44, 16  ;;  %v8882_v13 = vshll.u32 %v19847_v30, 16  ;;  %15617 = vmatmul.mubr.bf16.gmra.mrb[72].mxu1 %v16405_v62 }
 0x63e   : > { %8732 = vst [vmem:[#allocation4 + $0xa4] sm:$0x1] %v8731_v1  ;;  %8735 = vst [vmem:[#allocation4 + $0xb0] sm:$0x1] %v8734_v37  ;;  %v8814_v63 = vrot.slane %v8813_v7, 4  ;;  %v8888_v11 = vshll.u32 %v19857_v5, 16  ;;  %15620 = vmatprep.mubr.bf16.mxu1 %v16406_v26  ;;  %v8867_v34 = vsel %vm21505_vm6, %v19868_v20, %v8866_v61  ;;  %15649 = vmatpush3.bf16.msra.mxu1 %v16420_v14 }
 0x63f   : > { %8738 = vst [vmem:[#allocation4 + $0xbc] sm:$0x1] %v8737_v15  ;;  %8741 = vst [vmem:[#allocation4 + $0xc8] sm:$0x1] %v8740_v24  ;;  %v8892_v2 = vshrl.u32 %v19857_v5, 16  ;;  %v8848_v49 = vrot.slane %v8847_v43, 4  ;;  %15650 = vmatprep.subr.bf16.mxu1 %v16424_v25 }
 0x640   : > { %v8870_v55 = vrot.slane %v8868_v27, 4  ;;  %v8881_v32 = vrot.slane %v8879_v17, 4  ;;  %v8903_v44 = vshrl.u32 %v19870_v23, 16  ;;  %v8819_v6 = vsel %vm21505_vm6, %v8814_v63, %v19732_v58  ;;  %v8791_v33 = vld [vmem:[#allocation4 + $0x14] sm:$0x1]  ;;  %v19894_v3 = vld [vmem:[#allocation11 + $0x140] sm:$0xff]  }
 0x641   : > { %v8792_v45 = vld [vmem:[#allocation4 + $0x20] sm:$0x1]  ;;  %v8884_v38 = vrot.slane %v8882_v13, 5  ;;  %v8890_v46 = vrot.slane %v8888_v11, 5  ;;  %v14304_v31 = vcombine.low %v8819_v6, %v8829_v28  ;;  %v8850_v43 = vshll.u32 %v8791_v33, 16  ;;  %v16408_v0 = vld [vmem:[#allocation4 + $0x78] sm:$0xff]  }
 0x642   : > { %v8871_v35 = vor.u32 %v8870_v55, %v8866_v61  ;;  %v8793_v57 = vld [vmem:[#allocation4 + $0x2c] sm:$0x1]  ;;  %v8874_v58 = vshll.u32 %v8792_v45, 16  ;;  %v8894_v56 = vrot.slane %v8892_v2, 4  ;;  %v19898_v18 = vld [vmem:[#allocation4 + $0x34] sm:$0xf]  ;;  %15651 = vmatpush3.bf16.msra.mxu1 %v16424_v25 }
 0x643   : > { %v8885_v51 = vor.u32 %v8884_v38, %v8881_v32  ;;  %v8898_v53 = vshll.u32 %v8793_v57, 16  ;;  %15460 = vmatprep.mubr.bf16.mxu0 %v14304_v31  ;;  %v8852_v8 = vrot.slane %v8850_v43, 5  ;;  %v8905_v4 = vrot.slane %v8903_v44, 4  ;;  %v19901_v9 = vld [vmem:[#allocation4 + $0x3c] sm:$0xf]  ;;  %v16409_v24 = vld [vmem:[#allocation4 + $0x84] sm:$0xff]   ;;  %15684 = vmatprep.subr.bf16.mxu1 %v19894_v3 }
 0x644   : > { %v8872_v59 = vrot.slane %v8871_v35, 4  ;;  %v8906_v42 = vshll.u32 %v19870_v23, 16  ;;  %v8876_v52 = vrot.slane %v8874_v58, 5  ;;  %v8895_v19 = vor.u32 %v8894_v56, %v8890_v46  ;;  %v8794_v41 = vld [vmem:[#allocation4 + $0x38] sm:$0x1]  ;;  %v16414_v27 = vld [vmem:[#allocation11 + $0x8] sm:$0xff]  }
 0x645   : > { %v8886_v14 = vrot.slane %v8885_v51, 4  ;;  %v8900_v22 = vrot.slane %v8898_v53, 5  ;;  %v8853_v50 = vsel %vm21505_vm6, %v8848_v49, %v8852_v8  ;;  %v8912_v37 = vshll.u32 %v19898_v18, 16  ;;  %v19917_v61 = vld [vmem:[#allocation4 + $0x40] sm:$0xf]  ;;  %15621 = vmatmul.mubr.bf16.gmra.mrb[76].mxu1 %v16408_v0  ;;  %v16512_v6 = vld [vmem:[#allocation11] sm:$0xff]  }
 0x646   : > { %v8908_v1 = vrot.slane %v8906_v42, 5  ;;  %v8916_v15 = vshrl.u32 %v19898_v18, 16  ;;  %v14305_v7 = vcombine.low %v8843_v16, %v8853_v50  ;;  %v8877_v20 = vsel %vm21505_vm6, %v8872_v59, %v8876_v52  ;;  %15624 = vmatprep.mubr.bf16.mxu1 %v16409_v24  ;;  %v8795_v16 = vld [vmem:[#allocation4 + $0x44] sm:$0x1]  ;;  %v19924_v44 = vld [vmem:[#allocation4 + $0x48] sm:$0xf] }
 0x647   : > { %v8891_v62 = vsel %vm21505_vm6, %v8886_v14, %v8890_v46  ;;  %v8896_v28 = vrot.slane %v8895_v19, 4  ;;  %v14306_v17 = vcombine.low %v8867_v34, %v8877_v20  ;;  %v8914_v25 = vrot.slane %v8912_v37, 5  ;;  %v16416_v33 = vld [vmem:[#allocation11 + $0x10] sm:$0xff]   ;;  %v8796_v53 = vld [vmem:[#allocation4 + $0x50] sm:$0x1]  ;;  %v16413_v0 = vld [vmem:[#allocation4 + $0x9c] sm:$0xff]  }
 0x648   : > { %v8909_v26 = vor.u32 %v8908_v1, %v8905_v4  ;;  %v8918_v63 = vrot.slane %v8916_v15, 4  ;;  %15461 = vmatmul.mubr.bf16.vlgmr.msra.gmra.mrb[12].mxu0 %v14305_v7  ;;  %v8922_v29 = vshll.u32 %v8794_v41, 16  ;;  %v8927_v13 = vshrl.u32 %v19901_v9, 16  ;;  %v19927_v31 = vld [vmem:[#allocation4 + $0x4c] sm:$0xf]  ;;  %v16412_v4 = vld [vmem:[#allocation4 + $0x90] sm:$0xff]  }
 0x649   : > { %v8901_v54 = vsel %vm21505_vm6, %v8896_v28, %v8900_v22  ;;  %v8930_v11 = vshll.u32 %v19901_v9, 16  ;;  %15464 = vmatprep.mubr.bf16.mxu0 %v14306_v17  ;;  %v8936_v32 = vshll.u32 %v19917_v61, 16  ;;  %15493 = vmatpush3.bf16.msra.mxu0 %v16512_v6  ;;  %v8940_v46 = vshrl.u32 %v19917_v61, 16  ;;  %v19937_v22 = vld [vmem:[#allocation4 + $0x54] sm:$0xf] }
 0x64a   : > { %v14307_v2 = vcombine.low %v8891_v62, %v8901_v54  ;;  %v8910_v49 = vrot.slane %v8909_v26, 4  ;;  %v8919_v55 = vor.u32 %v8918_v63, %v8914_v25  ;;  %v8924_v45 = vrot.slane %v8922_v29, 5  ;;  %15494 = vmatprep.subr.bf16.mxu0 %v16414_v27  ;;  %v19939_v15 = vld [vmem:[#allocation4 + $0x58] sm:$0xf]  ;;  %v16419_v24 = vld [vmem:[#allocation11 + $0x18] sm:$0xff]  }
 0x64b   : > { %v8929_v34 = vrot.slane %v8927_v13, 4  ;;  %v8932_v38 = vrot.slane %v8930_v11, 5  ;;  %v8938_v57 = vrot.slane %v8936_v32, 5  ;;  %v8946_v58 = vshll.u32 %v8795_v16, 16  ;;  %v8797_v16 = vld [vmem:[#allocation4 + $0x5c] sm:$0x1] }
 0x64c   : > { %v8915_v43 = vsel %vm21505_vm6, %v8910_v49, %v8914_v25  ;;  %v8920_v35 = vrot.slane %v8919_v55, 4  ;;  %v8942_v56 = vrot.slane %v8940_v46, 4  ;;  %v8951_v8 = vshrl.u32 %v19924_v44, 16  ;;  %v19946_v11 = vld [vmem:[#allocation4 + $0x60] sm:$0xf] }
 0x64d   : > { %v8933_v51 = vor.u32 %v8932_v38, %v8929_v34  ;;  %v8954_v59 = vshll.u32 %v19924_v44, 16  ;;  %v8948_v52 = vrot.slane %v8946_v58, 5  ;;  %v8960_v14 = vshll.u32 %v19927_v31, 16  ;;  %15495 = vmatpush3.bf16.msra.mxu0 %v16414_v27  ;;  %15625 = vmatmul.mubr.bf16.gmra.mrb[80].mxu1 %v16412_v4  ;;  %v19951_v6 = vld [vmem:[#allocation4 + $0x64] sm:$0xf] }
 0x64e   : > { %v8925_v42 = vsel %vm21505_vm6, %v8920_v35, %v8924_v45  ;;  %v8964_v19 = vshrl.u32 %v19927_v31, 16  ;;  %v8943_v1 = vor.u32 %v8942_v56, %v8938_v57  ;;  %v8953_v37 = vrot.slane %v8951_v8, 4  ;;  %15496 = vmatprep.subr.bf16.mxu0 %v16416_v33  ;;  %15628 = vmatprep.mubr.bf16.mxu1 %v16413_v0  ;;  %v16421_v45 = vld [vmem:[#allocation11 + $0x20] sm:$0xff]   ;;  %v16417_v56 = vld [vmem:[#allocation4 + $0xa8] sm:$0xff]  }
 0x64f   : > { %v14308_v50 = vcombine.low %v8915_v43, %v8925_v42  ;;  %v8934_v41 = vrot.slane %v8933_v51, 4  ;;  %v8956_v7 = vrot.slane %v8954_v59, 5  ;;  %v8962_v20 = vrot.slane %v8960_v14, 5  ;;  %v19954_v51 = vld [vmem:[#allocation4 + $0x6c] sm:$0xf] }
 0x650   : > { %v8966_v62 = vrot.slane %v8964_v19, 4  ;;  %v8970_v28 = vshll.u32 %v8796_v53, 16  ;;  %15465 = vmatmul.mubr.bf16.gmra.mrb[16].mxu0 %v14307_v2  ;;  %v8944_v26 = vrot.slane %v8943_v1, 4  ;;  %v8975_v27 = vshrl.u32 %v19937_v22, 16  ;;  %v8798_v59 = vld [vmem:[#allocation4 + $0x68] sm:$0x1] }
 0x651   : > { %v8939_v17 = vsel %vm21505_vm6, %v8934_v41, %v8938_v57  ;;  %v8978_v25 = vshll.u32 %v19937_v22, 16  ;;  %15468 = vmatprep.mubr.bf16.mxu0 %v14308_v50  ;;  %v8957_v63 = vor.u32 %v8956_v7, %v8953_v37  ;;  %v8984_v13 = vshll.u32 %v19939_v15, 16  ;;  %15497 = vmatpush3.bf16.msra.mxu0 %v16416_v33  ;;  %v19962_v41 = vld [vmem:[#allocation4 + $0x70] sm:$0xf]  ;;  %v16423_v1 = vld [vmem:[#allocation11 + $0x28] sm:$0xff]  }
 0x652   : > { %v8967_v54 = vor.u32 %v8966_v62, %v8962_v20  ;;  %v8972_v29 = vrot.slane %v8970_v28, 5  ;;  %v8949_v2 = vsel %vm21505_vm6, %v8944_v26, %v8948_v52  ;;  %v8977_v49 = vrot.slane %v8975_v27, 4  ;;  %15498 = vmatprep.subr.bf16.mxu0 %v16419_v24  ;;  %v16418_v52 = vld [vmem:[#allocation4 + $0xb4] sm:$0xff]  }
 0x653   : > { %v8980_v55 = vrot.slane %v8978_v25, 5  ;;  %v8988_v32 = vshrl.u32 %v19939_v15, 16  ;;  %v14309_v34 = vcombine.low %v8939_v17, %v8949_v2  ;;  %v8958_v38 = vrot.slane %v8957_v63, 4  ;;  %v19968_v27 = vld [vmem:[#allocation4 + $0x78] sm:$0xf] }
 0x654   : > { %v8968_v46 = vrot.slane %v8967_v54, 4  ;;  %v8986_v43 = vrot.slane %v8984_v13, 5  ;;  %v8994_v58 = vshll.u32 %v8797_v16, 16  ;;  %v8999_v33 = vshrl.u32 %v19946_v11, 16  ;;  %v8799_v54 = vld [vmem:[#allocation4 + $0x74] sm:$0x1] }
 0x655   : > { %v8981_v35 = vor.u32 %v8980_v55, %v8977_v49  ;;  %v8990_v57 = vrot.slane %v8988_v32, 4  ;;  %v8963_v53 = vsel %vm21505_vm6, %v8958_v38, %v8962_v20  ;;  %v9002_v4 = vshll.u32 %v19946_v11, 16  ;;  %15499 = vmatpush3.bf16.msra.mxu0 %v16419_v24  ;;  %15629 = vmatmul.mubr.bf16.gmra.mrb[84].mxu1 %v16417_v56  ;;  %v16425_v32 = vld [vmem:[#allocation11 + $0x30] sm:$0xff]   ;;  %v16422_v56 = vld [vmem:[#allocation4 + $0xc0] sm:$0xff]  }
 0x656   : > { %v8973_v8 = vsel %vm21505_vm6, %v8968_v46, %v8972_v29  ;;  %v9008_v42 = vshll.u32 %v19951_v6, 16  ;;  %v8996_v50 = vrot.slane %v8994_v58, 5  ;;  %15500 = vmatprep.subr.bf16.mxu0 %v16421_v45  ;;  %v9001_v37 = vrot.slane %v8999_v33, 4  ;;  %15632 = vmatprep.mubr.bf16.mxu1 %v16418_v52 }
 0x657   : > { %v14310_v14 = vcombine.low %v8963_v53, %v8973_v8  ;;  %v8982_v19 = vrot.slane %v8981_v35, 4  ;;  %v8991_v0 = vor.u32 %v8990_v57, %v8986_v43  ;;  %v9004_v7 = vrot.slane %v9002_v4, 5  ;;  %v19975_v35 = vld [vmem:[#allocation4 + $0x7c] sm:$0xf]  ;;  %v8800_v4 = vld [vmem:[#allocation4 + $0x80] sm:$0x1] }
 0x658   : > { %v9010_v20 = vrot.slane %v9008_v42, 5  ;;  %v9012_v62 = vshrl.u32 %v19951_v6, 16  ;;  %15469 = vmatmul.mubr.bf16.gmra.mrb[20].mxu0 %v14309_v34  ;;  %v9018_v17 = vshll.u32 %v8798_v59, 16  ;;  %v9023_v26 = vshrl.u32 %v19954_v51, 16 }
 0x659   : > { %v8987_v28 = vsel %vm21505_vm6, %v8982_v19, %v8986_v43  ;;  %v8992_v24 = vrot.slane %v8991_v0, 4  ;;  %15472 = vmatprep.mubr.bf16.mxu0 %v14310_v14  ;;  %v9005_v25 = vor.u32 %v9004_v7, %v9001_v37  ;;  %v9026_v29 = vshll.u32 %v19954_v51, 16  ;;  %15501 = vmatpush3.bf16.msra.mxu0 %v16421_v45  ;;  %v16426_v37 = vld [vmem:[#allocation11 + $0x38] sm:$0xff]  }
 0x65a   : > { %v9014_v63 = vrot.slane %v9012_v62, 4  ;;  %v9032_v16 = vshll.u32 %v19962_v41, 16  ;;  %v9020_v2 = vrot.slane %v9018_v17, 5  ;;  %v9025_v49 = vrot.slane %v9023_v26, 4  ;;  %15502 = vmatprep.subr.bf16.mxu0 %v16423_v1 }
 0x65b   : > { %v8997_v13 = vsel %vm21505_vm6, %v8992_v24, %v8996_v50  ;;  %v9036_v55 = vshrl.u32 %v19962_v41, 16  ;;  %v9006_v38 = vrot.slane %v9005_v25, 4  ;;  %v9028_v43 = vrot.slane %v9026_v29, 5  ;;  %v19982_v50 = vld [vmem:[#allocation4 + $0x84] sm:$0xf] }
 0x65c   : > { %v14311_v34 = vcombine.low %v8987_v28, %v8997_v13  ;;  %v9015_v46 = vor.u32 %v9014_v63, %v9010_v20  ;;  %v9034_v57 = vrot.slane %v9032_v16, 5  ;;  %v9042_v33 = vshll.u32 %v8799_v54, 16  ;;  %v19987_v24 = vld [vmem:[#allocation4 + $0x88] sm:$0xf]  ;;  %v8801_v16 = vld [vmem:[#allocation4 + $0x8c] sm:$0x1] }
 0x65d   : > { %v9038_v58 = vrot.slane %v9036_v55, 4  ;;  %v9047_v45 = vshrl.u32 %v19968_v27, 16  ;;  %v9011_v53 = vsel %vm21505_vm6, %v9006_v38, %v9010_v20  ;;  %v9029_v59 = vor.u32 %v9028_v43, %v9025_v49  ;;  %15503 = vmatpush3.bf16.msra.mxu0 %v16423_v1  ;;  %15633 = vmatmul.mubr.bf16.gmra.mrb[88].mxu1 %v16422_v56  ;;  %v19996_v38 = vld [vmem:[#allocation4 + $0x90] sm:$0xf] }
 0x65e   : > { %v9016_v8 = vrot.slane %v9015_v46, 4  ;;  %v9050_v42 = vshll.u32 %v19968_v27, 16  ;;  %v9044_v14 = vrot.slane %v9042_v33, 5  ;;  %v9056_v0 = vshll.u32 %v19975_v35, 16  ;;  %15504 = vmatprep.subr.bf16.mxu0 %v16425_v32  ;;  %v19998_v46 = vld [vmem:[#allocation11 + $0x80] sm:$0xff]  }
 0x65f   : > { %v9039_v52 = vor.u32 %v9038_v58, %v9034_v57  ;;  %v9049_v19 = vrot.slane %v9047_v45, 4  ;;  %v9030_v20 = vrot.slane %v9029_v59, 4  ;;  %v9060_v28 = vshrl.u32 %v19975_v35, 16  ;;  %v20000_v45 = vld [vmem:[#allocation4 + $0x94] sm:$0xf] }
 0x660   : > { %v9021_v7 = vsel %vm21505_vm6, %v9016_v8, %v9020_v2  ;;  %v9052_v62 = vrot.slane %v9050_v42, 5  ;;  %15473 = vmatmul.mubr.bf16.gmra.mrb[24].mxu0 %v14311_v34  ;;  %v9058_v26 = vrot.slane %v9056_v0, 5  ;;  %v9066_v25 = vshll.u32 %v8800_v4, 16 }
 0x661   : > { %v14312_v1 = vcombine.low %v9011_v53, %v9021_v7  ;;  %v9040_v17 = vrot.slane %v9039_v52, 4  ;;  %v9035_v63 = vsel %vm21505_vm6, %v9030_v20, %v9034_v57  ;;  %v9062_v29 = vrot.slane %v9060_v28, 4  ;;  %15505 = vmatpush3.bf16.msra.mxu0 %v16425_v32  ;;  %v8802_v20 = vld [vmem:[#allocation4 + $0x98] sm:$0x1] }
 0x662   : > { %v9053_v54 = vor.u32 %v9052_v62, %v9049_v19  ;;  %v9071_v13 = vshrl.u32 %v19982_v50, 16  ;;  %v9068_v49 = vrot.slane %v9066_v25, 5  ;;  %v9074_v55 = vshll.u32 %v19982_v50, 16  ;;  %15506 = vmatprep.subr.bf16.mxu0 %v16426_v37  ;;  %v20014_v25 = vld [vmem:[#allocation4 + $0xa0] sm:$0xf] }
 0x663   : > { %15476 = vmatprep.mubr.bf16.mxu0 %v14312_v1  ;;  %v9045_v2 = vsel %vm21505_vm6, %v9040_v17, %v9044_v14  ;;  %v9080_v34 = vshll.u32 %v19987_v24, 16  ;;  %v9063_v58 = vor.u32 %v9062_v29, %v9058_v26  ;;  %v9084_v53 = vshrl.u32 %v19987_v24, 16  ;;  %v20007_v14 = vld [vmem:[#allocation4 + $0x9c] sm:$0xf] }
 0x664   : > { %v14313_v43 = vcombine.low %v9035_v63, %v9045_v2  ;;  %v9054_v57 = vrot.slane %v9053_v54, 4  ;;  %v9073_v33 = vrot.slane %v9071_v13, 4  ;;  %v9076_v32 = vrot.slane %v9074_v55, 5 }
 0x665   : > { %v9082_v56 = vrot.slane %v9080_v34, 5  ;;  %v9090_v8 = vshll.u32 %v8801_v16, 16  ;;  %v9064_v4 = vrot.slane %v9063_v58, 4  ;;  %v9095_v42 = vshrl.u32 %v19996_v38, 16  ;;  %15507 = vmatpush3.bf16.msra.mxu0 %v16426_v37 }
 0x666   : > { %v9059_v59 = vsel %vm21505_vm6, %v9054_v57, %v9058_v26  ;;  %v9098_v52 = vshll.u32 %v19996_v38, 16  ;;  %v9077_v19 = vor.u32 %v9076_v32, %v9073_v33  ;;  %v9086_v0 = vrot.slane %v9084_v53, 4  ;;  %15540 = vmatprep.subr.bf16.mxu0 %v19998_v46  ;;  %v8803_v57 = vld [vmem:[#allocation4 + $0xa4] sm:$0x1] }
 0x667   : > { %v9092_v7 = vrot.slane %v9090_v8, 5  ;;  %v9104_v62 = vshll.u32 %v20000_v45, 16  ;;  %v9069_v28 = vsel %vm21505_vm6, %v9064_v4, %v9068_v49  ;;  %v9097_v1 = vrot.slane %v9095_v42, 4 }
 0x668   : > { %v9100_v17 = vrot.slane %v9098_v52, 5  ;;  %v9108_v26 = vshrl.u32 %v20000_v45, 16  ;;  %15477 = vmatmul.mubr.bf16.gmra.mrb[28].mxu0 %v14313_v43  ;;  %v14314_v63 = vcombine.low %v9059_v59, %v9069_v28  ;;  %v9078_v37 = vrot.slane %v9077_v19, 4  ;;  %v20021_v59 = vld [vmem:[#allocation4 + $0xa8] sm:$0xf] }
 0x669   : > { %v9087_v54 = vor.u32 %v9086_v0, %v9082_v56  ;;  %v9106_v29 = vrot.slane %v9104_v62, 5  ;;  %v9114_v2 = vshll.u32 %v8802_v20, 16  ;;  %v9119_v55 = vshrl.u32 %v20007_v14, 16 }
 0x66a   : > { %v9101_v16 = vor.u32 %v9100_v17, %v9097_v1  ;;  %v9110_v13 = vrot.slane %v9108_v26, 4  ;;  %15480 = vmatprep.mubr.bf16.mxu0 %v14314_v63  ;;  %v9083_v49 = vsel %vm21505_vm6, %v9078_v37, %v9082_v56  ;;  %v9122_v58 = vshll.u32 %v20007_v14, 16  ;;  %v20026_v56 = vld [vmem:[#allocation4 + $0xac] sm:$0xf]  ;;  %v8804_v63 = vld [vmem:[#allocation4 + $0xb0] sm:$0x1] }
 0x66b   : > { %v9088_v34 = vrot.slane %v9087_v54, 4  ;;  %v9128_v33 = vshll.u32 %v20014_v25, 16  ;;  %v9116_v53 = vrot.slane %v9114_v2, 5  ;;  %v9121_v8 = vrot.slane %v9119_v55, 4  ;;  %v10653_v1 = vld [vmem:[#allocation4 + $0xc] sm:$0xf] }
 0x66c   : > { %v9102_v43 = vrot.slane %v9101_v16, 4  ;;  %v9111_v32 = vor.u32 %v9110_v13, %v9106_v29  ;;  %v9124_v42 = vrot.slane %v9122_v58, 5  ;;  %v9132_v19 = vshrl.u32 %v20014_v25, 16 }
 0x66d   : > { %v9093_v4 = vsel %vm21505_vm6, %v9088_v34, %v9092_v7  ;;  %v9130_v52 = vrot.slane %v9128_v33, 5  ;;  %v9138_v28 = vshll.u32 %v8803_v57, 16  ;;  %v9143_v37 = vshrl.u32 %v20021_v59, 16  ;;  %v20036_v57 = vld [vmem:[#allocation4 + $0x10] sm:$0xf] }
 0x66e   : > { %v14315_v0 = vcombine.low %v9083_v49, %v9093_v4  ;;  %v9107_v20 = vsel %vm21505_vm6, %v9102_v43, %v9106_v29  ;;  %v9112_v62 = vrot.slane %v9111_v32, 4  ;;  %v9125_v17 = vor.u32 %v9124_v42, %v9121_v8  ;;  %v20038_v8 = vld [vmem:[#allocation4 + $0xb4] sm:$0xf] }
 0x66f   : > { %v9134_v26 = vrot.slane %v9132_v19, 4  ;;  %v9146_v7 = vshll.u32 %v20021_v59, 16  ;;  %v9140_v16 = vrot.slane %v9138_v28, 5  ;;  %v9152_v13 = vshll.u32 %v20026_v56, 16  ;;  %v20042_v42 = vld [vmem:[#allocation4 + $0x14] sm:$0x1] }
 0x670   : > { %v9117_v54 = vsel %vm21505_vm6, %v9112_v62, %v9116_v53  ;;  %v9156_v2 = vshrl.u32 %v20026_v56, 16  ;;  %15481 = vmatmul.mubr.bf16.gmra.mrb[32].mxu0 %v14315_v0  ;;  %v9126_v55 = vrot.slane %v9125_v17, 4  ;;  %v9145_v34 = vrot.slane %v9143_v37, 4 }
 0x671   : > { %v14316_v29 = vcombine.low %v9107_v20, %v9117_v54  ;;  %v9135_v49 = vor.u32 %v9134_v26, %v9130_v52  ;;  %v9148_v58 = vrot.slane %v9146_v7, 5  ;;  %v9154_v33 = vrot.slane %v9152_v13, 5  ;;  %v20044_v20 = vld [vmem:[#allocation4 + $0xb8] sm:$0xf] }
 0x672   : > { %v9158_v43 = vrot.slane %v9156_v2, 4  ;;  %v9162_v32 = vshll.u32 %v8804_v63, 16  ;;  %v9131_v53 = vsel %vm21505_vm6, %v9126_v55, %v9130_v52  ;;  %v10702_v19 = vshrl.u32 %v10653_v1, 16  ;;  %v8805_v55 = vld [vmem:[#allocation4 + $0xbc] sm:$0x1] }
 0x673   : > { %15484 = vmatprep.mubr.bf16.mxu0 %v14316_v29  ;;  %v9136_v4 = vrot.slane %v9135_v49, 4  ;;  %v10705_v0 = vshll.u32 %v10653_v1, 16  ;;  %v9149_v62 = vor.u32 %v9148_v58, %v9145_v34  ;;  %v10711_v26 = vshll.u32 %v20036_v57, 16  ;;  %v10656_v1 = vld [vmem:[#allocation4 + $0x18] sm:$0xf] }
 0x674   : > { %v9159_v28 = vor.u32 %v9158_v43, %v9154_v33  ;;  %v9164_v17 = vrot.slane %v9162_v32, 5  ;;  %v10704_v37 = vrot.slane %v10702_v19, 4  ;;  %v10715_v54 = vshrl.u32 %v20036_v57, 16 }
 0x675   : > { %v9141_v63 = vsel %vm21505_vm6, %v9136_v4, %v9140_v16  ;;  %v10707_v7 = vrot.slane %v10705_v0, 5  ;;  %v9150_v13 = vrot.slane %v9149_v62, 4  ;;  %v10713_v29 = vrot.slane %v10711_v26, 5 }
 0x676   : > { %v14317_v52 = vcombine.low %v9131_v53, %v9141_v63  ;;  %v9160_v2 = vrot.slane %v9159_v28, 4  ;;  %v10717_v60 = vrot.slane %v10715_v54, 4  ;;  %v10721_v34 = vshll.u32 %v20042_v42, 16  ;;  %v20058_v28 = vld [vmem:[#allocation4 + $0x1c] sm:$0xf] }
 0x677   : > { %v10708_v49 = vor.u32 %v10707_v7, %v10704_v37  ;;  %v9167_v58 = vshrl.u32 %v20038_v8, 16  ;;  %v9155_v43 = vsel %vm21505_vm6, %v9150_v13, %v9154_v33  ;;  %v9170_v32 = vshll.u32 %v20038_v8, 16  ;;  %v20061_v33 = vld [vmem:[#allocation4 + $0x20] sm:$0x1]  ;;  %v10659_v54 = vld [vmem:[#allocation4 + $0x24] sm:$0xf] }
 0x678   : > { %v9165_v16 = vsel %vm21505_vm6, %v9160_v2, %v9164_v17  ;;  %v9176_v53 = vshll.u32 %v20044_v20, 16  ;;  %15485 = vmatmul.mubr.bf16.gmra.mrb[36].mxu0 %v14317_v52  ;;  %v10718_v0 = vor.u32 %v10717_v60, %v10713_v29  ;;  %v10723_v62 = vrot.slane %v10721_v34, 5 }
 0x679   : > { %v14318_v4 = vcombine.low %v9155_v43, %v9165_v16  ;;  %v10709_v19 = vrot.slane %v10708_v49, 4  ;;  %v9169_v26 = vrot.slane %v9167_v58, 4  ;;  %v9172_v63 = vrot.slane %v9170_v32, 5  ;;  %v20066_v58 = vld [vmem:[#allocation4 + $0x28] sm:$0xf] }
 0x67a   : > { %v9178_v37 = vrot.slane %v9176_v53, 5  ;;  %v9180_v7 = vshrl.u32 %v20044_v20, 16  ;;  %v10719_v13 = vrot.slane %v10718_v0, 4  ;;  %v9186_v52 = vshll.u32 %v8805_v55, 16 }
 0x67b   : > { %15488 = vmatprep.mubr.bf16.mxu0 %v14318_v4  ;;  %v10714_v17 = vsel %vm21505_vm6, %v10709_v19, %v10713_v29  ;;  %v10726_v2 = vshrl.u32 %v10656_v1, 16  ;;  %v9173_v49 = vor.u32 %v9172_v63, %v9169_v26  ;;  %v10729_v34 = vshll.u32 %v10656_v1, 16 }
 0x67c   : > { %v9182_v60 = vrot.slane %v9180_v7, 4  ;;  %v10735_v43 = vshll.u32 %v20058_v28, 16  ;;  %v10724_v16 = vsel %vm21505_vm6, %v10719_v13, %v10723_v62  ;;  %v9188_v32 = vrot.slane %v9186_v52, 5  ;;  %v20074_v62 = vld [vmem:[#allocation4 + $0x2c] sm:$0x1] }
 0x67d   : > { %v10728_v53 = vrot.slane %v10726_v2, 4  ;;  %v10739_v4 = vshrl.u32 %v20058_v28, 16  ;;  %v14416_v21 = vcombine.low %v10714_v17, %v10724_v16  ;;  %v9174_v39 = vrot.slane %v9173_v49, 4  ;;  %21506 = vst [vmem:[#allocation33_spill] sm:$0xff] %v20074_v62  ;;  %v10662_v16 = vld [vmem:[#allocation4 + $0x30] sm:$0xf] }
 0x67e   : > { %v9183_v29 = vor.u32 %v9182_v60, %v9178_v37  ;;  %v10731_v19 = vrot.slane %v10729_v34, 5  ;;  %v10737_v55 = vrot.slane %v10735_v43, 5  ;;  %v10745_v26 = vshll.u32 %v20061_v33, 16 }
 0x67f   : > { %v10741_v0 = vrot.slane %v10739_v4, 4  ;;  %v10750_v1 = vshrl.u32 %v10659_v54, 16  ;;  %15652 = vmatprep.mubr.bf16.mxu1 %v14416_v21  ;;  %v9179_v63 = vsel %vm21505_vm6, %v9174_v39, %v9178_v37  ;;  %v10753_v13 = vshll.u32 %v10659_v54, 16 }
 0x680   : > { %v9184_v7 = vrot.slane %v9183_v29, 4  ;;  %v10732_v36 = vor.u32 %v10731_v19, %v10728_v53  ;;  %v10747_v2 = vrot.slane %v10745_v26, 5  ;;  %v10759_v49 = vshll.u32 %v20066_v58, 16  ;;  %v20081_v29 = vld [vmem:[#allocation4 + $0x34] sm:$0xf] }
 0x681   : > { %v10742_v52 = vor.u32 %v10741_v0, %v10737_v55  ;;  %v10752_v17 = vrot.slane %v10750_v1, 4  ;;  %v10755_v43 = vrot.slane %v10753_v13, 5  ;;  %v10763_v21 = vshrl.u32 %v20066_v58, 16  ;;  %v16513_v26 = vld [vmem:[#allocation4 + $0x18] sm:$0xf] }
 0x682   : > { %v9189_v60 = vsel %vm21505_vm6, %v9184_v7, %v9188_v32  ;;  %v10733_v34 = vrot.slane %v10732_v36, 4  ;;  %v10761_v37 = vrot.slane %v10759_v49, 5  ;;  %v10769_v53 = vshll.u32 %v20074_v62, 16  ;;  %v20085_v1 = vld [vmem:[#allocation4 + $0x1c] sm:$0xf] }
 0x683   : > { %v14319_v4 = vcombine.low %v9179_v63, %v9189_v60  ;;  %v10743_v39 = vrot.slane %v10742_v52, 4  ;;  %v10756_v19 = vor.u32 %v10755_v43, %v10752_v17  ;;  %v10765_v0 = vrot.slane %v10763_v21, 4  ;;  %v20088_v32 = vld [vmem:[#allocation4 + $0x38] sm:$0x1]  ;;  %v10665_v49 = vld [vmem:[#allocation4 + $0x3c] sm:$0xf] }
 0x684   : > { %v10738_v54 = vsel %vm21505_vm6, %v10733_v34, %v10737_v55  ;;  %v14330_v36 = vcombine.low %v16513_v26, %v20085_v1  ;;  %21507 = vst [vmem:[#allocation35_spill] sm:$0xff] %v20088_v32  ;;  %v10771_v7 = vrot.slane %v10769_v53, 5  ;;  %v10774_v13 = vshrl.u32 %v10662_v16, 16  ;;  %v16431_v43 = vld [vmem:[#allocation11 + $0x148] sm:$0xff]  }
 0x685   : > { %15489 = vmatmul.mubr.bf16.gmra.mrb[40].mxu0 %v14319_v4  ;;  %v10748_v63 = vsel %vm21505_vm6, %v10743_v39, %v10747_v2  ;;  %v10777_v52 = vshll.u32 %v10662_v16, 16  ;;  %v10757_v62 = vrot.slane %v10756_v19, 4  ;;  %v10766_v55 = vor.u32 %v10765_v0, %v10761_v37  ;;  %v20098_v39 = vld [vmem:[#allocation4 + $0x40] sm:$0xf] }
 0x686   : > { %v14417_v60 = vcombine.low %v10738_v54, %v10748_v63  ;;  %v21508_v17 = vcombine.low %v19754_v10, %v19694_v12  ;;  %v10783_v34 = vshll.u32 %v20081_v29, 16  ;;  %v10776_v21 = vrot.slane %v10774_v13, 4  ;;  %v20103_v63 = vld [vmem:[#allocation4 + $0x44] sm:$0x1] }
 0x687   : > { %v10779_v26 = vrot.slane %v10777_v52, 5  ;;  %v10787_v4 = vshrl.u32 %v20081_v29, 16  ;;  %v10793_v2 = vshll.u32 %v20088_v32, 16  ;;  %v10762_v16 = vsel %vm21505_vm6, %v10757_v62, %v10761_v37 }
 0x688   : > { %15508 = vmatprep.mubr.bf16.mxu0 %v21508_v17  ;;  %15653 = vmatmul.mubr.bf16.vlgmr.msra.gmra.mrb[60].mxu1 %v14417_v60  ;;  %v10767_v53 = vrot.slane %v10766_v55, 4  ;;  %v10785_v54 = vrot.slane %v10783_v34, 5  ;;  %v10798_v19 = vshrl.u32 %v10665_v49, 16  ;;  %v10801_v13 = vshll.u32 %v10665_v49, 16 }
 0x689   : > { %15685 = vmatpush3.bf16.msra.mxu1 %v19894_v3  ;;  %v10780_v12 = vor.u32 %v10779_v26, %v10776_v21  ;;  %v10789_v10 = vrot.slane %v10787_v4, 4  ;;  %v10795_v0 = vrot.slane %v10793_v2, 5  ;;  %v10807_v60 = vshll.u32 %v20098_v39, 16  ;;  %v10668_v3 = vld [vmem:[#allocation4 + $0x48] sm:$0xf] }
 0x68a   : > { %v10772_v52 = vsel %vm21505_vm6, %v10767_v53, %v10771_v7  ;;  %v10800_v17 = vrot.slane %v10798_v19, 4  ;;  %v10811_v32 = vshrl.u32 %v20098_v39, 16  ;;  %15686 = vmatprep.subr.bf16.mxu1 %v16431_v43  ;;  %v10803_v34 = vrot.slane %v10801_v13, 5  ;;  %v16434_v21 = vld [vmem:[#allocation11 + $0x150] sm:$0xff]   ;;  %v16444_v53 = vld [vmem:[#allocation11 + $0x88] sm:$0xff]  }
 0x68b   : > { %v14418_v62 = vcombine.low %v10762_v16, %v10772_v52  ;;  %v10781_v37 = vrot.slane %v10780_v12, 4  ;;  %v10790_v55 = vor.u32 %v10789_v10, %v10785_v54  ;;  %v10809_v26 = vrot.slane %v10807_v60, 5  ;;  %v20112_v7 = vld [vmem:[#allocation4 + $0x4c] sm:$0xf]  ;;  %v10671_v13 = vld [vmem:[#allocation4 + $0x54] sm:$0xf] }
 0x68c   : > { %v10813_v4 = vrot.slane %v10811_v32, 4  ;;  %v10817_v2 = vshll.u32 %v20103_v63, 16  ;;  %v14331_v49 = vcombine.low %v19847_v30, %v19857_v5  ;;  %v21509_v19 = vcombine.low %v19704_v40, %v19741_v47  ;;  %v20121_v5 = vld [vmem:[#allocation4 + $0x50] sm:$0x1] }
 0x68d   : > { %15656 = vmatprep.mubr.bf16.mxu1 %v14418_v62  ;;  %v10786_v16 = vsel %vm21505_vm6, %v10781_v37, %v10785_v54  ;;  %v10791_v12 = vrot.slane %v10790_v55, 4  ;;  %v10804_v10 = vor.u32 %v10803_v34, %v10800_v17  ;;  %v14332_v32 = vcombine.low %v19870_v23, %v19898_v18  ;;  %15687 = vmatpush3.bf16.msra.mxu1 %v16431_v43  ;;  %v20127_v37 = vld [vmem:[#allocation4 + $0x58] sm:$0xf]  ;;  %v16437_v55 = vld [vmem:[#allocation11 + $0x158] sm:$0xff]   ;;  %v16447_v34 = vld [vmem:[#allocation11 + $0x90] sm:$0xff]  }
 0x68e   : > { %15509 = vmatmul.mubr.bf16.vlgmr.msra.gmra.mrb[12].mxu0 %v21509_v19  ;;  %v10814_v52 = vor.u32 %v10813_v4, %v10809_v26  ;;  %v10819_v30 = vrot.slane %v10817_v2, 5  ;;  %v10822_v60 = vshrl.u32 %v10668_v3, 16  ;;  %v10825_v62 = vshll.u32 %v10668_v3, 16  ;;  %15688 = vmatprep.subr.bf16.mxu1 %v16434_v21 }
 0x68f   : > { %15512 = vmatprep.mubr.bf16.mxu0 %v14330_v36  ;;  %v10796_v40 = vsel %vm21505_vm6, %v10791_v12, %v10795_v0  ;;  %v10805_v47 = vrot.slane %v10804_v10, 4  ;;  %v10831_v54 = vshll.u32 %v20112_v7, 16  ;;  %v10835_v17 = vshrl.u32 %v20112_v7, 16  ;;  %15541 = vmatpush3.bf16.msra.mxu0 %v19998_v46  ;;  %v20135_v46 = vld [vmem:[#allocation4 + $0x5c] sm:$0x1] }
 0x690   : > { %v14419_v23 = vcombine.low %v10786_v16, %v10796_v40  ;;  %v10815_v18 = vrot.slane %v10814_v52, 4  ;;  %v10824_v36 = vrot.slane %v10822_v60, 4  ;;  %v10827_v43 = vrot.slane %v10825_v62, 5  ;;  %15542 = vmatprep.subr.bf16.mxu0 %v16444_v53 }
 0x691   : > { %v10810_v0 = vsel %vm21505_vm6, %v10805_v47, %v10809_v26  ;;  %v10833_v3 = vrot.slane %v10831_v54, 5  ;;  %v10837_v4 = vrot.slane %v10835_v17, 4  ;;  %v10841_v2 = vshll.u32 %v20121_v5, 16  ;;  %15689 = vmatpush3.bf16.msra.mxu1 %v16434_v21  ;;  %v10674_v26 = vld [vmem:[#allocation4 + $0x60] sm:$0xf] }
 0x692   : > { %15657 = vmatmul.mubr.bf16.gmra.mrb[64].mxu1 %v14419_v23  ;;  %v10820_v19 = vsel %vm21505_vm6, %v10815_v18, %v10819_v30  ;;  %v10828_v12 = vor.u32 %v10827_v43, %v10824_v36  ;;  %v10846_v16 = vshrl.u32 %v10671_v13, 16  ;;  %v10849_v10 = vshll.u32 %v10671_v13, 16  ;;  %15690 = vmatprep.subr.bf16.mxu1 %v16437_v55  ;;  %v16440_v30 = vld [vmem:[#allocation11 + $0x160] sm:$0xff]   ;;  %v16449_v18 = vld [vmem:[#allocation11 + $0x98] sm:$0xff]  }
 0x693   : > { %v14420_v52 = vcombine.low %v10810_v0, %v10820_v19  ;;  %v10838_v60 = vor.u32 %v10837_v4, %v10833_v3  ;;  %v10843_v62 = vrot.slane %v10841_v2, 5  ;;  %v10855_v40 = vshll.u32 %v20127_v37, 16  ;;  %15543 = vmatpush3.bf16.msra.mxu0 %v16444_v53  ;;  %v20142_v0 = vld [vmem:[#allocation4 + $0x64] sm:$0xf] }
 0x694   : > { %v10829_v47 = vrot.slane %v10828_v12, 4  ;;  %v10848_v54 = vrot.slane %v10846_v16, 4  ;;  %v10851_v17 = vrot.slane %v10849_v10, 5  ;;  %v10859_v23 = vshrl.u32 %v20127_v37, 16  ;;  %15544 = vmatprep.subr.bf16.mxu0 %v16447_v34  ;;  %v20148_v12 = vld [vmem:[#allocation4 + $0x68] sm:$0x1] }
 0x695   : > { %15660 = vmatprep.mubr.bf16.mxu1 %v14420_v52  ;;  %v10839_v13 = vrot.slane %v10838_v60, 4  ;;  %v10857_v36 = vrot.slane %v10855_v40, 5  ;;  %v10865_v43 = vshll.u32 %v20135_v46, 16  ;;  %v14333_v21 = vcombine.low %v19901_v9, %v19917_v61  ;;  %v10677_v9 = vld [vmem:[#allocation4 + $0x6c] sm:$0xf]  ;;  %15691 = vmatpush3.bf16.msra.mxu1 %v16437_v55  ;;  %v16445_v40 = vld [vmem:[#allocation11 + $0x168] sm:$0xff]  }
 0x696   : > { %15513 = vmatmul.mubr.bf16.gmra.mrb[16].mxu0 %v14331_v49  ;;  %v10834_v53 = vsel %vm21505_vm6, %v10829_v47, %v10833_v3  ;;  %v10852_v4 = vor.u32 %v10851_v17, %v10848_v54  ;;  %v10861_v2 = vrot.slane %v10859_v23, 4  ;;  %v14334_v19 = vcombine.low %v19924_v44, %v19927_v31  ;;  %15692 = vmatprep.subr.bf16.mxu1 %v16440_v30  ;;  %v16452_v44 = vld [vmem:[#allocation11 + $0xa0] sm:$0xff]   ;;  %v20155_v17 = vld [vmem:[#allocation4 + $0x70] sm:$0xf] }
 0x697   : > { %15516 = vmatprep.mubr.bf16.mxu0 %v14332_v32  ;;  %v10844_v49 = vsel %vm21505_vm6, %v10839_v13, %v10843_v62  ;;  %v10867_v16 = vrot.slane %v10865_v43, 5  ;;  %v10870_v10 = vshrl.u32 %v10674_v26, 16  ;;  %v10873_v52 = vshll.u32 %v10674_v26, 16  ;;  %15545 = vmatpush3.bf16.msra.mxu0 %v16447_v34 }
 0x698   : > { %v14421_v61 = vcombine.low %v10834_v53, %v10844_v49  ;;  %v10853_v32 = vrot.slane %v10852_v4, 4  ;;  %v10862_v60 = vor.u32 %v10861_v2, %v10857_v36  ;;  %v10879_v3 = vshll.u32 %v20142_v0, 16  ;;  %15546 = vmatprep.subr.bf16.mxu0 %v16449_v18  ;;  %v20159_v4 = vld [vmem:[#allocation4 + $0x74] sm:$0x1] }
 0x699   : > { %v10872_v31 = vrot.slane %v10870_v10, 4  ;;  %v10875_v47 = vrot.slane %v10873_v52, 5  ;;  %v10883_v54 = vshrl.u32 %v20142_v0, 16  ;;  %v10889_v62 = vshll.u32 %v20148_v12, 16  ;;  %15693 = vmatpush3.bf16.msra.mxu1 %v16440_v30 }
 0x69a   : > { %15661 = vmatmul.mubr.bf16.gmra.mrb[68].mxu1 %v14421_v61  ;;  %v10858_v55 = vsel %vm21505_vm6, %v10853_v32, %v10857_v36  ;;  %v10863_v34 = vrot.slane %v10862_v60, 4  ;;  %v10881_v26 = vrot.slane %v10879_v3, 5  ;;  %v10894_v23 = vshrl.u32 %v10677_v9, 16  ;;  %15694 = vmatprep.subr.bf16.mxu1 %v16445_v40  ;;  %v16450_v36 = vld [vmem:[#allocation11 + $0x170] sm:$0xff]  }
 0x69b   : > { %v10876_v13 = vor.u32 %v10875_v47, %v10872_v31  ;;  %v10885_v43 = vrot.slane %v10883_v54, 4  ;;  %v10891_v53 = vrot.slane %v10889_v62, 5  ;;  %v10897_v2 = vshll.u32 %v10677_v9, 16  ;;  %15547 = vmatpush3.bf16.msra.mxu0 %v16449_v18  ;;  %v10680_v47 = vld [vmem:[#allocation4 + $0x78] sm:$0xf]  ;;  %v16454_v9 = vld [vmem:[#allocation11 + $0xa8] sm:$0xff]  }
 0x69c   : > { %v10868_v49 = vsel %vm21505_vm6, %v10863_v34, %v10867_v16  ;;  %v10896_v10 = vrot.slane %v10894_v23, 4  ;;  %v10903_v52 = vshll.u32 %v20155_v17, 16  ;;  %v10907_v61 = vshrl.u32 %v20155_v17, 16  ;;  %15548 = vmatprep.subr.bf16.mxu0 %v16452_v44  ;;  %v20168_v62 = vld [vmem:[#allocation4 + $0x7c] sm:$0xf] }
 0x69d   : > { %v14422_v32 = vcombine.low %v10858_v55, %v10868_v49  ;;  %v10877_v60 = vrot.slane %v10876_v13, 4  ;;  %v10886_v3 = vor.u32 %v10885_v43, %v10881_v26  ;;  %v10899_v31 = vrot.slane %v10897_v2, 5  ;;  %15695 = vmatpush3.bf16.msra.mxu1 %v16445_v40  ;;  %v20174_v43 = vld [vmem:[#allocation4 + $0x80] sm:$0x1] }
 0x69e   : > { %15517 = vmatmul.mubr.bf16.gmra.mrb[20].mxu0 %v14333_v21  ;;  %v10905_v30 = vrot.slane %v10903_v52, 5  ;;  %v10909_v18 = vrot.slane %v10907_v61, 4  ;;  %v10913_v16 = vshll.u32 %v20159_v4, 16  ;;  %v14335_v54 = vcombine.low %v19937_v22, %v19939_v15  ;;  %15696 = vmatprep.subr.bf16.mxu1 %v16450_v36  ;;  %v10683_v52 = vld [vmem:[#allocation4 + $0x84] sm:$0xf] }
 0x69f   : > { %15520 = vmatprep.mubr.bf16.mxu0 %v14334_v19  ;;  %15664 = vmatprep.mubr.bf16.mxu1 %v14422_v32  ;;  %v10882_v55 = vsel %vm21505_vm6, %v10877_v60, %v10881_v26  ;;  %v10887_v21 = vrot.slane %v10886_v3, 4  ;;  %v10900_v34 = vor.u32 %v10899_v31, %v10896_v10  ;;  %v14336_v23 = vcombine.low %v19946_v11, %v19951_v6  ;;  %v16455_v11 = vld [vmem:[#allocation11 + $0x178] sm:$0xff]   ;;  %v20180_v60 = vld [vmem:[#allocation4 + $0x88] sm:$0xf] }
 0x6a0   : > { %v10910_v19 = vor.u32 %v10909_v18, %v10905_v30  ;;  %v10915_v13 = vrot.slane %v10913_v16, 5  ;;  %v10918_v2 = vshrl.u32 %v10680_v47, 16  ;;  %v10921_v49 = vshll.u32 %v10680_v47, 16  ;;  %15549 = vmatpush3.bf16.msra.mxu0 %v16452_v44  ;;  %v16457_v3 = vld [vmem:[#allocation11 + $0xb0] sm:$0xff]  }
 0x6a1   : > { %v10892_v22 = vsel %vm21505_vm6, %v10887_v21, %v10891_v53  ;;  %v10901_v15 = vrot.slane %v10900_v34, 4  ;;  %v10927_v26 = vshll.u32 %v20168_v62, 16  ;;  %v10931_v10 = vshrl.u32 %v20168_v62, 16  ;;  %15550 = vmatprep.subr.bf16.mxu0 %v16454_v9  ;;  %15697 = vmatpush3.bf16.msra.mxu1 %v16450_v36  ;;  %v16458_v36 = vld [vmem:[#allocation11 + $0xb8] sm:$0xff]  }
 0x6a2   : > { %v14423_v6 = vcombine.low %v10882_v55, %v10892_v22  ;;  %v10911_v40 = vrot.slane %v10910_v19, 4  ;;  %v10920_v61 = vrot.slane %v10918_v2, 4  ;;  %v10923_v32 = vrot.slane %v10921_v49, 5  ;;  %v20187_v55 = vld [vmem:[#allocation4 + $0x8c] sm:$0x1]  ;;  %v20189_v19 = vld [vmem:[#allocation11 + $0x180] sm:$0xff]   ;;  %15698 = vmatprep.subr.bf16.mxu1 %v16455_v11 }
 0x6a3   : > { %v10906_v44 = vsel %vm21505_vm6, %v10901_v15, %v10905_v30  ;;  %v10929_v31 = vrot.slane %v10927_v26, 5  ;;  %v10933_v53 = vrot.slane %v10931_v10, 4  ;;  %v10937_v47 = vshll.u32 %v20174_v43, 16 }
 0x6a4   : > { %15665 = vmatmul.mubr.bf16.gmra.mrb[72].mxu1 %v14423_v6  ;;  %v10916_v18 = vsel %vm21505_vm6, %v10911_v40, %v10915_v13  ;;  %v10924_v16 = vor.u32 %v10923_v32, %v10920_v61  ;;  %v10942_v21 = vshrl.u32 %v10683_v52, 16  ;;  %v10945_v34 = vshll.u32 %v10683_v52, 16  ;;  %15551 = vmatpush3.bf16.msra.mxu0 %v16454_v9  ;;  %v10686_v6 = vld [vmem:[#allocation4 + $0x90] sm:$0xf]  ;;  %v20196_v61 = vld [vmem:[#allocation4 + $0x94] sm:$0xf] }
 0x6a5   : > { %v14424_v2 = vcombine.low %v10906_v44, %v10916_v18  ;;  %v10934_v30 = vor.u32 %v10933_v53, %v10929_v31  ;;  %v10939_v49 = vrot.slane %v10937_v47, 5  ;;  %v10951_v22 = vshll.u32 %v20180_v60, 16  ;;  %15552 = vmatprep.subr.bf16.mxu0 %v16457_v3  ;;  %15699 = vmatpush3.bf16.msra.mxu1 %v16455_v11  ;;  %v20202_v47 = vld [vmem:[#allocation4 + $0x98] sm:$0x1]  ;;  %v10689_v11 = vld [vmem:[#allocation4 + $0x9c] sm:$0xf] }
 0x6a6   : > { %15521 = vmatmul.mubr.bf16.gmra.mrb[24].mxu0 %v14335_v54  ;;  %v10925_v15 = vrot.slane %v10924_v16, 4  ;;  %v10944_v26 = vrot.slane %v10942_v21, 4  ;;  %v10947_v13 = vrot.slane %v10945_v34, 5  ;;  %v10955_v10 = vshrl.u32 %v20180_v60, 16  ;;  %15732 = vmatprep.subr.bf16.mxu1 %v20189_v19 }
 0x6a7   : > { %15524 = vmatprep.mubr.bf16.mxu0 %v14336_v23  ;;  %15668 = vmatprep.mubr.bf16.mxu1 %v14424_v2  ;;  %v10935_v9 = vrot.slane %v10934_v30, 4  ;;  %v10953_v52 = vrot.slane %v10951_v22, 5  ;;  %v10961_v40 = vshll.u32 %v20187_v55, 16  ;;  %v14337_v54 = vcombine.low %v19954_v51, %v19962_v41  ;;  %v20210_v22 = vld [vmem:[#allocation4 + $0xa0] sm:$0xf] }
 0x6a8   : > { %v10930_v23 = vsel %vm21505_vm6, %v10925_v15, %v10929_v31  ;;  %v10948_v32 = vor.u32 %v10947_v13, %v10944_v26  ;;  %v10957_v44 = vrot.slane %v10955_v10, 4  ;;  %v14338_v53 = vcombine.low %v19968_v27, %v19975_v35  ;;  %15553 = vmatpush3.bf16.msra.mxu0 %v16457_v3 }
 0x6a9   : > { %v10940_v18 = vsel %vm21505_vm6, %v10935_v9, %v10939_v49  ;;  %v10963_v51 = vrot.slane %v10961_v40, 5  ;;  %v10966_v41 = vshrl.u32 %v10686_v6, 16  ;;  %v10969_v16 = vshll.u32 %v10686_v6, 16  ;;  %15554 = vmatprep.subr.bf16.mxu0 %v16458_v36  ;;  %v20214_v40 = vld [vmem:[#allocation4 + $0xa4] sm:$0x1] }
 0x6aa   : > { %v14425_v21 = vcombine.low %v10930_v23, %v10940_v18  ;;  %v10949_v31 = vrot.slane %v10948_v32, 4  ;;  %v10958_v34 = vor.u32 %v10957_v44, %v10953_v52  ;;  %v10975_v2 = vshll.u32 %v20196_v61, 16 }
 0x6ab   : > { %v10968_v30 = vrot.slane %v10966_v41, 4  ;;  %v10971_v27 = vrot.slane %v10969_v16, 5  ;;  %v10979_v35 = vshrl.u32 %v20196_v61, 16  ;;  %v10985_v3 = vshll.u32 %v20202_v47, 16 }
 0x6ac   : > { %15669 = vmatmul.mubr.bf16.gmra.mrb[76].mxu1 %v14425_v21  ;;  %v10954_v49 = vsel %vm21505_vm6, %v10949_v31, %v10953_v52  ;;  %v10959_v15 = vrot.slane %v10958_v34, 4  ;;  %v10977_v26 = vrot.slane %v10975_v2, 5  ;;  %v10990_v13 = vshrl.u32 %v10689_v11, 16  ;;  %15555 = vmatpush3.bf16.msra.mxu0 %v16458_v36 }
 0x6ad   : > { %v10972_v10 = vor.u32 %v10971_v27, %v10968_v30  ;;  %v10981_v6 = vrot.slane %v10979_v35, 4  ;;  %v10987_v9 = vrot.slane %v10985_v3, 5  ;;  %v10993_v23 = vshll.u32 %v10689_v11, 16  ;;  %v20223_v30 = vld [vmem:[#allocation4 + $0xac] sm:$0xf] }
 0x6ae   : > { %15525 = vmatmul.mubr.bf16.gmra.mrb[28].mxu0 %v14337_v54  ;;  %v10964_v32 = vsel %vm21505_vm6, %v10959_v15, %v10963_v51  ;;  %v10992_v44 = vrot.slane %v10990_v13, 4  ;;  %v10999_v18 = vshll.u32 %v20210_v22, 16  ;;  %v11003_v52 = vshrl.u32 %v20210_v22, 16  ;;  %v10692_v54 = vld [vmem:[#allocation4 + $0xa8] sm:$0xf] }
 0x6af   : > { %15528 = vmatprep.mubr.bf16.mxu0 %v14338_v53  ;;  %v14426_v41 = vcombine.low %v10954_v49, %v10964_v32  ;;  %v10973_v16 = vrot.slane %v10972_v10, 4  ;;  %v10982_v21 = vor.u32 %v10981_v6, %v10977_v26  ;;  %v10995_v36 = vrot.slane %v10993_v23, 5  ;;  %v20229_v15 = vld [vmem:[#allocation4 + $0xb0] sm:$0x1] }
 0x6b0   : > { %v11001_v31 = vrot.slane %v10999_v18, 5  ;;  %v11005_v34 = vrot.slane %v11003_v52, 4  ;;  %v11009_v2 = vshll.u32 %v20214_v40, 16  ;;  %v14339_v11 = vcombine.low %v19982_v50, %v19987_v24 }
 0x6b1   : > { %15672 = vmatprep.mubr.bf16.mxu1 %v14426_v41  ;;  %v10978_v53 = vsel %vm21505_vm6, %v10973_v16, %v10977_v26  ;;  %v10983_v51 = vrot.slane %v10982_v21, 4  ;;  %v10996_v27 = vor.u32 %v10995_v36, %v10992_v44  ;;  %v14340_v35 = vcombine.low %v19996_v38, %v20000_v45  ;;  %v10695_v26 = vld [vmem:[#allocation4 + $0xb4] sm:$0xf]  ;;  %v20235_v38 = vld [vmem:[#allocation4 + $0xb8] sm:$0xf] }
 0x6b2   : > { %v11006_v3 = vor.u32 %v11005_v34, %v11001_v31  ;;  %v11011_v49 = vrot.slane %v11009_v2, 5  ;;  %v11014_v13 = vshrl.u32 %v10692_v54, 16  ;;  %v11017_v10 = vshll.u32 %v10692_v54, 16 }
 0x6b3   : > { %v10988_v50 = vsel %vm21505_vm6, %v10983_v51, %v10987_v9  ;;  %v10997_v24 = vrot.slane %v10996_v27, 4  ;;  %v11023_v6 = vshll.u32 %v20223_v30, 16  ;;  %v11027_v23 = vshrl.u32 %v20223_v30, 16  ;;  %v20242_v51 = vld [vmem:[#allocation4 + $0xbc] sm:$0x1] }
 0x6b4   : > { %v14427_v32 = vcombine.low %v10978_v53, %v10988_v50  ;;  %v11007_v44 = vrot.slane %v11006_v3, 4  ;;  %v11016_v18 = vrot.slane %v11014_v13, 4  ;;  %v11019_v52 = vrot.slane %v11017_v10, 5  ;;  %v10698_v13 = vld [vmem:[#allocation4 + $0xc0] sm:$0xf] }
 0x6b5   : > { %v11002_v45 = vsel %vm21505_vm6, %v10997_v24, %v11001_v31  ;;  %v11025_v41 = vrot.slane %v11023_v6, 5  ;;  %v11029_v16 = vrot.slane %v11027_v23, 4  ;;  %v11033_v9 = vshll.u32 %v20229_v15, 16 }
 0x6b6   : > { %15529 = vmatmul.mubr.bf16.gmra.mrb[32].mxu0 %v14339_v11  ;;  %15673 = vmatmul.mubr.bf16.gmra.mrb[80].mxu1 %v14427_v32  ;;  %v11012_v21 = vsel %vm21505_vm6, %v11007_v44, %v11011_v49  ;;  %v11020_v36 = vor.u32 %v11019_v52, %v11016_v18  ;;  %v11038_v54 = vshrl.u32 %v10695_v26, 16  ;;  %v11041_v34 = vshll.u32 %v10695_v26, 16  ;;  %v20251_v44 = vld [vmem:[#allocation4 + $0xc8] sm:$0x1] }
 0x6b7   : > { %15532 = vmatprep.mubr.bf16.mxu0 %v14340_v35  ;;  %v14428_v2 = vcombine.low %v11002_v45, %v11012_v21  ;;  %v11030_v53 = vor.u32 %v11029_v16, %v11025_v41  ;;  %v11047_v27 = vshll.u32 %v20235_v38, 16  ;;  %v11051_v3 = vshrl.u32 %v20235_v38, 16  ;;  %v20246_v35 = vld [vmem:[#allocation4 + $0xc4] sm:$0xf] }
 0x6b8   : > { %v11040_v31 = vrot.slane %v11038_v54, 4  ;;  %v11043_v11 = vrot.slane %v11041_v34, 5  ;;  %v11021_v10 = vrot.slane %v11020_v36, 4  ;;  %v11035_v24 = vrot.slane %v11033_v9, 5 }
 0x6b9   : > { %15676 = vmatprep.mubr.bf16.mxu1 %v14428_v2  ;;  %v11031_v50 = vrot.slane %v11030_v53, 4  ;;  %v11049_v49 = vrot.slane %v11047_v27, 5  ;;  %v11053_v23 = vrot.slane %v11051_v3, 4  ;;  %v11057_v26 = vshll.u32 %v20242_v51, 16 }
 0x6ba   : > { %v11044_v6 = vor.u32 %v11043_v11, %v11040_v31  ;;  %v14341_v32 = vcombine.low %v20007_v14, %v20014_v25  ;;  %v11026_v18 = vsel %vm21505_vm6, %v11021_v10, %v11025_v41  ;;  %v11062_v45 = vshrl.u32 %v10698_v13, 16  ;;  %v11407_v41 = vld [vmem:[#allocation4 + $0xc] sm:$0xe]  ;;  %v16515_v10 = vld [vmem:[#allocation4 + $0x14] sm:$0x1] }
 0x6bb   : > { %v11036_v52 = vsel %vm21505_vm6, %v11031_v50, %v11035_v24  ;;  %v11065_v16 = vshll.u32 %v10698_v13, 16  ;;  %v11054_v21 = vor.u32 %v11053_v23, %v11049_v49  ;;  %v14342_v36 = vcombine.low %v20021_v59, %v20026_v56  ;;  %v11408_v56 = vld [vmem:[#allocation4 + $0x18] sm:$0xe] }
 0x6bc   : > { %v14429_v9 = vcombine.low %v11026_v18, %v11036_v52  ;;  %v11071_v54 = vshll.u32 %v20246_v35, 16  ;;  %v11064_v34 = vrot.slane %v11062_v45, 4  ;;  %v11075_v25 = vshrl.u32 %v20246_v35, 16  ;;  %v9785_v45 = vld [vmem:[#allocation4] sm:$0xe] }
 0x6bd   : > { %v11067_v14 = vrot.slane %v11065_v16, 5  ;;  %v11081_v2 = vshll.u32 %v20251_v44, 16  ;;  %v11045_v53 = vrot.slane %v11044_v6, 4  ;;  %v11055_v27 = vrot.slane %v11054_v21, 4 }
 0x6be   : > { %15533 = vmatmul.mubr.bf16.gmra.mrb[36].mxu0 %v14341_v32  ;;  %15677 = vmatmul.mubr.bf16.gmra.mrb[84].mxu1 %v14429_v9  ;;  %v11059_v31 = vrot.slane %v11057_v26, 5  ;;  %v11073_v11 = vrot.slane %v11071_v54, 5  ;;  %v11077_v13 = vrot.slane %v11075_v25, 4  ;;  %v11473_v59 = vrot.slane %v20036_v57, 5 }
 0x6bf   : > { %15536 = vmatprep.mubr.bf16.mxu0 %v14342_v36  ;;  %v11068_v3 = vor.u32 %v11067_v14, %v11064_v34  ;;  %v9845_v50 = vrot.slane %v16515_v10, 5  ;;  %v11050_v24 = vsel %vm21505_vm6, %v11045_v53, %v11049_v49  ;;  %v14440_v32 = vrot.slane %v11407_v41, 9  ;;  %v11409_v36 = vld [vmem:[#allocation4 + $0x24] sm:$0xe]  ;;  %v21510_v34 = vld [vmem:[#allocation27_spill] sm:$0xff] }
 0x6c0   : > { %v11060_v23 = vsel %vm21505_vm6, %v11055_v27, %v11059_v31  ;;  %v11078_v6 = vor.u32 %v11077_v13, %v11073_v11  ;;  %v11083_v52 = vrot.slane %v11081_v2, 5  ;;  %v11476_v26 = vrot.slane %v20042_v42, 5  ;;  %v9786_v31 = vld [vmem:[#allocation4 + $0xc] sm:$0xe]  ;;  %v16516_v13 = vld [vmem:[#allocation4 + $0x4] sm:$0xf] }
 0x6c1   : > { %v14430_v18 = vcombine.low %v11050_v24, %v11060_v23  ;;  %v11475_v16 = vrot.slane %v11473_v59, 4  ;;  %v14343_v57 = vcombine.low %v20038_v8, %v20044_v20  ;;  %v14441_v9 = vrot.slane %v11408_v56, 9  ;;  %v16517_v56 = vld [vmem:[#allocation4 + $0x8] sm:$0x1] }
 0x6c2   : > { %v11480_v21 = vrot.slane %v20058_v28, 5  ;;  %v11069_v49 = vrot.slane %v11068_v3, 4  ;;  %v11079_v54 = vrot.slane %v11078_v6, 4  ;;  %vm21511_vm12 = vnez %v21510_v34  ;;  %v9787_v6 = vld [vmem:[#allocation4 + $0x18] sm:$0xe] }
 0x6c3   : > { %15680 = vmatprep.mubr.bf16.mxu1 %v14430_v18  ;;  %v11474_v14 = vsel %vm21511_vm12, %v14440_v32, %v11473_v59  ;;  %v11487_v25 = vrot.slane %v20066_v58, 5  ;;  %v11477_v42 = vsel %vm21511_vm12, %v11475_v16, %v11476_v26  ;;  %v11483_v41 = vrot.slane %v20061_v33, 5  ;;  %v16518_v32 = vld [vmem:[#allocation4 + $0x10] sm:$0xf] }
 0x6c4   : > { %v11482_v2 = vrot.slane %v11480_v21, 4  ;;  %v14352_v53 = vrot.slane %v9785_v45, 9  ;;  %v11074_v8 = vsel %vm21505_vm6, %v11069_v49, %v11073_v11  ;;  %v11084_v20 = vsel %vm21505_vm6, %v11079_v54, %v11083_v52  ;;  %v21512_v11 = vld [vmem:[#allocation33_spill] sm:$0xff]  ;;  %v11410_v49 = vld [vmem:[#allocation4 + $0x30] sm:$0xe] }
 0x6c5   : > { %v14442_v28 = vrot.slane %v11409_v36, 9  ;;  %v11489_v27 = vrot.slane %v11487_v25, 4  ;;  %v14431_v3 = vcombine.low %v11074_v8, %v11084_v20  ;;  %v9835_v59 = vrot.slane %v16516_v13, 5  ;;  %v16519_v8 = vld [vmem:[#allocation4 + $0x20] sm:$0x1] }
 0x6c6   : > { %15537 = vmatmul.mubr.bf16.gmra.mrb[40].mxu0 %v14343_v57  ;;  %v11484_v58 = vsel %vm21511_vm12, %v11482_v2, %v11483_v41  ;;  %v9838_v10 = vrot.slane %v16517_v56, 5  ;;  %v14456_v33 = vcombine.low %v11474_v14, %v11477_v42  ;;  %v11481_v24 = vsel %vm21511_vm12, %v14441_v9, %v11480_v21  ;;  %v9788_v13 = vld [vmem:[#allocation4 + $0x24] sm:$0xe] }
 0x6c7   : > { %v11490_v23 = vrot.slane %v21512_v11, 5  ;;  %v9842_v18 = vrot.slane %v16518_v32, 5  ;;  %15681 = vmatmul.mubr.bf16.gmra.mrb[88].mxu1 %v14431_v3  ;;  %v11488_v52 = vsel %vm21511_vm12, %v14442_v28, %v11487_v25  ;;  %v9836_v26 = vsel %vm21511_vm12, %v14352_v53, %v9835_v59  ;;  %v11411_v28 = vld [vmem:[#allocation4 + $0x3c] sm:$0xe]  ;;  %v21513_v3 = vld [vmem:[#allocation35_spill] sm:$0xff]  ;;  %v16460_v11 = vld [vmem:[#allocation11 + $0x188] sm:$0xff]  }
 0x6c8   : > { %v9837_v45 = vrot.slane %v9835_v59, 4  ;;  %v14353_v16 = vrot.slane %v9786_v31, 9  ;;  %15700 = vmatprep.mubr.bf16.mxu1 %v14456_v33  ;;  %v14457_v57 = vcombine.low %v11481_v24, %v11484_v58  ;;  %v9849_v21 = vrot.slane %v20085_v1, 5 }
 0x6c9   : > { %v11491_v36 = vsel %vm21511_vm12, %v11489_v27, %v11490_v23  ;;  %v9844_v9 = vrot.slane %v9842_v18, 4  ;;  %v14354_v25 = vrot.slane %v9787_v6, 9  ;;  %v11494_v42 = vrot.slane %v20081_v29, 5  ;;  %v16520_v23 = vld [vmem:[#allocation4 + $0x28] sm:$0xf] }
 0x6ca   : > { %v9839_v54 = vsel %vm21511_vm12, %v9837_v45, %v9838_v10  ;;  %v9843_v14 = vsel %vm21511_vm12, %v14353_v16, %v9842_v18  ;;  %v9851_v53 = vrot.slane %v9849_v21, 4  ;;  %v9852_v20 = vrot.slane %v16519_v8, 5  ;;  %v9789_v18 = vld [vmem:[#allocation4 + $0x30] sm:$0xe] }
 0x6cb   : > { %v14368_v2 = vcombine.low %v9836_v26, %v9839_v54  ;;  %v9846_v41 = vsel %vm21511_vm12, %v9844_v9, %v9845_v50  ;;  %v14443_v1 = vrot.slane %v11410_v49, 9  ;;  %v11496_v31 = vrot.slane %v11494_v42, 4  ;;  %v11412_v54 = vld [vmem:[#allocation4 + $0x48] sm:$0xe] }
 0x6cc   : > { %v14369_v27 = vcombine.low %v9843_v14, %v9846_v41  ;;  %v11497_v58 = vrot.slane %v21513_v3, 5  ;;  %v14458_v59 = vcombine.low %v11488_v52, %v11491_v36  ;;  %v9850_v56 = vsel %vm21511_vm12, %v14354_v25, %v9849_v21  ;;  %v16521_v36 = vld [vmem:[#allocation4 + $0x2c] sm:$0x1]  ;;  %v16522_v21 = vld [vmem:[#allocation4 + $0x34] sm:$0xf] }
 0x6cd   : > { %15556 = vmatprep.mubr.bf16.mxu0 %v14368_v2  ;;  %v9853_v29 = vsel %vm21511_vm12, %v9851_v53, %v9852_v20  ;;  %v11501_v50 = vrot.slane %v20098_v39, 5  ;;  %v20308_v33 = vsel %vm21511_vm12, %v14443_v1, %v11494_v42  ;;  %v9856_v32 = vrot.slane %v16520_v23, 5  ;;  %v16523_v53 = vld [vmem:[#allocation4 + $0x38] sm:$0x1]  ;;  %v16461_v20 = vld [vmem:[#allocation11 + $0x190] sm:$0xff]  }
 0x6ce   : > { %15557 = vmatmul.mubr.bf16.vlgmr.msra.gmra.mrb[12].mxu0 %v14369_v27  ;;  %v14370_v10 = vcombine.low %v9850_v56, %v9853_v29  ;;  %v20312_v24 = vsel %vm21511_vm12, %v11496_v31, %v11497_v58  ;;  %v14444_v6 = vrot.slane %v11411_v28, 9  ;;  %v11504_v26 = vrot.slane %v20103_v63, 5  ;;  %v9790_v3 = vld [vmem:[#allocation4 + $0x3c] sm:$0xe] }
 0x6cf   : > { %v11503_v52 = vrot.slane %v11501_v50, 4  ;;  %v14355_v45 = vrot.slane %v9788_v13, 9  ;;  %15701 = vmatmul.mubr.bf16.vlgmr.msra.gmra.mrb[60].mxu1 %v14457_v57  ;;  %v14459_v39 = vcombine.low %v20308_v33, %v20312_v24  ;;  %v9858_v16 = vrot.slane %v9856_v32, 4  ;;  %v9791_v33 = vld [vmem:[#allocation4 + $0x48] sm:$0xe] }
 0x6d0   : > { %15560 = vmatprep.mubr.bf16.mxu0 %v14370_v10  ;;  %v9859_v9 = vrot.slane %v16521_v36, 5  ;;  %v9863_v49 = vrot.slane %v16522_v21, 5  ;;  %15704 = vmatprep.mubr.bf16.mxu1 %v14458_v59  ;;  %v11502_v14 = vsel %vm21511_vm12, %v14444_v6, %v11501_v50  ;;  %v14356_v57 = vrot.slane %v9789_v18, 9  ;;  %v11414_v36 = vld [vmem:[#allocation4 + $0x60] sm:$0xe] }
 0x6d1   : > { %15733 = vmatpush3.bf16.msra.mxu1 %v20189_v19  ;;  %v11505_v63 = vsel %vm21511_vm12, %v11503_v52, %v11504_v26  ;;  %v11508_v25 = vrot.slane %v20112_v7, 5  ;;  %v9857_v42 = vsel %vm21511_vm12, %v14355_v45, %v9856_v32  ;;  %v9866_v8 = vrot.slane %v16523_v53, 5  ;;  %v11413_v19 = vld [vmem:[#allocation4 + $0x54] sm:$0xe]  ;;  %v16525_v52 = vld [vmem:[#allocation4 + $0x44] sm:$0x1] }
 0x6d2   : > { %15734 = vmatprep.subr.bf16.mxu1 %v16460_v11  ;;  %v9860_v2 = vsel %vm21511_vm12, %v9858_v16, %v9859_v9  ;;  %v9865_v41 = vrot.slane %v9863_v49, 4  ;;  %v14460_v28 = vcombine.low %v11502_v14, %v11505_v63  ;;  %v14445_v27 = vrot.slane %v11412_v54, 9  ;;  %v16526_v45 = vld [vmem:[#allocation4 + $0x4c] sm:$0xf] }
 0x6d3   : > { %v11510_v1 = vrot.slane %v11508_v25, 4  ;;  %v11511_v31 = vrot.slane %v20121_v5, 5  ;;  %v14371_v58 = vcombine.low %v9857_v42, %v9860_v2  ;;  %v9864_v7 = vsel %vm21511_vm12, %v14356_v57, %v9863_v49  ;;  %v16524_v5 = vld [vmem:[#allocation4 + $0x40] sm:$0xf]  ;;  %v16527_v57 = vld [vmem:[#allocation4 + $0x50] sm:$0x1] }
 0x6d4   : > { %v9867_v13 = vsel %vm21511_vm12, %v9865_v41, %v9866_v8  ;;  %v11515_v59 = vrot.slane %v20127_v37, 5  ;;  %v20335_v29 = vsel %vm21511_vm12, %v14445_v27, %v11508_v25  ;;  %v9870_v10 = vrot.slane %v16524_v5, 5  ;;  %v11415_v25 = vld [vmem:[#allocation4 + $0x6c] sm:$0xe]  ;;  %v16463_v8 = vld [vmem:[#allocation11 + $0x1a0] sm:$0xff]  }
 0x6d5   : > { %15735 = vmatpush3.bf16.msra.mxu1 %v16460_v11  ;;  %v14372_v56 = vcombine.low %v9864_v7, %v9867_v13  ;;  %v20339_v50 = vsel %vm21511_vm12, %v11510_v1, %v11511_v31  ;;  %v14446_v24 = vrot.slane %v11413_v19, 9  ;;  %v11518_v32 = vrot.slane %v20135_v46, 5  ;;  %v16462_v11 = vld [vmem:[#allocation11 + $0x198] sm:$0xff]   ;;  %v9793_v7 = vld [vmem:[#allocation4 + $0x60] sm:$0xe] }
 0x6d6   : > { %15561 = vmatmul.mubr.bf16.gmra.mrb[16].mxu0 %v14371_v58  ;;  %v11517_v23 = vrot.slane %v11515_v59, 4  ;;  %15736 = vmatprep.subr.bf16.mxu1 %v16461_v20  ;;  %v14357_v37 = vrot.slane %v9790_v3, 9  ;;  %v14461_v18 = vcombine.low %v20335_v29, %v20339_v50  ;;  %v9872_v6 = vrot.slane %v9870_v10, 4  ;;  %v9792_v27 = vld [vmem:[#allocation4 + $0x54] sm:$0xe] }
 0x6d7   : > { %15564 = vmatprep.mubr.bf16.mxu0 %v14372_v56  ;;  %v9873_v26 = vrot.slane %v16525_v52, 5  ;;  %v9877_v16 = vrot.slane %v16526_v45, 5  ;;  %15705 = vmatmul.mubr.bf16.gmra.mrb[64].mxu1 %v14459_v39  ;;  %v11516_v9 = vsel %vm21511_vm12, %v14446_v24, %v11515_v59  ;;  %v14358_v21 = vrot.slane %v9791_v33, 9  ;;  %v16528_v3 = vld [vmem:[#allocation4 + $0x58] sm:$0xf] }
 0x6d8   : > { %v11519_v46 = vsel %vm21511_vm12, %v11517_v23, %v11518_v32  ;;  %v11522_v49 = vrot.slane %v20142_v0, 5  ;;  %15708 = vmatprep.mubr.bf16.mxu1 %v14460_v28  ;;  %v9871_v54 = vsel %vm21511_vm12, %v14357_v37, %v9870_v10  ;;  %v9880_v39 = vrot.slane %v16527_v57, 5  ;;  %v11416_v29 = vld [vmem:[#allocation4 + $0x78] sm:$0xe]  ;;  %v16529_v10 = vld [vmem:[#allocation4 + $0x5c] sm:$0x1] }
 0x6d9   : > { %15737 = vmatpush3.bf16.msra.mxu1 %v16461_v20  ;;  %v9874_v14 = vsel %vm21511_vm12, %v9872_v6, %v9873_v26  ;;  %v9879_v63 = vrot.slane %v9877_v16, 4  ;;  %v14462_v42 = vcombine.low %v11516_v9, %v11519_v46  ;;  %v14447_v2 = vrot.slane %v11414_v36, 9  ;;  %v16530_v24 = vld [vmem:[#allocation4 + $0x64] sm:$0xf] }
 0x6da   : > { %v11524_v41 = vrot.slane %v11522_v49, 4  ;;  %v11525_v53 = vrot.slane %v20148_v12, 5  ;;  %15738 = vmatprep.subr.bf16.mxu1 %v16462_v11  ;;  %v14373_v0 = vcombine.low %v9871_v54, %v9874_v14  ;;  %v9878_v19 = vsel %vm21511_vm12, %v14358_v21, %v9877_v16  ;;  %v16464_v32 = vld [vmem:[#allocation11 + $0x1a8] sm:$0xff]   ;;  %v16531_v16 = vld [vmem:[#allocation4 + $0x68] sm:$0x1] }
 0x6db   : > { %v9881_v20 = vsel %vm21511_vm12, %v9879_v63, %v9880_v39  ;;  %v11529_v28 = vrot.slane %v20155_v17, 5  ;;  %v20361_v1 = vsel %vm21511_vm12, %v14447_v2, %v11522_v49  ;;  %v14448_v12 = vrot.slane %v11415_v25, 9  ;;  %v11417_v49 = vld [vmem:[#allocation4 + $0x84] sm:$0xe]  ;;  %v16465_v63 = vld [vmem:[#allocation11 + $0x1b0] sm:$0xff]  }
 0x6dc   : > { %v20365_v31 = vsel %vm21511_vm12, %v11524_v41, %v11525_v53  ;;  %v9884_v58 = vrot.slane %v16528_v3, 5  ;;  %v14374_v13 = vcombine.low %v9878_v19, %v9881_v20  ;;  %v11532_v17 = vrot.slane %v20159_v4, 5  ;;  %v16532_v25 = vld [vmem:[#allocation4 + $0x70] sm:$0xf]  ;;  %v16533_v20 = vld [vmem:[#allocation4 + $0x7c] sm:$0xf] }
 0x6dd   : > { %v14463_v59 = vcombine.low %v20361_v1, %v20365_v31  ;;  %v11531_v56 = vrot.slane %v11529_v28, 4  ;;  %15739 = vmatpush3.bf16.msra.mxu1 %v16462_v11  ;;  %v14359_v50 = vrot.slane %v9792_v27, 9  ;;  %v9887_v33 = vrot.slane %v16529_v10, 5  ;;  %v11418_v27 = vld [vmem:[#allocation4 + $0x90] sm:$0xe] }
 0x6de   : > { %15565 = vmatmul.mubr.bf16.gmra.mrb[20].mxu0 %v14373_v0  ;;  %v9886_v5 = vrot.slane %v9884_v58, 4  ;;  %v9891_v23 = vrot.slane %v16530_v24, 5  ;;  %15740 = vmatprep.subr.bf16.mxu1 %v16463_v8  ;;  %v11530_v37 = vsel %vm21511_vm12, %v14448_v12, %v11529_v28  ;;  %v14360_v52 = vrot.slane %v9793_v7, 9 }
 0x6df   : > { %15568 = vmatprep.mubr.bf16.mxu0 %v14374_v13  ;;  %v11533_v6 = vsel %vm21511_vm12, %v11531_v56, %v11532_v17  ;;  %v11536_v4 = vrot.slane %v20168_v62, 5  ;;  %15709 = vmatmul.mubr.bf16.gmra.mrb[68].mxu1 %v14461_v18  ;;  %v9894_v36 = vrot.slane %v16531_v16, 5  ;;  %v14449_v9 = vrot.slane %v11416_v29, 9  ;;  %v16534_v17 = vld [vmem:[#allocation4 + $0x74] sm:$0x1] }
 0x6e0   : > { %v14464_v11 = vcombine.low %v11530_v37, %v11533_v6  ;;  %v9888_v26 = vsel %vm21511_vm12, %v9886_v5, %v9887_v33  ;;  %v9893_v45 = vrot.slane %v9891_v23, 4  ;;  %15712 = vmatprep.mubr.bf16.mxu1 %v14462_v42  ;;  %v11539_v21 = vrot.slane %v20174_v43, 5  ;;  %v16535_v5 = vld [vmem:[#allocation4 + $0x80] sm:$0x1] }
 0x6e1   : > { %v11538_v46 = vrot.slane %v11536_v4, 4  ;;  %15741 = vmatpush3.bf16.msra.mxu1 %v16463_v8  ;;  %v9885_v54 = vsel %vm21511_vm12, %v14359_v50, %v9884_v58  ;;  %v9892_v62 = vsel %vm21511_vm12, %v14360_v52, %v9891_v23  ;;  %v11543_v14 = vrot.slane %v20180_v60, 5  ;;  %v9794_v8 = vld [vmem:[#allocation4 + $0x6c] sm:$0xe]  ;;  %v9795_v58 = vld [vmem:[#allocation4 + $0x78] sm:$0xe] }
 0x6e2   : > { %v9895_v18 = vsel %vm21511_vm12, %v9893_v45, %v9894_v36  ;;  %15742 = vmatprep.subr.bf16.mxu1 %v16464_v32  ;;  %v14375_v57 = vcombine.low %v9885_v54, %v9888_v26  ;;  %v20387_v39 = vsel %vm21511_vm12, %v14449_v9, %v11536_v4  ;;  %v9898_v42 = vrot.slane %v16532_v25, 5  ;;  %v11419_v23 = vld [vmem:[#allocation4 + $0x9c] sm:$0xe] }
 0x6e3   : > { %v20391_v43 = vsel %vm21511_vm12, %v11538_v46, %v11539_v21  ;;  %v14450_v41 = vrot.slane %v11417_v49, 9  ;;  %v11545_v53 = vrot.slane %v11543_v14, 4  ;;  %v11546_v60 = vrot.slane %v20187_v55, 5  ;;  %v16467_v55 = vld [vmem:[#allocation11 + $0x1b8] sm:$0xff]   ;;  %v9796_v46 = vld [vmem:[#allocation4 + $0x84] sm:$0xe] }
 0x6e4   : > { %v14465_v2 = vcombine.low %v20387_v39, %v20391_v43  ;;  %v14376_v0 = vcombine.low %v9892_v62, %v9895_v18  ;;  %v9900_v19 = vrot.slane %v9898_v42, 4  ;;  %v9905_v28 = vrot.slane %v16533_v20, 5  ;;  %v16537_v49 = vld [vmem:[#allocation4 + $0x94] sm:$0xf]  ;;  %v11420_v62 = vld [vmem:[#allocation4 + $0xa8] sm:$0xe] }
 0x6e5   : > { %15743 = vmatpush3.bf16.msra.mxu1 %v16464_v32  ;;  %v20398_v12 = vsel %vm21511_vm12, %v14450_v41, %v11543_v14  ;;  %v20402_v3 = vsel %vm21511_vm12, %v11545_v53, %v11546_v60  ;;  %v11550_v7 = vrot.slane %v20196_v61, 5  ;;  %v14361_v56 = vrot.slane %v9794_v8, 9  ;;  %v11421_v60 = vld [vmem:[#allocation4 + $0xb4] sm:$0xe] }
 0x6e6   : > { %15569 = vmatmul.mubr.bf16.gmra.mrb[24].mxu0 %v14375_v57  ;;  %15744 = vmatprep.subr.bf16.mxu1 %v16465_v63  ;;  %v14466_v13 = vcombine.low %v20398_v12, %v20402_v3  ;;  %v9901_v29 = vrot.slane %v16534_v17, 5  ;;  %v9907_v50 = vrot.slane %v9905_v28, 4  ;;  %v9908_v10 = vrot.slane %v16535_v5, 5  ;;  %v9797_v57 = vld [vmem:[#allocation4 + $0x90] sm:$0xe] }
 0x6e7   : > { %15572 = vmatprep.mubr.bf16.mxu0 %v14376_v0  ;;  %15713 = vmatmul.mubr.bf16.gmra.mrb[72].mxu1 %v14463_v59  ;;  %v14451_v33 = vrot.slane %v11418_v27, 9  ;;  %v11552_v24 = vrot.slane %v11550_v7, 4  ;;  %v11553_v61 = vrot.slane %v20202_v47, 5  ;;  %v9899_v32 = vsel %vm21511_vm12, %v14361_v56, %v9898_v42  ;;  %v16536_v59 = vld [vmem:[#allocation4 + $0x88] sm:$0xf] }
 0x6e8   : > { %15716 = vmatprep.mubr.bf16.mxu1 %v14464_v11  ;;  %v9902_v37 = vsel %vm21511_vm12, %v9900_v19, %v9901_v29  ;;  %v14362_v6 = vrot.slane %v9795_v58, 9  ;;  %v11557_v52 = vrot.slane %v20210_v22, 5  ;;  %v9909_v1 = vsel %vm21511_vm12, %v9907_v50, %v9908_v10  ;;  %v20426_v11 = vld [vmem:[#allocation11 + $0x1c0] sm:$0xff]   ;;  %v16538_v42 = vld [vmem:[#allocation4 + $0x8c] sm:$0x1] }
 0x6e9   : > { %15745 = vmatpush3.bf16.msra.mxu1 %v16465_v63  ;;  %v20420_v31 = vsel %vm21511_vm12, %v14451_v33, %v11550_v7  ;;  %v20424_v47 = vsel %vm21511_vm12, %v11552_v24, %v11553_v61  ;;  %v9912_v4 = vrot.slane %v16536_v59, 5  ;;  %v14452_v26 = vrot.slane %v11419_v23, 9  ;;  %v16539_v27 = vld [vmem:[#allocation4 + $0x98] sm:$0x1]  ;;  %v16541_v29 = vld [vmem:[#allocation4 + $0xac] sm:$0xf] }
 0x6ea   : > { %15746 = vmatprep.subr.bf16.mxu1 %v16467_v55  ;;  %v14467_v22 = vcombine.low %v20420_v31, %v20424_v47  ;;  %v11559_v45 = vrot.slane %v11557_v52, 4  ;;  %v11560_v16 = vrot.slane %v20214_v40, 5  ;;  %v14377_v36 = vcombine.low %v9899_v32, %v9902_v37  ;;  %v11422_v5 = vld [vmem:[#allocation4 + $0xc0] sm:$0xe]  ;;  %v576_v23 = vld [vmem:[#allocation4 + $0xcc] sm:$0x1] }
 0x6eb   : > { %v9906_v9 = vsel %vm21511_vm12, %v14362_v6, %v9905_v28  ;;  %v9914_v21 = vrot.slane %v9912_v4, 4  ;;  %v9919_v54 = vrot.slane %v16537_v49, 5  ;;  %v20435_v14 = vsel %vm21511_vm12, %v14452_v26, %v11557_v52  ;;  %v9798_v6 = vld [vmem:[#allocation4 + $0x9c] sm:$0xe]  ;;  %v16542_v26 = vld [vmem:[#allocation4 + $0xa4] sm:$0x1] }
 0x6ec   : > { %v14378_v18 = vcombine.low %v9906_v9, %v9909_v1  ;;  %v11561_v63 = vsel %vm21511_vm12, %v11559_v45, %v11560_v16  ;;  %v11564_v40 = vrot.slane %v20223_v30, 5  ;;  %v9915_v41 = vrot.slane %v16538_v42, 5  ;;  %v9799_v16 = vld [vmem:[#allocation4 + $0xa8] sm:$0xe]  ;;  %v9800_v42 = vld [vmem:[#allocation4 + $0xb4] sm:$0xe] }
 0x6ed   : > { %15747 = vmatpush3.bf16.msra.mxu1 %v16467_v55  ;;  %v14468_v25 = vcombine.low %v20435_v14, %v11561_v63  ;;  %v9921_v53 = vrot.slane %v9919_v54, 4  ;;  %v14363_v8 = vrot.slane %v9796_v46, 9  ;;  %v14453_v0 = vrot.slane %v11420_v62, 9  ;;  %v16540_v55 = vld [vmem:[#allocation4 + $0xa0] sm:$0xf] }
 0x6ee   : > { %15573 = vmatmul.mubr.bf16.gmra.mrb[28].mxu0 %v14377_v36  ;;  %15780 = vmatprep.subr.bf16.mxu1 %v20426_v11  ;;  %v11566_v19 = vrot.slane %v11564_v40, 4  ;;  %v11567_v20 = vrot.slane %v20229_v15, 5  ;;  %v9916_v30 = vsel %vm21511_vm12, %v9914_v21, %v9915_v41  ;;  %v14364_v28 = vrot.slane %v9797_v57, 9  ;;  %v16545_v41 = vld [vmem:[#allocation4 + $0xbc] sm:$0x1] }
 0x6ef   : > { %15576 = vmatprep.mubr.bf16.mxu0 %v14378_v18  ;;  %15717 = vmatmul.mubr.bf16.gmra.mrb[76].mxu1 %v14465_v2  ;;  %v9922_v12 = vrot.slane %v16539_v27, 5  ;;  %v11571_v3 = vrot.slane %v20235_v38, 5  ;;  %v11565_v58 = vsel %vm21511_vm12, %v14453_v0, %v11564_v40  ;;  %v14454_v15 = vrot.slane %v11421_v60, 9  ;;  %v16544_v18 = vld [vmem:[#allocation4 + $0xb8] sm:$0xf]  ;;  %v16469_v27 = vld [vmem:[#allocation4 + $0x30] sm:$0xff]  }
 0x6f0   : > { %15720 = vmatprep.mubr.bf16.mxu1 %v14466_v13  ;;  %v11568_v7 = vsel %vm21511_vm12, %v11566_v19, %v11567_v20  ;;  %v9926_v56 = vrot.slane %v16540_v55, 5  ;;  %v11574_v17 = vrot.slane %v20242_v51, 5  ;;  %v9913_v38 = vsel %vm21511_vm12, %v14363_v8, %v9912_v4  ;;  %v16466_v20 = vld [vmem:[#allocation4 + $0x18] sm:$0xff]  }
 0x6f1   : > { %v9923_v39 = vsel %vm21511_vm12, %v9921_v53, %v9922_v12  ;;  %v14469_v43 = vcombine.low %v11565_v58, %v11568_v7  ;;  %v11573_v2 = vrot.slane %v11571_v3, 4  ;;  %v9920_v13 = vsel %vm21511_vm12, %v14364_v28, %v9919_v54  ;;  %v16473_v28 = vld [vmem:[#allocation11 + $0x1c8] sm:$0xff]   ;;  %v16476_v12 = vld [vmem:[#allocation11 + $0x1d0] sm:$0xff]   ;;  %v12293_v58 = vld [vmem:[#allocation4 + $0x1c] sm:$0xf] }
 0x6f2   : > { %v9933_v50 = vrot.slane %v16541_v29, 5  ;;  %v14379_v10 = vcombine.low %v9913_v38, %v9916_v30  ;;  %v11572_v33 = vsel %vm21511_vm12, %v14454_v15, %v11571_v3  ;;  %v11578_v61 = vrot.slane %v20246_v35, 5  ;;  %v16543_v35 = vld [vmem:[#allocation4 + $0xb0] sm:$0x1]  ;;  %v16468_v30 = vld [vmem:[#allocation4 + $0x24] sm:$0xff]   ;;  %v16471_v7 = vld [vmem:[#allocation4 + $0x3c] sm:$0xff]  }
 0x6f3   : > { %v11575_v24 = vsel %vm21511_vm12, %v11573_v2, %v11574_v17  ;;  %v14380_v51 = vcombine.low %v9920_v13, %v9923_v39  ;;  %v9928_v37 = vrot.slane %v9926_v56, 4  ;;  %v14455_v1 = vrot.slane %v11422_v5, 9  ;;  %v12292_v3 = vld [vmem:[#allocation4 + $0x18] sm:$0xf]  ;;  %v16479_v15 = vld [vmem:[#allocation11 + $0x1d8] sm:$0xff]   ;;  %v16472_v39 = vld [vmem:[#allocation4 + $0x48] sm:$0xff]  }
 0x6f4   : > { %v14470_v32 = vcombine.low %v11572_v33, %v11575_v24  ;;  %v9935_v52 = vrot.slane %v9933_v50, 4  ;;  %v11580_v59 = vrot.slane %v11578_v61, 4  ;;  %v11581_v4 = vrot.slane %v20251_v44, 5  ;;  %v12295_v17 = vld [vmem:[#allocation4 + $0x24] sm:$0xf] }
 0x6f5   : > { %v9929_v45 = vrot.slane %v16542_v26, 5  ;;  %v577_v9 = vsel %vm17077_vm3, 0, %v576_v23  ;;  %v9936_v46 = vrot.slane %v16543_v35, 5  ;;  %v11579_v21 = vsel %vm21511_vm12, %v14455_v1, %v11578_v61  ;;  %v20488_v38 = vld [vmem:[#allocation4 + $0x28] sm:$0xf] }
 0x6f6   : > { %15577 = vmatmul.mubr.bf16.gmra.mrb[32].mxu0 %v14379_v10  ;;  %v11582_v49 = vsel %vm21511_vm12, %v11580_v59, %v11581_v4  ;;  %578 = vst [vmem:[#allocation4 + $0xcc] sm:$0x1] %v577_v9  ;;  %v14365_v44 = vrot.slane %v9798_v6, 9  ;;  %v9940_v14 = vrot.slane %v16544_v18, 5  ;;  %v14366_v63 = vrot.slane %v9799_v16, 9 }
 0x6f7   : > { %15580 = vmatprep.mubr.bf16.mxu0 %v14380_v51  ;;  %15721 = vmatmul.mubr.bf16.gmra.mrb[80].mxu1 %v14467_v22  ;;  %v9930_v54 = vsel %vm21511_vm12, %v9928_v37, %v9929_v45  ;;  %v14471_v62 = vcombine.low %v11579_v21, %v11582_v49  ;;  %v9937_v31 = vsel %vm21511_vm12, %v9935_v52, %v9936_v46  ;;  %v9943_v53 = vrot.slane %v16545_v41, 5  ;;  %v20492_v24 = vld [vmem:[#allocation4 + $0x20] sm:$0x1]  ;;  %v12298_v51 = vld [vmem:[#allocation4 + $0x30] sm:$0xf]  ;;  %v16488_v21 = vld [vmem:[#allocation11 + $0x1f0] sm:$0xff]  }
 0x6f8   : > { %15724 = vmatprep.mubr.bf16.mxu1 %v14468_v25  ;;  %v9927_v47 = vsel %vm21511_vm12, %v14365_v44, %v9926_v56  ;;  %v9934_v57 = vsel %vm21511_vm12, %v14366_v63, %v9933_v50  ;;  %v9942_v25 = vrot.slane %v9940_v14, 4  ;;  %v14367_v60 = vrot.slane %v9800_v42, 9  ;;  %v16485_v37 = vld [vmem:[#allocation11 + $0x1e8] sm:$0xff]   ;;  %v20498_v45 = vld [vmem:[#allocation4 + $0x2c] sm:$0x1] }
 0x6f9   : > { %v14381_v22 = vcombine.low %v9927_v47, %v9930_v54  ;;  %v14382_v40 = vcombine.low %v9934_v57, %v9937_v31  ;;  %v12341_v55 = vshrl.u32 %v12292_v3, 16  ;;  %v12344_v56 = vshll.u32 %v12292_v3, 16  ;;  %v16475_v52 = vld [vmem:[#allocation4 + $0x60] sm:$0xff]   ;;  %v12301_v46 = vld [vmem:[#allocation4 + $0x3c] sm:$0xf] }
 0x6fa   : > { %v9944_v8 = vsel %vm21511_vm12, %v9942_v25, %v9943_v53  ;;  %v9941_v0 = vsel %vm21511_vm12, %v14367_v60, %v9940_v14  ;;  %v12354_v2 = vshrl.u32 %v12293_v58, 16  ;;  %v12365_v10 = vshrl.u32 %v12295_v17, 16  ;;  %v20502_v44 = vld [vmem:[#allocation4 + $0x34] sm:$0xf]  ;;  %v20504_v54 = vld [vmem:[#allocation4 + $0x40] sm:$0xf] }
 0x6fb   : > { %v14383_v19 = vcombine.low %v9941_v0, %v9944_v8  ;;  %v12343_v13 = vrot.slane %v12341_v55, 4  ;;  %v12346_v29 = vrot.slane %v12344_v56, 5  ;;  %v12368_v33 = vshll.u32 %v12295_v17, 16  ;;  %v20507_v31 = vld [vmem:[#allocation4 + $0x4c] sm:$0xf] }
 0x6fc   : > { %v12356_v5 = vrot.slane %v12354_v2, 4  ;;  %v12374_v61 = vshll.u32 %v20488_v38, 16  ;;  %v12378_v23 = vshrl.u32 %v20488_v38, 16  ;;  %v12360_v59 = vshll.u32 %v20492_v24, 16  ;;  %v20513_v57 = vld [vmem:[#allocation4 + $0x38] sm:$0x1] }
 0x6fd   : > { %v12347_v6 = vor.u32 %v12346_v29, %v12343_v13  ;;  %v12367_v4 = vrot.slane %v12365_v10, 4  ;;  %v12370_v26 = vrot.slane %v12368_v33, 5  ;;  %v12389_v9 = vshrl.u32 %v12298_v51, 16  ;;  %v12304_v8 = vld [vmem:[#allocation4 + $0x48] sm:$0xf]  ;;  %v16477_v0 = vld [vmem:[#allocation4 + $0x6c] sm:$0xff]  }
 0x6fe   : > { %15581 = vmatmul.mubr.bf16.gmra.mrb[36].mxu0 %v14381_v22  ;;  %v20500_v16 = vrot.slane %v12374_v61, 5  ;;  %v12380_v36 = vrot.slane %v12378_v23, 4  ;;  %v12392_v35 = vshll.u32 %v12298_v51, 16  ;;  %v12362_v18 = vrot.slane %v12360_v59, 5  ;;  %v20524_v2 = vld [vmem:[#allocation4 + $0x58] sm:$0xf] }
 0x6ff   : > { %15584 = vmatprep.mubr.bf16.mxu0 %v14382_v40  ;;  %15725 = vmatmul.mubr.bf16.gmra.mrb[84].mxu1 %v14469_v43  ;;  %v12350_v43 = vshll.u32 %v12293_v58, 16  ;;  %v12348_v49 = vrot.slane %v12347_v6, 4  ;;  %v12371_v14 = vor.u32 %v12370_v26, %v12367_v4  ;;  %v12384_v63 = vshll.u32 %v20498_v45, 16 }
 0x700   : > { %15728 = vmatprep.mubr.bf16.mxu1 %v14470_v32  ;;  %v16474_v32 = vld [vmem:[#allocation4 + $0x54] sm:$0xff]   ;;  %v12381_v22 = vor.u32 %v12380_v36, %v20500_v16  ;;  %v12391_v40 = vrot.slane %v12389_v9, 4  ;;  %v12394_v25 = vrot.slane %v12392_v35, 5  ;;  %v12398_v42 = vshll.u32 %v20502_v44, 16  ;;  %v20543_v36 = vld [vmem:[#allocation4 + $0x64] sm:$0xf] }
 0x701   : > { %v20490_v50 = vrot.slane %v12350_v43, 5  ;;  %v12402_v41 = vshrl.u32 %v20502_v44, 16  ;;  %v12413_v53 = vshrl.u32 %v12301_v46, 16  ;;  %v12416_v60 = vshll.u32 %v12301_v46, 16 }
 0x702   : > { %v12372_v58 = vrot.slane %v12371_v14, 4  ;;  %v12382_v55 = vrot.slane %v12381_v22, 4  ;;  %v12395_v56 = vor.u32 %v12394_v25, %v12391_v40  ;;  %v12440_v43 = vshll.u32 %v12304_v8, 16  ;;  %v16481_v22 = vld [vmem:[#allocation4 + $0x90] sm:$0xff]  }
 0x703   : > { %v12357_v1 = vor.u32 %v12356_v5, %v20490_v50  ;;  %v12353_v47 = vsel %vm21505_vm6, %v12348_v49, %v20490_v50  ;;  %v20526_v17 = vrot.slane %v12398_v42, 5  ;;  %v12415_v13 = vrot.slane %v12413_v53, 4  ;;  %v12307_v50 = vld [vmem:[#allocation4 + $0x54] sm:$0xf]  ;;  %v20528_v5 = vld [vmem:[#allocation11 + $0x200] sm:$0xff]   ;;  %v16480_v49 = vld [vmem:[#allocation4 + $0x84] sm:$0xff]  }
 0x704   : > { %v12418_v29 = vrot.slane %v12416_v60, 5  ;;  %v12470_v6 = vshll.u32 %v20524_v2, 16  ;;  %v12442_v59 = vrot.slane %v12440_v43, 5  ;;  %v12461_v4 = vshrl.u32 %v12307_v50, 16 }
 0x705   : > { %v12464_v26 = vshll.u32 %v12307_v50, 16  ;;  %v20547_v35 = vrot.slane %v12395_v56, 4  ;;  %v12494_v42 = vshll.u32 %v20543_v36, 16  ;;  %v630_v50 = vld [vmem:[#allocation4 + $0xd4] sm:$0x1] }
 0x706   : > { %15585 = vmatmul.mubr.bf16.gmra.mrb[40].mxu0 %v14383_v19  ;;  %v16490_v19 = vld [vmem:[#allocation11 + $0x1f8] sm:$0xff]   ;;  %v20558_v40 = vrot.slane %v12470_v6, 5 }
 0x707   : > { %15729 = vmatmul.mubr.bf16.gmra.mrb[88].mxu1 %v14471_v62  ;;  %v12358_v62 = vrot.slane %v12357_v1, 4 }
 0x708   : > { %15748 = vmatprep.mubr.bf16.mxu1 %v16466_v20  ;;  %v12422_v20 = vshll.u32 %v20504_v54, 16 }
 0x709   : > { %v12363_v3 = vsel %vm21505_vm6, %v12358_v62, %v12362_v18  ;;  %v12419_v62 = vor.u32 %v12418_v29, %v12415_v13 }
 0x70a   : > { %v20530_v10 = vrot.slane %v12422_v20, 5  ;;  %v20534_v51 = vcombine.low %v12353_v47, %v12363_v3  ;;  %v12310_v47 = vld [vmem:[#allocation4 + $0x60] sm:$0xf]  ;;  %v12401_v20 = vsel %vm21505_vm6, %v20547_v35, %v20526_v17  ;;  %v20588_v35 = vld [vmem:[#allocation4 + $0x68] sm:$0x1] }
 0x70b   : > { %v12420_v3 = vrot.slane %v12419_v62, 4 }
 0x70f   : > { %15749 = vmatmul.mubr.bf16.vlgmr.msra.gmra.mrb[60].mxu1 %v16468_v30  ;;  %v12426_v30 = vshrl.u32 %v20504_v54, 16 }
 0x710   : > { %15752 = vmatprep.mubr.bf16.mxu1 %v16469_v27  ;;  %15781 = vmatpush3.bf16.msra.mxu1 %v20426_v11  ;;  %v16482_v11 = vld [vmem:[#allocation11 + $0x1e0] sm:$0xff]   ;;  %v12450_v27 = vshrl.u32 %v20507_v31, 16 }
 0x711   : > { %15782 = vmatprep.subr.bf16.mxu1 %v16473_v28  ;;  %v12428_v33 = vrot.slane %v12426_v30, 4  ;;  %v20569_v30 = vld [vmem:[#allocation4 + $0x5c] sm:$0x1] }
 0x712   : > { %v12452_v23 = vrot.slane %v12450_v27, 4  ;;  %v12488_v27 = vshll.u32 %v12310_v47, 16 }
 0x713   : > { %v12429_v18 = vor.u32 %v12428_v33, %v20530_v10 }
 0x714   : > { %15783 = vmatpush3.bf16.msra.mxu1 %v16473_v28  ;;  %v12446_v28 = vshll.u32 %v20507_v31, 16 }
 0x715   : > { %15784 = vmatprep.subr.bf16.mxu1 %v16476_v12 }
 0x716   : > { %v20532_v61 = vrot.slane %v12446_v28, 5  ;;  %v12485_v28 = vshrl.u32 %v12310_v47, 16 }
 0x717   : > { %15753 = vmatmul.mubr.bf16.gmra.mrb[64].mxu1 %v16471_v7  ;;  %v12386_v7 = vrot.slane %v12384_v63, 5 }
 0x718   : > { %15756 = vmatprep.mubr.bf16.mxu1 %v16472_v39  ;;  %15785 = vmatpush3.bf16.msra.mxu1 %v16476_v12  ;;  %v16478_v12 = vld [vmem:[#allocation4 + $0x78] sm:$0xff]   ;;  %v12437_v39 = vshrl.u32 %v12304_v8, 16  ;;  %v12453_v63 = vor.u32 %v12452_v23, %v20532_v61  ;;  %v12463_v8 = vrot.slane %v12461_v4, 4  ;;  %v12487_v33 = vrot.slane %v12485_v28, 4 }
 0x719   : > { %15786 = vmatprep.subr.bf16.mxu1 %v16479_v15  ;;  %v12387_v9 = vsel %vm21505_vm6, %v12382_v55, %v12386_v7  ;;  %v12490_v23 = vrot.slane %v12488_v27, 5  ;;  %v12425_v4 = vsel %vm21505_vm6, %v12420_v3, %v20530_v10  ;;  %v631_v10 = vsel %vm17082_vm4, 0, %v630_v50  ;;  %v20732_v50 = vld [vmem:[#allocation4 + $0x8c] sm:$0x1]  ;;  %v13056_v27 = vld [vmem:[#allocation4 + $0x90] sm:$0xe] }
 0x71a   : > { %v12439_v1 = vrot.slane %v12437_v39, 4  ;;  %v12454_v55 = vrot.slane %v12453_v63, 4  ;;  %v20572_v39 = vrot.slane %v12494_v42, 5  ;;  %632 = vst [vmem:[#allocation4 + $0xd4] sm:$0x1] %v631_v10  ;;  %v12504_v42 = vshll.u32 %v20588_v35, 16 }
 0x71b   : > { %v13057_v3 = vld [vmem:[#allocation4 + $0x9c] sm:$0xe] }
 0x71c   : > { %15787 = vmatpush3.bf16.msra.mxu1 %v16479_v15  ;;  %v12408_v15 = vshll.u32 %v20513_v57, 16  ;;  %v12443_v53 = vor.u32 %v12442_v59, %v12439_v1  ;;  %v16483_v1 = vld [vmem:[#allocation4 + $0x9c] sm:$0xff]  }
 0x71d   : > { %15788 = vmatprep.subr.bf16.mxu1 %v16482_v11 }
 0x71e   : > { %v20550_v46 = vrot.slane %v12408_v15, 5  ;;  %v12313_v15 = vld [vmem:[#allocation4 + $0x6c] sm:$0xf] }
 0x71f   : > { %15757 = vmatmul.mubr.bf16.gmra.mrb[68].mxu1 %v16474_v32  ;;  %v12377_v32 = vsel %vm21505_vm6, %v12372_v58, %v20500_v16  ;;  %v12430_v58 = vrot.slane %v12429_v18, 4  ;;  %v12509_v6 = vshrl.u32 %v12313_v15, 16 }
 0x720   : > { %15760 = vmatprep.mubr.bf16.mxu1 %v16475_v52  ;;  %15789 = vmatpush3.bf16.msra.mxu1 %v16482_v11  ;;  %v12404_v11 = vrot.slane %v12402_v41, 4  ;;  %v12474_v52 = vshrl.u32 %v20524_v2, 16  ;;  %v12498_v41 = vshrl.u32 %v20543_v36, 16 }
 0x721   : > { %15790 = vmatprep.subr.bf16.mxu1 %v16485_v37 }
 0x722   : > { %v12405_v16 = vor.u32 %v12404_v11, %v20526_v17  ;;  %v12476_v25 = vrot.slane %v12474_v52, 4  ;;  %v12500_v43 = vrot.slane %v12498_v41, 4  ;;  %v12444_v11 = vrot.slane %v12443_v53, 4 }
 0x723   : > { %v12480_v17 = vshll.u32 %v20569_v30, 16  ;;  %v12512_v52 = vshll.u32 %v12313_v15, 16  ;;  %v20604_v41 = vrot.slane %v12509_v6, 4  ;;  %v13047_v15 = vld [vmem:[#allocation4 + $0x24] sm:$0xe] }
 0x724   : > { %15791 = vmatpush3.bf16.msra.mxu1 %v16485_v37  ;;  %v20539_v37 = vld [vmem:[#allocation4 + $0x44] sm:$0x1]  ;;  %v12477_v56 = vor.u32 %v12476_v25, %v20558_v40  ;;  %v12491_v25 = vor.u32 %v12490_v23, %v12487_v33  ;;  %v14529_v6 = vrot.slane %v13047_v15, 9  ;;  %v20764_v33 = vld [vmem:[#allocation4 + $0xb0] sm:$0x1]  ;;  %v14539_v15 = vrot.slane %v13057_v3, 9 }
 0x725   : > { %15792 = vmatprep.subr.bf16.mxu1 %v16488_v21  ;;  %v12432_v14 = vshll.u32 %v20539_v37, 16  ;;  %v20599_v63 = vrot.slane %v12480_v17, 5  ;;  %v20606_v53 = vrot.slane %v12512_v52, 5  ;;  %v20636_v17 = vrot.slane %v12504_v42, 5  ;;  %v13050_v42 = vld [vmem:[#allocation4 + $0x48] sm:$0xe] }
 0x726   : > { %v20592_v62 = vrot.slane %v12477_v56, 4 }
 0x727   : > { %15761 = vmatmul.mubr.bf16.gmra.mrb[72].mxu1 %v16477_v0  ;;  %v12466_v0 = vrot.slane %v12464_v26, 5  ;;  %v12434_v7 = vrot.slane %v12432_v14, 5 }
 0x728   : > { %15764 = vmatprep.mubr.bf16.mxu1 %v16478_v12  ;;  %15793 = vmatpush3.bf16.msra.mxu1 %v16488_v21  ;;  %v20552_v21 = vld [vmem:[#allocation4 + $0x50] sm:$0x1]  ;;  %v12406_v12 = vrot.slane %v12405_v16, 4  ;;  %v16484_v16 = vld [vmem:[#allocation4 + $0xa8] sm:$0xff]  }
 0x729   : > { %15794 = vmatprep.subr.bf16.mxu1 %v16490_v19  ;;  %v12456_v60 = vshll.u32 %v20552_v21, 16  ;;  %v12467_v29 = vor.u32 %v12466_v0, %v12463_v8  ;;  %v12435_v26 = vsel %vm21505_vm6, %v12430_v58, %v12434_v7 }
 0x72a   : > { %v12411_v59 = vsel %vm21505_vm6, %v12406_v12, %v20550_v46  ;;  %v12501_v46 = vor.u32 %v12500_v43, %v20572_v39  ;;  %v20612_v0 = vcombine.low %v12425_v4, %v12435_v26  ;;  %v20620_v12 = vld [vmem:[#allocation4 + $0x74] sm:$0x1]  ;;  %v16487_v4 = vld [vmem:[#allocation4 + $0xc0] sm:$0xff]  }
 0x72b   : > { %v12458_v13 = vrot.slane %v12456_v60, 5  ;;  %v20597_v14 = vrot.slane %v12467_v29, 4  ;;  %v20608_v60 = vld [vmem:[#allocation4 + $0x7c] sm:$0xf]  ;;  %v20610_v8 = vcombine.low %v12401_v20, %v12411_v59  ;;  %v20634_v29 = vrot.slane %v12491_v25, 4 }
 0x72c   : > { %15795 = vmatpush3.bf16.msra.mxu1 %v16490_v19  ;;  %v20563_v19 = vcombine.low %v12377_v32, %v12387_v9  ;;  %v20575_v32 = vld [vmem:[#allocation4 + $0x70] sm:$0xf]  ;;  %v12449_v9 = vsel %vm21505_vm6, %v12444_v11, %v20532_v61  ;;  %v20626_v58 = vrot.slane %v12501_v46, 4  ;;  %v12542_v43 = vshll.u32 %v20608_v60, 16 }
 0x72d   : > { %15828 = vmatprep.subr.bf16.mxu1 %v20528_v5  ;;  %v12518_v61 = vshll.u32 %v20575_v32, 16  ;;  %v12522_v47 = vshrl.u32 %v20575_v32, 16  ;;  %v13119_v11 = vrot.slane %v20488_v38, 5  ;;  %v12546_v23 = vshrl.u32 %v20608_v60, 16  ;;  %v13048_v59 = vld [vmem:[#allocation4 + $0x30] sm:$0xe] }
 0x72e   : > { %v13129_v25 = vrot.slane %v20513_v57, 5 }
 0x72f   : > { %15765 = vmatmul.mubr.bf16.gmra.mrb[76].mxu1 %v16480_v49  ;;  %v12459_v49 = vsel %vm21505_vm6, %v12454_v55, %v12458_v13  ;;  %v20628_v55 = vrot.slane %v12518_v61, 5  ;;  %v20630_v56 = vrot.slane %v12522_v47, 4  ;;  %v16486_v13 = vld [vmem:[#allocation4 + $0xb4] sm:$0xff]   ;;  %v13121_v52 = vrot.slane %v13119_v11, 4  ;;  %v13049_v61 = vld [vmem:[#allocation4 + $0x3c] sm:$0xe] }
 0x730   : > { %15768 = vmatprep.mubr.bf16.mxu1 %v16481_v22  ;;  %v12316_v22 = vld [vmem:[#allocation4 + $0x78] sm:$0xf]  ;;  %v20614_v28 = vcombine.low %v12449_v9, %v12459_v49  ;;  %v13126_v49 = vrot.slane %v20502_v44, 5  ;;  %v20660_v18 = vsel %vm21511_vm12, %v14529_v6, %v13119_v11  ;;  %v14530_v44 = vrot.slane %v13048_v59, 9  ;;  %v13053_v59 = vld [vmem:[#allocation4 + $0x6c] sm:$0xe] }
 0x731   : > { %v12533_v20 = vshrl.u32 %v12316_v22, 16  ;;  %v12536_v7 = vshll.u32 %v12316_v22, 16  ;;  %v13133_v11 = vrot.slane %v20504_v54, 5  ;;  %v14531_v57 = vrot.slane %v13049_v61, 9 }
 0x732   : > { %v13128_v22 = vrot.slane %v13126_v49, 4  ;;  %v13136_v47 = vrot.slane %v20539_v37, 5  ;;  %v14532_v54 = vrot.slane %v13050_v42, 9  ;;  %v13143_v61 = vrot.slane %v20552_v21, 5 }
 0x733   : > { %v20647_v26 = vrot.slane %v12533_v20, 4  ;;  %v20649_v9 = vrot.slane %v12536_v7, 5  ;;  %v20669_v20 = vrot.slane %v12546_v23, 4  ;;  %v13140_v23 = vrot.slane %v20507_v31, 5 }
 0x734   : > { %v20682_v6 = vsel %vm21511_vm12, %v13128_v22, %v13129_v25  ;;  %v13052_v22 = vld [vmem:[#allocation4 + $0x60] sm:$0xe]  ;;  %v13147_v42 = vrot.slane %v20524_v2, 5  ;;  %v13150_v21 = vrot.slane %v20569_v30, 5  ;;  %v13157_v2 = vrot.slane %v20588_v35, 5 }
 0x735   : > { %v20700_v25 = vsel %vm21511_vm12, %v14532_v54, %v13140_v23  ;;  %v13054_v54 = vld [vmem:[#allocation4 + $0x78] sm:$0xe]  ;;  %v14538_v7 = vrot.slane %v13056_v27, 9 }
 0x736   : > { %21516 = vst [vmem:[#allocation36_spill] sm:$0xff] %v20700_v25  ;;  %v20787_v27 = vld [vmem:[#allocation4 + $0xb8] sm:$0xf]  ;;  %v20814_v25 = vld [vmem:[#allocation4 + $0xc8] sm:$0x1] }
 0x737   : > { %15769 = vmatmul.mubr.bf16.gmra.mrb[80].mxu1 %v16483_v1  ;;  %v13122_v1 = vrot.slane %v20498_v45, 5  ;;  %v20656_v45 = vrot.slane %v12542_v43, 5  ;;  %v20673_v43 = vld [vmem:[#allocation4 + $0x94] sm:$0xf] }
 0x738   : > { %15772 = vmatprep.mubr.bf16.mxu1 %v16484_v16  ;;  %v20651_v16 = vld [vmem:[#allocation4 + $0x88] sm:$0xf] }
 0x739   : > { %v20664_v10 = vsel %vm21511_vm12, %v13121_v52, %v13122_v1  ;;  %v13051_v52 = vld [vmem:[#allocation4 + $0x54] sm:$0xe]  ;;  %v16489_v1 = vld [vmem:[#allocation4 + $0xcc] sm:$0xff]  }
 0x73a   : > { %v14533_v37 = vrot.slane %v13051_v52, 9  ;;  %v14534_v52 = vrot.slane %v13052_v22, 9  ;;  %v13168_v22 = vrot.slane %v20608_v60, 5 }
 0x73f   : > { %15773 = vmatmul.mubr.bf16.gmra.mrb[84].mxu1 %v16486_v13  ;;  %v20678_v13 = vsel %vm21511_vm12, %v14530_v44, %v13126_v49  ;;  %v20691_v49 = vsel %vm21511_vm12, %v14531_v57, %v13133_v11  ;;  %v13142_v44 = vrot.slane %v13140_v23, 4  ;;  %v13055_v23 = vld [vmem:[#allocation4 + $0x84] sm:$0xe] }
 0x740   : > { %15776 = vmatprep.mubr.bf16.mxu1 %v16487_v4  ;;  %v13135_v4 = vrot.slane %v13133_v11, 4  ;;  %v20715_v11 = vld [vmem:[#allocation4 + $0x80] sm:$0x1]  ;;  %v21543_v48 = vcombine.low %v20678_v13, %v20682_v6 }
 0x741   : > { %v20707_v57 = vsel %vm21511_vm12, %v13142_v44, %v13143_v61  ;;  %v20719_v44 = vsel %vm21511_vm12, %v14533_v37, %v13147_v42  ;;  %v14535_v61 = vrot.slane %v13053_v59, 9  ;;  %v20734_v37 = vld [vmem:[#allocation4 + $0x98] sm:$0x1]  ;;  %v13171_v38 = vrot.slane %v20715_v11, 5 }
 0x742   : > { %v20696_v31 = vsel %vm21511_vm12, %v13135_v4, %v13136_v47  ;;  %21517 = vst [vmem:[#allocation30_spill] sm:$0xff] %v20707_v57  ;;  %v13154_v47 = vrot.slane %v20543_v36, 5  ;;  %v13149_v4 = vrot.slane %v13147_v42, 4  ;;  %21518 = vst [vmem:[#allocation31_spill] sm:$0xff] %v20719_v44  ;;  %v13161_v36 = vrot.slane %v20575_v32, 5 }
 0x743   : > { %v20751_v32 = vld [vmem:[#allocation4 + $0xa4] sm:$0x1]  ;;  %v13185_v46 = vrot.slane %v20734_v37, 5  ;;  %v13060_v44 = vld [vmem:[#allocation4 + $0xc0] sm:$0xe] }
 0x744   : > { %v13156_v30 = vrot.slane %v13154_v47, 4  ;;  %v20728_v35 = vsel %vm21511_vm12, %v14534_v52, %v13154_v47  ;;  %v13163_v42 = vrot.slane %v13161_v36, 4  ;;  %v20742_v47 = vld [vmem:[#allocation4 + $0xa0] sm:$0xf]  ;;  %v20748_v60 = vsel %vm21511_vm12, %v14535_v61, %v13161_v36  ;;  %v20762_v36 = vld [vmem:[#allocation4 + $0xac] sm:$0xf] }
 0x745   : > { %21520 = vst [vmem:[#allocation39_spill] sm:$0xff] %v20728_v35  ;;  %21522 = vst [vmem:[#allocation38_spill] sm:$0xff] %v20748_v60  ;;  %v13170_v52 = vrot.slane %v13168_v22, 4  ;;  %v16492_v61 = vld [vmem:[#allocation11 + $0x208] sm:$0xff]   ;;  %v20778_v35 = vld [vmem:[#allocation4 + $0xbc] sm:$0x1] }
 0x746   : > { %v20740_v59 = vsel %vm21511_vm12, %v13156_v30, %v13157_v2  ;;  %v14537_v30 = vrot.slane %v13055_v23, 9  ;;  %v13196_v3 = vrot.slane %v20762_v36, 5  ;;  %v13061_v57 = vld [vmem:[#allocation4 + $0xcc] sm:$0xe] }
 0x747   : > { %15777 = vmatmul.mubr.bf16.gmra.mrb[88].mxu1 %v16489_v1  ;;  %v20724_v1 = vsel %vm21511_vm12, %v13149_v4, %v13150_v21  ;;  %21521 = vst [vmem:[#allocation37_spill] sm:$0xff] %v20740_v59  ;;  %v14536_v21 = vrot.slane %v13054_v54, 9  ;;  %v13175_v4 = vrot.slane %v20651_v16, 5  ;;  %v13058_v59 = vld [vmem:[#allocation4 + $0xa8] sm:$0xe] }
 0x748   : > { %15796 = vmatprep.mubr.bf16.mxu1 %v20534_v51  ;;  %21519 = vst [vmem:[#allocation29_spill] sm:$0xff] %v20724_v1  ;;  %v13164_v51 = vrot.slane %v20620_v12, 5  ;;  %v13198_v60 = vrot.slane %v13196_v3, 4  ;;  %v13199_v1 = vrot.slane %v20764_v33, 5 }
 0x749   : > { %v20759_v54 = vsel %vm21511_vm12, %v14536_v21, %v13168_v22  ;;  %v13182_v22 = vrot.slane %v20673_v43, 5  ;;  %v13177_v21 = vrot.slane %v13175_v4, 4  ;;  %v21548_v34 = vld [vmem:[#allocation31_spill] sm:$0xff] }
 0x74a   : > { %v20755_v2 = vsel %vm21511_vm12, %v13163_v42, %v13164_v51  ;;  %21524 = vst [vmem:[#allocation28_spill] sm:$0xff] %v20759_v54  ;;  %v20770_v51 = vsel %vm21511_vm12, %v13170_v52, %v13171_v38  ;;  %v13178_v42 = vrot.slane %v20732_v50, 5  ;;  %v20782_v38 = vsel %vm21511_vm12, %v14537_v30, %v13175_v4  ;;  %v13059_v30 = vld [vmem:[#allocation4 + $0xb4] sm:$0xe] }
 0x74b   : > { %21523 = vst [vmem:[#allocation32_spill] sm:$0xff] %v20755_v2  ;;  %21525 = vst [vmem:[#allocation34_spill] sm:$0xff] %v20770_v51  ;;  %v13184_v52 = vrot.slane %v13182_v22, 4  ;;  %v13189_v2 = vrot.slane %v20742_v47, 5  ;;  %v13192_v4 = vrot.slane %v20751_v32, 5  ;;  %v16493_v51 = vld [vmem:[#allocation11 + $0x210] sm:$0xff]  }
 0x74c   : > { %21526 = vst [vmem:[#allocation26_spill] sm:$0xff] %v20782_v38  ;;  %v20791_v23 = vsel %vm21511_vm12, %v13177_v21, %v13178_v42  ;;  %v14540_v54 = vrot.slane %v13058_v59, 9 }
 0x74d   : > { %21527 = vst [vmem:[#allocation27_spill] sm:$0xff] %v20791_v23  ;;  %v20805_v42 = vsel %vm21511_vm12, %v13184_v52, %v13185_v46  ;;  %v13191_v21 = vrot.slane %v13189_v2, 4  ;;  %v14541_v52 = vrot.slane %v13059_v30, 9  ;;  %v12319_v23 = vld [vmem:[#allocation4 + $0x84] sm:$0xf] }
 0x74e   : > { %21529 = vst [vmem:[#allocation35_spill] sm:$0xff] %v20805_v42  ;;  %v20822_v59 = vsel %vm21511_vm12, %v14540_v54, %v13196_v3  ;;  %v16494_v54 = vld [vmem:[#allocation11 + $0x218] sm:$0xff]   ;;  %v14542_v42 = vrot.slane %v13060_v44, 9 }
 0x74f   : > { %15797 = vmatmul.mubr.bf16.vlgmr.msra.gmra.mrb[60].mxu1 %v20563_v19  ;;  %v20795_v19 = vsel %vm21511_vm12, %v14538_v7, %v13182_v22  ;;  %v20811_v22 = vsel %vm21511_vm12, %v14539_v15, %v13189_v2  ;;  %v20818_v46 = vsel %vm21511_vm12, %v13191_v21, %v13192_v4  ;;  %v13203_v7 = vrot.slane %v20787_v27, 5  ;;  %v20825_v15 = vld [vmem:[#allocation4 + $0xd0] sm:$0xf]  ;;  %v20835_v3 = vld [vmem:[#allocation4 + $0xd4] sm:$0x1] }
 0x750   : > { %15800 = vmatprep.mubr.bf16.mxu1 %v20610_v8  ;;  %15829 = vmatpush3.bf16.msra.mxu1 %v20528_v5  ;;  %21528 = vst [vmem:[#allocation33_spill] sm:$0xff] %v20795_v19  ;;  %v20799_v8 = vld [vmem:[#allocation4 + $0xc4] sm:$0xf]  ;;  %21530 = vst [vmem:[#allocation24_spill] sm:$0xff] %v20811_v22  ;;  %v20831_v5 = vsel %vm21511_vm12, %v13198_v60, %v13199_v1  ;;  %v13206_v4 = vrot.slane %v20778_v35, 5  ;;  %v14543_v19 = vrot.slane %v13061_v57, 9 }
 0x751   : > { %15830 = vmatprep.subr.bf16.mxu1 %v16492_v61  ;;  %21531 = vst [vmem:[#allocation25_spill] sm:$0xff] %v20818_v46  ;;  %21532 = vst [vmem:[#allocation40_spill] sm:$0xff] %v20831_v5  ;;  %v13210_v21 = vrot.slane %v20799_v8, 5  ;;  %v13205_v30 = vrot.slane %v13203_v7, 4  ;;  %v13213_v46 = vrot.slane %v20814_v25, 5  ;;  %v13217_v1 = vrot.slane %v20825_v15, 5 }
 0x752   : > { %v13220_v60 = vrot.slane %v20835_v3, 5  ;;  %v12594_v22 = vshrl.u32 %v20673_v43, 16  ;;  %v20846_v38 = vsel %vm21511_vm12, %v14541_v52, %v13203_v7 }
 0x753   : > { %v13212_v2 = vrot.slane %v13210_v21, 4  ;;  %v20850_v44 = vsel %vm21511_vm12, %v13205_v30, %v13206_v4  ;;  %v20854_v57 = vsel %vm21511_vm12, %v14542_v42, %v13210_v21  ;;  %v20865_v7 = vsel %vm21511_vm12, %v14543_v19, %v13217_v1 }
 0x754   : > { %15831 = vmatpush3.bf16.msra.mxu1 %v16492_v61  ;;  %v12322_v61 = vld [vmem:[#allocation4 + $0x90] sm:$0xf]  ;;  %v13219_v52 = vrot.slane %v13217_v1, 4  ;;  %v12539_v42 = vor.u32 %v20649_v9, %v20647_v26  ;;  %v12552_v4 = vshll.u32 %v20715_v11, 16  ;;  %v12549_v19 = vor.u32 %v20669_v20, %v20656_v45 }
 0x755   : > { %15832 = vmatprep.subr.bf16.mxu1 %v16493_v51  ;;  %v20861_v5 = vsel %vm21511_vm12, %v13212_v2, %v13213_v46  ;;  %v21533_v46 = vor.u32 %v20630_v56, %v20628_v55  ;;  %v12560_v30 = vshll.u32 %v12319_v23, 16  ;;  %v21534_v26 = vshll.u32 %v20651_v16, 16 }
 0x756   : > { %v20879_v1 = vsel %vm21511_vm12, %v13219_v52, %v13220_v60  ;;  %v21535_v11 = vshrl.u32 %v20651_v16, 16  ;;  %v12581_v21 = vshrl.u32 %v12322_v61, 16  ;;  %v12497_v20 = vsel %vm21505_vm6, %v20634_v29, %v20572_v39 }
 0x757   : > { %15801 = vmatmul.mubr.bf16.gmra.mrb[64].mxu1 %v20612_v0  ;;  %v12526_v2 = vrot.slane %v21533_v46, 4  ;;  %v20883_v9 = vrot.slane %v21534_v26, 5  ;;  %v21536_v60 = vshll.u32 %v20673_v43, 16  ;;  %v12596_v46 = vrot.slane %v12594_v22, 4 }
 0x758   : > { %15804 = vmatprep.mubr.bf16.mxu1 %v20614_v28  ;;  %15833 = vmatpush3.bf16.msra.mxu1 %v16493_v51  ;;  %v12557_v28 = vshrl.u32 %v12319_v23, 16  ;;  %v16495_v51 = vld [vmem:[#allocation11 + $0x220] sm:$0xff]   ;;  %v12572_v0 = vrot.slane %v21535_v11, 4  ;;  %v12584_v23 = vshll.u32 %v12322_v61, 16  ;;  %v21537_v16 = vsel %vm21505_vm6, %v20592_v62, %v20599_v63  ;;  %v16496_v63 = vld [vmem:[#allocation11 + $0x228] sm:$0xff]  }
 0x759   : > { %15834 = vmatprep.subr.bf16.mxu1 %v16494_v54  ;;  %v20895_v52 = vrot.slane %v21536_v60, 5  ;;  %v21538_v26 = vsel %vm21505_vm6, %v20597_v14, %v20558_v40  ;;  %v21539_v39 = vsel %vm21505_vm6, %v20626_v58, %v20636_v17  ;;  %v21540_v43 = vor.u32 %v20606_v53, %v20604_v41  ;;  %v12325_v62 = vld [vmem:[#allocation4 + $0x9c] sm:$0xf] }
 0x75a   : > { %v14509_v11 = vcombine.low %v21538_v26, %v21537_v16  ;;  %v14510_v29 = vcombine.low %v12497_v20, %v21539_v39  ;;  %v12550_v60 = vrot.slane %v12549_v19, 4  ;;  %v12554_v56 = vrot.slane %v12552_v4, 5 }
 0x75b   : > { %v12516_v22 = vrot.slane %v21540_v43, 4  ;;  %v12559_v40 = vrot.slane %v12557_v28, 4  ;;  %v12562_v14 = vrot.slane %v12560_v30, 5  ;;  %v12540_v58 = vrot.slane %v12539_v42, 4 }
 0x75c   : > { %15835 = vmatpush3.bf16.msra.mxu1 %v16494_v54  ;;  %v21541_v54 = vshll.u32 %v20620_v12, 16  ;;  %v12573_v17 = vor.u32 %v12572_v0, %v20883_v9  ;;  %v12583_v20 = vrot.slane %v12581_v21, 4  ;;  %v12586_v41 = vrot.slane %v12584_v23, 5  ;;  %v16497_v0 = vld [vmem:[#allocation11 + $0x230] sm:$0xff]  }
 0x75d   : > { %15836 = vmatprep.subr.bf16.mxu1 %v16495_v51  ;;  %v12597_v53 = vor.u32 %v12596_v46, %v20895_v52  ;;  %v12605_v12 = vshrl.u32 %v12325_v62, 16  ;;  %v12608_v26 = vshll.u32 %v12325_v62, 16  ;;  %v12521_v4 = vsel %vm21505_vm6, %v12516_v22, %v20628_v55  ;;  %v12328_v23 = vld [vmem:[#allocation4 + $0xa8] sm:$0xf] }
 0x75e   : > { %v12530_v61 = vrot.slane %v21541_v54, 5  ;;  %v12576_v28 = vshll.u32 %v20732_v50, 16  ;;  %v12614_v19 = vshll.u32 %v20742_v47, 16  ;;  %v12618_v42 = vshrl.u32 %v20742_v47, 16 }
 0x75f   : > { %15805 = vmatmul.mubr.bf16.gmra.mrb[68].mxu1 %v14509_v11  ;;  %v12563_v30 = vor.u32 %v12562_v14, %v12559_v40  ;;  %v12574_v46 = vrot.slane %v12573_v17, 4  ;;  %v12600_v55 = vshll.u32 %v20734_v37, 16  ;;  %v12638_v50 = vshll.u32 %v20762_v36, 16 }
 0x760   : > { %v12531_v16 = vsel %vm21505_vm6, %v12526_v2, %v12530_v61  ;;  %15808 = vmatprep.mubr.bf16.mxu1 %v14510_v29  ;;  %15837 = vmatpush3.bf16.msra.mxu1 %v16495_v51  ;;  %v12545_v2 = vsel %vm21505_vm6, %v12540_v58, %v20656_v45  ;;  %v12555_v51 = vsel %vm21505_vm6, %v12550_v60, %v12554_v56  ;;  %v12642_v11 = vshrl.u32 %v20762_v36, 16  ;;  %v16498_v56 = vld [vmem:[#allocation11 + $0x238] sm:$0xff]  }
 0x761   : > { %15838 = vmatprep.subr.bf16.mxu1 %v16496_v63  ;;  %v14511_v21 = vcombine.low %v12521_v4, %v12531_v16  ;;  %v12587_v47 = vor.u32 %v12586_v41, %v12583_v20  ;;  %v12598_v39 = vrot.slane %v12597_v53, 4  ;;  %v12607_v29 = vrot.slane %v12605_v12, 4  ;;  %v12331_v4 = vld [vmem:[#allocation4 + $0xb4] sm:$0xf] }
 0x762   : > { %v12610_v43 = vrot.slane %v12608_v26, 5  ;;  %v20935_v22 = vrot.slane %v12614_v19, 5  ;;  %v12620_v45 = vrot.slane %v12618_v42, 4  ;;  %v12629_v54 = vshrl.u32 %v12328_v23, 16 }
 0x763   : > { %v12632_v61 = vshll.u32 %v12328_v23, 16  ;;  %v14512_v62 = vcombine.low %v12545_v2, %v12555_v51  ;;  %v12578_v60 = vrot.slane %v12576_v28, 5  ;;  %v12564_v37 = vrot.slane %v12563_v30, 4 }
 0x764   : > { %15839 = vmatpush3.bf16.msra.mxu1 %v16496_v63  ;;  %v12602_v40 = vrot.slane %v12600_v55, 5  ;;  %v20937_v14 = vrot.slane %v12638_v50, 5  ;;  %v12644_v36 = vrot.slane %v12642_v11, 4  ;;  %v12588_v63 = vrot.slane %v12587_v47, 4  ;;  %v12337_v11 = vld [vmem:[#allocation4 + $0xcc] sm:$0xf] }
 0x765   : > { %15840 = vmatprep.subr.bf16.mxu1 %v16497_v0  ;;  %v12579_v16 = vsel %vm21505_vm6, %v12574_v46, %v12578_v60  ;;  %v12611_v58 = vor.u32 %v12610_v43, %v12607_v29  ;;  %v12624_v17 = vshll.u32 %v20751_v32, 16  ;;  %v12621_v41 = vor.u32 %v12620_v45, %v20935_v22 }
 0x766   : > { %v12603_v20 = vsel %vm21505_vm6, %v12598_v39, %v12602_v40  ;;  %v12631_v53 = vrot.slane %v12629_v54, 4  ;;  %v12634_v12 = vrot.slane %v12632_v61, 5  ;;  %v12569_v26 = vsel %vm21505_vm6, %v12564_v37, %v20883_v9 }
 0x767   : > { %15809 = vmatmul.mubr.bf16.gmra.mrb[72].mxu1 %v14511_v21  ;;  %v12662_v28 = vshll.u32 %v20787_v27, 16  ;;  %v12666_v19 = vshrl.u32 %v20787_v27, 16  ;;  %v12593_v32 = vsel %vm21505_vm6, %v12588_v63, %v20895_v52  ;;  %v12645_v42 = vor.u32 %v12644_v36, %v20937_v14 }
 0x768   : > { %15812 = vmatprep.mubr.bf16.mxu1 %v14512_v62  ;;  %15841 = vmatpush3.bf16.msra.mxu1 %v16497_v0  ;;  %v12334_v0 = vld [vmem:[#allocation4 + $0xc0] sm:$0xf]  ;;  %v12686_v21 = vshll.u32 %v20799_v8, 16  ;;  %v12690_v2 = vshrl.u32 %v20799_v8, 16  ;;  %v14513_v51 = vcombine.low %v12569_v26, %v12579_v16  ;;  %v14514_v30 = vcombine.low %v12593_v32, %v12603_v20 }
 0x769   : > { %15842 = vmatprep.subr.bf16.mxu1 %v16498_v56  ;;  %v12612_v23 = vrot.slane %v12611_v58, 4  ;;  %v12626_v9 = vrot.slane %v12624_v17, 5  ;;  %v12622_v46 = vrot.slane %v12621_v41, 4  ;;  %v12635_v55 = vor.u32 %v12634_v12, %v12631_v53 }
 0x76a   : > { %v12648_v27 = vshll.u32 %v20764_v33, 16  ;;  %v12653_v50 = vshrl.u32 %v12331_v4, 16  ;;  %v12656_v47 = vshll.u32 %v12331_v4, 16  ;;  %v12664_v52 = vrot.slane %v12662_v28, 5 }
 0x76b   : > { %v12668_v39 = vrot.slane %v12666_v19, 4  ;;  %v12677_v29 = vshrl.u32 %v12334_v0, 16  ;;  %v12646_v43 = vrot.slane %v12645_v42, 4  ;;  %v12680_v45 = vshll.u32 %v12334_v0, 16 }
 0x76c   : > { %15843 = vmatpush3.bf16.msra.mxu1 %v16498_v56  ;;  %v12688_v54 = vrot.slane %v12686_v21, 5  ;;  %v12692_v8 = vrot.slane %v12690_v2, 4  ;;  %v12701_v61 = vshrl.u32 %v12337_v11, 16  ;;  %v12704_v62 = vshll.u32 %v12337_v11, 16 }
 0x76d   : > { %v12710_v56 = vshll.u32 %v20825_v15, 16  ;;  %v12714_v60 = vshrl.u32 %v20825_v15, 16  ;;  %v12617_v33 = vsel %vm21505_vm6, %v12612_v23, %v20935_v22  ;;  %v12627_v37 = vsel %vm21505_vm6, %v12622_v46, %v12626_v9 }
 0x76e   : > { %v12650_v40 = vrot.slane %v12648_v27, 5  ;;  %v12655_v36 = vrot.slane %v12653_v50, 4  ;;  %v12636_v16 = vrot.slane %v12635_v55, 4  ;;  %v12658_v63 = vrot.slane %v12656_v47, 5  ;;  %v16546_v50 = vld [vmem:[#allocation4 + $0x1c] sm:$0xf] }
 0x76f   : > { %15813 = vmatmul.mubr.bf16.gmra.mrb[76].mxu1 %v14513_v51  ;;  %v12669_v58 = vor.u32 %v12668_v39, %v12664_v52  ;;  %v12672_v17 = vshll.u32 %v20778_v35, 16  ;;  %v12679_v41 = vrot.slane %v12677_v29, 4  ;;  %v12682_v53 = vrot.slane %v12680_v45, 5 }
 0x770   : > { %15816 = vmatprep.mubr.bf16.mxu1 %v14514_v30  ;;  %v12651_v20 = vsel %vm21505_vm6, %v12646_v43, %v12650_v40  ;;  %v12693_v15 = vor.u32 %v12692_v8, %v12688_v54  ;;  %v12703_v12 = vrot.slane %v12701_v61, 4  ;;  %v12706_v26 = vrot.slane %v12704_v62, 5 }
 0x771   : > { %v12712_v4 = vrot.slane %v12710_v56, 5  ;;  %v12716_v22 = vrot.slane %v12714_v60, 4  ;;  %v14515_v28 = vcombine.low %v12617_v33, %v12627_v37  ;;  %v12641_v19 = vsel %vm21505_vm6, %v12636_v16, %v20937_v14  ;;  %v13046_v60 = vld [vmem:[#allocation4 + $0x18] sm:$0xe] }
 0x772   : > { %v12696_v32 = vshll.u32 %v20814_v25, 16  ;;  %v14516_v42 = vcombine.low %v12641_v19, %v12651_v20  ;;  %v12659_v0 = vor.u32 %v12658_v63, %v12655_v36  ;;  %v12670_v35 = vrot.slane %v12669_v58, 4  ;;  %v21545_v63 = vld [vmem:[#allocation36_spill] sm:$0xff]  ;;  %v21546_v58 = vld [vmem:[#allocation30_spill] sm:$0xff]  ;;  %v21549_v20 = vld [vmem:[#allocation29_spill] sm:$0xff] }
 0x773   : > { %v12683_v21 = vor.u32 %v12682_v53, %v12679_v41  ;;  %v12694_v2 = vrot.slane %v12693_v15, 4  ;;  %v12674_v51 = vrot.slane %v12672_v17, 5  ;;  %v12707_v30 = vor.u32 %v12706_v26, %v12703_v12  ;;  %v21551_v53 = vld [vmem:[#allocation39_spill] sm:$0xff]  ;;  %v21552_v15 = vld [vmem:[#allocation37_spill] sm:$0xff]  ;;  %v21554_v26 = vld [vmem:[#allocation38_spill] sm:$0xff] }
 0x774   : > { %v12717_v23 = vor.u32 %v12716_v22, %v12712_v4  ;;  %v12720_v9 = vshll.u32 %v20835_v3, 16  ;;  %v12698_v46 = vrot.slane %v12696_v32, 5  ;;  %v12660_v55 = vrot.slane %v12659_v0, 4  ;;  %v21558_v22 = vld [vmem:[#allocation34_spill] sm:$0xff] }
 0x775   : > { %v12675_v27 = vsel %vm21505_vm6, %v12670_v35, %v12674_v51  ;;  %v12684_v14 = vrot.slane %v12683_v21, 4  ;;  %v13112_v11 = vrot.slane %v16546_v50, 5  ;;  %v12708_v39 = vrot.slane %v12707_v30, 4  ;;  %v21560_v35 = vld [vmem:[#allocation26_spill] sm:$0xff]  ;;  %v21561_v21 = vld [vmem:[#allocation27_spill] sm:$0xff]  ;;  %v21563_v51 = vld [vmem:[#allocation33_spill] sm:$0xff] }
 0x776   : > { %v12699_v25 = vsel %vm21505_vm6, %v12694_v2, %v12698_v46  ;;  %v12665_v47 = vsel %vm21505_vm6, %v12660_v55, %v12664_v52  ;;  %v12718_v29 = vrot.slane %v12717_v23, 4  ;;  %v12722_v43 = vrot.slane %v12720_v9, 5  ;;  %v21564_v30 = vld [vmem:[#allocation35_spill] sm:$0xff] }
 0x777   : > { %15817 = vmatmul.mubr.bf16.gmra.mrb[80].mxu1 %v14515_v28  ;;  %v14517_v45 = vcombine.low %v12665_v47, %v12675_v27  ;;  %v12689_v3 = vsel %vm21505_vm6, %v12684_v14, %v12688_v54  ;;  %v13114_v61 = vrot.slane %v13112_v11, 4  ;;  %v12713_v62 = vsel %vm21505_vm6, %v12708_v39, %v12712_v4  ;;  %v21555_v4 = vld [vmem:[#allocation32_spill] sm:$0xff] }
 0x778   : > { %15820 = vmatprep.mubr.bf16.mxu1 %v14516_v42  ;;  %v14518_v8 = vcombine.low %v12689_v3, %v12699_v25  ;;  %v12723_v56 = vsel %vm21505_vm6, %v12718_v29, %v12722_v43  ;;  %v13115_v52 = vrot.slane %v20492_v24, 5  ;;  %v14528_v37 = vrot.slane %v13046_v60, 9  ;;  %v21566_v14 = vld [vmem:[#allocation24_spill] sm:$0xff]  ;;  %v21567_v25 = vld [vmem:[#allocation25_spill] sm:$0xff] }
 0x779   : > { %v14519_v33 = vcombine.low %v12713_v62, %v12723_v56  ;;  %v21542_v16 = vcombine.low %v20660_v18, %v20664_v10  ;;  %v21544_v24 = vcombine.low %v20691_v49, %v20696_v31  ;;  %v21547_v17 = vcombine.low %v21545_v63, %v21546_v58  ;;  %v21557_v31 = vld [vmem:[#allocation28_spill] sm:$0xff]  ;;  %v21092_v58 = vld [vmem:[%s21263_s9] ss:$0 sm:$0xff] }
 0x77a   : > { %v13116_v40 = vsel %vm21511_vm12, %v13114_v61, %v13115_v52  ;;  %v13113_v54 = vsel %vm21511_vm12, %v14528_v37, %v13112_v11  ;;  %v21550_v41 = vcombine.low %v21548_v34, %v21549_v20  ;;  %v21553_v18 = vcombine.low %v21551_v53, %v21552_v15  ;;  %v21569_v11 = vld [vmem:[#allocation40_spill] sm:$0xff] }
 0x77b   : > { %v14544_v36 = vcombine.low %v13113_v54, %v13116_v40  ;;  %v21556_v49 = vcombine.low %v21554_v26, %v21555_v4  ;;  %v21559_v28 = vcombine.low %v21557_v31, %v21558_v22  ;;  %v21562_v2 = vcombine.low %v21560_v35, %v21561_v21 }
 0x77c   : > { %v21565_v23 = vcombine.low %v21563_v51, %v21564_v30  ;;  %v21568_v50 = vcombine.low %v21566_v14, %v21567_v25  ;;  %v21570_v47 = vcombine.low %v20822_v59, %v21569_v11  ;;  %v21571_v3 = vcombine.low %v20846_v38, %v20850_v44 }
 0x77d   : > { %v21573_v60 = vcombine.low %v20865_v7, %v20879_v1 }
 0x77f   : > { %15821 = vmatmul.mubr.bf16.gmra.mrb[84].mxu1 %v14517_v45 }
 0x780   : > { %15824 = vmatprep.mubr.bf16.mxu1 %v14518_v8  ;;  %v21572_v8 = vcombine.low %v20854_v57, %v20861_v5 }
 0x787   : > { %15825 = vmatmul.mubr.bf16.gmra.mrb[88].mxu1 %v14519_v33 }
 0x788   : > { %15844 = vmatprep.mubr.bf16.mxu1 %v14544_v36 }
 0x78f   : > { %15845 = vmatmul.mubr.bf16.vlgmr.msra.gmra.mrb[60].mxu1 %v21542_v16 }
 0x790   : > { %15848 = vmatprep.mubr.bf16.mxu1 %v21543_v48  ;;  %v21087_v48 = vld [vmem:[%s21262_s8] ss:$0 sm:$0xff] }
 0x797   : > { %15849 = vmatmul.mubr.bf16.gmra.mrb[64].mxu1 %v21544_v24 }
 0x798   : > { %15852 = vmatprep.mubr.bf16.mxu1 %v21547_v17 }
 0x79f   : > { %15853 = vmatmul.mubr.bf16.gmra.mrb[68].mxu1 %v21550_v41 }
 0x7a0   : > { %15856 = vmatprep.mubr.bf16.mxu1 %v21553_v18 }
 0x7a1   : > { %v15558_v10 = vpop.f32.mrb[12].mxu0 }
 0x7a2   : > { %v10108_v12 = vpop.f32.mrb[13].mxu0 }
 0x7a3   : > { %v15559_v13 = vpop.f32.mrb[14].mxu0 }
 0x7a4   : > { %v10111_v6 = vpop.f32.mrb[15].mxu0 }
 0x7a7   : > { %15857 = vmatmul.mubr.bf16.gmra.mrb[72].mxu1 %v21556_v49 }
 0x7a8   : > { %15860 = vmatprep.mubr.bf16.mxu1 %v21559_v28 }
 0x7a9   : > { %v15562_v19 = vpop.f32.mrb[16].mxu0 }
 0x7aa   : > { %v10124_v32 = vpop.f32.mrb[17].mxu0 }
 0x7ab   : > { %v15563_v42 = vpop.f32.mrb[18].mxu0 }
 0x7ac   : > { %v21013_v0 = vpop.f32.mrb[19].mxu0 }
 0x7af   : > { %15861 = vmatmul.mubr.bf16.gmra.mrb[76].mxu1 %v21562_v2 }
 0x7b0   : > { %15864 = vmatprep.mubr.bf16.mxu1 %v21565_v23 }
 0x7b1   : > { %v21021_v9 = vpop.f32.mrb[20].mxu0 }
 0x7b2   : > { %v21023_v46 = vpop.f32.mrb[21].mxu0 }
 0x7b3   : > { %v21025_v55 = vpop.f32.mrb[22].mxu0 }
 0x7b4   : > { %v21027_v27 = vpop.f32.mrb[23].mxu0 }
 0x7b7   : > { %15865 = vmatmul.mubr.bf16.gmra.mrb[80].mxu1 %v21568_v50 }
 0x7b8   : > { %15868 = vmatprep.mubr.bf16.mxu1 %v21570_v47 }
 0x7b9   : > { %v21035_v39 = vpop.f32.mrb[24].mxu0 }
 0x7ba   : > { %v21037_v29 = vpop.f32.mrb[25].mxu0 }
 0x7bb   : > { %v21039_v43 = vpop.f32.mrb[26].mxu0 }
 0x7bc   : > { %v21041_v45 = vpop.f32.mrb[27].mxu0 }
 0x7bf   : > { %15869 = vmatmul.mubr.bf16.gmra.mrb[84].mxu1 %v21571_v3 }
 0x7c0   : > { %15872 = vmatprep.mubr.bf16.mxu1 %v21572_v8 }
 0x7c1   : > { %v21049_v61 = vpop.f32.mrb[28].mxu0 }
 0x7c2   : > { %v21051_v59 = vpop.f32.mrb[29].mxu0 }
 0x7c3   : > { %v21053_v62 = vpop.f32.mrb[30].mxu0 }
 0x7c4   : > { %v21055_v56 = vpop.f32.mrb[31].mxu0 }
 0x7c7   : > { %15873 = vmatmul.mubr.bf16.gmra.mrb[88].mxu1 %v21573_v60 }
 0x7c9   : > { %v21060_v52 = vpop.f32.mrb[32].mxu0 }
 0x7ca   : > { %v21062_v38 = vpop.f32.mrb[33].mxu0 }
 0x7cb   : > { %v21064_v44 = vpop.f32.mrb[34].mxu0 }
 0x7cc   : > { %v21066_v5 = vpop.f32.mrb[35].mxu0 }
 0x7d1   : > { %v21068_v57 = vpop.f32.mrb[36].mxu0 }
 0x7d2   : > { %v21070_v33 = vpop.f32.mrb[37].mxu0 }
 0x7d3   : > { %v21072_v37 = vpop.f32.mrb[38].mxu0 }
 0x7d4   : > { %v21074_v40 = vpop.f32.mrb[39].mxu0 }
 0x7d9   : > { %v21076_v54 = vpop.f32.mrb[40].mxu0 }
 0x7da   : > { %v21078_v7 = vpop.f32.mrb[41].mxu0 }
 0x7db   : > { %v21080_v1 = vpop.f32.mrb[42].mxu0 }
 0x7dc   : > { %v21082_v36 = vpop.f32.mrb[43].mxu0 }
 0x862   : > { %v15846_v16 = vpop.f32.mrb[60].mxu1 }
 0x863   : > { %v15876_v24 = vadd.f32 %v15846_v16, %v15558_v10  ;;  %v13385_v63 = vpop.f32.mrb[61].mxu1 }
 0x864   : > { %v15877_v17 = vadd.f32 %v13385_v63, %v10108_v12  ;;  %v15847_v34 = vpop.f32.mrb[62].mxu1 }
 0x865   : > { %v13553_v20 = vmul.f32 %v15876_v24, %v21087_v48  ;;  %v15878_v41 = vadd.f32 %v15847_v34, %v15559_v13  ;;  %v13388_v53 = vpop.f32.mrb[63].mxu1 }
 0x866   : > { %v13551_v15 = vmul.f32 %v15877_v17, %v21087_v48  ;;  %v15879_v18 = vadd.f32 %v13388_v53, %v10111_v6 }
 0x867   : > { %v13592_v26 = vadd.f32 %v21092_v58, %v13553_v20  ;;  %v13554_v4 = vmul.f32 %v15878_v41, %v21087_v48 }
 0x868   : > { %v13590_v10 = vadd.f32 %v21092_v58, %v13551_v15  ;;  %v13552_v49 = vmul.f32 %v15879_v18, %v21087_v48 }
 0x869   : > { %v13593_v31 = vadd.f32 %v21092_v58, %v13554_v4  ;;  %v13624_v28 = vmax.f32 %v13592_v26, 0.0 }
 0x86a   : > { %v13591_v12 = vadd.f32 %v21092_v58, %v13552_v49  ;;  %v15850_v22 = vpop.f32.mrb[64].mxu1  ;;  %v13622_v2 = vmax.f32 %v13590_v10, 0.0 }
 0x86b   : > { %v13625_v13 = vmax.f32 %v13593_v31, 0.0  ;;  %v15880_v35 = vadd.f32 %v15850_v22, %v15562_v19  ;;  %v13401_v21 = vpop.f32.mrb[65].mxu1 }
 0x86c   : > { %v13623_v6 = vmax.f32 %v13591_v12, 0.0  ;;  %v15881_v51 = vadd.f32 %v13401_v21, %v10124_v32  ;;  %v15851_v30 = vpop.f32.mrb[66].mxu1 }
 0x86d   : > { %v14738_v23 = vpack.c.bf16 %v13625_v13, %v13624_v28  ;;  %v13557_v14 = vmul.f32 %v15880_v35, %v21087_v48  ;;  %v15882_v25 = vadd.f32 %v15851_v30, %v15563_v42  ;;  %v13404_v50 = vpop.f32.mrb[67].mxu1 }
 0x86e   : > { %v14733_v11 = vpack.c.bf16 %v13623_v6, %v13622_v2  ;;  %v13555_v47 = vmul.f32 %v15881_v51, %v21087_v48  ;;  %v15883_v3 = vadd.f32 %v13404_v50, %v21013_v0 }
 0x86f   : > { %14825 = vst [vmem:[%s21107_s2 + $0x8] sm:$0xff] %v14738_v23   ;;  %v13596_v19 = vadd.f32 %v21092_v58, %v13557_v14  ;;  %v13558_v32 = vmul.f32 %v15882_v25, %v21087_v48 }
 0x870   : > { %14734 = vst [vmem:[%s21107_s2] sm:$0xff] %v14733_v11   ;;  %v13594_v8 = vadd.f32 %v21092_v58, %v13555_v47  ;;  %v13556_v42 = vmul.f32 %v15883_v3, %v21087_v48 }
 0x871   : > { %v13597_v60 = vadd.f32 %v21092_v58, %v13558_v32  ;;  %v13628_v24 = vmax.f32 %v13596_v19, 0.0 }
 0x872   : > { %v13595_v16 = vadd.f32 %v21092_v58, %v13556_v42  ;;  %v15854_v0 = vpop.f32.mrb[68].mxu1  ;;  %v13626_v20 = vmax.f32 %v13594_v8, 0.0 }
 0x873   : > { %v13629_v63 = vmax.f32 %v13597_v60, 0.0  ;;  %v15884_v17 = vadd.f32 %v15854_v0, %v21021_v9  ;;  %v13417_v34 = vpop.f32.mrb[69].mxu1 }
 0x874   : > { %v13627_v41 = vmax.f32 %v13595_v16, 0.0  ;;  %v15885_v53 = vadd.f32 %v13417_v34, %v21023_v46  ;;  %v15855_v15 = vpop.f32.mrb[70].mxu1 }
 0x875   : > { %v14748_v18 = vpack.c.bf16 %v13629_v63, %v13628_v24  ;;  %v13561_v26 = vmul.f32 %v15884_v17, %v21087_v48  ;;  %v15886_v4 = vadd.f32 %v15855_v15, %v21025_v55  ;;  %v13420_v10 = vpop.f32.mrb[71].mxu1 }
 0x876   : > { %v14743_v49 = vpack.c.bf16 %v13627_v41, %v13626_v20  ;;  %v13559_v31 = vmul.f32 %v15885_v53, %v21087_v48  ;;  %v15887_v12 = vadd.f32 %v13420_v10, %v21027_v27 }
 0x877   : > { %14827 = vst [vmem:[%s21107_s2 + $0x18] sm:$0xff] %v14748_v18   ;;  %v13600_v9 = vadd.f32 %v21092_v58, %v13561_v26  ;;  %v13562_v22 = vmul.f32 %v15886_v4, %v21087_v48 }
 0x878   : > { %14826 = vst [vmem:[%s21107_s2 + $0x10] sm:$0xff] %v14743_v49   ;;  %v13598_v46 = vadd.f32 %v21092_v58, %v13559_v31  ;;  %v13560_v28 = vmul.f32 %v15887_v12, %v21087_v48 }
 0x879   : > { %v13601_v13 = vadd.f32 %v21092_v58, %v13562_v22  ;;  %v13632_v21 = vmax.f32 %v13600_v9, 0.0 }
 0x87a   : > { %v13599_v55 = vadd.f32 %v21092_v58, %v13560_v28  ;;  %v15858_v35 = vpop.f32.mrb[72].mxu1  ;;  %v13630_v51 = vmax.f32 %v13598_v46, 0.0 }
 0x87b   : > { %v13633_v2 = vmax.f32 %v13601_v13, 0.0  ;;  %v15888_v27 = vadd.f32 %v15858_v35, %v21035_v39  ;;  %v13433_v6 = vpop.f32.mrb[73].mxu1 }
 0x87c   : > { %v13631_v30 = vmax.f32 %v13599_v55, 0.0  ;;  %v15889_v23 = vadd.f32 %v13433_v6, %v21037_v29  ;;  %v15859_v14 = vpop.f32.mrb[74].mxu1 }
 0x87d   : > { %v14758_v25 = vpack.c.bf16 %v13633_v2, %v13632_v21  ;;  %v13565_v50 = vmul.f32 %v15888_v27, %v21087_v48  ;;  %v15890_v11 = vadd.f32 %v15859_v14, %v21039_v43  ;;  %v13436_v47 = vpop.f32.mrb[75].mxu1 }
 0x87e   : > { %v14753_v3 = vpack.c.bf16 %v13631_v30, %v13630_v51  ;;  %v13563_v19 = vmul.f32 %v15889_v23, %v21087_v48  ;;  %v15891_v32 = vadd.f32 %v13436_v47, %v21041_v45 }
 0x87f   : > { %14829 = vst [vmem:[%s21107_s2 + $0x28] sm:$0xff] %v14758_v25   ;;  %v13604_v39 = vadd.f32 %v21092_v58, %v13565_v50  ;;  %v13566_v8 = vmul.f32 %v15890_v11, %v21087_v48 }
 0x880   : > { %14828 = vst [vmem:[%s21107_s2 + $0x20] sm:$0xff] %v14753_v3   ;;  %v13602_v29 = vadd.f32 %v21092_v58, %v13563_v19  ;;  %v13564_v42 = vmul.f32 %v15891_v32, %v21087_v48 }
 0x881   : > { %v13605_v60 = vadd.f32 %v21092_v58, %v13566_v8  ;;  %v13636_v0 = vmax.f32 %v13604_v39, 0.0 }
 0x882   : > { %v13603_v43 = vadd.f32 %v21092_v58, %v13564_v42  ;;  %v15862_v16 = vpop.f32.mrb[76].mxu1  ;;  %v13634_v17 = vmax.f32 %v13602_v29, 0.0 }
 0x883   : > { %v13637_v24 = vmax.f32 %v13605_v60, 0.0  ;;  %v15892_v45 = vadd.f32 %v15862_v16, %v21049_v61  ;;  %v13449_v63 = vpop.f32.mrb[77].mxu1 }
 0x884   : > { %v13635_v34 = vmax.f32 %v13603_v43, 0.0  ;;  %v15893_v20 = vadd.f32 %v13449_v63, %v21051_v59  ;;  %v15863_v41 = vpop.f32.mrb[78].mxu1 }
 0x885   : > { %v14768_v53 = vpack.c.bf16 %v13637_v24, %v13636_v0  ;;  %v13569_v15 = vmul.f32 %v15892_v45, %v21087_v48  ;;  %v15894_v18 = vadd.f32 %v15863_v41, %v21053_v62  ;;  %v13452_v26 = vpop.f32.mrb[79].mxu1 }
 0x886   : > { %v14763_v4 = vpack.c.bf16 %v13635_v34, %v13634_v17  ;;  %v13567_v10 = vmul.f32 %v15893_v20, %v21087_v48  ;;  %v15895_v49 = vadd.f32 %v13452_v26, %v21055_v56 }
 0x887   : > { %14831 = vst [vmem:[%s21107_s2 + $0x38] sm:$0xff] %v14768_v53   ;;  %v13608_v61 = vadd.f32 %v21092_v58, %v13569_v15  ;;  %v13570_v31 = vmul.f32 %v15894_v18, %v21087_v48 }
 0x888   : > { %14830 = vst [vmem:[%s21107_s2 + $0x30] sm:$0xff] %v14763_v4   ;;  %v13606_v59 = vadd.f32 %v21092_v58, %v13567_v10  ;;  %v13568_v12 = vmul.f32 %v15895_v49, %v21087_v48 }
 0x889   : > { %v13609_v9 = vadd.f32 %v21092_v58, %v13570_v31  ;;  %v13640_v46 = vmax.f32 %v13608_v61, 0.0 }
 0x88a   : > { %v13607_v62 = vadd.f32 %v21092_v58, %v13568_v12  ;;  %v15866_v22 = vpop.f32.mrb[80].mxu1  ;;  %v13638_v55 = vmax.f32 %v13606_v59, 0.0 }
 0x88b   : > { %v13641_v28 = vmax.f32 %v13609_v9, 0.0  ;;  %v15896_v56 = vadd.f32 %v15866_v22, %v21060_v52  ;;  %v13465_v13 = vpop.f32.mrb[81].mxu1 }
 0x88c   : > { %v13639_v35 = vmax.f32 %v13607_v62, 0.0  ;;  %v15897_v21 = vadd.f32 %v13465_v13, %v21062_v38  ;;  %v15867_v2 = vpop.f32.mrb[82].mxu1 }
 0x88d   : > { %v14778_v27 = vpack.c.bf16 %v13641_v28, %v13640_v46  ;;  %v13573_v6 = vmul.f32 %v15896_v56, %v21087_v48  ;;  %v15898_v51 = vadd.f32 %v15867_v2, %v21064_v44  ;;  %v13468_v30 = vpop.f32.mrb[83].mxu1 }
 0x88e   : > { %v14773_v23 = vpack.c.bf16 %v13639_v35, %v13638_v55  ;;  %v13571_v14 = vmul.f32 %v15897_v21, %v21087_v48  ;;  %v15899_v25 = vadd.f32 %v13468_v30, %v21066_v5 }
 0x88f   : > { %14833 = vst [vmem:[%s21107_s2 + $0x48] sm:$0xff] %v14778_v27   ;;  %v13612_v52 = vadd.f32 %v21092_v58, %v13573_v6  ;;  %v13574_v50 = vmul.f32 %v15898_v51, %v21087_v48 }
 0x890   : > { %14832 = vst [vmem:[%s21107_s2 + $0x40] sm:$0xff] %v14773_v23   ;;  %v13610_v38 = vadd.f32 %v21092_v58, %v13571_v14  ;;  %v13572_v11 = vmul.f32 %v15899_v25, %v21087_v48 }
 0x891   : > { %v13613_v47 = vadd.f32 %v21092_v58, %v13574_v50  ;;  %v13644_v19 = vmax.f32 %v13612_v52, 0.0 }
 0x892   : > { %v13611_v44 = vadd.f32 %v21092_v58, %v13572_v11  ;;  %v15870_v3 = vpop.f32.mrb[84].mxu1  ;;  %v13642_v8 = vmax.f32 %v13610_v38, 0.0 }
 0x893   : > { %v13645_v32 = vmax.f32 %v13613_v47, 0.0  ;;  %v15900_v5 = vadd.f32 %v15870_v3, %v21068_v57  ;;  %v13481_v39 = vpop.f32.mrb[85].mxu1 }
 0x894   : > { %v13643_v29 = vmax.f32 %v13611_v44, 0.0  ;;  %v15901_v42 = vadd.f32 %v13481_v39, %v21070_v33  ;;  %v15871_v60 = vpop.f32.mrb[86].mxu1 }
 0x895   : > { %v14788_v43 = vpack.c.bf16 %v13645_v32, %v13644_v19  ;;  %v13577_v16 = vmul.f32 %v15900_v5, %v21087_v48  ;;  %v15902_v0 = vadd.f32 %v15871_v60, %v21072_v37  ;;  %v13484_v24 = vpop.f32.mrb[87].mxu1 }
 0x896   : > { %v14783_v45 = vpack.c.bf16 %v13643_v29, %v13642_v8  ;;  %v13575_v63 = vmul.f32 %v15901_v42, %v21087_v48  ;;  %v15903_v17 = vadd.f32 %v13484_v24, %v21074_v40 }
 0x897   : > { %14835 = vst [vmem:[%s21107_s2 + $0x58] sm:$0xff] %v14788_v43   ;;  %v13616_v57 = vadd.f32 %v21092_v58, %v13577_v16  ;;  %v13578_v34 = vmul.f32 %v15902_v0, %v21087_v48 }
 0x898   : > { %14834 = vst [vmem:[%s21107_s2 + $0x50] sm:$0xff] %v14783_v45   ;;  %v13614_v33 = vadd.f32 %v21092_v58, %v13575_v63  ;;  %v13576_v20 = vmul.f32 %v15903_v17, %v21087_v48 }
 0x899   : > { %v13617_v41 = vadd.f32 %v21092_v58, %v13578_v34  ;;  %v13648_v15 = vmax.f32 %v13616_v57, 0.0 }
 0x89a   : > { %v13615_v37 = vadd.f32 %v21092_v58, %v13576_v20  ;;  %v15874_v53 = vpop.f32.mrb[88].mxu1  ;;  %v13646_v4 = vmax.f32 %v13614_v33, 0.0 }
 0x89b   : > { %v13649_v18 = vmax.f32 %v13617_v41, 0.0  ;;  %v15904_v40 = vadd.f32 %v15874_v53, %v21076_v54  ;;  %v13497_v26 = vpop.f32.mrb[89].mxu1 }
 0x89c   : > { %v13647_v10 = vmax.f32 %v13615_v37, 0.0  ;;  %v15905_v49 = vadd.f32 %v13497_v26, %v21078_v7  ;;  %v15875_v61 = vpop.f32.mrb[90].mxu1 }
 0x89d   : > { %v14798_v31 = vpack.c.bf16 %v13649_v18, %v13648_v15  ;;  %v13581_v59 = vmul.f32 %v15904_v40, %v21087_v48  ;;  %v15906_v12 = vadd.f32 %v15875_v61, %v21080_v1  ;;  %v13500_v9 = vpop.f32.mrb[91].mxu1 }
 0x89e   : > { %v14793_v62 = vpack.c.bf16 %v13647_v10, %v13646_v4  ;;  %v13579_v22 = vmul.f32 %v15905_v49, %v21087_v48  ;;  %v15907_v54 = vadd.f32 %v13500_v9, %v21082_v36 }
 0x89f   : > { %14837 = vst [vmem:[%s21107_s2 + $0x68] sm:$0xff] %v14798_v31   ;;  %v13620_v46 = vadd.f32 %v21092_v58, %v13581_v59  ;;  %v13582_v28 = vmul.f32 %v15906_v12, %v21087_v48 }
 0x8a0   : > { %14836 = vst [vmem:[%s21107_s2 + $0x60] sm:$0xff] %v14793_v62   ;;  %v13618_v7 = vadd.f32 %v21092_v58, %v13579_v22  ;;  %v13580_v56 = vmul.f32 %v15907_v54, %v21087_v48 }
 0x8a1   : > { %v13621_v1 = vadd.f32 %v21092_v58, %v13582_v28  ;;  %v13652_v36 = vmax.f32 %v13620_v46, 0.0 }
 0x8a2   : > { %v13619_v13 = vadd.f32 %v21092_v58, %v13580_v56  ;;  %v13650_v35 = vmax.f32 %v13618_v7, 0.0 }
 0x8a3   : > { %v13653_v55 = vmax.f32 %v13621_v1, 0.0 }
 0x8a4   : > { %v13651_v21 = vmax.f32 %v13619_v13, 0.0 }
 0x8a5   : > { %v14808_v2 = vpack.c.bf16 %v13653_v55, %v13652_v36 }
 0x8a6   : > { %v14803_v48 = vpack.c.bf16 %v13651_v21, %v13650_v35 }
 0x8a7   : > { %14839 = vst [vmem:[%s21107_s2 + $0x78] sm:$0xff] %v14808_v2  }
 0x8a8   : > { %14838 = vst [vmem:[%s21107_s2 + $0x70] sm:$0xff] %v14803_v48  }
 0x8a9   : > { %16676 = shalt.err (!%p16673_p7)
}
 0x8aa   : > { %s16677_s12 = scalar_lea.hbm %s21206_s29, 2048  ;;  %s16681_s27 = scalar_lea.hbm %s21264_s10, 4096 }
 0x8ab   : > { %p16678_p9 = scmp.ne.s32.totalorder %s21206_s29, %s16677_s12  ;;  %p16682_p11 = scmp.lt.u32.totalorder %s21206_s29, %s21264_s10 }
 0x8ac   : > { %p16683_p2 = scmp.lt.u32.totalorder %s16681_s27, %s16677_s12  ;;  %p16685_p1 = scmp.lt.u32.totalorder %s16677_s12, %s21206_s29 }
 0x8ad   : > { %p16679_p0 = pnand %p16678_p9, %p21574_p13 }
 0x8ae   : > { %p16684_p12 = por %p16683_p2, %p16682_p11 }
 0x8af   : > { %p16680_p8 = pneg %p16679_p0 }
 0x8b0   : > { %p16686_p6 = por %p16685_p1, %p16684_p12 }
 0x8b2   : > { %p16687_p10 = pnand %p16686_p6, %p16680_p8 }
 0x8b4   : > { %16690 = shalt.err (!%p16687_p10)
}
 0x8b5   : > { %s16755_s25 = smov 64   ;;  %s16756_s7 = smov 4  }
 0x8b6   : > { %16208 = dma.vmem_to_hbm [thread:$0]  (%p21574_p13), %s21208_s0, 2048, %s21206_s29, %s13815_s17, %s16755_s25, %s16755_s25, %s16756_s7  }
 0x8b7 PF: > { %s21575_s2 = sld [smem:[#allocation19_spill]]  ;;  %s21576_s13 = sld [smem:[#allocation21_spill]] }
 0x8b8   : > { %p21578_p5 = scmp.ge.s32.totalorder %s16741_s16, 2 }
 0x8bd   : > { %s13843_s15 = sand.u32 1, %s21575_s2   ;;  %p21577_p4 = scmp.ne.s32.totalorder %s21576_s13, 0 }
 0x8be   : > { %s13844_s21 = scalar_lea.sflag [#allocation7], %s13843_s15 }
 0x8bf   : > { %p16225_p3 = pnand %p21578_p5, %p21577_p4 }
 0x8c1   : > { %16724 = dma.done.wait (!%p16225_p3), %s13844_s21, 2048  }
 0x8c2   : > { %16726 = vsyncadd (!%p16225_p3), %s13844_s21, 4294965248  ;;  %s21579_s16 = sld [smem:[#allocation22_spill]]  ;;  %s21580_s19 = sld [smem:[#allocation20_spill]] }
 0x8c3   : > { %s21581_s15 = sld [smem:[#allocation23_spill]]  ;;  %s21582_s13 = smov %s16733_s14 }
 0x8c8   : > { %p27_p7 = scmp.ge.s32.totalorder %s21579_s16, 4   ;;  %s21583_s14 = smov %s21580_s19 }
 0x8ca   :  { %29 = sbr.rel (!%p27_p7) target bundleno = 12 (0xc), region = 148 }
 0x8d1   :  { %13849 = vsyncpa [#allocation6], 1 }
 0x8d2   :  { %13851 = vsyncpa [#allocation6 + $0x1], 1 }
 0x8d3   :  { %13852 = vsyncpa [#allocation9], 1 }
 0x8d4   :  { %13854 = vsyncpa [#allocation9 + $0x1], 1 }
 0x8d5   :  { %13855 = vsyncpa [#allocation12], 1 }
 0x8d6   :  { %13856 = vsyncpa [#allocation7], 1 }
 0x8d7   :  { %13858 = vsyncpa [#allocation7 + $0x1], 1 }

</bundles_post_ra>
